<compile_context>
chip_gen: v6e
topology: v6e:2x2x1
jax: 0.10.0
libtpu: 0.0.40
codegen_flags: <defaults>
</compile_context>

<pallas_src>
import jax
import jax.numpy as jnp
from jax import lax
from jax.experimental import pallas as pl
from jax.experimental.pallas import tpu as pltpu

K_MAX = 39            # largest ConvTranspose1d kernel size
PAD = K_MAX // 2      # 19
EPS = 1e-5            # BatchNorm1d eps


# ----------------------------------------------------------------------------
# In-kernel core: fused [3x ConvTranspose1d -> concat -> 1x1 bottleneck]
# (single im2col matmul) + [1x1 conv_to_maxpool -> MaxUnpool1d(3,1,1)] + add.
# `a` is the (L, Cin) activated input of this layer, `idx` the (L, Cout) int32
# unpool indices.  Returns the pre-BatchNorm signal s = BN_pre + MUP.
# ----------------------------------------------------------------------------
def _inception_core(a, idx, weff_ref, wmp_ref,
                    xpad_scr, im2col_scr, zpad_scr, ipad_scr):
    L, cin = a.shape
    cout = wmp_ref.shape[1]

    # --- zero-haloed staging buffer (handles the K_MAX-1 halo in VMEM) -------
    xpad_scr[...] = jnp.zeros(xpad_scr.shape, jnp.float32)
    xpad_scr[PAD:PAD + L, :] = a

    # --- build (L, K_MAX*cin) im2col slab, statically unrolled ---------------
    # column block j holds xpad[t + K_MAX - 1 - j], matching Weff row block j.
    for j in range(K_MAX):
        start = K_MAX - 1 - j
        im2col_scr[:, j * cin:(j + 1) * cin] = xpad_scr[start:start + L, :]

    # --- ONE MXU matmul for the fused 39-tap conv ----------------------------
    bn_pre = jnp.dot(im2col_scr[...], weff_ref[...],
                     preferred_element_type=jnp.float32)

    # --- conv_to_maxpool (1x1) -----------------------------------------------
    z4 = jnp.dot(a, wmp_ref[...], preferred_element_type=jnp.float32)

    # --- MaxUnpool1d(k=3, s=1, p=1): 3-candidate select ----------------------
    # Indices from MaxPool1d(3,1,1) satisfy |idx[t]-t| <= 1, so output row p can
    # only receive from t in {p-1, p, p+1}.  Candidates are applied in
    # increasing-t order so the largest t wins on duplicates (PyTorch CPU order).
    zpad_scr[...] = jnp.zeros(zpad_scr.shape, jnp.float32)
    ipad_scr[...] = jnp.full(ipad_scr.shape, -1, jnp.int32)   # -1 never matches
    zpad_scr[1:L + 1, :] = z4
    ipad_scr[1:L + 1, :] = idx

    pos = lax.broadcasted_iota(jnp.int32, (L, cout), 0)
    mup = jnp.where(ipad_scr[0:L, :] == pos, zpad_scr[0:L, :], 0.0)       # t=p-1
    mup = jnp.where(idx == pos, z4, mup)                                  # t=p
    mup = jnp.where(ipad_scr[2:L + 2, :] == pos, zpad_scr[2:L + 2, :], mup)  # t=p+1

    return bn_pre + mup


# Layer 1 kernel: raw x in, pre-BN signal + BN partial sums out, plus the fused
# residual 1x1 ConvTranspose1d (+bias) and its BN partial sums (same x read).
def _layer1_kernel(x_ref, idx_ref, weff_ref, wmp_ref, wres_ref, bres_ref,
                   s_ref, sum_ref, ssq_ref, r_ref, rsum_ref, rssq_ref,
                   xpad_scr, im2col_scr, zpad_scr, ipad_scr):
    x = x_ref[0]                                   # (L, cin)
    s = _inception_core(x, idx_ref[0], weff_ref, wmp_ref,
                        xpad_scr, im2col_scr, zpad_scr, ipad_scr)
    s_ref[0] = s
    sum_ref[0] = jnp.sum(s, axis=0, keepdims=True)
    ssq_ref[0] = jnp.sum(s * s, axis=0, keepdims=True)

    r = jnp.dot(x, wres_ref[...], preferred_element_type=jnp.float32) + bres_ref[...]
    r_ref[0] = r
    rsum_ref[0] = jnp.sum(r, axis=0, keepdims=True)
    rssq_ref[0] = jnp.sum(r * r, axis=0, keepdims=True)


# Layer 2 / 3 kernel: previous layer's BatchNorm + ReLU fused into the input
# read (scale/shift precomputed in glue), then the same core.
def _layer_kernel(sprev_ref, scale_ref, shift_ref, idx_ref, weff_ref, wmp_ref,
                  s_ref, sum_ref, ssq_ref,
                  xpad_scr, im2col_scr, zpad_scr, ipad_scr):
    a = jnp.maximum(sprev_ref[0] * scale_ref[0] + shift_ref[0], 0.0)   # (L, cin)
    s = _inception_core(a, idx_ref[0], weff_ref, wmp_ref,
                        xpad_scr, im2col_scr, zpad_scr, ipad_scr)
    s_ref[0] = s
    sum_ref[0] = jnp.sum(s, axis=0, keepdims=True)
    ssq_ref[0] = jnp.sum(s * s, axis=0, keepdims=True)


# Final kernel: out = relu( relu(BN3(s3)) + BN_res(r) )  (layer-3 BN+ReLU merged)
def _final_kernel(s3_ref, sc3_ref, sh3_ref, r_ref, scr_ref, shr_ref, o_ref):
    z = jnp.maximum(s3_ref[...] * sc3_ref[...] + sh3_ref[...], 0.0)
    o_ref[...] = jnp.maximum(z + r_ref[...] * scr_ref[...] + shr_ref[...], 0.0)


# ----------------------------------------------------------------------------
# Wrappers
# ----------------------------------------------------------------------------
def _bn_scale_shift(ssum, ssq, gamma, beta, cnt):
    """Training-mode BatchNorm1d (biased var) folded into y = s*scale + shift."""
    mean = jnp.sum(ssum, axis=(0, 1)) / cnt
    var = jnp.maximum(jnp.sum(ssq, axis=(0, 1)) / cnt - mean * mean, 0.0)
    inv = gamma / jnp.sqrt(var + EPS)
    c = gamma.shape[0]
    return inv.reshape(1, 1, c), (beta - mean * inv).reshape(1, 1, c)


def _layer_scratch(L, cin, cout):
    return [
        pltpu.VMEM((L + K_MAX - 1, cin), jnp.float32),   # zero-haloed input
        pltpu.VMEM((L, K_MAX * cin), jnp.float32),       # im2col slab
        pltpu.VMEM((L + 2, cout), jnp.float32),          # unpool value halo
        pltpu.VMEM((L + 2, cout), jnp.int32),            # unpool index halo
    ]


def _call_layer1(x, idx, weff, wmp, w_res, b_res):
    N, L, cin = x.shape
    cout = wmp.shape[1]
    cres = w_res.shape[1]
    return pl.pallas_call(
        _layer1_kernel,
        out_shape=(
            jax.ShapeDtypeStruct((N, L, cout), jnp.float32),
            jax.ShapeDtypeStruct((N, 1, cout), jnp.float32),
            jax.ShapeDtypeStruct((N, 1, cout), jnp.float32),
            jax.ShapeDtypeStruct((N, L, cres), jnp.float32),
            jax.ShapeDtypeStruct((N, 1, cres), jnp.float32),
            jax.ShapeDtypeStruct((N, 1, cres), jnp.float32),
        ),
        grid=(N,),
        in_specs=[
            pl.BlockSpec((1, L, cin), lambda n: (n, 0, 0)),
            pl.BlockSpec((1, L, cout), lambda n: (n, 0, 0)),
            pl.BlockSpec((K_MAX * cin, cout), lambda n: (0, 0)),
            pl.BlockSpec((cin, cout), lambda n: (0, 0)),
            pl.BlockSpec((cin, cres), lambda n: (0, 0)),
            pl.BlockSpec((1, cres), lambda n: (0, 0)),
        ],
        out_specs=(
            pl.BlockSpec((1, L, cout), lambda n: (n, 0, 0)),
            pl.BlockSpec((1, 1, cout), lambda n: (n, 0, 0)),
            pl.BlockSpec((1, 1, cout), lambda n: (n, 0, 0)),
            pl.BlockSpec((1, L, cres), lambda n: (n, 0, 0)),
            pl.BlockSpec((1, 1, cres), lambda n: (n, 0, 0)),
            pl.BlockSpec((1, 1, cres), lambda n: (n, 0, 0)),
        ),
        scratch_shapes=_layer_scratch(L, cin, cout),
        compiler_params=pltpu.CompilerParams(
            dimension_semantics=("parallel",)),
    )(x, idx, weff, wmp, w_res, b_res.reshape(1, cres))


def _call_layer(s_prev, scale_prev, shift_prev, idx, weff, wmp):
    N, L, cin = s_prev.shape
    cout = wmp.shape[1]
    return pl.pallas_call(
        _layer_kernel,
        out_shape=(
            jax.ShapeDtypeStruct((N, L, cout), jnp.float32),
            jax.ShapeDtypeStruct((N, 1, cout), jnp.float32),
            jax.ShapeDtypeStruct((N, 1, cout), jnp.float32),
        ),
        grid=(N,),
        in_specs=[
            pl.BlockSpec((1, L, cin), lambda n: (n, 0, 0)),
            pl.BlockSpec((1, 1, cin), lambda n: (0, 0, 0)),
            pl.BlockSpec((1, 1, cin), lambda n: (0, 0, 0)),
            pl.BlockSpec((1, L, cout), lambda n: (n, 0, 0)),
            pl.BlockSpec((K_MAX * cin, cout), lambda n: (0, 0)),
            pl.BlockSpec((cin, cout), lambda n: (0, 0)),
        ],
        out_specs=(
            pl.BlockSpec((1, L, cout), lambda n: (n, 0, 0)),
            pl.BlockSpec((1, 1, cout), lambda n: (n, 0, 0)),
            pl.BlockSpec((1, 1, cout), lambda n: (n, 0, 0)),
        ),
        scratch_shapes=_layer_scratch(L, cin, cout),
        compiler_params=pltpu.CompilerParams(
            dimension_semantics=("parallel",)),
    )(s_prev, scale_prev, shift_prev, idx, weff, wmp)


def _call_final(s3, sc3, sh3, r, scr, shr):
    N, L, cout = s3.shape
    return pl.pallas_call(
        _final_kernel,
        out_shape=jax.ShapeDtypeStruct((N, L, cout), jnp.float32),
        grid=(N,),
        in_specs=[
            pl.BlockSpec((1, L, cout), lambda n: (n, 0, 0)),
            pl.BlockSpec((1, 1, cout), lambda n: (0, 0, 0)),
            pl.BlockSpec((1, 1, cout), lambda n: (0, 0, 0)),
            pl.BlockSpec((1, L, cout), lambda n: (n, 0, 0)),
            pl.BlockSpec((1, 1, cout), lambda n: (0, 0, 0)),
            pl.BlockSpec((1, 1, cout), lambda n: (0, 0, 0)),
        ],
        out_specs=pl.BlockSpec((1, L, cout), lambda n: (n, 0, 0)),
        compiler_params=pltpu.CompilerParams(
            dimension_semantics=("parallel",)),
    )(s3, sc3, sh3, r, scr, shr)


def inception_transpose_block(x, indices, inc1, inc2, inc3,
                              w_res, b_res, gamma_res, beta_res):
    """InceptionTransposeBlock forward.  indices = (idx0, idx1, idx2) in NLC."""
    idx0, idx1, idx2 = indices
    N, L, _ = x.shape
    cnt = float(N * L)

    weff1, wmp1, g1, b1 = inc1
    weff2, wmp2, g2, b2 = inc2
    weff3, wmp3, g3, b3 = inc3

    # layer 1 (+ fused residual 1x1 ConvTranspose1d)
    s1, sum1, ssq1, r, rsum, rssq = _call_layer1(x, idx2, weff1, wmp1, w_res, b_res)
    sc1, sh1 = _bn_scale_shift(sum1, ssq1, g1, b1, cnt)

    # layer 2 (applies layer-1 BN+ReLU on input read)
    s2, sum2, ssq2 = _call_layer(s1, sc1, sh1, idx1, weff2, wmp2)
    sc2, sh2 = _bn_scale_shift(sum2, ssq2, g2, b2, cnt)

    # layer 3 (applies layer-2 BN+ReLU on input read)
    s3, sum3, ssq3 = _call_layer(s2, sc2, sh2, idx0, weff3, wmp3)
    sc3, sh3 = _bn_scale_shift(sum3, ssq3, g3, b3, cnt)
    scr, shr = _bn_scale_shift(rsum, rssq, gamma_res, beta_res, cnt)

    # out = relu( relu(BN3(s3)) + BN_res(r) )
    return _call_final(s3, sc3, sh3, r, scr, shr)


# ----------------------------------------------------------------------------
# Deterministic parameter construction (mirrors the nn.Module __init__ shapes)
# ----------------------------------------------------------------------------
def make_inception_params(key, cin, cout, bneck):
    """Builds (Weff2d, Wmp, gamma, beta) for one InceptionTranspose layer."""
    ks = [9, 19, 39]
    k1, k2, k3, k4, k5 = jax.random.split(key, 5)
    # ConvTranspose1d weights: (C_in, bottleneck, k)
    ws = [jax.random.normal(kk, (cin, bneck, k), jnp.float32) * 0.1
          for kk, k in zip([k1, k2, k3], ks)]
    # conv_to_maxpool: Conv1d weight (C_out, C_in, 1)
    wmp = jax.random.normal(k4, (cout, cin, 1), jnp.float32) * 0.1
    # bottleneck: Conv1d weight (C_out, 3*bottleneck, 1)
    wbn = jax.random.normal(k5, (cout, 3 * bneck, 1), jnp.float32) * 0.1

    # Zero-pad each transposed-conv kernel into the 39-tap frame, concat along
    # output channels (matching torch.cat order), fold in the 1x1 bottleneck.
    wbig = jnp.zeros((K_MAX, cin, 3 * bneck), jnp.float32)
    for i, (w, k) in enumerate(zip(ws, ks)):
        off = (K_MAX - k) // 2
        wbig = wbig.at[off:off + k, :, i * bneck:(i + 1) * bneck].set(
            jnp.transpose(w, (2, 0, 1)))
    weff = jnp.einsum('kib,ob->kio', wbig, wbn[:, :, 0])        # (K, Cin, Cout)
    weff2d = weff.reshape(K_MAX * cin, cout)                    # dense im2col RHS
    wmp_mat = jnp.transpose(wmp[:, :, 0])                       # (Cin, Cout)
    gamma = jnp.ones((cout,), jnp.float32)                      # BN default init
    beta = jnp.zeros((cout,), jnp.float32)
    return weff2d, wmp_mat, gamma, beta


if __name__ == "__main__":
    key = jax.random.PRNGKey(0)
    N, L = 2, 32
    C_IN, C_OUT, BNECK = 4, 8, 8

    keys = jax.random.split(key, 8)
    x = jax.random.normal(keys[0], (N, L, C_IN), jnp.float32)

    # MaxUnpool indices in NLC layout; MaxPool1d(3,1,1) indices satisfy
    # |idx[t] - t| <= 1 and lie in [0, L).
    def make_idx(k, c):
        delta = jax.random.randint(k, (N, L, c), -1, 2)
        base = jnp.arange(L, dtype=jnp.int32)[None, :, None]
        return jnp.clip(base + delta, 0, L - 1).astype(jnp.int32)

    idx0 = make_idx(keys[1], C_OUT)   # used by inception_3
    idx1 = make_idx(keys[2], C_IN)    # used by inception_2
    idx2 = make_idx(keys[3], C_IN)    # used by inception_1

    inc1 = make_inception_params(keys[4], C_IN, C_IN, BNECK)
    inc2 = make_inception_params(keys[5], C_IN, C_IN, BNECK)
    inc3 = make_inception_params(keys[6], C_IN, C_OUT, BNECK)

    kr1, kr2 = jax.random.split(keys[7])
    w_res = jax.random.normal(kr1, (C_IN, C_OUT), jnp.float32) * 0.1  # k=1 convT
    b_res = jax.random.normal(kr2, (C_OUT,), jnp.float32) * 0.1
    gamma_res = jnp.ones((C_OUT,), jnp.float32)
    beta_res = jnp.zeros((C_OUT,), jnp.float32)

    fwd = jax.jit(inception_transpose_block)
    out = fwd(x, (idx0, idx1, idx2), inc1, inc2, inc3,
              w_res, b_res, gamma_res, beta_res)
    jax.block_until_ready(out)
    assert out.shape == (N, L, C_OUT)
    assert bool(jnp.all(jnp.isfinite(out)))
    print("KERNEL_OK")
</pallas_src>

<mosaic_0001>
module attributes {stable_mosaic.version = 11 : i64} {
  func.func @_layer1_kernel(%arg0: i32, %arg1: memref<1x32x4xf32, #tpu.memory_space<vmem>>, %arg2: memref<1x32x4xi32, #tpu.memory_space<vmem>>, %arg3: memref<156x4xf32, #tpu.memory_space<vmem>>, %arg4: memref<4x4xf32, #tpu.memory_space<vmem>>, %arg5: memref<4x8xf32, #tpu.memory_space<vmem>>, %arg6: memref<1x8xf32, #tpu.memory_space<vmem>>, %arg7: memref<1x32x4xf32, #tpu.memory_space<vmem>>, %arg8: memref<1x1x4xf32, #tpu.memory_space<vmem>>, %arg9: memref<1x1x4xf32, #tpu.memory_space<vmem>>, %arg10: memref<1x32x8xf32, #tpu.memory_space<vmem>>, %arg11: memref<1x1x8xf32, #tpu.memory_space<vmem>>, %arg12: memref<1x1x8xf32, #tpu.memory_space<vmem>>, %arg13: memref<70x4xf32, #tpu.memory_space<vmem>>, %arg14: memref<32x156xf32, #tpu.memory_space<vmem>>, %arg15: memref<34x4xf32, #tpu.memory_space<vmem>>, %arg16: memref<34x4xi32, #tpu.memory_space<vmem>>) attributes {dimension_semantics = [#tpu.dimension_semantics<parallel>], iteration_bounds = array<i64: 2>, scalar_prefetch = 0 : i64, scratch_operands = 4 : i64, tpu.core_type = #tpu.core_type<tc>, window_params = [{transform_indices = @transform_0, window_bounds = array<i64: 1, 32, 4>}, {transform_indices = @transform_1, window_bounds = array<i64: 1, 32, 4>}, {pipeline_mode = #tpu.pipeline_mode<synchronous>, transform_indices = @transform_2, window_bounds = array<i64: 156, 4>}, {pipeline_mode = #tpu.pipeline_mode<synchronous>, transform_indices = @transform_3, window_bounds = array<i64: 4, 4>}, {pipeline_mode = #tpu.pipeline_mode<synchronous>, transform_indices = @transform_4, window_bounds = array<i64: 4, 8>}, {pipeline_mode = #tpu.pipeline_mode<synchronous>, transform_indices = @transform_5, window_bounds = array<i64: 1, 8>}, {transform_indices = @transform_6, window_bounds = array<i64: 1, 32, 4>}, {transform_indices = @transform_7, window_bounds = array<i64: 1, 1, 4>}, {transform_indices = @transform_8, window_bounds = array<i64: 1, 1, 4>}, {transform_indices = @transform_9, window_bounds = array<i64: 1, 32, 8>}, {transform_indices = @transform_10, window_bounds = array<i64: 1, 1, 8>}, {transform_indices = @transform_11, window_bounds = array<i64: 1, 1, 8>}]} {
    %c0 = arith.constant 0 : index
    %c0_0 = arith.constant 0 : index
    %c0_1 = arith.constant 0 : index
    %0 = vector.load %arg1[%c0, %c0_0, %c0_1] : memref<1x32x4xf32, #tpu.memory_space<vmem>>, vector<1x32x4xf32>
    %1 = vector.shape_cast %0 : vector<1x32x4xf32> to vector<32x4xf32>
    %c0_2 = arith.constant 0 : index
    %c0_3 = arith.constant 0 : index
    %c0_4 = arith.constant 0 : index
    %2 = vector.load %arg2[%c0_2, %c0_3, %c0_4] : memref<1x32x4xi32, #tpu.memory_space<vmem>>, vector<1x32x4xi32>
    %3 = vector.shape_cast %2 : vector<1x32x4xi32> to vector<32x4xi32>
    %cst = arith.constant 0.000000e+00 : f32
    %4 = vector.broadcast %cst : f32 to vector<70x4xf32>
    %c0_5 = arith.constant 0 : index
    %c0_6 = arith.constant 0 : index
    %5 = vector.load %arg13[%c0_5, %c0_6] : memref<70x4xf32, #tpu.memory_space<vmem>>, vector<70x4xf32>
    tpu.vector_store %arg13[%c0_5, %c0_6], %4 {strides = array<i32>} : memref<70x4xf32, #tpu.memory_space<vmem>>, vector<70x4xf32>,
    %c19 = arith.constant 19 : index
    %c0_7 = arith.constant 0 : index
    %6 = vector.load %arg13[%c19, %c0_7] : memref<70x4xf32, #tpu.memory_space<vmem>>, vector<32x4xf32>
    tpu.vector_store %arg13[%c19, %c0_7], %1 {strides = array<i32>} : memref<70x4xf32, #tpu.memory_space<vmem>>, vector<32x4xf32>,
    %c38 = arith.constant 38 : index
    %c0_8 = arith.constant 0 : index
    %7 = vector.load %arg13[%c38, %c0_8] : memref<70x4xf32, #tpu.memory_space<vmem>>, vector<32x4xf32>
    %c0_9 = arith.constant 0 : index
    %c0_10 = arith.constant 0 : index
    %8 = vector.load %arg14[%c0_9, %c0_10] : memref<32x156xf32, #tpu.memory_space<vmem>>, vector<32x4xf32>
    tpu.vector_store %arg14[%c0_9, %c0_10], %7 {strides = array<i32>} : memref<32x156xf32, #tpu.memory_space<vmem>>, vector<32x4xf32>,
    %c37 = arith.constant 37 : index
    %c0_11 = arith.constant 0 : index
    %9 = vector.load %arg13[%c37, %c0_11] : memref<70x4xf32, #tpu.memory_space<vmem>>, vector<32x4xf32>
    %c0_12 = arith.constant 0 : index
    %c4 = arith.constant 4 : index
    %10 = vector.load %arg14[%c0_12, %c4] : memref<32x156xf32, #tpu.memory_space<vmem>>, vector<32x4xf32>
    tpu.vector_store %arg14[%c0_12, %c4], %9 {strides = array<i32>} : memref<32x156xf32, #tpu.memory_space<vmem>>, vector<32x4xf32>,
    %c36 = arith.constant 36 : index
    %c0_13 = arith.constant 0 : index
    %11 = vector.load %arg13[%c36, %c0_13] : memref<70x4xf32, #tpu.memory_space<vmem>>, vector<32x4xf32>
    %c0_14 = arith.constant 0 : index
    %c8 = arith.constant 8 : index
    %12 = vector.load %arg14[%c0_14, %c8] : memref<32x156xf32, #tpu.memory_space<vmem>>, vector<32x4xf32>
    tpu.vector_store %arg14[%c0_14, %c8], %11 {strides = array<i32>} : memref<32x156xf32, #tpu.memory_space<vmem>>, vector<32x4xf32>,
    %c35 = arith.constant 35 : index
    %c0_15 = arith.constant 0 : index
    %13 = vector.load %arg13[%c35, %c0_15] : memref<70x4xf32, #tpu.memory_space<vmem>>, vector<32x4xf32>
    %c0_16 = arith.constant 0 : index
    %c12 = arith.constant 12 : index
    %14 = vector.load %arg14[%c0_16, %c12] : memref<32x156xf32, #tpu.memory_space<vmem>>, vector<32x4xf32>
    tpu.vector_store %arg14[%c0_16, %c12], %13 {strides = array<i32>} : memref<32x156xf32, #tpu.memory_space<vmem>>, vector<32x4xf32>,
    %c34 = arith.constant 34 : index
    %c0_17 = arith.constant 0 : index
    %15 = vector.load %arg13[%c34, %c0_17] : memref<70x4xf32, #tpu.memory_space<vmem>>, vector<32x4xf32>
    %c0_18 = arith.constant 0 : index
    %c16 = arith.constant 16 : index
    %16 = vector.load %arg14[%c0_18, %c16] : memref<32x156xf32, #tpu.memory_space<vmem>>, vector<32x4xf32>
    tpu.vector_store %arg14[%c0_18, %c16], %15 {strides = array<i32>} : memref<32x156xf32, #tpu.memory_space<vmem>>, vector<32x4xf32>,
    %c33 = arith.constant 33 : index
    %c0_19 = arith.constant 0 : index
    %17 = vector.load %arg13[%c33, %c0_19] : memref<70x4xf32, #tpu.memory_space<vmem>>, vector<32x4xf32>
    %c0_20 = arith.constant 0 : index
    %c20 = arith.constant 20 : index
    %18 = vector.load %arg14[%c0_20, %c20] : memref<32x156xf32, #tpu.memory_space<vmem>>, vector<32x4xf32>
    tpu.vector_store %arg14[%c0_20, %c20], %17 {strides = array<i32>} : memref<32x156xf32, #tpu.memory_space<vmem>>, vector<32x4xf32>,
    %c32 = arith.constant 32 : index
    %c0_21 = arith.constant 0 : index
    %19 = vector.load %arg13[%c32, %c0_21] : memref<70x4xf32, #tpu.memory_space<vmem>>, vector<32x4xf32>
    %c0_22 = arith.constant 0 : index
    %c24 = arith.constant 24 : index
    %20 = vector.load %arg14[%c0_22, %c24] : memref<32x156xf32, #tpu.memory_space<vmem>>, vector<32x4xf32>
    tpu.vector_store %arg14[%c0_22, %c24], %19 {strides = array<i32>} : memref<32x156xf32, #tpu.memory_space<vmem>>, vector<32x4xf32>,
    %c31 = arith.constant 31 : index
    %c0_23 = arith.constant 0 : index
    %21 = vector.load %arg13[%c31, %c0_23] : memref<70x4xf32, #tpu.memory_space<vmem>>, vector<32x4xf32>
    %c0_24 = arith.constant 0 : index
    %c28 = arith.constant 28 : index
    %22 = vector.load %arg14[%c0_24, %c28] : memref<32x156xf32, #tpu.memory_space<vmem>>, vector<32x4xf32>
    tpu.vector_store %arg14[%c0_24, %c28], %21 {strides = array<i32>} : memref<32x156xf32, #tpu.memory_space<vmem>>, vector<32x4xf32>,
    %c30 = arith.constant 30 : index
    %c0_25 = arith.constant 0 : index
    %23 = vector.load %arg13[%c30, %c0_25] : memref<70x4xf32, #tpu.memory_space<vmem>>, vector<32x4xf32>
    %c0_26 = arith.constant 0 : index
    %c32_27 = arith.constant 32 : index
    %24 = vector.load %arg14[%c0_26, %c32_27] : memref<32x156xf32, #tpu.memory_space<vmem>>, vector<32x4xf32>
    tpu.vector_store %arg14[%c0_26, %c32_27], %23 {strides = array<i32>} : memref<32x156xf32, #tpu.memory_space<vmem>>, vector<32x4xf32>,
    %c29 = arith.constant 29 : index
    %c0_28 = arith.constant 0 : index
    %25 = vector.load %arg13[%c29, %c0_28] : memref<70x4xf32, #tpu.memory_space<vmem>>, vector<32x4xf32>
    %c0_29 = arith.constant 0 : index
    %c36_30 = arith.constant 36 : index
    %26 = vector.load %arg14[%c0_29, %c36_30] : memref<32x156xf32, #tpu.memory_space<vmem>>, vector<32x4xf32>
    tpu.vector_store %arg14[%c0_29, %c36_30], %25 {strides = array<i32>} : memref<32x156xf32, #tpu.memory_space<vmem>>, vector<32x4xf32>,
    %c28_31 = arith.constant 28 : index
    %c0_32 = arith.constant 0 : index
    %27 = vector.load %arg13[%c28_31, %c0_32] : memref<70x4xf32, #tpu.memory_space<vmem>>, vector<32x4xf32>
    %c0_33 = arith.constant 0 : index
    %c40 = arith.constant 40 : index
    %28 = vector.load %arg14[%c0_33, %c40] : memref<32x156xf32, #tpu.memory_space<vmem>>, vector<32x4xf32>
    tpu.vector_store %arg14[%c0_33, %c40], %27 {strides = array<i32>} : memref<32x156xf32, #tpu.memory_space<vmem>>, vector<32x4xf32>,
    %c27 = arith.constant 27 : index
    %c0_34 = arith.constant 0 : index
    %29 = vector.load %arg13[%c27, %c0_34] : memref<70x4xf32, #tpu.memory_space<vmem>>, vector<32x4xf32>
    %c0_35 = arith.constant 0 : index
    %c44 = arith.constant 44 : index
    %30 = vector.load %arg14[%c0_35, %c44] : memref<32x156xf32, #tpu.memory_space<vmem>>, vector<32x4xf32>
    tpu.vector_store %arg14[%c0_35, %c44], %29 {strides = array<i32>} : memref<32x156xf32, #tpu.memory_space<vmem>>, vector<32x4xf32>,
    %c26 = arith.constant 26 : index
    %c0_36 = arith.constant 0 : index
    %31 = vector.load %arg13[%c26, %c0_36] : memref<70x4xf32, #tpu.memory_space<vmem>>, vector<32x4xf32>
    %c0_37 = arith.constant 0 : index
    %c48 = arith.constant 48 : index
    %32 = vector.load %arg14[%c0_37, %c48] : memref<32x156xf32, #tpu.memory_space<vmem>>, vector<32x4xf32>
    tpu.vector_store %arg14[%c0_37, %c48], %31 {strides = array<i32>} : memref<32x156xf32, #tpu.memory_space<vmem>>, vector<32x4xf32>,
    %c25 = arith.constant 25 : index
    %c0_38 = arith.constant 0 : index
    %33 = vector.load %arg13[%c25, %c0_38] : memref<70x4xf32, #tpu.memory_space<vmem>>, vector<32x4xf32>
    %c0_39 = arith.constant 0 : index
    %c52 = arith.constant 52 : index
    %34 = vector.load %arg14[%c0_39, %c52] : memref<32x156xf32, #tpu.memory_space<vmem>>, vector<32x4xf32>
    tpu.vector_store %arg14[%c0_39, %c52], %33 {strides = array<i32>} : memref<32x156xf32, #tpu.memory_space<vmem>>, vector<32x4xf32>,
    %c24_40 = arith.constant 24 : index
    %c0_41 = arith.constant 0 : index
    %35 = vector.load %arg13[%c24_40, %c0_41] : memref<70x4xf32, #tpu.memory_space<vmem>>, vector<32x4xf32>
    %c0_42 = arith.constant 0 : index
    %c56 = arith.constant 56 : index
    %36 = vector.load %arg14[%c0_42, %c56] : memref<32x156xf32, #tpu.memory_space<vmem>>, vector<32x4xf32>
    tpu.vector_store %arg14[%c0_42, %c56], %35 {strides = array<i32>} : memref<32x156xf32, #tpu.memory_space<vmem>>, vector<32x4xf32>,
    %c23 = arith.constant 23 : index
    %c0_43 = arith.constant 0 : index
    %37 = vector.load %arg13[%c23, %c0_43] : memref<70x4xf32, #tpu.memory_space<vmem>>, vector<32x4xf32>
    %c0_44 = arith.constant 0 : index
    %c60 = arith.constant 60 : index
    %38 = vector.load %arg14[%c0_44, %c60] : memref<32x156xf32, #tpu.memory_space<vmem>>, vector<32x4xf32>
    tpu.vector_store %arg14[%c0_44, %c60], %37 {strides = array<i32>} : memref<32x156xf32, #tpu.memory_space<vmem>>, vector<32x4xf32>,
    %c22 = arith.constant 22 : index
    %c0_45 = arith.constant 0 : index
    %39 = vector.load %arg13[%c22, %c0_45] : memref<70x4xf32, #tpu.memory_space<vmem>>, vector<32x4xf32>
    %c0_46 = arith.constant 0 : index
    %c64 = arith.constant 64 : index
    %40 = vector.load %arg14[%c0_46, %c64] : memref<32x156xf32, #tpu.memory_space<vmem>>, vector<32x4xf32>
    tpu.vector_store %arg14[%c0_46, %c64], %39 {strides = array<i32>} : memref<32x156xf32, #tpu.memory_space<vmem>>, vector<32x4xf32>,
    %c21 = arith.constant 21 : index
    %c0_47 = arith.constant 0 : index
    %41 = vector.load %arg13[%c21, %c0_47] : memref<70x4xf32, #tpu.memory_space<vmem>>, vector<32x4xf32>
    %c0_48 = arith.constant 0 : index
    %c68 = arith.constant 68 : index
    %42 = vector.load %arg14[%c0_48, %c68] : memref<32x156xf32, #tpu.memory_space<vmem>>, vector<32x4xf32>
    tpu.vector_store %arg14[%c0_48, %c68], %41 {strides = array<i32>} : memref<32x156xf32, #tpu.memory_space<vmem>>, vector<32x4xf32>,
    %c20_49 = arith.constant 20 : index
    %c0_50 = arith.constant 0 : index
    %43 = vector.load %arg13[%c20_49, %c0_50] : memref<70x4xf32, #tpu.memory_space<vmem>>, vector<32x4xf32>
    %c0_51 = arith.constant 0 : index
    %c72 = arith.constant 72 : index
    %44 = vector.load %arg14[%c0_51, %c72] : memref<32x156xf32, #tpu.memory_space<vmem>>, vector<32x4xf32>
    tpu.vector_store %arg14[%c0_51, %c72], %43 {strides = array<i32>} : memref<32x156xf32, #tpu.memory_space<vmem>>, vector<32x4xf32>,
    %c19_52 = arith.constant 19 : index
    %c0_53 = arith.constant 0 : index
    %45 = vector.load %arg13[%c19_52, %c0_53] : memref<70x4xf32, #tpu.memory_space<vmem>>, vector<32x4xf32>
    %c0_54 = arith.constant 0 : index
    %c76 = arith.constant 76 : index
    %46 = vector.load %arg14[%c0_54, %c76] : memref<32x156xf32, #tpu.memory_space<vmem>>, vector<32x4xf32>
    tpu.vector_store %arg14[%c0_54, %c76], %45 {strides = array<i32>} : memref<32x156xf32, #tpu.memory_space<vmem>>, vector<32x4xf32>,
    %c18 = arith.constant 18 : index
    %c0_55 = arith.constant 0 : index
    %47 = vector.load %arg13[%c18, %c0_55] : memref<70x4xf32, #tpu.memory_space<vmem>>, vector<32x4xf32>
    %c0_56 = arith.constant 0 : index
    %c80 = arith.constant 80 : index
    %48 = vector.load %arg14[%c0_56, %c80] : memref<32x156xf32, #tpu.memory_space<vmem>>, vector<32x4xf32>
    tpu.vector_store %arg14[%c0_56, %c80], %47 {strides = array<i32>} : memref<32x156xf32, #tpu.memory_space<vmem>>, vector<32x4xf32>,
    %c17 = arith.constant 17 : index
    %c0_57 = arith.constant 0 : index
    %49 = vector.load %arg13[%c17, %c0_57] : memref<70x4xf32, #tpu.memory_space<vmem>>, vector<32x4xf32>
    %c0_58 = arith.constant 0 : index
    %c84 = arith.constant 84 : index
    %50 = vector.load %arg14[%c0_58, %c84] : memref<32x156xf32, #tpu.memory_space<vmem>>, vector<32x4xf32>
    tpu.vector_store %arg14[%c0_58, %c84], %49 {strides = array<i32>} : memref<32x156xf32, #tpu.memory_space<vmem>>, vector<32x4xf32>,
    %c16_59 = arith.constant 16 : index
    %c0_60 = arith.constant 0 : index
    %51 = vector.load %arg13[%c16_59, %c0_60] : memref<70x4xf32, #tpu.memory_space<vmem>>, vector<32x4xf32>
    %c0_61 = arith.constant 0 : index
    %c88 = arith.constant 88 : index
    %52 = vector.load %arg14[%c0_61, %c88] : memref<32x156xf32, #tpu.memory_space<vmem>>, vector<32x4xf32>
    tpu.vector_store %arg14[%c0_61, %c88], %51 {strides = array<i32>} : memref<32x156xf32, #tpu.memory_space<vmem>>, vector<32x4xf32>,
    %c15 = arith.constant 15 : index
    %c0_62 = arith.constant 0 : index
    %53 = vector.load %arg13[%c15, %c0_62] : memref<70x4xf32, #tpu.memory_space<vmem>>, vector<32x4xf32>
    %c0_63 = arith.constant 0 : index
    %c92 = arith.constant 92 : index
    %54 = vector.load %arg14[%c0_63, %c92] : memref<32x156xf32, #tpu.memory_space<vmem>>, vector<32x4xf32>
    tpu.vector_store %arg14[%c0_63, %c92], %53 {strides = array<i32>} : memref<32x156xf32, #tpu.memory_space<vmem>>, vector<32x4xf32>,
    %c14 = arith.constant 14 : index
    %c0_64 = arith.constant 0 : index
    %55 = vector.load %arg13[%c14, %c0_64] : memref<70x4xf32, #tpu.memory_space<vmem>>, vector<32x4xf32>
    %c0_65 = arith.constant 0 : index
    %c96 = arith.constant 96 : index
    %56 = vector.load %arg14[%c0_65, %c96] : memref<32x156xf32, #tpu.memory_space<vmem>>, vector<32x4xf32>
    tpu.vector_store %arg14[%c0_65, %c96], %55 {strides = array<i32>} : memref<32x156xf32, #tpu.memory_space<vmem>>, vector<32x4xf32>,
    %c13 = arith.constant 13 : index
    %c0_66 = arith.constant 0 : index
    %57 = vector.load %arg13[%c13, %c0_66] : memref<70x4xf32, #tpu.memory_space<vmem>>, vector<32x4xf32>
    %c0_67 = arith.constant 0 : index
    %c100 = arith.constant 100 : index
    %58 = vector.load %arg14[%c0_67, %c100] : memref<32x156xf32, #tpu.memory_space<vmem>>, vector<32x4xf32>
    tpu.vector_store %arg14[%c0_67, %c100], %57 {strides = array<i32>} : memref<32x156xf32, #tpu.memory_space<vmem>>, vector<32x4xf32>,
    %c12_68 = arith.constant 12 : index
    %c0_69 = arith.constant 0 : index
    %59 = vector.load %arg13[%c12_68, %c0_69] : memref<70x4xf32, #tpu.memory_space<vmem>>, vector<32x4xf32>
    %c0_70 = arith.constant 0 : index
    %c104 = arith.constant 104 : index
    %60 = vector.load %arg14[%c0_70, %c104] : memref<32x156xf32, #tpu.memory_space<vmem>>, vector<32x4xf32>
    tpu.vector_store %arg14[%c0_70, %c104], %59 {strides = array<i32>} : memref<32x156xf32, #tpu.memory_space<vmem>>, vector<32x4xf32>,
    %c11 = arith.constant 11 : index
    %c0_71 = arith.constant 0 : index
    %61 = vector.load %arg13[%c11, %c0_71] : memref<70x4xf32, #tpu.memory_space<vmem>>, vector<32x4xf32>
    %c0_72 = arith.constant 0 : index
    %c108 = arith.constant 108 : index
    %62 = vector.load %arg14[%c0_72, %c108] : memref<32x156xf32, #tpu.memory_space<vmem>>, vector<32x4xf32>
    tpu.vector_store %arg14[%c0_72, %c108], %61 {strides = array<i32>} : memref<32x156xf32, #tpu.memory_space<vmem>>, vector<32x4xf32>,
    %c10 = arith.constant 10 : index
    %c0_73 = arith.constant 0 : index
    %63 = vector.load %arg13[%c10, %c0_73] : memref<70x4xf32, #tpu.memory_space<vmem>>, vector<32x4xf32>
    %c0_74 = arith.constant 0 : index
    %c112 = arith.constant 112 : index
    %64 = vector.load %arg14[%c0_74, %c112] : memref<32x156xf32, #tpu.memory_space<vmem>>, vector<32x4xf32>
    tpu.vector_store %arg14[%c0_74, %c112], %63 {strides = array<i32>} : memref<32x156xf32, #tpu.memory_space<vmem>>, vector<32x4xf32>,
    %c9 = arith.constant 9 : index
    %c0_75 = arith.constant 0 : index
    %65 = vector.load %arg13[%c9, %c0_75] : memref<70x4xf32, #tpu.memory_space<vmem>>, vector<32x4xf32>
    %c0_76 = arith.constant 0 : index
    %c116 = arith.constant 116 : index
    %66 = vector.load %arg14[%c0_76, %c116] : memref<32x156xf32, #tpu.memory_space<vmem>>, vector<32x4xf32>
    tpu.vector_store %arg14[%c0_76, %c116], %65 {strides = array<i32>} : memref<32x156xf32, #tpu.memory_space<vmem>>, vector<32x4xf32>,
    %c8_77 = arith.constant 8 : index
    %c0_78 = arith.constant 0 : index
    %67 = vector.load %arg13[%c8_77, %c0_78] : memref<70x4xf32, #tpu.memory_space<vmem>>, vector<32x4xf32>
    %c0_79 = arith.constant 0 : index
    %c120 = arith.constant 120 : index
    %68 = vector.load %arg14[%c0_79, %c120] : memref<32x156xf32, #tpu.memory_space<vmem>>, vector<32x4xf32>
    tpu.vector_store %arg14[%c0_79, %c120], %67 {strides = array<i32>} : memref<32x156xf32, #tpu.memory_space<vmem>>, vector<32x4xf32>,
    %c7 = arith.constant 7 : index
    %c0_80 = arith.constant 0 : index
    %69 = vector.load %arg13[%c7, %c0_80] : memref<70x4xf32, #tpu.memory_space<vmem>>, vector<32x4xf32>
    %c0_81 = arith.constant 0 : index
    %c124 = arith.constant 124 : index
    %70 = vector.load %arg14[%c0_81, %c124] : memref<32x156xf32, #tpu.memory_space<vmem>>, vector<32x4xf32>
    tpu.vector_store %arg14[%c0_81, %c124], %69 {strides = array<i32>} : memref<32x156xf32, #tpu.memory_space<vmem>>, vector<32x4xf32>,
    %c6 = arith.constant 6 : index
    %c0_82 = arith.constant 0 : index
    %71 = vector.load %arg13[%c6, %c0_82] : memref<70x4xf32, #tpu.memory_space<vmem>>, vector<32x4xf32>
    %c0_83 = arith.constant 0 : index
    %c128 = arith.constant 128 : index
    %72 = vector.load %arg14[%c0_83, %c128] : memref<32x156xf32, #tpu.memory_space<vmem>>, vector<32x4xf32>
    tpu.vector_store %arg14[%c0_83, %c128], %71 {strides = array<i32>} : memref<32x156xf32, #tpu.memory_space<vmem>>, vector<32x4xf32>,
    %c5 = arith.constant 5 : index
    %c0_84 = arith.constant 0 : index
    %73 = vector.load %arg13[%c5, %c0_84] : memref<70x4xf32, #tpu.memory_space<vmem>>, vector<32x4xf32>
    %c0_85 = arith.constant 0 : index
    %c132 = arith.constant 132 : index
    %74 = vector.load %arg14[%c0_85, %c132] : memref<32x156xf32, #tpu.memory_space<vmem>>, vector<32x4xf32>
    tpu.vector_store %arg14[%c0_85, %c132], %73 {strides = array<i32>} : memref<32x156xf32, #tpu.memory_space<vmem>>, vector<32x4xf32>,
    %c4_86 = arith.constant 4 : index
    %c0_87 = arith.constant 0 : index
    %75 = vector.load %arg13[%c4_86, %c0_87] : memref<70x4xf32, #tpu.memory_space<vmem>>, vector<32x4xf32>
    %c0_88 = arith.constant 0 : index
    %c136 = arith.constant 136 : index
    %76 = vector.load %arg14[%c0_88, %c136] : memref<32x156xf32, #tpu.memory_space<vmem>>, vector<32x4xf32>
    tpu.vector_store %arg14[%c0_88, %c136], %75 {strides = array<i32>} : memref<32x156xf32, #tpu.memory_space<vmem>>, vector<32x4xf32>,
    %c3 = arith.constant 3 : index
    %c0_89 = arith.constant 0 : index
    %77 = vector.load %arg13[%c3, %c0_89] : memref<70x4xf32, #tpu.memory_space<vmem>>, vector<32x4xf32>
    %c0_90 = arith.constant 0 : index
    %c140 = arith.constant 140 : index
    %78 = vector.load %arg14[%c0_90, %c140] : memref<32x156xf32, #tpu.memory_space<vmem>>, vector<32x4xf32>
    tpu.vector_store %arg14[%c0_90, %c140], %77 {strides = array<i32>} : memref<32x156xf32, #tpu.memory_space<vmem>>, vector<32x4xf32>,
    %c2 = arith.constant 2 : index
    %c0_91 = arith.constant 0 : index
    %79 = vector.load %arg13[%c2, %c0_91] : memref<70x4xf32, #tpu.memory_space<vmem>>, vector<32x4xf32>
    %c0_92 = arith.constant 0 : index
    %c144 = arith.constant 144 : index
    %80 = vector.load %arg14[%c0_92, %c144] : memref<32x156xf32, #tpu.memory_space<vmem>>, vector<32x4xf32>
    tpu.vector_store %arg14[%c0_92, %c144], %79 {strides = array<i32>} : memref<32x156xf32, #tpu.memory_space<vmem>>, vector<32x4xf32>,
    %c1 = arith.constant 1 : index
    %c0_93 = arith.constant 0 : index
    %81 = vector.load %arg13[%c1, %c0_93] : memref<70x4xf32, #tpu.memory_space<vmem>>, vector<32x4xf32>
    %c0_94 = arith.constant 0 : index
    %c148 = arith.constant 148 : index
    %82 = vector.load %arg14[%c0_94, %c148] : memref<32x156xf32, #tpu.memory_space<vmem>>, vector<32x4xf32>
    tpu.vector_store %arg14[%c0_94, %c148], %81 {strides = array<i32>} : memref<32x156xf32, #tpu.memory_space<vmem>>, vector<32x4xf32>,
    %c0_95 = arith.constant 0 : index
    %c0_96 = arith.constant 0 : index
    %83 = vector.load %arg13[%c0_95, %c0_96] : memref<70x4xf32, #tpu.memory_space<vmem>>, vector<32x4xf32>
    %c0_97 = arith.constant 0 : index
    %c152 = arith.constant 152 : index
    %84 = vector.load %arg14[%c0_97, %c152] : memref<32x156xf32, #tpu.memory_space<vmem>>, vector<32x4xf32>
    tpu.vector_store %arg14[%c0_97, %c152], %83 {strides = array<i32>} : memref<32x156xf32, #tpu.memory_space<vmem>>, vector<32x4xf32>,
    %c0_98 = arith.constant 0 : index
    %c0_99 = arith.constant 0 : index
    %85 = vector.load %arg14[%c0_98, %c0_99] : memref<32x156xf32, #tpu.memory_space<vmem>>, vector<32x156xf32>
    %c0_100 = arith.constant 0 : index
    %c0_101 = arith.constant 0 : index
    %86 = vector.load %arg3[%c0_100, %c0_101] : memref<156x4xf32, #tpu.memory_space<vmem>>, vector<156x4xf32>
    %cst_102 = arith.constant dense<0.000000e+00> : vector<32x4xf32>
    %87 = tpu.matmul %85, %86, %cst_102 {dimension_numbers = #tpu.dot_dimension_numbers<[1], [0], [0], [1], [0, 0, 1, 1], [], []>} : vector<32x156xf32>, vector<156x4xf32>, vector<32x4xf32> -> vector<32x4xf32>
    %c0_103 = arith.constant 0 : index
    %c0_104 = arith.constant 0 : index
    %88 = vector.load %arg4[%c0_103, %c0_104] : memref<4x4xf32, #tpu.memory_space<vmem>>, vector<4x4xf32>
    %cst_105 = arith.constant dense<0.000000e+00> : vector<32x4xf32>
    %89 = tpu.matmul %1, %88, %cst_105 {dimension_numbers = #tpu.dot_dimension_numbers<[1], [0], [0], [1], [0, 0, 1, 1], [], []>} : vector<32x4xf32>, vector<4x4xf32>, vector<32x4xf32> -> vector<32x4xf32>
    %cst_106 = arith.constant 0.000000e+00 : f32
    %90 = vector.broadcast %cst_106 : f32 to vector<34x4xf32>
    %c0_107 = arith.constant 0 : index
    %c0_108 = arith.constant 0 : index
    %91 = vector.load %arg15[%c0_107, %c0_108] : memref<34x4xf32, #tpu.memory_space<vmem>>, vector<34x4xf32>
    tpu.vector_store %arg15[%c0_107, %c0_108], %90 {strides = array<i32>} : memref<34x4xf32, #tpu.memory_space<vmem>>, vector<34x4xf32>,
    %c-1_i32 = arith.constant -1 : i32
    %92 = vector.broadcast %c-1_i32 : i32 to vector<34x4xi32>
    %c0_109 = arith.constant 0 : index
    %c0_110 = arith.constant 0 : index
    %93 = vector.load %arg16[%c0_109, %c0_110] : memref<34x4xi32, #tpu.memory_space<vmem>>, vector<34x4xi32>
    tpu.vector_store %arg16[%c0_109, %c0_110], %92 {strides = array<i32>} : memref<34x4xi32, #tpu.memory_space<vmem>>, vector<34x4xi32>,
    %c1_111 = arith.constant 1 : index
    %c0_112 = arith.constant 0 : index
    %94 = vector.load %arg15[%c1_111, %c0_112] : memref<34x4xf32, #tpu.memory_space<vmem>>, vector<32x4xf32>
    tpu.vector_store %arg15[%c1_111, %c0_112], %89 {strides = array<i32>} : memref<34x4xf32, #tpu.memory_space<vmem>>, vector<32x4xf32>,
    %c1_113 = arith.constant 1 : index
    %c0_114 = arith.constant 0 : index
    %95 = vector.load %arg16[%c1_113, %c0_114] : memref<34x4xi32, #tpu.memory_space<vmem>>, vector<32x4xi32>
    tpu.vector_store %arg16[%c1_113, %c0_114], %3 {strides = array<i32>} : memref<34x4xi32, #tpu.memory_space<vmem>>, vector<32x4xi32>,
    %96 = tpu.iota {dimensions = array<i32: 0>} : vector<32x4xi32>
    %c0_115 = arith.constant 0 : index
    %c0_116 = arith.constant 0 : index
    %97 = vector.load %arg16[%c0_115, %c0_116] : memref<34x4xi32, #tpu.memory_space<vmem>>, vector<32x4xi32>
    %98 = arith.cmpi eq, %97, %96 : vector<32x4xi32>
    %c0_117 = arith.constant 0 : index
    %c0_118 = arith.constant 0 : index
    %99 = vector.load %arg15[%c0_117, %c0_118] : memref<34x4xf32, #tpu.memory_space<vmem>>, vector<32x4xf32>
    %cst_119 = arith.constant 0.000000e+00 : f32
    %100 = vector.broadcast %cst_119 : f32 to vector<32x4xf32>
    %101 = arith.select %98, %99, %100 : vector<32x4xi1>, vector<32x4xf32>
    %102 = arith.cmpi eq, %3, %96 : vector<32x4xi32>
    %103 = arith.select %102, %89, %101 : vector<32x4xi1>, vector<32x4xf32>
    %c2_120 = arith.constant 2 : index
    %c0_121 = arith.constant 0 : index
    %104 = vector.load %arg16[%c2_120, %c0_121] : memref<34x4xi32, #tpu.memory_space<vmem>>, vector<32x4xi32>
    %105 = arith.cmpi eq, %104, %96 : vector<32x4xi32>
    %c2_122 = arith.constant 2 : index
    %c0_123 = arith.constant 0 : index
    %106 = vector.load %arg15[%c2_122, %c0_123] : memref<34x4xf32, #tpu.memory_space<vmem>>, vector<32x4xf32>
    %107 = arith.select %105, %106, %103 : vector<32x4xi1>, vector<32x4xf32>
    %108 = arith.addf %87, %107 : vector<32x4xf32>
    %c0_124 = arith.constant 0 : index
    %c0_125 = arith.constant 0 : index
    %c0_126 = arith.constant 0 : index
    %109 = vector.load %arg7[%c0_124, %c0_125, %c0_126] : memref<1x32x4xf32, #tpu.memory_space<vmem>>, vector<1x32x4xf32>
    %110 = vector.shape_cast %109 : vector<1x32x4xf32> to vector<32x4xf32>
    %111 = vector.shape_cast %108 : vector<32x4xf32> to vector<1x32x4xf32>
    tpu.vector_store %arg7[%c0_124, %c0_125, %c0_126], %111 {strides = array<i32>} : memref<1x32x4xf32, #tpu.memory_space<vmem>>, vector<1x32x4xf32>,
    %cst_127 = arith.constant dense<0.000000e+00> : vector<4xf32>
    %112 = vector.multi_reduction <add>, %108, %cst_127 [0] : vector<32x4xf32> to vector<4xf32>
    %113 = vector.shape_cast %112 : vector<4xf32> to vector<1x4xf32>
    %c0_128 = arith.constant 0 : index
    %c0_129 = arith.constant 0 : index
    %c0_130 = arith.constant 0 : index
    %114 = vector.load %arg8[%c0_128, %c0_129, %c0_130] : memref<1x1x4xf32, #tpu.memory_space<vmem>>, vector<1x1x4xf32>
    %115 = vector.shape_cast %114 : vector<1x1x4xf32> to vector<1x4xf32>
    %116 = vector.shape_cast %113 : vector<1x4xf32> to vector<1x1x4xf32>
    tpu.vector_store %arg8[%c0_128, %c0_129, %c0_130], %116 {strides = array<i32>} : memref<1x1x4xf32, #tpu.memory_space<vmem>>, vector<1x1x4xf32>,
    %117 = arith.mulf %108, %108 : vector<32x4xf32>
    %cst_131 = arith.constant dense<0.000000e+00> : vector<4xf32>
    %118 = vector.multi_reduction <add>, %117, %cst_131 [0] : vector<32x4xf32> to vector<4xf32>
    %119 = vector.shape_cast %118 : vector<4xf32> to vector<1x4xf32>
    %c0_132 = arith.constant 0 : index
    %c0_133 = arith.constant 0 : index
    %c0_134 = arith.constant 0 : index
    %120 = vector.load %arg9[%c0_132, %c0_133, %c0_134] : memref<1x1x4xf32, #tpu.memory_space<vmem>>, vector<1x1x4xf32>
    %121 = vector.shape_cast %120 : vector<1x1x4xf32> to vector<1x4xf32>
    %122 = vector.shape_cast %119 : vector<1x4xf32> to vector<1x1x4xf32>
    tpu.vector_store %arg9[%c0_132, %c0_133, %c0_134], %122 {strides = array<i32>} : memref<1x1x4xf32, #tpu.memory_space<vmem>>, vector<1x1x4xf32>,
    %c0_135 = arith.constant 0 : index
    %c0_136 = arith.constant 0 : index
    %123 = vector.load %arg5[%c0_135, %c0_136] : memref<4x8xf32, #tpu.memory_space<vmem>>, vector<4x8xf32>
    %cst_137 = arith.constant dense<0.000000e+00> : vector<32x8xf32>
    %124 = tpu.matmul %1, %123, %cst_137 {dimension_numbers = #tpu.dot_dimension_numbers<[1], [0], [0], [1], [0, 0, 1, 1], [], []>} : vector<32x4xf32>, vector<4x8xf32>, vector<32x8xf32> -> vector<32x8xf32>
    %c0_138 = arith.constant 0 : index
    %c0_139 = arith.constant 0 : index
    %125 = vector.load %arg6[%c0_138, %c0_139] : memref<1x8xf32, #tpu.memory_space<vmem>>, vector<1x8xf32>
    %126 = vector.broadcast %125 : vector<1x8xf32> to vector<32x8xf32>
    %127 = arith.addf %124, %126 : vector<32x8xf32>
    %c0_140 = arith.constant 0 : index
    %c0_141 = arith.constant 0 : index
    %c0_142 = arith.constant 0 : index
    %128 = vector.load %arg10[%c0_140, %c0_141, %c0_142] : memref<1x32x8xf32, #tpu.memory_space<vmem>>, vector<1x32x8xf32>
    %129 = vector.shape_cast %128 : vector<1x32x8xf32> to vector<32x8xf32>
    %130 = vector.shape_cast %127 : vector<32x8xf32> to vector<1x32x8xf32>
    tpu.vector_store %arg10[%c0_140, %c0_141, %c0_142], %130 {strides = array<i32>} : memref<1x32x8xf32, #tpu.memory_space<vmem>>, vector<1x32x8xf32>,
    %cst_143 = arith.constant dense<0.000000e+00> : vector<8xf32>
    %131 = vector.multi_reduction <add>, %127, %cst_143 [0] : vector<32x8xf32> to vector<8xf32>
    %132 = vector.shape_cast %131 : vector<8xf32> to vector<1x8xf32>
    %c0_144 = arith.constant 0 : index
    %c0_145 = arith.constant 0 : index
    %c0_146 = arith.constant 0 : index
    %133 = vector.load %arg11[%c0_144, %c0_145, %c0_146] : memref<1x1x8xf32, #tpu.memory_space<vmem>>, vector<1x1x8xf32>
    %134 = vector.shape_cast %133 : vector<1x1x8xf32> to vector<1x8xf32>
    %135 = vector.shape_cast %132 : vector<1x8xf32> to vector<1x1x8xf32>
    tpu.vector_store %arg11[%c0_144, %c0_145, %c0_146], %135 {strides = array<i32>} : memref<1x1x8xf32, #tpu.memory_space<vmem>>, vector<1x1x8xf32>,
    %136 = arith.mulf %127, %127 : vector<32x8xf32>
    %cst_147 = arith.constant dense<0.000000e+00> : vector<8xf32>
    %137 = vector.multi_reduction <add>, %136, %cst_147 [0] : vector<32x8xf32> to vector<8xf32>
    %138 = vector.shape_cast %137 : vector<8xf32> to vector<1x8xf32>
    %c0_148 = arith.constant 0 : index
    %c0_149 = arith.constant 0 : index
    %c0_150 = arith.constant 0 : index
    %139 = vector.load %arg12[%c0_148, %c0_149, %c0_150] : memref<1x1x8xf32, #tpu.memory_space<vmem>>, vector<1x1x8xf32>
    %140 = vector.shape_cast %139 : vector<1x1x8xf32> to vector<1x8xf32>
    %141 = vector.shape_cast %138 : vector<1x8xf32> to vector<1x1x8xf32>
    tpu.vector_store %arg12[%c0_148, %c0_149, %c0_150], %141 {strides = array<i32>} : memref<1x1x8xf32, #tpu.memory_space<vmem>>, vector<1x1x8xf32>,
    return
  }
  func.func @transform_0(%arg0: i32) -> (i32, i32, i32) {
    %c0_i32 = arith.constant 0 : i32
    %c0_i32_0 = arith.constant 0 : i32
    %c0_i32_1 = arith.constant 0 : i32
    return %arg0, %c0_i32, %c0_i32_0 : i32, i32, i32
  }
  func.func @transform_1(%arg0: i32) -> (i32, i32, i32) {
    %c0_i32 = arith.constant 0 : i32
    %c0_i32_0 = arith.constant 0 : i32
    %c0_i32_1 = arith.constant 0 : i32
    return %arg0, %c0_i32, %c0_i32_0 : i32, i32, i32
  }
  func.func @transform_2(%arg0: i32) -> (i32, i32) {
    %c0_i32 = arith.constant 0 : i32
    %c0_i32_0 = arith.constant 0 : i32
    %c0_i32_1 = arith.constant 0 : i32
    return %c0_i32, %c0_i32_0 : i32, i32
  }
  func.func @transform_3(%arg0: i32) -> (i32, i32) {
    %c0_i32 = arith.constant 0 : i32
    %c0_i32_0 = arith.constant 0 : i32
    %c0_i32_1 = arith.constant 0 : i32
    return %c0_i32, %c0_i32_0 : i32, i32
  }
  func.func @transform_4(%arg0: i32) -> (i32, i32) {
    %c0_i32 = arith.constant 0 : i32
    %c0_i32_0 = arith.constant 0 : i32
    %c0_i32_1 = arith.constant 0 : i32
    return %c0_i32, %c0_i32_0 : i32, i32
  }
  func.func @transform_5(%arg0: i32) -> (i32, i32) {
    %c0_i32 = arith.constant 0 : i32
    %c0_i32_0 = arith.constant 0 : i32
    %c0_i32_1 = arith.constant 0 : i32
    return %c0_i32, %c0_i32_0 : i32, i32
  }
  func.func @transform_6(%arg0: i32) -> (i32, i32, i32) {
    %c0_i32 = arith.constant 0 : i32
    %c0_i32_0 = arith.constant 0 : i32
    %c0_i32_1 = arith.constant 0 : i32
    return %arg0, %c0_i32, %c0_i32_0 : i32, i32, i32
  }
  func.func @transform_7(%arg0: i32) -> (i32, i32, i32) {
    %c0_i32 = arith.constant 0 : i32
    %c0_i32_0 = arith.constant 0 : i32
    %c0_i32_1 = arith.constant 0 : i32
    return %arg0, %c0_i32, %c0_i32_0 : i32, i32, i32
  }
  func.func @transform_8(%arg0: i32) -> (i32, i32, i32) {
    %c0_i32 = arith.constant 0 : i32
    %c0_i32_0 = arith.constant 0 : i32
    %c0_i32_1 = arith.constant 0 : i32
    return %arg0, %c0_i32, %c0_i32_0 : i32, i32, i32
  }
  func.func @transform_9(%arg0: i32) -> (i32, i32, i32) {
    %c0_i32 = arith.constant 0 : i32
    %c0_i32_0 = arith.constant 0 : i32
    %c0_i32_1 = arith.constant 0 : i32
    return %arg0, %c0_i32, %c0_i32_0 : i32, i32, i32
  }
  func.func @transform_10(%arg0: i32) -> (i32, i32, i32) {
    %c0_i32 = arith.constant 0 : i32
    %c0_i32_0 = arith.constant 0 : i32
    %c0_i32_1 = arith.constant 0 : i32
    return %arg0, %c0_i32, %c0_i32_0 : i32, i32, i32
  }
  func.func @transform_11(%arg0: i32) -> (i32, i32, i32) {
    %c0_i32 = arith.constant 0 : i32
    %c0_i32_0 = arith.constant 0 : i32
    %c0_i32_1 = arith.constant 0 : i32
    return %arg0, %c0_i32, %c0_i32_0 : i32, i32, i32
  }
}

module attributes {stable_mosaic.version = 11 : i64} {
  func.func @_layer_kernel(%arg0: i32, %arg1: memref<1x32x4xf32, #tpu.memory_space<vmem>>, %arg2: memref<1x1x4xf32, #tpu.memory_space<vmem>>, %arg3: memref<1x1x4xf32, #tpu.memory_space<vmem>>, %arg4: memref<1x32x4xi32, #tpu.memory_space<vmem>>, %arg5: memref<156x4xf32, #tpu.memory_space<vmem>>, %arg6: memref<4x4xf32, #tpu.memory_space<vmem>>, %arg7: memref<1x32x4xf32, #tpu.memory_space<vmem>>, %arg8: memref<1x1x4xf32, #tpu.memory_space<vmem>>, %arg9: memref<1x1x4xf32, #tpu.memory_space<vmem>>, %arg10: memref<70x4xf32, #tpu.memory_space<vmem>>, %arg11: memref<32x156xf32, #tpu.memory_space<vmem>>, %arg12: memref<34x4xf32, #tpu.memory_space<vmem>>, %arg13: memref<34x4xi32, #tpu.memory_space<vmem>>) attributes {dimension_semantics = [#tpu.dimension_semantics<parallel>], iteration_bounds = array<i64: 2>, scalar_prefetch = 0 : i64, scratch_operands = 4 : i64, tpu.core_type = #tpu.core_type<tc>, window_params = [{transform_indices = @transform_0, window_bounds = array<i64: 1, 32, 4>}, {pipeline_mode = #tpu.pipeline_mode<synchronous>, transform_indices = @transform_1, window_bounds = array<i64: 1, 1, 4>}, {pipeline_mode = #tpu.pipeline_mode<synchronous>, transform_indices = @transform_2, window_bounds = array<i64: 1, 1, 4>}, {transform_indices = @transform_3, window_bounds = array<i64: 1, 32, 4>}, {pipeline_mode = #tpu.pipeline_mode<synchronous>, transform_indices = @transform_4, window_bounds = array<i64: 156, 4>}, {pipeline_mode = #tpu.pipeline_mode<synchronous>, transform_indices = @transform_5, window_bounds = array<i64: 4, 4>}, {transform_indices = @transform_6, window_bounds = array<i64: 1, 32, 4>}, {transform_indices = @transform_7, window_bounds = array<i64: 1, 1, 4>}, {transform_indices = @transform_8, window_bounds = array<i64: 1, 1, 4>}]} {
    %c0 = arith.constant 0 : index
    %c0_0 = arith.constant 0 : index
    %c0_1 = arith.constant 0 : index
    %0 = vector.load %arg1[%c0, %c0_0, %c0_1] : memref<1x32x4xf32, #tpu.memory_space<vmem>>, vector<1x32x4xf32>
    %1 = vector.shape_cast %0 : vector<1x32x4xf32> to vector<32x4xf32>
    %c0_2 = arith.constant 0 : index
    %c0_3 = arith.constant 0 : index
    %c0_4 = arith.constant 0 : index
    %2 = vector.load %arg2[%c0_2, %c0_3, %c0_4] : memref<1x1x4xf32, #tpu.memory_space<vmem>>, vector<1x1x4xf32>
    %3 = vector.shape_cast %2 : vector<1x1x4xf32> to vector<1x4xf32>
    %4 = vector.broadcast %3 : vector<1x4xf32> to vector<32x4xf32>
    %5 = arith.mulf %1, %4 : vector<32x4xf32>
    %c0_5 = arith.constant 0 : index
    %c0_6 = arith.constant 0 : index
    %c0_7 = arith.constant 0 : index
    %6 = vector.load %arg3[%c0_5, %c0_6, %c0_7] : memref<1x1x4xf32, #tpu.memory_space<vmem>>, vector<1x1x4xf32>
    %7 = vector.shape_cast %6 : vector<1x1x4xf32> to vector<1x4xf32>
    %8 = vector.broadcast %7 : vector<1x4xf32> to vector<32x4xf32>
    %9 = arith.addf %5, %8 : vector<32x4xf32>
    %cst = arith.constant 0.000000e+00 : f32
    %10 = vector.broadcast %cst : f32 to vector<32x4xf32>
    %11 = arith.maximumf %9, %10 : vector<32x4xf32>
    %c0_8 = arith.constant 0 : index
    %c0_9 = arith.constant 0 : index
    %c0_10 = arith.constant 0 : index
    %12 = vector.load %arg4[%c0_8, %c0_9, %c0_10] : memref<1x32x4xi32, #tpu.memory_space<vmem>>, vector<1x32x4xi32>
    %13 = vector.shape_cast %12 : vector<1x32x4xi32> to vector<32x4xi32>
    %cst_11 = arith.constant 0.000000e+00 : f32
    %14 = vector.broadcast %cst_11 : f32 to vector<70x4xf32>
    %c0_12 = arith.constant 0 : index
    %c0_13 = arith.constant 0 : index
    %15 = vector.load %arg10[%c0_12, %c0_13] : memref<70x4xf32, #tpu.memory_space<vmem>>, vector<70x4xf32>
    tpu.vector_store %arg10[%c0_12, %c0_13], %14 {strides = array<i32>} : memref<70x4xf32, #tpu.memory_space<vmem>>, vector<70x4xf32>,
    %c19 = arith.constant 19 : index
    %c0_14 = arith.constant 0 : index
    %16 = vector.load %arg10[%c19, %c0_14] : memref<70x4xf32, #tpu.memory_space<vmem>>, vector<32x4xf32>
    tpu.vector_store %arg10[%c19, %c0_14], %11 {strides = array<i32>} : memref<70x4xf32, #tpu.memory_space<vmem>>, vector<32x4xf32>,
    %c38 = arith.constant 38 : index
    %c0_15 = arith.constant 0 : index
    %17 = vector.load %arg10[%c38, %c0_15] : memref<70x4xf32, #tpu.memory_space<vmem>>, vector<32x4xf32>
    %c0_16 = arith.constant 0 : index
    %c0_17 = arith.constant 0 : index
    %18 = vector.load %arg11[%c0_16, %c0_17] : memref<32x156xf32, #tpu.memory_space<vmem>>, vector<32x4xf32>
    tpu.vector_store %arg11[%c0_16, %c0_17], %17 {strides = array<i32>} : memref<32x156xf32, #tpu.memory_space<vmem>>, vector<32x4xf32>,
    %c37 = arith.constant 37 : index
    %c0_18 = arith.constant 0 : index
    %19 = vector.load %arg10[%c37, %c0_18] : memref<70x4xf32, #tpu.memory_space<vmem>>, vector<32x4xf32>
    %c0_19 = arith.constant 0 : index
    %c4 = arith.constant 4 : index
    %20 = vector.load %arg11[%c0_19, %c4] : memref<32x156xf32, #tpu.memory_space<vmem>>, vector<32x4xf32>
    tpu.vector_store %arg11[%c0_19, %c4], %19 {strides = array<i32>} : memref<32x156xf32, #tpu.memory_space<vmem>>, vector<32x4xf32>,
    %c36 = arith.constant 36 : index
    %c0_20 = arith.constant 0 : index
    %21 = vector.load %arg10[%c36, %c0_20] : memref<70x4xf32, #tpu.memory_space<vmem>>, vector<32x4xf32>
    %c0_21 = arith.constant 0 : index
    %c8 = arith.constant 8 : index
    %22 = vector.load %arg11[%c0_21, %c8] : memref<32x156xf32, #tpu.memory_space<vmem>>, vector<32x4xf32>
    tpu.vector_store %arg11[%c0_21, %c8], %21 {strides = array<i32>} : memref<32x156xf32, #tpu.memory_space<vmem>>, vector<32x4xf32>,
    %c35 = arith.constant 35 : index
    %c0_22 = arith.constant 0 : index
    %23 = vector.load %arg10[%c35, %c0_22] : memref<70x4xf32, #tpu.memory_space<vmem>>, vector<32x4xf32>
    %c0_23 = arith.constant 0 : index
    %c12 = arith.constant 12 : index
    %24 = vector.load %arg11[%c0_23, %c12] : memref<32x156xf32, #tpu.memory_space<vmem>>, vector<32x4xf32>
    tpu.vector_store %arg11[%c0_23, %c12], %23 {strides = array<i32>} : memref<32x156xf32, #tpu.memory_space<vmem>>, vector<32x4xf32>,
    %c34 = arith.constant 34 : index
    %c0_24 = arith.constant 0 : index
    %25 = vector.load %arg10[%c34, %c0_24] : memref<70x4xf32, #tpu.memory_space<vmem>>, vector<32x4xf32>
    %c0_25 = arith.constant 0 : index
    %c16 = arith.constant 16 : index
    %26 = vector.load %arg11[%c0_25, %c16] : memref<32x156xf32, #tpu.memory_space<vmem>>, vector<32x4xf32>
    tpu.vector_store %arg11[%c0_25, %c16], %25 {strides = array<i32>} : memref<32x156xf32, #tpu.memory_space<vmem>>, vector<32x4xf32>,
    %c33 = arith.constant 33 : index
    %c0_26 = arith.constant 0 : index
    %27 = vector.load %arg10[%c33, %c0_26] : memref<70x4xf32, #tpu.memory_space<vmem>>, vector<32x4xf32>
    %c0_27 = arith.constant 0 : index
    %c20 = arith.constant 20 : index
    %28 = vector.load %arg11[%c0_27, %c20] : memref<32x156xf32, #tpu.memory_space<vmem>>, vector<32x4xf32>
    tpu.vector_store %arg11[%c0_27, %c20], %27 {strides = array<i32>} : memref<32x156xf32, #tpu.memory_space<vmem>>, vector<32x4xf32>,
    %c32 = arith.constant 32 : index
    %c0_28 = arith.constant 0 : index
    %29 = vector.load %arg10[%c32, %c0_28] : memref<70x4xf32, #tpu.memory_space<vmem>>, vector<32x4xf32>
    %c0_29 = arith.constant 0 : index
    %c24 = arith.constant 24 : index
    %30 = vector.load %arg11[%c0_29, %c24] : memref<32x156xf32, #tpu.memory_space<vmem>>, vector<32x4xf32>
    tpu.vector_store %arg11[%c0_29, %c24], %29 {strides = array<i32>} : memref<32x156xf32, #tpu.memory_space<vmem>>, vector<32x4xf32>,
    %c31 = arith.constant 31 : index
    %c0_30 = arith.constant 0 : index
    %31 = vector.load %arg10[%c31, %c0_30] : memref<70x4xf32, #tpu.memory_space<vmem>>, vector<32x4xf32>
    %c0_31 = arith.constant 0 : index
    %c28 = arith.constant 28 : index
    %32 = vector.load %arg11[%c0_31, %c28] : memref<32x156xf32, #tpu.memory_space<vmem>>, vector<32x4xf32>
    tpu.vector_store %arg11[%c0_31, %c28], %31 {strides = array<i32>} : memref<32x156xf32, #tpu.memory_space<vmem>>, vector<32x4xf32>,
    %c30 = arith.constant 30 : index
    %c0_32 = arith.constant 0 : index
    %33 = vector.load %arg10[%c30, %c0_32] : memref<70x4xf32, #tpu.memory_space<vmem>>, vector<32x4xf32>
    %c0_33 = arith.constant 0 : index
    %c32_34 = arith.constant 32 : index
    %34 = vector.load %arg11[%c0_33, %c32_34] : memref<32x156xf32, #tpu.memory_space<vmem>>, vector<32x4xf32>
    tpu.vector_store %arg11[%c0_33, %c32_34], %33 {strides = array<i32>} : memref<32x156xf32, #tpu.memory_space<vmem>>, vector<32x4xf32>,
    %c29 = arith.constant 29 : index
    %c0_35 = arith.constant 0 : index
    %35 = vector.load %arg10[%c29, %c0_35] : memref<70x4xf32, #tpu.memory_space<vmem>>, vector<32x4xf32>
    %c0_36 = arith.constant 0 : index
    %c36_37 = arith.constant 36 : index
    %36 = vector.load %arg11[%c0_36, %c36_37] : memref<32x156xf32, #tpu.memory_space<vmem>>, vector<32x4xf32>
    tpu.vector_store %arg11[%c0_36, %c36_37], %35 {strides = array<i32>} : memref<32x156xf32, #tpu.memory_space<vmem>>, vector<32x4xf32>,
    %c28_38 = arith.constant 28 : index
    %c0_39 = arith.constant 0 : index
    %37 = vector.load %arg10[%c28_38, %c0_39] : memref<70x4xf32, #tpu.memory_space<vmem>>, vector<32x4xf32>
    %c0_40 = arith.constant 0 : index
    %c40 = arith.constant 40 : index
    %38 = vector.load %arg11[%c0_40, %c40] : memref<32x156xf32, #tpu.memory_space<vmem>>, vector<32x4xf32>
    tpu.vector_store %arg11[%c0_40, %c40], %37 {strides = array<i32>} : memref<32x156xf32, #tpu.memory_space<vmem>>, vector<32x4xf32>,
    %c27 = arith.constant 27 : index
    %c0_41 = arith.constant 0 : index
    %39 = vector.load %arg10[%c27, %c0_41] : memref<70x4xf32, #tpu.memory_space<vmem>>, vector<32x4xf32>
    %c0_42 = arith.constant 0 : index
    %c44 = arith.constant 44 : index
    %40 = vector.load %arg11[%c0_42, %c44] : memref<32x156xf32, #tpu.memory_space<vmem>>, vector<32x4xf32>
    tpu.vector_store %arg11[%c0_42, %c44], %39 {strides = array<i32>} : memref<32x156xf32, #tpu.memory_space<vmem>>, vector<32x4xf32>,
    %c26 = arith.constant 26 : index
    %c0_43 = arith.constant 0 : index
    %41 = vector.load %arg10[%c26, %c0_43] : memref<70x4xf32, #tpu.memory_space<vmem>>, vector<32x4xf32>
    %c0_44 = arith.constant 0 : index
    %c48 = arith.constant 48 : index
    %42 = vector.load %arg11[%c0_44, %c48] : memref<32x156xf32, #tpu.memory_space<vmem>>, vector<32x4xf32>
    tpu.vector_store %arg11[%c0_44, %c48], %41 {strides = array<i32>} : memref<32x156xf32, #tpu.memory_space<vmem>>, vector<32x4xf32>,
    %c25 = arith.constant 25 : index
    %c0_45 = arith.constant 0 : index
    %43 = vector.load %arg10[%c25, %c0_45] : memref<70x4xf32, #tpu.memory_space<vmem>>, vector<32x4xf32>
    %c0_46 = arith.constant 0 : index
    %c52 = arith.constant 52 : index
    %44 = vector.load %arg11[%c0_46, %c52] : memref<32x156xf32, #tpu.memory_space<vmem>>, vector<32x4xf32>
    tpu.vector_store %arg11[%c0_46, %c52], %43 {strides = array<i32>} : memref<32x156xf32, #tpu.memory_space<vmem>>, vector<32x4xf32>,
    %c24_47 = arith.constant 24 : index
    %c0_48 = arith.constant 0 : index
    %45 = vector.load %arg10[%c24_47, %c0_48] : memref<70x4xf32, #tpu.memory_space<vmem>>, vector<32x4xf32>
    %c0_49 = arith.constant 0 : index
    %c56 = arith.constant 56 : index
    %46 = vector.load %arg11[%c0_49, %c56] : memref<32x156xf32, #tpu.memory_space<vmem>>, vector<32x4xf32>
    tpu.vector_store %arg11[%c0_49, %c56], %45 {strides = array<i32>} : memref<32x156xf32, #tpu.memory_space<vmem>>, vector<32x4xf32>,
    %c23 = arith.constant 23 : index
    %c0_50 = arith.constant 0 : index
    %47 = vector.load %arg10[%c23, %c0_50] : memref<70x4xf32, #tpu.memory_space<vmem>>, vector<32x4xf32>
    %c0_51 = arith.constant 0 : index
    %c60 = arith.constant 60 : index
    %48 = vector.load %arg11[%c0_51, %c60] : memref<32x156xf32, #tpu.memory_space<vmem>>, vector<32x4xf32>
    tpu.vector_store %arg11[%c0_51, %c60], %47 {strides = array<i32>} : memref<32x156xf32, #tpu.memory_space<vmem>>, vector<32x4xf32>,
    %c22 = arith.constant 22 : index
    %c0_52 = arith.constant 0 : index
    %49 = vector.load %arg10[%c22, %c0_52] : memref<70x4xf32, #tpu.memory_space<vmem>>, vector<32x4xf32>
    %c0_53 = arith.constant 0 : index
    %c64 = arith.constant 64 : index
    %50 = vector.load %arg11[%c0_53, %c64] : memref<32x156xf32, #tpu.memory_space<vmem>>, vector<32x4xf32>
    tpu.vector_store %arg11[%c0_53, %c64], %49 {strides = array<i32>} : memref<32x156xf32, #tpu.memory_space<vmem>>, vector<32x4xf32>,
    %c21 = arith.constant 21 : index
    %c0_54 = arith.constant 0 : index
    %51 = vector.load %arg10[%c21, %c0_54] : memref<70x4xf32, #tpu.memory_space<vmem>>, vector<32x4xf32>
    %c0_55 = arith.constant 0 : index
    %c68 = arith.constant 68 : index
    %52 = vector.load %arg11[%c0_55, %c68] : memref<32x156xf32, #tpu.memory_space<vmem>>, vector<32x4xf32>
    tpu.vector_store %arg11[%c0_55, %c68], %51 {strides = array<i32>} : memref<32x156xf32, #tpu.memory_space<vmem>>, vector<32x4xf32>,
    %c20_56 = arith.constant 20 : index
    %c0_57 = arith.constant 0 : index
    %53 = vector.load %arg10[%c20_56, %c0_57] : memref<70x4xf32, #tpu.memory_space<vmem>>, vector<32x4xf32>
    %c0_58 = arith.constant 0 : index
    %c72 = arith.constant 72 : index
    %54 = vector.load %arg11[%c0_58, %c72] : memref<32x156xf32, #tpu.memory_space<vmem>>, vector<32x4xf32>
    tpu.vector_store %arg11[%c0_58, %c72], %53 {strides = array<i32>} : memref<32x156xf32, #tpu.memory_space<vmem>>, vector<32x4xf32>,
    %c19_59 = arith.constant 19 : index
    %c0_60 = arith.constant 0 : index
    %55 = vector.load %arg10[%c19_59, %c0_60] : memref<70x4xf32, #tpu.memory_space<vmem>>, vector<32x4xf32>
    %c0_61 = arith.constant 0 : index
    %c76 = arith.constant 76 : index
    %56 = vector.load %arg11[%c0_61, %c76] : memref<32x156xf32, #tpu.memory_space<vmem>>, vector<32x4xf32>
    tpu.vector_store %arg11[%c0_61, %c76], %55 {strides = array<i32>} : memref<32x156xf32, #tpu.memory_space<vmem>>, vector<32x4xf32>,
    %c18 = arith.constant 18 : index
    %c0_62 = arith.constant 0 : index
    %57 = vector.load %arg10[%c18, %c0_62] : memref<70x4xf32, #tpu.memory_space<vmem>>, vector<32x4xf32>
    %c0_63 = arith.constant 0 : index
    %c80 = arith.constant 80 : index
    %58 = vector.load %arg11[%c0_63, %c80] : memref<32x156xf32, #tpu.memory_space<vmem>>, vector<32x4xf32>
    tpu.vector_store %arg11[%c0_63, %c80], %57 {strides = array<i32>} : memref<32x156xf32, #tpu.memory_space<vmem>>, vector<32x4xf32>,
    %c17 = arith.constant 17 : index
    %c0_64 = arith.constant 0 : index
    %59 = vector.load %arg10[%c17, %c0_64] : memref<70x4xf32, #tpu.memory_space<vmem>>, vector<32x4xf32>
    %c0_65 = arith.constant 0 : index
    %c84 = arith.constant 84 : index
    %60 = vector.load %arg11[%c0_65, %c84] : memref<32x156xf32, #tpu.memory_space<vmem>>, vector<32x4xf32>
    tpu.vector_store %arg11[%c0_65, %c84], %59 {strides = array<i32>} : memref<32x156xf32, #tpu.memory_space<vmem>>, vector<32x4xf32>,
    %c16_66 = arith.constant 16 : index
    %c0_67 = arith.constant 0 : index
    %61 = vector.load %arg10[%c16_66, %c0_67] : memref<70x4xf32, #tpu.memory_space<vmem>>, vector<32x4xf32>
    %c0_68 = arith.constant 0 : index
    %c88 = arith.constant 88 : index
    %62 = vector.load %arg11[%c0_68, %c88] : memref<32x156xf32, #tpu.memory_space<vmem>>, vector<32x4xf32>
    tpu.vector_store %arg11[%c0_68, %c88], %61 {strides = array<i32>} : memref<32x156xf32, #tpu.memory_space<vmem>>, vector<32x4xf32>,
    %c15 = arith.constant 15 : index
    %c0_69 = arith.constant 0 : index
    %63 = vector.load %arg10[%c15, %c0_69] : memref<70x4xf32, #tpu.memory_space<vmem>>, vector<32x4xf32>
    %c0_70 = arith.constant 0 : index
    %c92 = arith.constant 92 : index
    %64 = vector.load %arg11[%c0_70, %c92] : memref<32x156xf32, #tpu.memory_space<vmem>>, vector<32x4xf32>
    tpu.vector_store %arg11[%c0_70, %c92], %63 {strides = array<i32>} : memref<32x156xf32, #tpu.memory_space<vmem>>, vector<32x4xf32>,
    %c14 = arith.constant 14 : index
    %c0_71 = arith.constant 0 : index
    %65 = vector.load %arg10[%c14, %c0_71] : memref<70x4xf32, #tpu.memory_space<vmem>>, vector<32x4xf32>
    %c0_72 = arith.constant 0 : index
    %c96 = arith.constant 96 : index
    %66 = vector.load %arg11[%c0_72, %c96] : memref<32x156xf32, #tpu.memory_space<vmem>>, vector<32x4xf32>
    tpu.vector_store %arg11[%c0_72, %c96], %65 {strides = array<i32>} : memref<32x156xf32, #tpu.memory_space<vmem>>, vector<32x4xf32>,
    %c13 = arith.constant 13 : index
    %c0_73 = arith.constant 0 : index
    %67 = vector.load %arg10[%c13, %c0_73] : memref<70x4xf32, #tpu.memory_space<vmem>>, vector<32x4xf32>
    %c0_74 = arith.constant 0 : index
    %c100 = arith.constant 100 : index
    %68 = vector.load %arg11[%c0_74, %c100] : memref<32x156xf32, #tpu.memory_space<vmem>>, vector<32x4xf32>
    tpu.vector_store %arg11[%c0_74, %c100], %67 {strides = array<i32>} : memref<32x156xf32, #tpu.memory_space<vmem>>, vector<32x4xf32>,
    %c12_75 = arith.constant 12 : index
    %c0_76 = arith.constant 0 : index
    %69 = vector.load %arg10[%c12_75, %c0_76] : memref<70x4xf32, #tpu.memory_space<vmem>>, vector<32x4xf32>
    %c0_77 = arith.constant 0 : index
    %c104 = arith.constant 104 : index
    %70 = vector.load %arg11[%c0_77, %c104] : memref<32x156xf32, #tpu.memory_space<vmem>>, vector<32x4xf32>
    tpu.vector_store %arg11[%c0_77, %c104], %69 {strides = array<i32>} : memref<32x156xf32, #tpu.memory_space<vmem>>, vector<32x4xf32>,
    %c11 = arith.constant 11 : index
    %c0_78 = arith.constant 0 : index
    %71 = vector.load %arg10[%c11, %c0_78] : memref<70x4xf32, #tpu.memory_space<vmem>>, vector<32x4xf32>
    %c0_79 = arith.constant 0 : index
    %c108 = arith.constant 108 : index
    %72 = vector.load %arg11[%c0_79, %c108] : memref<32x156xf32, #tpu.memory_space<vmem>>, vector<32x4xf32>
    tpu.vector_store %arg11[%c0_79, %c108], %71 {strides = array<i32>} : memref<32x156xf32, #tpu.memory_space<vmem>>, vector<32x4xf32>,
    %c10 = arith.constant 10 : index
    %c0_80 = arith.constant 0 : index
    %73 = vector.load %arg10[%c10, %c0_80] : memref<70x4xf32, #tpu.memory_space<vmem>>, vector<32x4xf32>
    %c0_81 = arith.constant 0 : index
    %c112 = arith.constant 112 : index
    %74 = vector.load %arg11[%c0_81, %c112] : memref<32x156xf32, #tpu.memory_space<vmem>>, vector<32x4xf32>
    tpu.vector_store %arg11[%c0_81, %c112], %73 {strides = array<i32>} : memref<32x156xf32, #tpu.memory_space<vmem>>, vector<32x4xf32>,
    %c9 = arith.constant 9 : index
    %c0_82 = arith.constant 0 : index
    %75 = vector.load %arg10[%c9, %c0_82] : memref<70x4xf32, #tpu.memory_space<vmem>>, vector<32x4xf32>
    %c0_83 = arith.constant 0 : index
    %c116 = arith.constant 116 : index
    %76 = vector.load %arg11[%c0_83, %c116] : memref<32x156xf32, #tpu.memory_space<vmem>>, vector<32x4xf32>
    tpu.vector_store %arg11[%c0_83, %c116], %75 {strides = array<i32>} : memref<32x156xf32, #tpu.memory_space<vmem>>, vector<32x4xf32>,
    %c8_84 = arith.constant 8 : index
    %c0_85 = arith.constant 0 : index
    %77 = vector.load %arg10[%c8_84, %c0_85] : memref<70x4xf32, #tpu.memory_space<vmem>>, vector<32x4xf32>
    %c0_86 = arith.constant 0 : index
    %c120 = arith.constant 120 : index
    %78 = vector.load %arg11[%c0_86, %c120] : memref<32x156xf32, #tpu.memory_space<vmem>>, vector<32x4xf32>
    tpu.vector_store %arg11[%c0_86, %c120], %77 {strides = array<i32>} : memref<32x156xf32, #tpu.memory_space<vmem>>, vector<32x4xf32>,
    %c7 = arith.constant 7 : index
    %c0_87 = arith.constant 0 : index
    %79 = vector.load %arg10[%c7, %c0_87] : memref<70x4xf32, #tpu.memory_space<vmem>>, vector<32x4xf32>
    %c0_88 = arith.constant 0 : index
    %c124 = arith.constant 124 : index
    %80 = vector.load %arg11[%c0_88, %c124] : memref<32x156xf32, #tpu.memory_space<vmem>>, vector<32x4xf32>
    tpu.vector_store %arg11[%c0_88, %c124], %79 {strides = array<i32>} : memref<32x156xf32, #tpu.memory_space<vmem>>, vector<32x4xf32>,
    %c6 = arith.constant 6 : index
    %c0_89 = arith.constant 0 : index
    %81 = vector.load %arg10[%c6, %c0_89] : memref<70x4xf32, #tpu.memory_space<vmem>>, vector<32x4xf32>
    %c0_90 = arith.constant 0 : index
    %c128 = arith.constant 128 : index
    %82 = vector.load %arg11[%c0_90, %c128] : memref<32x156xf32, #tpu.memory_space<vmem>>, vector<32x4xf32>
    tpu.vector_store %arg11[%c0_90, %c128], %81 {strides = array<i32>} : memref<32x156xf32, #tpu.memory_space<vmem>>, vector<32x4xf32>,
    %c5 = arith.constant 5 : index
    %c0_91 = arith.constant 0 : index
    %83 = vector.load %arg10[%c5, %c0_91] : memref<70x4xf32, #tpu.memory_space<vmem>>, vector<32x4xf32>
    %c0_92 = arith.constant 0 : index
    %c132 = arith.constant 132 : index
    %84 = vector.load %arg11[%c0_92, %c132] : memref<32x156xf32, #tpu.memory_space<vmem>>, vector<32x4xf32>
    tpu.vector_store %arg11[%c0_92, %c132], %83 {strides = array<i32>} : memref<32x156xf32, #tpu.memory_space<vmem>>, vector<32x4xf32>,
    %c4_93 = arith.constant 4 : index
    %c0_94 = arith.constant 0 : index
    %85 = vector.load %arg10[%c4_93, %c0_94] : memref<70x4xf32, #tpu.memory_space<vmem>>, vector<32x4xf32>
    %c0_95 = arith.constant 0 : index
    %c136 = arith.constant 136 : index
    %86 = vector.load %arg11[%c0_95, %c136] : memref<32x156xf32, #tpu.memory_space<vmem>>, vector<32x4xf32>
    tpu.vector_store %arg11[%c0_95, %c136], %85 {strides = array<i32>} : memref<32x156xf32, #tpu.memory_space<vmem>>, vector<32x4xf32>,
    %c3 = arith.constant 3 : index
    %c0_96 = arith.constant 0 : index
    %87 = vector.load %arg10[%c3, %c0_96] : memref<70x4xf32, #tpu.memory_space<vmem>>, vector<32x4xf32>
    %c0_97 = arith.constant 0 : index
    %c140 = arith.constant 140 : index
    %88 = vector.load %arg11[%c0_97, %c140] : memref<32x156xf32, #tpu.memory_space<vmem>>, vector<32x4xf32>
    tpu.vector_store %arg11[%c0_97, %c140], %87 {strides = array<i32>} : memref<32x156xf32, #tpu.memory_space<vmem>>, vector<32x4xf32>,
    %c2 = arith.constant 2 : index
    %c0_98 = arith.constant 0 : index
    %89 = vector.load %arg10[%c2, %c0_98] : memref<70x4xf32, #tpu.memory_space<vmem>>, vector<32x4xf32>
    %c0_99 = arith.constant 0 : index
    %c144 = arith.constant 144 : index
    %90 = vector.load %arg11[%c0_99, %c144] : memref<32x156xf32, #tpu.memory_space<vmem>>, vector<32x4xf32>
    tpu.vector_store %arg11[%c0_99, %c144], %89 {strides = array<i32>} : memref<32x156xf32, #tpu.memory_space<vmem>>, vector<32x4xf32>,
    %c1 = arith.constant 1 : index
    %c0_100 = arith.constant 0 : index
    %91 = vector.load %arg10[%c1, %c0_100] : memref<70x4xf32, #tpu.memory_space<vmem>>, vector<32x4xf32>
    %c0_101 = arith.constant 0 : index
    %c148 = arith.constant 148 : index
    %92 = vector.load %arg11[%c0_101, %c148] : memref<32x156xf32, #tpu.memory_space<vmem>>, vector<32x4xf32>
    tpu.vector_store %arg11[%c0_101, %c148], %91 {strides = array<i32>} : memref<32x156xf32, #tpu.memory_space<vmem>>, vector<32x4xf32>,
    %c0_102 = arith.constant 0 : index
    %c0_103 = arith.constant 0 : index
    %93 = vector.load %arg10[%c0_102, %c0_103] : memref<70x4xf32, #tpu.memory_space<vmem>>, vector<32x4xf32>
    %c0_104 = arith.constant 0 : index
    %c152 = arith.constant 152 : index
    %94 = vector.load %arg11[%c0_104, %c152] : memref<32x156xf32, #tpu.memory_space<vmem>>, vector<32x4xf32>
    tpu.vector_store %arg11[%c0_104, %c152], %93 {strides = array<i32>} : memref<32x156xf32, #tpu.memory_space<vmem>>, vector<32x4xf32>,
    %c0_105 = arith.constant 0 : index
    %c0_106 = arith.constant 0 : index
    %95 = vector.load %arg11[%c0_105, %c0_106] : memref<32x156xf32, #tpu.memory_space<vmem>>, vector<32x156xf32>
    %c0_107 = arith.constant 0 : index
    %c0_108 = arith.constant 0 : index
    %96 = vector.load %arg5[%c0_107, %c0_108] : memref<156x4xf32, #tpu.memory_space<vmem>>, vector<156x4xf32>
    %cst_109 = arith.constant dense<0.000000e+00> : vector<32x4xf32>
    %97 = tpu.matmul %95, %96, %cst_109 {dimension_numbers = #tpu.dot_dimension_numbers<[1], [0], [0], [1], [0, 0, 1, 1], [], []>} : vector<32x156xf32>, vector<156x4xf32>, vector<32x4xf32> -> vector<32x4xf32>
    %c0_110 = arith.constant 0 : index
    %c0_111 = arith.constant 0 : index
    %98 = vector.load %arg6[%c0_110, %c0_111] : memref<4x4xf32, #tpu.memory_space<vmem>>, vector<4x4xf32>
    %cst_112 = arith.constant dense<0.000000e+00> : vector<32x4xf32>
    %99 = tpu.matmul %11, %98, %cst_112 {dimension_numbers = #tpu.dot_dimension_numbers<[1], [0], [0], [1], [0, 0, 1, 1], [], []>} : vector<32x4xf32>, vector<4x4xf32>, vector<32x4xf32> -> vector<32x4xf32>
    %cst_113 = arith.constant 0.000000e+00 : f32
    %100 = vector.broadcast %cst_113 : f32 to vector<34x4xf32>
    %c0_114 = arith.constant 0 : index
    %c0_115 = arith.constant 0 : index
    %101 = vector.load %arg12[%c0_114, %c0_115] : memref<34x4xf32, #tpu.memory_space<vmem>>, vector<34x4xf32>
    tpu.vector_store %arg12[%c0_114, %c0_115], %100 {strides = array<i32>} : memref<34x4xf32, #tpu.memory_space<vmem>>, vector<34x4xf32>,
    %c-1_i32 = arith.constant -1 : i32
    %102 = vector.broadcast %c-1_i32 : i32 to vector<34x4xi32>
    %c0_116 = arith.constant 0 : index
    %c0_117 = arith.constant 0 : index
    %103 = vector.load %arg13[%c0_116, %c0_117] : memref<34x4xi32, #tpu.memory_space<vmem>>, vector<34x4xi32>
    tpu.vector_store %arg13[%c0_116, %c0_117], %102 {strides = array<i32>} : memref<34x4xi32, #tpu.memory_space<vmem>>, vector<34x4xi32>,
    %c1_118 = arith.constant 1 : index
    %c0_119 = arith.constant 0 : index
    %104 = vector.load %arg12[%c1_118, %c0_119] : memref<34x4xf32, #tpu.memory_space<vmem>>, vector<32x4xf32>
    tpu.vector_store %arg12[%c1_118, %c0_119], %99 {strides = array<i32>} : memref<34x4xf32, #tpu.memory_space<vmem>>, vector<32x4xf32>,
    %c1_120 = arith.constant 1 : index
    %c0_121 = arith.constant 0 : index
    %105 = vector.load %arg13[%c1_120, %c0_121] : memref<34x4xi32, #tpu.memory_space<vmem>>, vector<32x4xi32>
    tpu.vector_store %arg13[%c1_120, %c0_121], %13 {strides = array<i32>} : memref<34x4xi32, #tpu.memory_space<vmem>>, vector<32x4xi32>,
    %106 = tpu.iota {dimensions = array<i32: 0>} : vector<32x4xi32>
    %c0_122 = arith.constant 0 : index
    %c0_123 = arith.constant 0 : index
    %107 = vector.load %arg13[%c0_122, %c0_123] : memref<34x4xi32, #tpu.memory_space<vmem>>, vector<32x4xi32>
    %108 = arith.cmpi eq, %107, %106 : vector<32x4xi32>
    %c0_124 = arith.constant 0 : index
    %c0_125 = arith.constant 0 : index
    %109 = vector.load %arg12[%c0_124, %c0_125] : memref<34x4xf32, #tpu.memory_space<vmem>>, vector<32x4xf32>
    %cst_126 = arith.constant 0.000000e+00 : f32
    %110 = vector.broadcast %cst_126 : f32 to vector<32x4xf32>
    %111 = arith.select %108, %109, %110 : vector<32x4xi1>, vector<32x4xf32>
    %112 = arith.cmpi eq, %13, %106 : vector<32x4xi32>
    %113 = arith.select %112, %99, %111 : vector<32x4xi1>, vector<32x4xf32>
    %c2_127 = arith.constant 2 : index
    %c0_128 = arith.constant 0 : index
    %114 = vector.load %arg13[%c2_127, %c0_128] : memref<34x4xi32, #tpu.memory_space<vmem>>, vector<32x4xi32>
    %115 = arith.cmpi eq, %114, %106 : vector<32x4xi32>
    %c2_129 = arith.constant 2 : index
    %c0_130 = arith.constant 0 : index
    %116 = vector.load %arg12[%c2_129, %c0_130] : memref<34x4xf32, #tpu.memory_space<vmem>>, vector<32x4xf32>
    %117 = arith.select %115, %116, %113 : vector<32x4xi1>, vector<32x4xf32>
    %118 = arith.addf %97, %117 : vector<32x4xf32>
    %c0_131 = arith.constant 0 : index
    %c0_132 = arith.constant 0 : index
    %c0_133 = arith.constant 0 : index
    %119 = vector.load %arg7[%c0_131, %c0_132, %c0_133] : memref<1x32x4xf32, #tpu.memory_space<vmem>>, vector<1x32x4xf32>
    %120 = vector.shape_cast %119 : vector<1x32x4xf32> to vector<32x4xf32>
    %121 = vector.shape_cast %118 : vector<32x4xf32> to vector<1x32x4xf32>
    tpu.vector_store %arg7[%c0_131, %c0_132, %c0_133], %121 {strides = array<i32>} : memref<1x32x4xf32, #tpu.memory_space<vmem>>, vector<1x32x4xf32>,
    %cst_134 = arith.constant dense<0.000000e+00> : vector<4xf32>
    %122 = vector.multi_reduction <add>, %118, %cst_134 [0] : vector<32x4xf32> to vector<4xf32>
    %123 = vector.shape_cast %122 : vector<4xf32> to vector<1x4xf32>
    %c0_135 = arith.constant 0 : index
    %c0_136 = arith.constant 0 : index
    %c0_137 = arith.constant 0 : index
    %124 = vector.load %arg8[%c0_135, %c0_136, %c0_137] : memref<1x1x4xf32, #tpu.memory_space<vmem>>, vector<1x1x4xf32>
    %125 = vector.shape_cast %124 : vector<1x1x4xf32> to vector<1x4xf32>
    %126 = vector.shape_cast %123 : vector<1x4xf32> to vector<1x1x4xf32>
    tpu.vector_store %arg8[%c0_135, %c0_136, %c0_137], %126 {strides = array<i32>} : memref<1x1x4xf32, #tpu.memory_space<vmem>>, vector<1x1x4xf32>,
    %127 = arith.mulf %118, %118 : vector<32x4xf32>
    %cst_138 = arith.constant dense<0.000000e+00> : vector<4xf32>
    %128 = vector.multi_reduction <add>, %127, %cst_138 [0] : vector<32x4xf32> to vector<4xf32>
    %129 = vector.shape_cast %128 : vector<4xf32> to vector<1x4xf32>
    %c0_139 = arith.constant 0 : index
    %c0_140 = arith.constant 0 : index
    %c0_141 = arith.constant 0 : index
    %130 = vector.load %arg9[%c0_139, %c0_140, %c0_141] : memref<1x1x4xf32, #tpu.memory_space<vmem>>, vector<1x1x4xf32>
    %131 = vector.shape_cast %130 : vector<1x1x4xf32> to vector<1x4xf32>
    %132 = vector.shape_cast %129 : vector<1x4xf32> to vector<1x1x4xf32>
    tpu.vector_store %arg9[%c0_139, %c0_140, %c0_141], %132 {strides = array<i32>} : memref<1x1x4xf32, #tpu.memory_space<vmem>>, vector<1x1x4xf32>,
    return
  }
  func.func @transform_0(%arg0: i32) -> (i32, i32, i32) {
    %c0_i32 = arith.constant 0 : i32
    %c0_i32_0 = arith.constant 0 : i32
    %c0_i32_1 = arith.constant 0 : i32
    return %arg0, %c0_i32, %c0_i32_0 : i32, i32, i32
  }
  func.func @transform_1(%arg0: i32) -> (i32, i32, i32) {
    %c0_i32 = arith.constant 0 : i32
    %c0_i32_0 = arith.constant 0 : i32
    %c0_i32_1 = arith.constant 0 : i32
    %c0_i32_2 = arith.constant 0 : i32
    return %c0_i32, %c0_i32_0, %c0_i32_1 : i32, i32, i32
  }
  func.func @transform_2(%arg0: i32) -> (i32, i32, i32) {
    %c0_i32 = arith.constant 0 : i32
    %c0_i32_0 = arith.constant 0 : i32
    %c0_i32_1 = arith.constant 0 : i32
    %c0_i32_2 = arith.constant 0 : i32
    return %c0_i32, %c0_i32_0, %c0_i32_1 : i32, i32, i32
  }
  func.func @transform_3(%arg0: i32) -> (i32, i32, i32) {
    %c0_i32 = arith.constant 0 : i32
    %c0_i32_0 = arith.constant 0 : i32
    %c0_i32_1 = arith.constant 0 : i32
    return %arg0, %c0_i32, %c0_i32_0 : i32, i32, i32
  }
  func.func @transform_4(%arg0: i32) -> (i32, i32) {
    %c0_i32 = arith.constant 0 : i32
    %c0_i32_0 = arith.constant 0 : i32
    %c0_i32_1 = arith.constant 0 : i32
    return %c0_i32, %c0_i32_0 : i32, i32
  }
  func.func @transform_5(%arg0: i32) -> (i32, i32) {
    %c0_i32 = arith.constant 0 : i32
    %c0_i32_0 = arith.constant 0 : i32
    %c0_i32_1 = arith.constant 0 : i32
    return %c0_i32, %c0_i32_0 : i32, i32
  }
  func.func @transform_6(%arg0: i32) -> (i32, i32, i32) {
    %c0_i32 = arith.constant 0 : i32
    %c0_i32_0 = arith.constant 0 : i32
    %c0_i32_1 = arith.constant 0 : i32
    return %arg0, %c0_i32, %c0_i32_0 : i32, i32, i32
  }
  func.func @transform_7(%arg0: i32) -> (i32, i32, i32) {
    %c0_i32 = arith.constant 0 : i32
    %c0_i32_0 = arith.constant 0 : i32
    %c0_i32_1 = arith.constant 0 : i32
    return %arg0, %c0_i32, %c0_i32_0 : i32, i32, i32
  }
  func.func @transform_8(%arg0: i32) -> (i32, i32, i32) {
    %c0_i32 = arith.constant 0 : i32
    %c0_i32_0 = arith.constant 0 : i32
    %c0_i32_1 = arith.constant 0 : i32
    return %arg0, %c0_i32, %c0_i32_0 : i32, i32, i32
  }
}

module attributes {stable_mosaic.version = 11 : i64} {
  func.func @_final_kernel(%arg0: i32, %arg1: memref<1x32x8xf32, #tpu.memory_space<vmem>>, %arg2: memref<1x1x8xf32, #tpu.memory_space<vmem>>, %arg3: memref<1x1x8xf32, #tpu.memory_space<vmem>>, %arg4: memref<1x32x8xf32, #tpu.memory_space<vmem>>, %arg5: memref<1x1x8xf32, #tpu.memory_space<vmem>>, %arg6: memref<1x1x8xf32, #tpu.memory_space<vmem>>, %arg7: memref<1x32x8xf32, #tpu.memory_space<vmem>>) attributes {dimension_semantics = [#tpu.dimension_semantics<parallel>], iteration_bounds = array<i64: 2>, scalar_prefetch = 0 : i64, scratch_operands = 0 : i64, tpu.core_type = #tpu.core_type<tc>, window_params = [{transform_indices = @transform_0, window_bounds = array<i64: 1, 32, 8>}, {pipeline_mode = #tpu.pipeline_mode<synchronous>, transform_indices = @transform_1, window_bounds = array<i64: 1, 1, 8>}, {pipeline_mode = #tpu.pipeline_mode<synchronous>, transform_indices = @transform_2, window_bounds = array<i64: 1, 1, 8>}, {transform_indices = @transform_3, window_bounds = array<i64: 1, 32, 8>}, {pipeline_mode = #tpu.pipeline_mode<synchronous>, transform_indices = @transform_4, window_bounds = array<i64: 1, 1, 8>}, {pipeline_mode = #tpu.pipeline_mode<synchronous>, transform_indices = @transform_5, window_bounds = array<i64: 1, 1, 8>}, {transform_indices = @transform_6, window_bounds = array<i64: 1, 32, 8>}]} {
    %c0 = arith.constant 0 : index
    %c0_0 = arith.constant 0 : index
    %c0_1 = arith.constant 0 : index
    %0 = vector.load %arg1[%c0, %c0_0, %c0_1] : memref<1x32x8xf32, #tpu.memory_space<vmem>>, vector<1x32x8xf32>
    %c0_2 = arith.constant 0 : index
    %c0_3 = arith.constant 0 : index
    %c0_4 = arith.constant 0 : index
    %1 = vector.load %arg2[%c0_2, %c0_3, %c0_4] : memref<1x1x8xf32, #tpu.memory_space<vmem>>, vector<1x1x8xf32>
    %2 = vector.broadcast %1 : vector<1x1x8xf32> to vector<1x32x8xf32>
    %3 = arith.mulf %0, %2 : vector<1x32x8xf32>
    %c0_5 = arith.constant 0 : index
    %c0_6 = arith.constant 0 : index
    %c0_7 = arith.constant 0 : index
    %4 = vector.load %arg3[%c0_5, %c0_6, %c0_7] : memref<1x1x8xf32, #tpu.memory_space<vmem>>, vector<1x1x8xf32>
    %5 = vector.broadcast %4 : vector<1x1x8xf32> to vector<1x32x8xf32>
    %6 = arith.addf %3, %5 : vector<1x32x8xf32>
    %cst = arith.constant 0.000000e+00 : f32
    %7 = vector.broadcast %cst : f32 to vector<1x32x8xf32>
    %8 = arith.maximumf %6, %7 : vector<1x32x8xf32>
    %c0_8 = arith.constant 0 : index
    %c0_9 = arith.constant 0 : index
    %c0_10 = arith.constant 0 : index
    %9 = vector.load %arg4[%c0_8, %c0_9, %c0_10] : memref<1x32x8xf32, #tpu.memory_space<vmem>>, vector<1x32x8xf32>
    %c0_11 = arith.constant 0 : index
    %c0_12 = arith.constant 0 : index
    %c0_13 = arith.constant 0 : index
    %10 = vector.load %arg5[%c0_11, %c0_12, %c0_13] : memref<1x1x8xf32, #tpu.memory_space<vmem>>, vector<1x1x8xf32>
    %11 = vector.broadcast %10 : vector<1x1x8xf32> to vector<1x32x8xf32>
    %12 = arith.mulf %9, %11 : vector<1x32x8xf32>
    %13 = arith.addf %8, %12 : vector<1x32x8xf32>
    %c0_14 = arith.constant 0 : index
    %c0_15 = arith.constant 0 : index
    %c0_16 = arith.constant 0 : index
    %14 = vector.load %arg6[%c0_14, %c0_15, %c0_16] : memref<1x1x8xf32, #tpu.memory_space<vmem>>, vector<1x1x8xf32>
    %15 = vector.broadcast %14 : vector<1x1x8xf32> to vector<1x32x8xf32>
    %16 = arith.addf %13, %15 : vector<1x32x8xf32>
    %cst_17 = arith.constant 0.000000e+00 : f32
    %17 = vector.broadcast %cst_17 : f32 to vector<1x32x8xf32>
    %18 = arith.maximumf %16, %17 : vector<1x32x8xf32>
    %c0_18 = arith.constant 0 : index
    %c0_19 = arith.constant 0 : index
    %c0_20 = arith.constant 0 : index
    %19 = vector.load %arg7[%c0_18, %c0_19, %c0_20] : memref<1x32x8xf32, #tpu.memory_space<vmem>>, vector<1x32x8xf32>
    tpu.vector_store %arg7[%c0_18, %c0_19, %c0_20], %18 {strides = array<i32>} : memref<1x32x8xf32, #tpu.memory_space<vmem>>, vector<1x32x8xf32>,
    return
  }
  func.func @transform_0(%arg0: i32) -> (i32, i32, i32) {
    %c0_i32 = arith.constant 0 : i32
    %c0_i32_0 = arith.constant 0 : i32
    %c0_i32_1 = arith.constant 0 : i32
    return %arg0, %c0_i32, %c0_i32_0 : i32, i32, i32
  }
  func.func @transform_1(%arg0: i32) -> (i32, i32, i32) {
    %c0_i32 = arith.constant 0 : i32
    %c0_i32_0 = arith.constant 0 : i32
    %c0_i32_1 = arith.constant 0 : i32
    %c0_i32_2 = arith.constant 0 : i32
    return %c0_i32, %c0_i32_0, %c0_i32_1 : i32, i32, i32
  }
  func.func @transform_2(%arg0: i32) -> (i32, i32, i32) {
    %c0_i32 = arith.constant 0 : i32
    %c0_i32_0 = arith.constant 0 : i32
    %c0_i32_1 = arith.constant 0 : i32
    %c0_i32_2 = arith.constant 0 : i32
    return %c0_i32, %c0_i32_0, %c0_i32_1 : i32, i32, i32
  }
  func.func @transform_3(%arg0: i32) -> (i32, i32, i32) {
    %c0_i32 = arith.constant 0 : i32
    %c0_i32_0 = arith.constant 0 : i32
    %c0_i32_1 = arith.constant 0 : i32
    return %arg0, %c0_i32, %c0_i32_0 : i32, i32, i32
  }
  func.func @transform_4(%arg0: i32) -> (i32, i32, i32) {
    %c0_i32 = arith.constant 0 : i32
    %c0_i32_0 = arith.constant 0 : i32
    %c0_i32_1 = arith.constant 0 : i32
    %c0_i32_2 = arith.constant 0 : i32
    return %c0_i32, %c0_i32_0, %c0_i32_1 : i32, i32, i32
  }
  func.func @transform_5(%arg0: i32) -> (i32, i32, i32) {
    %c0_i32 = arith.constant 0 : i32
    %c0_i32_0 = arith.constant 0 : i32
    %c0_i32_1 = arith.constant 0 : i32
    %c0_i32_2 = arith.constant 0 : i32
    return %c0_i32, %c0_i32_0, %c0_i32_1 : i32, i32, i32
  }
  func.func @transform_6(%arg0: i32) -> (i32, i32, i32) {
    %c0_i32 = arith.constant 0 : i32
    %c0_i32_0 = arith.constant 0 : i32
    %c0_i32_1 = arith.constant 0 : i32
    return %arg0, %c0_i32, %c0_i32_0 : i32, i32, i32
  }
}

module attributes {stable_mosaic.version = 11 : i64} {
  func.func @_layer_kernel(%arg0: i32, %arg1: memref<1x32x4xf32, #tpu.memory_space<vmem>>, %arg2: memref<1x1x4xf32, #tpu.memory_space<vmem>>, %arg3: memref<1x1x4xf32, #tpu.memory_space<vmem>>, %arg4: memref<1x32x8xi32, #tpu.memory_space<vmem>>, %arg5: memref<156x8xf32, #tpu.memory_space<vmem>>, %arg6: memref<4x8xf32, #tpu.memory_space<vmem>>, %arg7: memref<1x32x8xf32, #tpu.memory_space<vmem>>, %arg8: memref<1x1x8xf32, #tpu.memory_space<vmem>>, %arg9: memref<1x1x8xf32, #tpu.memory_space<vmem>>, %arg10: memref<70x4xf32, #tpu.memory_space<vmem>>, %arg11: memref<32x156xf32, #tpu.memory_space<vmem>>, %arg12: memref<34x8xf32, #tpu.memory_space<vmem>>, %arg13: memref<34x8xi32, #tpu.memory_space<vmem>>) attributes {dimension_semantics = [#tpu.dimension_semantics<parallel>], iteration_bounds = array<i64: 2>, scalar_prefetch = 0 : i64, scratch_operands = 4 : i64, tpu.core_type = #tpu.core_type<tc>, window_params = [{transform_indices = @transform_0, window_bounds = array<i64: 1, 32, 4>}, {pipeline_mode = #tpu.pipeline_mode<synchronous>, transform_indices = @transform_1, window_bounds = array<i64: 1, 1, 4>}, {pipeline_mode = #tpu.pipeline_mode<synchronous>, transform_indices = @transform_2, window_bounds = array<i64: 1, 1, 4>}, {transform_indices = @transform_3, window_bounds = array<i64: 1, 32, 8>}, {pipeline_mode = #tpu.pipeline_mode<synchronous>, transform_indices = @transform_4, window_bounds = array<i64: 156, 8>}, {pipeline_mode = #tpu.pipeline_mode<synchronous>, transform_indices = @transform_5, window_bounds = array<i64: 4, 8>}, {transform_indices = @transform_6, window_bounds = array<i64: 1, 32, 8>}, {transform_indices = @transform_7, window_bounds = array<i64: 1, 1, 8>}, {transform_indices = @transform_8, window_bounds = array<i64: 1, 1, 8>}]} {
    %c0 = arith.constant 0 : index
    %c0_0 = arith.constant 0 : index
    %c0_1 = arith.constant 0 : index
    %0 = vector.load %arg1[%c0, %c0_0, %c0_1] : memref<1x32x4xf32, #tpu.memory_space<vmem>>, vector<1x32x4xf32>
    %1 = vector.shape_cast %0 : vector<1x32x4xf32> to vector<32x4xf32>
    %c0_2 = arith.constant 0 : index
    %c0_3 = arith.constant 0 : index
    %c0_4 = arith.constant 0 : index
    %2 = vector.load %arg2[%c0_2, %c0_3, %c0_4] : memref<1x1x4xf32, #tpu.memory_space<vmem>>, vector<1x1x4xf32>
    %3 = vector.shape_cast %2 : vector<1x1x4xf32> to vector<1x4xf32>
    %4 = vector.broadcast %3 : vector<1x4xf32> to vector<32x4xf32>
    %5 = arith.mulf %1, %4 : vector<32x4xf32>
    %c0_5 = arith.constant 0 : index
    %c0_6 = arith.constant 0 : index
    %c0_7 = arith.constant 0 : index
    %6 = vector.load %arg3[%c0_5, %c0_6, %c0_7] : memref<1x1x4xf32, #tpu.memory_space<vmem>>, vector<1x1x4xf32>
    %7 = vector.shape_cast %6 : vector<1x1x4xf32> to vector<1x4xf32>
    %8 = vector.broadcast %7 : vector<1x4xf32> to vector<32x4xf32>
    %9 = arith.addf %5, %8 : vector<32x4xf32>
    %cst = arith.constant 0.000000e+00 : f32
    %10 = vector.broadcast %cst : f32 to vector<32x4xf32>
    %11 = arith.maximumf %9, %10 : vector<32x4xf32>
    %c0_8 = arith.constant 0 : index
    %c0_9 = arith.constant 0 : index
    %c0_10 = arith.constant 0 : index
    %12 = vector.load %arg4[%c0_8, %c0_9, %c0_10] : memref<1x32x8xi32, #tpu.memory_space<vmem>>, vector<1x32x8xi32>
    %13 = vector.shape_cast %12 : vector<1x32x8xi32> to vector<32x8xi32>
    %cst_11 = arith.constant 0.000000e+00 : f32
    %14 = vector.broadcast %cst_11 : f32 to vector<70x4xf32>
    %c0_12 = arith.constant 0 : index
    %c0_13 = arith.constant 0 : index
    %15 = vector.load %arg10[%c0_12, %c0_13] : memref<70x4xf32, #tpu.memory_space<vmem>>, vector<70x4xf32>
    tpu.vector_store %arg10[%c0_12, %c0_13], %14 {strides = array<i32>} : memref<70x4xf32, #tpu.memory_space<vmem>>, vector<70x4xf32>,
    %c19 = arith.constant 19 : index
    %c0_14 = arith.constant 0 : index
    %16 = vector.load %arg10[%c19, %c0_14] : memref<70x4xf32, #tpu.memory_space<vmem>>, vector<32x4xf32>
    tpu.vector_store %arg10[%c19, %c0_14], %11 {strides = array<i32>} : memref<70x4xf32, #tpu.memory_space<vmem>>, vector<32x4xf32>,
    %c38 = arith.constant 38 : index
    %c0_15 = arith.constant 0 : index
    %17 = vector.load %arg10[%c38, %c0_15] : memref<70x4xf32, #tpu.memory_space<vmem>>, vector<32x4xf32>
    %c0_16 = arith.constant 0 : index
    %c0_17 = arith.constant 0 : index
    %18 = vector.load %arg11[%c0_16, %c0_17] : memref<32x156xf32, #tpu.memory_space<vmem>>, vector<32x4xf32>
    tpu.vector_store %arg11[%c0_16, %c0_17], %17 {strides = array<i32>} : memref<32x156xf32, #tpu.memory_space<vmem>>, vector<32x4xf32>,
    %c37 = arith.constant 37 : index
    %c0_18 = arith.constant 0 : index
    %19 = vector.load %arg10[%c37, %c0_18] : memref<70x4xf32, #tpu.memory_space<vmem>>, vector<32x4xf32>
    %c0_19 = arith.constant 0 : index
    %c4 = arith.constant 4 : index
    %20 = vector.load %arg11[%c0_19, %c4] : memref<32x156xf32, #tpu.memory_space<vmem>>, vector<32x4xf32>
    tpu.vector_store %arg11[%c0_19, %c4], %19 {strides = array<i32>} : memref<32x156xf32, #tpu.memory_space<vmem>>, vector<32x4xf32>,
    %c36 = arith.constant 36 : index
    %c0_20 = arith.constant 0 : index
    %21 = vector.load %arg10[%c36, %c0_20] : memref<70x4xf32, #tpu.memory_space<vmem>>, vector<32x4xf32>
    %c0_21 = arith.constant 0 : index
    %c8 = arith.constant 8 : index
    %22 = vector.load %arg11[%c0_21, %c8] : memref<32x156xf32, #tpu.memory_space<vmem>>, vector<32x4xf32>
    tpu.vector_store %arg11[%c0_21, %c8], %21 {strides = array<i32>} : memref<32x156xf32, #tpu.memory_space<vmem>>, vector<32x4xf32>,
    %c35 = arith.constant 35 : index
    %c0_22 = arith.constant 0 : index
    %23 = vector.load %arg10[%c35, %c0_22] : memref<70x4xf32, #tpu.memory_space<vmem>>, vector<32x4xf32>
    %c0_23 = arith.constant 0 : index
    %c12 = arith.constant 12 : index
    %24 = vector.load %arg11[%c0_23, %c12] : memref<32x156xf32, #tpu.memory_space<vmem>>, vector<32x4xf32>
    tpu.vector_store %arg11[%c0_23, %c12], %23 {strides = array<i32>} : memref<32x156xf32, #tpu.memory_space<vmem>>, vector<32x4xf32>,
    %c34 = arith.constant 34 : index
    %c0_24 = arith.constant 0 : index
    %25 = vector.load %arg10[%c34, %c0_24] : memref<70x4xf32, #tpu.memory_space<vmem>>, vector<32x4xf32>
    %c0_25 = arith.constant 0 : index
    %c16 = arith.constant 16 : index
    %26 = vector.load %arg11[%c0_25, %c16] : memref<32x156xf32, #tpu.memory_space<vmem>>, vector<32x4xf32>
    tpu.vector_store %arg11[%c0_25, %c16], %25 {strides = array<i32>} : memref<32x156xf32, #tpu.memory_space<vmem>>, vector<32x4xf32>,
    %c33 = arith.constant 33 : index
    %c0_26 = arith.constant 0 : index
    %27 = vector.load %arg10[%c33, %c0_26] : memref<70x4xf32, #tpu.memory_space<vmem>>, vector<32x4xf32>
    %c0_27 = arith.constant 0 : index
    %c20 = arith.constant 20 : index
    %28 = vector.load %arg11[%c0_27, %c20] : memref<32x156xf32, #tpu.memory_space<vmem>>, vector<32x4xf32>
    tpu.vector_store %arg11[%c0_27, %c20], %27 {strides = array<i32>} : memref<32x156xf32, #tpu.memory_space<vmem>>, vector<32x4xf32>,
    %c32 = arith.constant 32 : index
    %c0_28 = arith.constant 0 : index
    %29 = vector.load %arg10[%c32, %c0_28] : memref<70x4xf32, #tpu.memory_space<vmem>>, vector<32x4xf32>
    %c0_29 = arith.constant 0 : index
    %c24 = arith.constant 24 : index
    %30 = vector.load %arg11[%c0_29, %c24] : memref<32x156xf32, #tpu.memory_space<vmem>>, vector<32x4xf32>
    tpu.vector_store %arg11[%c0_29, %c24], %29 {strides = array<i32>} : memref<32x156xf32, #tpu.memory_space<vmem>>, vector<32x4xf32>,
    %c31 = arith.constant 31 : index
    %c0_30 = arith.constant 0 : index
    %31 = vector.load %arg10[%c31, %c0_30] : memref<70x4xf32, #tpu.memory_space<vmem>>, vector<32x4xf32>
    %c0_31 = arith.constant 0 : index
    %c28 = arith.constant 28 : index
    %32 = vector.load %arg11[%c0_31, %c28] : memref<32x156xf32, #tpu.memory_space<vmem>>, vector<32x4xf32>
    tpu.vector_store %arg11[%c0_31, %c28], %31 {strides = array<i32>} : memref<32x156xf32, #tpu.memory_space<vmem>>, vector<32x4xf32>,
    %c30 = arith.constant 30 : index
    %c0_32 = arith.constant 0 : index
    %33 = vector.load %arg10[%c30, %c0_32] : memref<70x4xf32, #tpu.memory_space<vmem>>, vector<32x4xf32>
    %c0_33 = arith.constant 0 : index
    %c32_34 = arith.constant 32 : index
    %34 = vector.load %arg11[%c0_33, %c32_34] : memref<32x156xf32, #tpu.memory_space<vmem>>, vector<32x4xf32>
    tpu.vector_store %arg11[%c0_33, %c32_34], %33 {strides = array<i32>} : memref<32x156xf32, #tpu.memory_space<vmem>>, vector<32x4xf32>,
    %c29 = arith.constant 29 : index
    %c0_35 = arith.constant 0 : index
    %35 = vector.load %arg10[%c29, %c0_35] : memref<70x4xf32, #tpu.memory_space<vmem>>, vector<32x4xf32>
    %c0_36 = arith.constant 0 : index
    %c36_37 = arith.constant 36 : index
    %36 = vector.load %arg11[%c0_36, %c36_37] : memref<32x156xf32, #tpu.memory_space<vmem>>, vector<32x4xf32>
    tpu.vector_store %arg11[%c0_36, %c36_37], %35 {strides = array<i32>} : memref<32x156xf32, #tpu.memory_space<vmem>>, vector<32x4xf32>,
    %c28_38 = arith.constant 28 : index
    %c0_39 = arith.constant 0 : index
    %37 = vector.load %arg10[%c28_38, %c0_39] : memref<70x4xf32, #tpu.memory_space<vmem>>, vector<32x4xf32>
    %c0_40 = arith.constant 0 : index
    %c40 = arith.constant 40 : index
    %38 = vector.load %arg11[%c0_40, %c40] : memref<32x156xf32, #tpu.memory_space<vmem>>, vector<32x4xf32>
    tpu.vector_store %arg11[%c0_40, %c40], %37 {strides = array<i32>} : memref<32x156xf32, #tpu.memory_space<vmem>>, vector<32x4xf32>,
    %c27 = arith.constant 27 : index
    %c0_41 = arith.constant 0 : index
    %39 = vector.load %arg10[%c27, %c0_41] : memref<70x4xf32, #tpu.memory_space<vmem>>, vector<32x4xf32>
    %c0_42 = arith.constant 0 : index
    %c44 = arith.constant 44 : index
    %40 = vector.load %arg11[%c0_42, %c44] : memref<32x156xf32, #tpu.memory_space<vmem>>, vector<32x4xf32>
    tpu.vector_store %arg11[%c0_42, %c44], %39 {strides = array<i32>} : memref<32x156xf32, #tpu.memory_space<vmem>>, vector<32x4xf32>,
    %c26 = arith.constant 26 : index
    %c0_43 = arith.constant 0 : index
    %41 = vector.load %arg10[%c26, %c0_43] : memref<70x4xf32, #tpu.memory_space<vmem>>, vector<32x4xf32>
    %c0_44 = arith.constant 0 : index
    %c48 = arith.constant 48 : index
    %42 = vector.load %arg11[%c0_44, %c48] : memref<32x156xf32, #tpu.memory_space<vmem>>, vector<32x4xf32>
    tpu.vector_store %arg11[%c0_44, %c48], %41 {strides = array<i32>} : memref<32x156xf32, #tpu.memory_space<vmem>>, vector<32x4xf32>,
    %c25 = arith.constant 25 : index
    %c0_45 = arith.constant 0 : index
    %43 = vector.load %arg10[%c25, %c0_45] : memref<70x4xf32, #tpu.memory_space<vmem>>, vector<32x4xf32>
    %c0_46 = arith.constant 0 : index
    %c52 = arith.constant 52 : index
    %44 = vector.load %arg11[%c0_46, %c52] : memref<32x156xf32, #tpu.memory_space<vmem>>, vector<32x4xf32>
    tpu.vector_store %arg11[%c0_46, %c52], %43 {strides = array<i32>} : memref<32x156xf32, #tpu.memory_space<vmem>>, vector<32x4xf32>,
    %c24_47 = arith.constant 24 : index
    %c0_48 = arith.constant 0 : index
    %45 = vector.load %arg10[%c24_47, %c0_48] : memref<70x4xf32, #tpu.memory_space<vmem>>, vector<32x4xf32>
    %c0_49 = arith.constant 0 : index
    %c56 = arith.constant 56 : index
    %46 = vector.load %arg11[%c0_49, %c56] : memref<32x156xf32, #tpu.memory_space<vmem>>, vector<32x4xf32>
    tpu.vector_store %arg11[%c0_49, %c56], %45 {strides = array<i32>} : memref<32x156xf32, #tpu.memory_space<vmem>>, vector<32x4xf32>,
    %c23 = arith.constant 23 : index
    %c0_50 = arith.constant 0 : index
    %47 = vector.load %arg10[%c23, %c0_50] : memref<70x4xf32, #tpu.memory_space<vmem>>, vector<32x4xf32>
    %c0_51 = arith.constant 0 : index
    %c60 = arith.constant 60 : index
    %48 = vector.load %arg11[%c0_51, %c60] : memref<32x156xf32, #tpu.memory_space<vmem>>, vector<32x4xf32>
    tpu.vector_store %arg11[%c0_51, %c60], %47 {strides = array<i32>} : memref<32x156xf32, #tpu.memory_space<vmem>>, vector<32x4xf32>,
    %c22 = arith.constant 22 : index
    %c0_52 = arith.constant 0 : index
    %49 = vector.load %arg10[%c22, %c0_52] : memref<70x4xf32, #tpu.memory_space<vmem>>, vector<32x4xf32>
    %c0_53 = arith.constant 0 : index
    %c64 = arith.constant 64 : index
    %50 = vector.load %arg11[%c0_53, %c64] : memref<32x156xf32, #tpu.memory_space<vmem>>, vector<32x4xf32>
    tpu.vector_store %arg11[%c0_53, %c64], %49 {strides = array<i32>} : memref<32x156xf32, #tpu.memory_space<vmem>>, vector<32x4xf32>,
    %c21 = arith.constant 21 : index
    %c0_54 = arith.constant 0 : index
    %51 = vector.load %arg10[%c21, %c0_54] : memref<70x4xf32, #tpu.memory_space<vmem>>, vector<32x4xf32>
    %c0_55 = arith.constant 0 : index
    %c68 = arith.constant 68 : index
    %52 = vector.load %arg11[%c0_55, %c68] : memref<32x156xf32, #tpu.memory_space<vmem>>, vector<32x4xf32>
    tpu.vector_store %arg11[%c0_55, %c68], %51 {strides = array<i32>} : memref<32x156xf32, #tpu.memory_space<vmem>>, vector<32x4xf32>,
    %c20_56 = arith.constant 20 : index
    %c0_57 = arith.constant 0 : index
    %53 = vector.load %arg10[%c20_56, %c0_57] : memref<70x4xf32, #tpu.memory_space<vmem>>, vector<32x4xf32>
    %c0_58 = arith.constant 0 : index
    %c72 = arith.constant 72 : index
    %54 = vector.load %arg11[%c0_58, %c72] : memref<32x156xf32, #tpu.memory_space<vmem>>, vector<32x4xf32>
    tpu.vector_store %arg11[%c0_58, %c72], %53 {strides = array<i32>} : memref<32x156xf32, #tpu.memory_space<vmem>>, vector<32x4xf32>,
    %c19_59 = arith.constant 19 : index
    %c0_60 = arith.constant 0 : index
    %55 = vector.load %arg10[%c19_59, %c0_60] : memref<70x4xf32, #tpu.memory_space<vmem>>, vector<32x4xf32>
    %c0_61 = arith.constant 0 : index
    %c76 = arith.constant 76 : index
    %56 = vector.load %arg11[%c0_61, %c76] : memref<32x156xf32, #tpu.memory_space<vmem>>, vector<32x4xf32>
    tpu.vector_store %arg11[%c0_61, %c76], %55 {strides = array<i32>} : memref<32x156xf32, #tpu.memory_space<vmem>>, vector<32x4xf32>,
    %c18 = arith.constant 18 : index
    %c0_62 = arith.constant 0 : index
    %57 = vector.load %arg10[%c18, %c0_62] : memref<70x4xf32, #tpu.memory_space<vmem>>, vector<32x4xf32>
    %c0_63 = arith.constant 0 : index
    %c80 = arith.constant 80 : index
    %58 = vector.load %arg11[%c0_63, %c80] : memref<32x156xf32, #tpu.memory_space<vmem>>, vector<32x4xf32>
    tpu.vector_store %arg11[%c0_63, %c80], %57 {strides = array<i32>} : memref<32x156xf32, #tpu.memory_space<vmem>>, vector<32x4xf32>,
    %c17 = arith.constant 17 : index
    %c0_64 = arith.constant 0 : index
    %59 = vector.load %arg10[%c17, %c0_64] : memref<70x4xf32, #tpu.memory_space<vmem>>, vector<32x4xf32>
    %c0_65 = arith.constant 0 : index
    %c84 = arith.constant 84 : index
    %60 = vector.load %arg11[%c0_65, %c84] : memref<32x156xf32, #tpu.memory_space<vmem>>, vector<32x4xf32>
    tpu.vector_store %arg11[%c0_65, %c84], %59 {strides = array<i32>} : memref<32x156xf32, #tpu.memory_space<vmem>>, vector<32x4xf32>,
    %c16_66 = arith.constant 16 : index
    %c0_67 = arith.constant 0 : index
    %61 = vector.load %arg10[%c16_66, %c0_67] : memref<70x4xf32, #tpu.memory_space<vmem>>, vector<32x4xf32>
    %c0_68 = arith.constant 0 : index
    %c88 = arith.constant 88 : index
    %62 = vector.load %arg11[%c0_68, %c88] : memref<32x156xf32, #tpu.memory_space<vmem>>, vector<32x4xf32>
    tpu.vector_store %arg11[%c0_68, %c88], %61 {strides = array<i32>} : memref<32x156xf32, #tpu.memory_space<vmem>>, vector<32x4xf32>,
    %c15 = arith.constant 15 : index
    %c0_69 = arith.constant 0 : index
    %63 = vector.load %arg10[%c15, %c0_69] : memref<70x4xf32, #tpu.memory_space<vmem>>, vector<32x4xf32>
    %c0_70 = arith.constant 0 : index
    %c92 = arith.constant 92 : index
    %64 = vector.load %arg11[%c0_70, %c92] : memref<32x156xf32, #tpu.memory_space<vmem>>, vector<32x4xf32>
    tpu.vector_store %arg11[%c0_70, %c92], %63 {strides = array<i32>} : memref<32x156xf32, #tpu.memory_space<vmem>>, vector<32x4xf32>,
    %c14 = arith.constant 14 : index
    %c0_71 = arith.constant 0 : index
    %65 = vector.load %arg10[%c14, %c0_71] : memref<70x4xf32, #tpu.memory_space<vmem>>, vector<32x4xf32>
    %c0_72 = arith.constant 0 : index
    %c96 = arith.constant 96 : index
    %66 = vector.load %arg11[%c0_72, %c96] : memref<32x156xf32, #tpu.memory_space<vmem>>, vector<32x4xf32>
    tpu.vector_store %arg11[%c0_72, %c96], %65 {strides = array<i32>} : memref<32x156xf32, #tpu.memory_space<vmem>>, vector<32x4xf32>,
    %c13 = arith.constant 13 : index
    %c0_73 = arith.constant 0 : index
    %67 = vector.load %arg10[%c13, %c0_73] : memref<70x4xf32, #tpu.memory_space<vmem>>, vector<32x4xf32>
    %c0_74 = arith.constant 0 : index
    %c100 = arith.constant 100 : index
    %68 = vector.load %arg11[%c0_74, %c100] : memref<32x156xf32, #tpu.memory_space<vmem>>, vector<32x4xf32>
    tpu.vector_store %arg11[%c0_74, %c100], %67 {strides = array<i32>} : memref<32x156xf32, #tpu.memory_space<vmem>>, vector<32x4xf32>,
    %c12_75 = arith.constant 12 : index
    %c0_76 = arith.constant 0 : index
    %69 = vector.load %arg10[%c12_75, %c0_76] : memref<70x4xf32, #tpu.memory_space<vmem>>, vector<32x4xf32>
    %c0_77 = arith.constant 0 : index
    %c104 = arith.constant 104 : index
    %70 = vector.load %arg11[%c0_77, %c104] : memref<32x156xf32, #tpu.memory_space<vmem>>, vector<32x4xf32>
    tpu.vector_store %arg11[%c0_77, %c104], %69 {strides = array<i32>} : memref<32x156xf32, #tpu.memory_space<vmem>>, vector<32x4xf32>,
    %c11 = arith.constant 11 : index
    %c0_78 = arith.constant 0 : index
    %71 = vector.load %arg10[%c11, %c0_78] : memref<70x4xf32, #tpu.memory_space<vmem>>, vector<32x4xf32>
    %c0_79 = arith.constant 0 : index
    %c108 = arith.constant 108 : index
    %72 = vector.load %arg11[%c0_79, %c108] : memref<32x156xf32, #tpu.memory_space<vmem>>, vector<32x4xf32>
    tpu.vector_store %arg11[%c0_79, %c108], %71 {strides = array<i32>} : memref<32x156xf32, #tpu.memory_space<vmem>>, vector<32x4xf32>,
    %c10 = arith.constant 10 : index
    %c0_80 = arith.constant 0 : index
    %73 = vector.load %arg10[%c10, %c0_80] : memref<70x4xf32, #tpu.memory_space<vmem>>, vector<32x4xf32>
    %c0_81 = arith.constant 0 : index
    %c112 = arith.constant 112 : index
    %74 = vector.load %arg11[%c0_81, %c112] : memref<32x156xf32, #tpu.memory_space<vmem>>, vector<32x4xf32>
    tpu.vector_store %arg11[%c0_81, %c112], %73 {strides = array<i32>} : memref<32x156xf32, #tpu.memory_space<vmem>>, vector<32x4xf32>,
    %c9 = arith.constant 9 : index
    %c0_82 = arith.constant 0 : index
    %75 = vector.load %arg10[%c9, %c0_82] : memref<70x4xf32, #tpu.memory_space<vmem>>, vector<32x4xf32>
    %c0_83 = arith.constant 0 : index
    %c116 = arith.constant 116 : index
    %76 = vector.load %arg11[%c0_83, %c116] : memref<32x156xf32, #tpu.memory_space<vmem>>, vector<32x4xf32>
    tpu.vector_store %arg11[%c0_83, %c116], %75 {strides = array<i32>} : memref<32x156xf32, #tpu.memory_space<vmem>>, vector<32x4xf32>,
    %c8_84 = arith.constant 8 : index
    %c0_85 = arith.constant 0 : index
    %77 = vector.load %arg10[%c8_84, %c0_85] : memref<70x4xf32, #tpu.memory_space<vmem>>, vector<32x4xf32>
    %c0_86 = arith.constant 0 : index
    %c120 = arith.constant 120 : index
    %78 = vector.load %arg11[%c0_86, %c120] : memref<32x156xf32, #tpu.memory_space<vmem>>, vector<32x4xf32>
    tpu.vector_store %arg11[%c0_86, %c120], %77 {strides = array<i32>} : memref<32x156xf32, #tpu.memory_space<vmem>>, vector<32x4xf32>,
    %c7 = arith.constant 7 : index
    %c0_87 = arith.constant 0 : index
    %79 = vector.load %arg10[%c7, %c0_87] : memref<70x4xf32, #tpu.memory_space<vmem>>, vector<32x4xf32>
    %c0_88 = arith.constant 0 : index
    %c124 = arith.constant 124 : index
    %80 = vector.load %arg11[%c0_88, %c124] : memref<32x156xf32, #tpu.memory_space<vmem>>, vector<32x4xf32>
    tpu.vector_store %arg11[%c0_88, %c124], %79 {strides = array<i32>} : memref<32x156xf32, #tpu.memory_space<vmem>>, vector<32x4xf32>,
    %c6 = arith.constant 6 : index
    %c0_89 = arith.constant 0 : index
    %81 = vector.load %arg10[%c6, %c0_89] : memref<70x4xf32, #tpu.memory_space<vmem>>, vector<32x4xf32>
    %c0_90 = arith.constant 0 : index
    %c128 = arith.constant 128 : index
    %82 = vector.load %arg11[%c0_90, %c128] : memref<32x156xf32, #tpu.memory_space<vmem>>, vector<32x4xf32>
    tpu.vector_store %arg11[%c0_90, %c128], %81 {strides = array<i32>} : memref<32x156xf32, #tpu.memory_space<vmem>>, vector<32x4xf32>,
    %c5 = arith.constant 5 : index
    %c0_91 = arith.constant 0 : index
    %83 = vector.load %arg10[%c5, %c0_91] : memref<70x4xf32, #tpu.memory_space<vmem>>, vector<32x4xf32>
    %c0_92 = arith.constant 0 : index
    %c132 = arith.constant 132 : index
    %84 = vector.load %arg11[%c0_92, %c132] : memref<32x156xf32, #tpu.memory_space<vmem>>, vector<32x4xf32>
    tpu.vector_store %arg11[%c0_92, %c132], %83 {strides = array<i32>} : memref<32x156xf32, #tpu.memory_space<vmem>>, vector<32x4xf32>,
    %c4_93 = arith.constant 4 : index
    %c0_94 = arith.constant 0 : index
    %85 = vector.load %arg10[%c4_93, %c0_94] : memref<70x4xf32, #tpu.memory_space<vmem>>, vector<32x4xf32>
    %c0_95 = arith.constant 0 : index
    %c136 = arith.constant 136 : index
    %86 = vector.load %arg11[%c0_95, %c136] : memref<32x156xf32, #tpu.memory_space<vmem>>, vector<32x4xf32>
    tpu.vector_store %arg11[%c0_95, %c136], %85 {strides = array<i32>} : memref<32x156xf32, #tpu.memory_space<vmem>>, vector<32x4xf32>,
    %c3 = arith.constant 3 : index
    %c0_96 = arith.constant 0 : index
    %87 = vector.load %arg10[%c3, %c0_96] : memref<70x4xf32, #tpu.memory_space<vmem>>, vector<32x4xf32>
    %c0_97 = arith.constant 0 : index
    %c140 = arith.constant 140 : index
    %88 = vector.load %arg11[%c0_97, %c140] : memref<32x156xf32, #tpu.memory_space<vmem>>, vector<32x4xf32>
    tpu.vector_store %arg11[%c0_97, %c140], %87 {strides = array<i32>} : memref<32x156xf32, #tpu.memory_space<vmem>>, vector<32x4xf32>,
    %c2 = arith.constant 2 : index
    %c0_98 = arith.constant 0 : index
    %89 = vector.load %arg10[%c2, %c0_98] : memref<70x4xf32, #tpu.memory_space<vmem>>, vector<32x4xf32>
    %c0_99 = arith.constant 0 : index
    %c144 = arith.constant 144 : index
    %90 = vector.load %arg11[%c0_99, %c144] : memref<32x156xf32, #tpu.memory_space<vmem>>, vector<32x4xf32>
    tpu.vector_store %arg11[%c0_99, %c144], %89 {strides = array<i32>} : memref<32x156xf32, #tpu.memory_space<vmem>>, vector<32x4xf32>,
    %c1 = arith.constant 1 : index
    %c0_100 = arith.constant 0 : index
    %91 = vector.load %arg10[%c1, %c0_100] : memref<70x4xf32, #tpu.memory_space<vmem>>, vector<32x4xf32>
    %c0_101 = arith.constant 0 : index
    %c148 = arith.constant 148 : index
    %92 = vector.load %arg11[%c0_101, %c148] : memref<32x156xf32, #tpu.memory_space<vmem>>, vector<32x4xf32>
    tpu.vector_store %arg11[%c0_101, %c148], %91 {strides = array<i32>} : memref<32x156xf32, #tpu.memory_space<vmem>>, vector<32x4xf32>,
    %c0_102 = arith.constant 0 : index
    %c0_103 = arith.constant 0 : index
    %93 = vector.load %arg10[%c0_102, %c0_103] : memref<70x4xf32, #tpu.memory_space<vmem>>, vector<32x4xf32>
    %c0_104 = arith.constant 0 : index
    %c152 = arith.constant 152 : index
    %94 = vector.load %arg11[%c0_104, %c152] : memref<32x156xf32, #tpu.memory_space<vmem>>, vector<32x4xf32>
    tpu.vector_store %arg11[%c0_104, %c152], %93 {strides = array<i32>} : memref<32x156xf32, #tpu.memory_space<vmem>>, vector<32x4xf32>,
    %c0_105 = arith.constant 0 : index
    %c0_106 = arith.constant 0 : index
    %95 = vector.load %arg11[%c0_105, %c0_106] : memref<32x156xf32, #tpu.memory_space<vmem>>, vector<32x156xf32>
    %c0_107 = arith.constant 0 : index
    %c0_108 = arith.constant 0 : index
    %96 = vector.load %arg5[%c0_107, %c0_108] : memref<156x8xf32, #tpu.memory_space<vmem>>, vector<156x8xf32>
    %cst_109 = arith.constant dense<0.000000e+00> : vector<32x8xf32>
    %97 = tpu.matmul %95, %96, %cst_109 {dimension_numbers = #tpu.dot_dimension_numbers<[1], [0], [0], [1], [0, 0, 1, 1], [], []>} : vector<32x156xf32>, vector<156x8xf32>, vector<32x8xf32> -> vector<32x8xf32>
    %c0_110 = arith.constant 0 : index
    %c0_111 = arith.constant 0 : index
    %98 = vector.load %arg6[%c0_110, %c0_111] : memref<4x8xf32, #tpu.memory_space<vmem>>, vector<4x8xf32>
    %cst_112 = arith.constant dense<0.000000e+00> : vector<32x8xf32>
    %99 = tpu.matmul %11, %98, %cst_112 {dimension_numbers = #tpu.dot_dimension_numbers<[1], [0], [0], [1], [0, 0, 1, 1], [], []>} : vector<32x4xf32>, vector<4x8xf32>, vector<32x8xf32> -> vector<32x8xf32>
    %cst_113 = arith.constant 0.000000e+00 : f32
    %100 = vector.broadcast %cst_113 : f32 to vector<34x8xf32>
    %c0_114 = arith.constant 0 : index
    %c0_115 = arith.constant 0 : index
    %101 = vector.load %arg12[%c0_114, %c0_115] : memref<34x8xf32, #tpu.memory_space<vmem>>, vector<34x8xf32>
    tpu.vector_store %arg12[%c0_114, %c0_115], %100 {strides = array<i32>} : memref<34x8xf32, #tpu.memory_space<vmem>>, vector<34x8xf32>,
    %c-1_i32 = arith.constant -1 : i32
    %102 = vector.broadcast %c-1_i32 : i32 to vector<34x8xi32>
    %c0_116 = arith.constant 0 : index
    %c0_117 = arith.constant 0 : index
    %103 = vector.load %arg13[%c0_116, %c0_117] : memref<34x8xi32, #tpu.memory_space<vmem>>, vector<34x8xi32>
    tpu.vector_store %arg13[%c0_116, %c0_117], %102 {strides = array<i32>} : memref<34x8xi32, #tpu.memory_space<vmem>>, vector<34x8xi32>,
    %c1_118 = arith.constant 1 : index
    %c0_119 = arith.constant 0 : index
    %104 = vector.load %arg12[%c1_118, %c0_119] : memref<34x8xf32, #tpu.memory_space<vmem>>, vector<32x8xf32>
    tpu.vector_store %arg12[%c1_118, %c0_119], %99 {strides = array<i32>} : memref<34x8xf32, #tpu.memory_space<vmem>>, vector<32x8xf32>,
    %c1_120 = arith.constant 1 : index
    %c0_121 = arith.constant 0 : index
    %105 = vector.load %arg13[%c1_120, %c0_121] : memref<34x8xi32, #tpu.memory_space<vmem>>, vector<32x8xi32>
    tpu.vector_store %arg13[%c1_120, %c0_121], %13 {strides = array<i32>} : memref<34x8xi32, #tpu.memory_space<vmem>>, vector<32x8xi32>,
    %106 = tpu.iota {dimensions = array<i32: 0>} : vector<32x8xi32>
    %c0_122 = arith.constant 0 : index
    %c0_123 = arith.constant 0 : index
    %107 = vector.load %arg13[%c0_122, %c0_123] : memref<34x8xi32, #tpu.memory_space<vmem>>, vector<32x8xi32>
    %108 = arith.cmpi eq, %107, %106 : vector<32x8xi32>
    %c0_124 = arith.constant 0 : index
    %c0_125 = arith.constant 0 : index
    %109 = vector.load %arg12[%c0_124, %c0_125] : memref<34x8xf32, #tpu.memory_space<vmem>>, vector<32x8xf32>
    %cst_126 = arith.constant 0.000000e+00 : f32
    %110 = vector.broadcast %cst_126 : f32 to vector<32x8xf32>
    %111 = arith.select %108, %109, %110 : vector<32x8xi1>, vector<32x8xf32>
    %112 = arith.cmpi eq, %13, %106 : vector<32x8xi32>
    %113 = arith.select %112, %99, %111 : vector<32x8xi1>, vector<32x8xf32>
    %c2_127 = arith.constant 2 : index
    %c0_128 = arith.constant 0 : index
    %114 = vector.load %arg13[%c2_127, %c0_128] : memref<34x8xi32, #tpu.memory_space<vmem>>, vector<32x8xi32>
    %115 = arith.cmpi eq, %114, %106 : vector<32x8xi32>
    %c2_129 = arith.constant 2 : index
    %c0_130 = arith.constant 0 : index
    %116 = vector.load %arg12[%c2_129, %c0_130] : memref<34x8xf32, #tpu.memory_space<vmem>>, vector<32x8xf32>
    %117 = arith.select %115, %116, %113 : vector<32x8xi1>, vector<32x8xf32>
    %118 = arith.addf %97, %117 : vector<32x8xf32>
    %c0_131 = arith.constant 0 : index
    %c0_132 = arith.constant 0 : index
    %c0_133 = arith.constant 0 : index
    %119 = vector.load %arg7[%c0_131, %c0_132, %c0_133] : memref<1x32x8xf32, #tpu.memory_space<vmem>>, vector<1x32x8xf32>
    %120 = vector.shape_cast %119 : vector<1x32x8xf32> to vector<32x8xf32>
    %121 = vector.shape_cast %118 : vector<32x8xf32> to vector<1x32x8xf32>
    tpu.vector_store %arg7[%c0_131, %c0_132, %c0_133], %121 {strides = array<i32>} : memref<1x32x8xf32, #tpu.memory_space<vmem>>, vector<1x32x8xf32>,
    %cst_134 = arith.constant dense<0.000000e+00> : vector<8xf32>
    %122 = vector.multi_reduction <add>, %118, %cst_134 [0] : vector<32x8xf32> to vector<8xf32>
    %123 = vector.shape_cast %122 : vector<8xf32> to vector<1x8xf32>
    %c0_135 = arith.constant 0 : index
    %c0_136 = arith.constant 0 : index
    %c0_137 = arith.constant 0 : index
    %124 = vector.load %arg8[%c0_135, %c0_136, %c0_137] : memref<1x1x8xf32, #tpu.memory_space<vmem>>, vector<1x1x8xf32>
    %125 = vector.shape_cast %124 : vector<1x1x8xf32> to vector<1x8xf32>
    %126 = vector.shape_cast %123 : vector<1x8xf32> to vector<1x1x8xf32>
    tpu.vector_store %arg8[%c0_135, %c0_136, %c0_137], %126 {strides = array<i32>} : memref<1x1x8xf32, #tpu.memory_space<vmem>>, vector<1x1x8xf32>,
    %127 = arith.mulf %118, %118 : vector<32x8xf32>
    %cst_138 = arith.constant dense<0.000000e+00> : vector<8xf32>
    %128 = vector.multi_reduction <add>, %127, %cst_138 [0] : vector<32x8xf32> to vector<8xf32>
    %129 = vector.shape_cast %128 : vector<8xf32> to vector<1x8xf32>
    %c0_139 = arith.constant 0 : index
    %c0_140 = arith.constant 0 : index
    %c0_141 = arith.constant 0 : index
    %130 = vector.load %arg9[%c0_139, %c0_140, %c0_141] : memref<1x1x8xf32, #tpu.memory_space<vmem>>, vector<1x1x8xf32>
    %131 = vector.shape_cast %130 : vector<1x1x8xf32> to vector<1x8xf32>
    %132 = vector.shape_cast %129 : vector<1x8xf32> to vector<1x1x8xf32>
    tpu.vector_store %arg9[%c0_139, %c0_140, %c0_141], %132 {strides = array<i32>} : memref<1x1x8xf32, #tpu.memory_space<vmem>>, vector<1x1x8xf32>,
    return
  }
  func.func @transform_0(%arg0: i32) -> (i32, i32, i32) {
    %c0_i32 = arith.constant 0 : i32
    %c0_i32_0 = arith.constant 0 : i32
    %c0_i32_1 = arith.constant 0 : i32
    return %arg0, %c0_i32, %c0_i32_0 : i32, i32, i32
  }
  func.func @transform_1(%arg0: i32) -> (i32, i32, i32) {
    %c0_i32 = arith.constant 0 : i32
    %c0_i32_0 = arith.constant 0 : i32
    %c0_i32_1 = arith.constant 0 : i32
    %c0_i32_2 = arith.constant 0 : i32
    return %c0_i32, %c0_i32_0, %c0_i32_1 : i32, i32, i32
  }
  func.func @transform_2(%arg0: i32) -> (i32, i32, i32) {
    %c0_i32 = arith.constant 0 : i32
    %c0_i32_0 = arith.constant 0 : i32
    %c0_i32_1 = arith.constant 0 : i32
    %c0_i32_2 = arith.constant 0 : i32
    return %c0_i32, %c0_i32_0, %c0_i32_1 : i32, i32, i32
  }
  func.func @transform_3(%arg0: i32) -> (i32, i32, i32) {
    %c0_i32 = arith.constant 0 : i32
    %c0_i32_0 = arith.constant 0 : i32
    %c0_i32_1 = arith.constant 0 : i32
    return %arg0, %c0_i32, %c0_i32_0 : i32, i32, i32
  }
  func.func @transform_4(%arg0: i32) -> (i32, i32) {
    %c0_i32 = arith.constant 0 : i32
    %c0_i32_0 = arith.constant 0 : i32
    %c0_i32_1 = arith.constant 0 : i32
    return %c0_i32, %c0_i32_0 : i32, i32
  }
  func.func @transform_5(%arg0: i32) -> (i32, i32) {
    %c0_i32 = arith.constant 0 : i32
    %c0_i32_0 = arith.constant 0 : i32
    %c0_i32_1 = arith.constant 0 : i32
    return %c0_i32, %c0_i32_0 : i32, i32
  }
  func.func @transform_6(%arg0: i32) -> (i32, i32, i32) {
    %c0_i32 = arith.constant 0 : i32
    %c0_i32_0 = arith.constant 0 : i32
    %c0_i32_1 = arith.constant 0 : i32
    return %arg0, %c0_i32, %c0_i32_0 : i32, i32, i32
  }
  func.func @transform_7(%arg0: i32) -> (i32, i32, i32) {
    %c0_i32 = arith.constant 0 : i32
    %c0_i32_0 = arith.constant 0 : i32
    %c0_i32_1 = arith.constant 0 : i32
    return %arg0, %c0_i32, %c0_i32_0 : i32, i32, i32
  }
  func.func @transform_8(%arg0: i32) -> (i32, i32, i32) {
    %c0_i32 = arith.constant 0 : i32
    %c0_i32_0 = arith.constant 0 : i32
    %c0_i32_1 = arith.constant 0 : i32
    return %arg0, %c0_i32, %c0_i32_0 : i32, i32, i32
  }
}

</mosaic_0001>

<bundles_post_ra>
// kernel: inception_transpose_block.7
= control target key start
LH: loop header
LB: loop body
LE: loop exit
PB: predicated region body
PF: predicated region fallthrough
CT: control target
= control target key end

     0   :  { %s479_s21 = smov 0   ;;  %s516_s0 = inlined_call_operand.vmem [shape: f32[2,32,8], index: 0, kind: input, shape index: {}]   ;;  %s517_s1 = inlined_call_operand.vmem [shape: f32[1,1,8], index: 1, kind: input, shape index: {}]   ;;  %s518_s2 = inlined_call_operand.vmem [shape: f32[1,1,8], index: 2, kind: input, shape index: {}]   ;;  %s519_s3 = inlined_call_operand.vmem [shape: f32[2,32,8], index: 3, kind: input, shape index: {}]   ;;  %s520_s4 = inlined_call_operand.vmem [shape: f32[1,1,8], index: 4, kind: input, shape index: {}]   ;;  %s521_s5 = inlined_call_operand.vmem [shape: f32[1,1,8], index: 5, kind: input, shape index: {}]   ;;  %s522_s6 = inlined_call_operand.vmem [shape: f32[2,32,8], index: 6, kind: output, shape index: {}]  }
   0x1 LB: > { %s408_s22 = sadd.s32 4294967295, %s442_s21   ;;  %p412_p0 = scmp.ge.s32.totalorder %s442_s21, 1  ;;  %s442_s21 = sphi %s479_s21, %s16_s21  }
   0x2   : > { %p222_p1 = scmp.lt.s32.totalorder %s442_s21, 3 }
   0x4   : > { %p223_p2 = pnand %p412_p0, %p222_p1 }
   0x5   : > { %p257_p3 = scmp.lt.s32.totalorder (!%p223_p2), %s408_s22, 1 }
   0x6   : > { %226 = sbr.rel (%p223_p2) target bundleno = 30 (0x1e), region = 44 }
   0xb   : > { %s524_s22 = smov (!%p257_p3, %s408_s22), 1  ;;  %v419_v0 = vld [vmem:[%s517_s1] ss:$0 sm:$0xff]  ;;  %vm336_vm0 = vcmask 64512  }
   0xc   : > { %s487_s23 = sshll.u32 %s524_s22, 5  ;;  %v420_v1 = vld [vmem:[%s518_s2] ss:$0 sm:$0xff] }
   0xd   : > { %s261_s28 = scalar_lea.vmem %s516_s0, %s487_s23  ;;  %s266_s7 = scalar_lea.vmem %s519_s3, %s487_s23  ;;  %v421_v2 = vld [vmem:[%s520_s4] ss:$0 sm:$0xff] }
   0xe   : > { %v272_v3 = vld [vmem:[%s261_s28] sm:$0xff]  ;;  %v273_v5 = vld [vmem:[%s261_s28 + $0x8] sm:$0xff]  ;;  %v274_v9 = vld [vmem:[%s261_s28 + $0x10] sm:$0xff]  ;;  %s271_s16 = scalar_lea.vmem %s522_s6, %s487_s23 }
   0xf   : > { %v302_v4 = vld [vmem:[%s266_s7] sm:$0xff]  ;;  %v283_v6 = vmul.f32 %v419_v0, %v272_v3  ;;  %v284_v7 = vmul.f32 %v419_v0, %v273_v5  ;;  %v303_v8 = vld [vmem:[%s266_s7 + $0x8] sm:$0xff]  ;;  %v304_v10 = vld [vmem:[%s266_s7 + $0x10] sm:$0xff]  ;;  %v285_v12 = vmul.f32 %v419_v0, %v274_v9 }
  0x10   : > { %v313_v11 = vmul.f32 %v421_v2, %v302_v4  ;;  %v275_v13 = vld [vmem:[%s261_s28 + $0x18] sm:$0xff]  ;;  %v314_v17 = vmul.f32 %v421_v2, %v303_v8  ;;  %v315_v20 = vmul.f32 %v421_v2, %v304_v10  ;;  %v422_v25 = vld [vmem:[%s521_s5] ss:$0 sm:$0xff] }
  0x11   : > { %v305_v14 = vld [vmem:[%s266_s7 + $0x18] sm:$0xff]  ;;  %v294_v15 = vadd.f32 %v420_v1, %v283_v6  ;;  %v295_v16 = vadd.f32 %v420_v1, %v284_v7  ;;  %v286_v18 = vmul.f32 %v419_v0, %v275_v13  ;;  %v296_v19 = vadd.f32 %v420_v1, %v285_v12 }
  0x12   : > { %v316_v24 = vmul.f32 %v421_v2, %v305_v14 }
  0x13   : > { %v298_v21 = vmax.f32 %v294_v15, 0.0  ;;  %v299_v22 = vmax.f32 %v295_v16, 0.0  ;;  %v297_v23 = vadd.f32 %v420_v1, %v286_v18  ;;  %v300_v26 = vmax.f32 %v296_v19, 0.0 }
  0x15   : > { %v317_v27 = vadd.f32 %v313_v11, %v298_v21  ;;  %v318_v28 = vadd.f32 %v314_v17, %v299_v22  ;;  %v301_v29 = vmax.f32 %v297_v23, 0.0  ;;  %v319_v30 = vadd.f32 %v315_v20, %v300_v26 }
  0x17   : > { %v328_v31 = vadd.f32 %v422_v25, %v317_v27  ;;  %v329_v32 = vadd.f32 %v422_v25, %v318_v28  ;;  %v320_v33 = vadd.f32 %v316_v24, %v301_v29  ;;  %v330_v34 = vadd.f32 %v422_v25, %v319_v30 }
  0x19   : > { %v332_v35 = vmax.f32 %v328_v31, 0.0  ;;  %v333_v36 = vmax.f32 %v329_v32, 0.0  ;;  %v331_v37 = vadd.f32 %v422_v25, %v320_v33  ;;  %v334_v38 = vmax.f32 %v330_v34, 0.0 }
  0x1b   : > { %337 = vst.msk [vmem:[%s271_s16] sm:$0xff] %vm336_vm0, %v332_v35  ;;  %338 = vst.msk [vmem:[%s271_s16 + $0x8] sm:$0xff] %vm336_vm0, %v333_v36  ;;  %v335_v39 = vmax.f32 %v331_v37, 0.0 }
  0x1c   : > { %339 = vst.msk [vmem:[%s271_s16 + $0x10] sm:$0xff] %vm336_vm0, %v334_v38 }
  0x1d   : > { %340 = vst.msk [vmem:[%s271_s16 + $0x18] sm:$0xff] %vm336_vm0, %v335_v39 }
  0x1e PF: > { %s16_s21 = sadd.s32 1, %s442_s21  }
  0x1f   : > { %p13_p4 = scmp.ge.s32.totalorder %s16_s21, 4  }
  0x21   :  { %15 = sbr.rel (!%p13_p4) target bundleno = 1 (0x1), region = 77 }

// kernel: inception_transpose_block.4
= control target key start
LH: loop header
LB: loop body
LE: loop exit
PB: predicated region body
PF: predicated region fallthrough
CT: control target
= control target key end

     0   :  { %s2279_s17 = smov 0   ;;  %s3113_s0 = inlined_call_operand.vmem [shape: f32[2,32,4], index: 0, kind: input, shape index: {}]   ;;  %s3114_s1 = inlined_call_operand.vmem [shape: s32[2,32,4], index: 1, kind: input, shape index: {}]   ;;  %s3115_s2 = inlined_call_operand.vmem [shape: f32[156,4], index: 2, kind: input, shape index: {}]   ;;  %s3116_s3 = inlined_call_operand.vmem [shape: f32[4,4], index: 3, kind: input, shape index: {}]   ;;  %s3117_s4 = inlined_call_operand.vmem [shape: f32[4,8], index: 4, kind: input, shape index: {}]   ;;  %s3118_s5 = inlined_call_operand.vmem [shape: f32[1,8], index: 5, kind: input, shape index: {}]   ;;  %s3119_s6 = inlined_call_operand.vmem [shape: f32[2,32,4], index: 6, kind: output, shape index: {0}]   ;;  %s3120_s7 = inlined_call_operand.vmem [shape: f32[2,1,4], index: 7, kind: output, shape index: {1}]   ;;  %s3121_s8 = inlined_call_operand.vmem [shape: f32[2,1,4], index: 8, kind: output, shape index: {2}]   ;;  %s3122_s9 = inlined_call_operand.vmem [shape: f32[2,32,8], index: 9, kind: output, shape index: {3}]   ;;  %s3123_s10 = inlined_call_operand.vmem [shape: f32[2,1,8], index: 10, kind: output, shape index: {4}]   ;;  %s3124_s11 = inlined_call_operand.vmem [shape: f32[2,1,8], index: 11, kind: output, shape index: {5}]  }
   0x1 LB: > { %s2076_s18 = sadd.s32 4294967295, %s2184_s17   ;;  %p2080_p0 = scmp.ge.s32.totalorder %s2184_s17, 1  ;;  %s2184_s17 = sphi %s2279_s17, %s22_s17  }
   0x2   : > { %p358_p1 = scmp.lt.s32.totalorder %s2184_s17, 3 }
   0x4   : > { %p359_p2 = pnand %p2080_p0, %p358_p1 }
   0x5   : > { %p2287_p3 = scmp.lt.s32.totalorder (!%p359_p2), %s2076_s18, 1  ;;  %s2187_s24 = smov (!%p359_p2), 12  }
   0x6   : > { %362 = sbr.rel (%p359_p2) target bundleno = 657 (0x291), region = 44  ;;  %s2188_s25 = smov (!%p359_p2), 4  }
   0x7   : > { %s3131_s26 = smov (!%p359_p2), 8   ;;  %s3125_s27 = smov (!%p359_p2), 16  }
   0x8   : > { %s3127_s28 = smov (!%p359_p2), 20   ;;  %s3129_s29 = smov (!%p359_p2), 24  }
   0x9   : > { %s2193_s30 = smov (!%p359_p2), 28   ;;  %s2194_s12 = smov (!%p359_p2), 32  }
   0xa   : > { %s2195_s13 = smov (!%p359_p2), 36   ;;  %s2196_s14 = smov (!%p359_p2), 40  }
   0xb   : > { %vm3151_vm0 = vcmask 31744   ;;  %vm469_vm1 = vcmask 29696   ;;  %v2186_v0 = vmov 0.0   ;;  %s3206_s18 = smov (!%p2287_p3, %s2076_s18), 1  ;;  %s2197_s15 = smov 44   ;;  %vm3152_vm2 = vcmask 64544  }
   0xc   : > { %465 = vst.msk [vmem:[#allocation2 + $0x20] sm:$0xff] %vm3151_vm0, %v2186_v0  ;;  %466 = vst.msk [vmem:[#allocation2 + $0x28] sm:$0xff] %vm3151_vm0, %v2186_v0  ;;  %1620 = vmatprep.subr.mxu1 %v2186_v0  ;;  %s2322_s20 = sshll.u32 %s3206_s18, 5  ;;  %s2198_s16 = smov 48   ;;  %vm3145_vm3 = vcmask 97344   ;;  %vm3138_vm4 = vcmask 130144  }
   0xd   : > { %461 = vst.msk [vmem:[#allocation2] sm:$0xff] %vm3151_vm0, %v2186_v0  ;;  %462 = vst.msk [vmem:[#allocation2 + $0x8] sm:$0xff] %vm3151_vm0, %v2186_v0  ;;  %s424_s23 = scalar_lea.vmem %s3113_s0, %s2322_s20  ;;  %s2199_s19 = smov 52   ;;  %vm3139_vm5 = vcmask 162944   ;;  %vm3146_vm6 = vcmask 195744   ;;  %vm3150_vm7 = vcmask 228544  }
   0xe   : > { %463 = vst.msk [vmem:[#allocation2 + $0x10] sm:$0xff] %vm3151_vm0, %v2186_v0  ;;  %464 = vst.msk [vmem:[#allocation2 + $0x18] sm:$0xff] %vm3151_vm0, %v2186_v0  ;;  %v2328_v1 = vld [vmem:[%s424_s23 + $0x10] sm:$0xff]  ;;  %v2330_v2 = vld [vmem:[%s424_s23 + $0x18] sm:$0xff]  ;;  %s2200_s21 = smov 56   ;;  %s2201_s22 = smov 60  }
   0xf   : > { %467 = vst.msk [vmem:[#allocation2 + $0x30] sm:$0xff] %vm3151_vm0, %v2186_v0  ;;  %468 = vst.msk [vmem:[#allocation2 + $0x38] sm:$0xff] %vm3151_vm0, %v2186_v0  ;;  %v2332_v3 = vld [vmem:[%s424_s23 + $0x8] sm:$0xff]  ;;  %v2340_v4 = vld [vmem:[%s424_s23] sm:$0xff]  ;;  %s2202_s23 = smov 64   ;;  %vm653_vm8 = vcmask 261344  }
  0x10   : > { %1540 = vst.msk [vmem:[#allocation4] sm:$0xff] %vm3151_vm0, %v2186_v0  ;;  %1541 = vst.msk [vmem:[#allocation4 + $0x8] sm:$0xff] %vm3151_vm0, %v2186_v0  ;;  %2123 = vmatprep.mubr.msk.f32.mxu0 %vm3151_vm0, %v2340_v4  ;;  %vm678_vm9 = vcmask 294144   ;;  %vm703_vm10 = vcmask 326944   ;;  %vm728_vm11 = vcmask 359744   ;;  %vm753_vm12 = vcmask 392544  }
  0x11   : > { %1542 = vst.msk [vmem:[#allocation4 + $0x10] sm:$0xff] %vm3151_vm0, %v2186_v0  ;;  %1543 = vst.msk [vmem:[#allocation4 + $0x18] sm:$0xff] %vm3151_vm0, %v2186_v0  ;;  %vm778_vm13 = vcmask 425344   ;;  %vm803_vm14 = vcmask 458144   ;;  %vm828_vm15 = vcmask 490944  }
  0x12   : > { %470 = vst.msk [vmem:[#allocation2 + $0x40] sm:$0x3f] %vm469_vm1, %v2186_v0  ;;  %vm853_vm1 = vcmask 523744  }
  0x13   : > { %473 = vst.msk [vmem:[#allocation2 + $0x23] sm:$0xff] %vm3151_vm0, %v2328_v1  ;;  %474 = vst.msk [vmem:[#allocation2 + $0x2b] sm:$0xff] %vm3151_vm0, %v2330_v2 }
  0x14   : > { %472 = vst.msk [vmem:[#allocation2 + $0x1b] sm:$0xff] %vm3151_vm0, %v2332_v3  ;;  %471 = vst.msk [vmem:[#allocation2 + $0x13] sm:$0xff] %vm3151_vm0, %v2340_v4 }
  0x16   : > { %v2346_v5 = vld [vmem:[#allocation2 + $0x36] sm:$0xff] }
  0x17   : > { %481 = vst.msk [vmem:[#allocation3 + $0x20] sm:$0xff] %vm3151_vm0, %v2346_v5  ;;  %v2410_v21 = vld [vmem:[#allocation2 + $0x35] sm:$0xff] }
  0x18   : > { %v2420_v24 = vld [vmem:[#allocation2 + $0x34] sm:$0xff] }
  0x19   : > { %v478_v27 = vld [vmem:[#allocation2 + $0x3e] sm:$0xff]  ;;  %v2434_v28 = vld [vmem:[#allocation2 + $0x33] sm:$0xff] }
  0x1a   : > { %v2350_v6 = vld [vmem:[#allocation2 + $0x23] sm:$0xff]  ;;  %v2366_v10 = vld [vmem:[#allocation2 + $0x2d] sm:$0xff]  ;;  %482 = vst.msk [vmem:[#allocation3 + $0x30] sm:$0xff] %vm3151_vm0, %v478_v27  ;;  %v536_v39 = vld [vmem:[#allocation2 + $0x3b] sm:$0xff] }
  0x1b   : > { %v2352_v7 = vld [vmem:[#allocation2 + $0x25] sm:$0xff]  ;;  %541 = vrot.lane.b32.xlu1 %v2350_v6, %s2187_s24  ;;  %v2378_v13 = vld [vmem:[#allocation2 + $0x2e] sm:$0xff]  ;;  %v2418_v23 = vld [vmem:[#allocation2 + $0x1d] sm:$0xff] }
  0x1c   : > { %491 = vrot.lane.b32.xlu0 %v2352_v7, %s2188_s25  ;;  %v2358_v8 = vld [vmem:[#allocation2 + $0x24] sm:$0xff]  ;;  %v2380_v14 = vld [vmem:[#allocation2 + $0x2c] sm:$0xff]  ;;  %480 = vst.msk [vmem:[#allocation3 + $0x10] sm:$0xff] %vm3151_vm0, %v2378_v13  ;;  %v2428_v26 = vld [vmem:[#allocation2 + $0x1c] sm:$0xff] }
  0x1d   : > { %v2360_v9 = vld [vmem:[#allocation2 + $0x22] sm:$0xff]  ;;  %v2386_v16 = vld [vmem:[#allocation2 + $0xe] sm:$0xff]  ;;  %v2451_v32 = vld [vmem:[#allocation2 + $0x1a] sm:$0xff] }
  0x1e   : > { %v2368_v11 = vld [vmem:[#allocation2 + $0x21] sm:$0xff]  ;;  %1263 = vst.msk [vmem:[#allocation3 + $0x18] sm:$0xff] %vm3151_vm0, %v2386_v16  ;;  %v2394_v17 = vld [vmem:[#allocation2 + $0x2b] sm:$0xff]  ;;  %v2462_v35 = vld [vmem:[#allocation2 + $0x19] sm:$0xff] }
  0x1f   : > { %566 = vrot.lane.b32.xlu1 %v2360_v9, %s3125_s27  ;;  %v2370_v12 = vld [vmem:[#allocation2 + $0x26] sm:$0xff]  ;;  %v2404_v20 = vld [vmem:[#allocation2 + $0x1e] sm:$0xff]  ;;  %v2445_v31 = vld [vmem:[#allocation2 + $0x32] sm:$0xff] }
  0x20   : > { %516 = vrot.lane.b32.xlu0 %v2358_v8, %s3131_s26  ;;  %479 = vst.msk [vmem:[#allocation3] sm:$0xff] %vm3151_vm0, %v2370_v12  ;;  %v2382_v15 = vld [vmem:[#allocation2 + $0x20] sm:$0xff]  ;;  %v2402_v19 = vld [vmem:[#allocation2 + $0x2a] sm:$0xff]  ;;  %v2473_v38 = vld [vmem:[#allocation2 + $0x18] sm:$0xff] }
  0x21   : > { %v2396_v18 = vld [vmem:[#allocation2 + $0x1f] sm:$0xff]  ;;  %v2412_v22 = vld [vmem:[#allocation2 + $0x29] sm:$0xff]  ;;  %v2457_v34 = vld [vmem:[#allocation2 + $0x31] sm:$0xff] }
  0x22   : > { %v2426_v25 = vld [vmem:[#allocation2 + $0x28] sm:$0xff]  ;;  %v2443_v30 = vld [vmem:[#allocation2 + $0x1b] sm:$0xff]  ;;  %v2468_v37 = vld [vmem:[#allocation2 + $0x30] sm:$0xff] }
  0x23   : > { %591 = vrot.lane.b32.xlu1 %v2368_v11, %s3127_s28  ;;  %v2436_v29 = vld [vmem:[#allocation2 + $0x27] sm:$0xff]  ;;  %v486_v33 = vld [vmem:[#allocation2 + $0x3d] sm:$0xff]  ;;  %v2479_v40 = vld [vmem:[#allocation2 + $0x2f] sm:$0xff] }
  0x24   : > { %493 = vrot.lane.b32.xlu0 %v2366_v10, %s2188_s25  ;;  %v511_v36 = vld [vmem:[#allocation2 + $0x3c] sm:$0xff]  ;;  %v2511_v47 = vld [vmem:[#allocation2 + $0x14] sm:$0xff] }
  0x25   : > { %v2484_v41 = vld [vmem:[#allocation2 + $0x17] sm:$0xff]  ;;  %v2568_v61 = vld [vmem:[#allocation2 + $0xf] sm:$0xff] }
  0x26   : > { %v561_v42 = vld [vmem:[#allocation2 + $0x3a] sm:$0xff]  ;;  %v2530_v50 = vld [vmem:[#allocation2 + $0x12] sm:$0xff] }
  0x27   : > { %616 = vrot.lane.b32.xlu1 %v2382_v15, %s3129_s29  ;;  %v2493_v43 = vld [vmem:[#allocation2 + $0x16] sm:$0xff] }
  0x28   : > { %518 = vrot.lane.b32.xlu0 %v2380_v14, %s3131_s26  ;;  %v586_v44 = vld [vmem:[#allocation2 + $0x39] sm:$0xff]  ;;  %v2540_v51 = vld [vmem:[#allocation2 + $0x11] sm:$0xff] }
  0x29   : > { %v2502_v45 = vld [vmem:[#allocation2 + $0x15] sm:$0xff] }
  0x2a   : > { %v611_v46 = vld [vmem:[#allocation2 + $0x38] sm:$0xff]  ;;  %v2554_v56 = vld [vmem:[#allocation2 + $0x10] sm:$0xff] }
  0x2b   : > { %641 = vrot.lane.b32.xlu1 %v2396_v18, %s2193_s30  ;;  %v636_v48 = vld [vmem:[#allocation2 + $0x37] sm:$0xff] }
  0x2c   : > { %543 = vrot.lane.b32.xlu0 %v2394_v17, %s2187_s24  ;;  %v2520_v49 = vld [vmem:[#allocation2 + $0x13] sm:$0xff] }
  0x2f   : > { %666 = vrot.lane.b32.xlu1 %v2404_v20, %s2194_s12 }
  0x30   : > { %568 = vrot.lane.b32.xlu0 %v2402_v19, %s3125_s27 }
  0x33   : > { %593 = vrot.lane.b32.xlu1 %v2412_v22, %s3127_s28 }
  0x34   : > { %495 = vrot.lane.b32.xlu0 %v2410_v21, %s2188_s25 }
  0x37   : > { %520 = vrot.lane.b32.xlu1 %v2420_v24, %s3131_s26 }
  0x38   : > { %691 = vrot.lane.b32.xlu0 %v2418_v23, %s2195_s13 }
  0x3b   : > { %716 = vrot.lane.b32.xlu1 %v2428_v26, %s2196_s14 }
  0x3c   : > { %618 = vrot.lane.b32.xlu0 %v2426_v25, %s3129_s29 }
  0x3f   : > { %643 = vrot.lane.b32.xlu1 %v2436_v29, %s2193_s30 }
  0x40   : > { %545 = vrot.lane.b32.xlu0 %v2434_v28, %s2187_s24 }
  0x43   : > { %570 = vrot.lane.b32.xlu1 %v2445_v31, %s3125_s27 }
  0x44   : > { %741 = vrot.lane.b32.xlu0 %v2443_v30, %s2197_s15 }
  0x47   : > { %766 = vrot.lane.b32.xlu1 %v2451_v32, %s2198_s16 }
  0x48   : > { %668 = vrot.lane.b32.xlu0 %v2370_v12, %s2194_s12 }
  0x4b   : > { %595 = vrot.lane.b32.xlu1 %v2457_v34, %s3127_s28 }
  0x4c   : > { %497 = vrot.lane.b32.xlu0 %v486_v33, %s2188_s25 }
  0x4f   : > { %791 = vrot.lane.b32.xlu1 %v2462_v35, %s2199_s19 }
  0x50   : > { %693 = vrot.lane.b32.xlu0 %v2352_v7, %s2195_s13 }
  0x53   : > { %620 = vrot.lane.b32.xlu1 %v2468_v37, %s3129_s29 }
  0x54   : > { %522 = vrot.lane.b32.xlu0 %v511_v36, %s3131_s26  ;;  %v2595_v36 = vld [vmem:[#allocation2 + $0xd] sm:$0xff] }
  0x57   : > { %816 = vrot.lane.b32.xlu1 %v2473_v38, %s2200_s21 }
  0x58   : > { %718 = vrot.lane.b32.xlu0 %v2358_v8, %s2196_s14 }
  0x5b   : > { %645 = vrot.lane.b32.xlu1 %v2479_v40, %s2193_s30 }
  0x5c   : > { %547 = vrot.lane.b32.xlu0 %v536_v39, %s2187_s24 }
  0x5f   : > { %841 = vrot.lane.b32.xlu1 %v2484_v41, %s2201_s22 }
  0x60   : > { %743 = vrot.lane.b32.xlu0 %v2350_v6, %s2197_s15 }
  0x63   : > { %670 = vrot.lane.b32.xlu1 %v2378_v13, %s2194_s12 }
  0x64   : > { %572 = vrot.lane.b32.xlu0 %v561_v42, %s3125_s27  ;;  %s2203_s27 = smov 68  }
  0x67   : > { %866 = vrot.lane.b32.xlu1 %v2493_v43, %s2202_s23 }
  0x68   : > { %768 = vrot.lane.b32.xlu0 %v2360_v9, %s2198_s16 }
  0x6b   : > { %695 = vrot.lane.b32.xlu1 %v2366_v10, %s2195_s13 }
  0x6c   : > { %597 = vrot.lane.b32.xlu0 %v586_v44, %s3127_s28  ;;  %s2204_s28 = smov 72  }
  0x6f   : > { %891 = vrot.lane.b32.xlu1 %v2502_v45, %s2203_s27 }
  0x70   : > { %793 = vrot.lane.b32.xlu0 %v2368_v11, %s2199_s19 }
  0x73   : > { %720 = vrot.lane.b32.xlu1 %v2380_v14, %s2196_s14 }
  0x74   : > { %622 = vrot.lane.b32.xlu0 %v611_v46, %s3129_s29  ;;  %s3133_s29 = smov 76  }
  0x77   : > { %916 = vrot.lane.b32.xlu1 %v2511_v47, %s2204_s28 }
  0x78   : > { %818 = vrot.lane.b32.xlu0 %v2382_v15, %s2200_s21 }
  0x7b   : > { %745 = vrot.lane.b32.xlu1 %v2394_v17, %s2197_s15 }
  0x7c   : > { %647 = vrot.lane.b32.xlu0 %v636_v48, %s2193_s30  ;;  %s2206_s30 = smov 80  }
  0x7f   : > { %941 = vrot.lane.b32.xlu1 %v2520_v49, %s3133_s29 }
  0x80   : > { %843 = vrot.lane.b32.xlu0 %v2396_v18, %s2201_s22 }
  0x83   : > { %770 = vrot.lane.b32.xlu1 %v2402_v19, %s2198_s16 }
  0x84   : > { %672 = vrot.lane.b32.xlu0 %v2346_v5, %s2194_s12  ;;  %s3144_s12 = smov 84  }
  0x87   : > { %966 = vrot.lane.b32.xlu1 %v2530_v50, %s2206_s30 }
  0x88   : > { %868 = vrot.lane.b32.xlu0 %v2404_v20, %s2202_s23 }
  0x8b   : > { %795 = vrot.lane.b32.xlu1 %v2412_v22, %s2199_s19 }
  0x8c   : > { %697 = vrot.lane.b32.xlu0 %v2410_v21, %s2195_s13  ;;  %s3149_s13 = smov 88  }
  0x8d   : > { %v542_v52 = vpop.permute.xlu1 %541 }
  0x8e   : > { %v492_v53 = vpop.permute.xlu0 %491 }
  0x8f   : > { %504 = vst.msk [vmem:[#allocation3] sm:$0xff] %vm3152_vm2, %v492_v53  ;;  %991 = vrot.lane.b32.xlu1 %v2540_v51, %s3144_s12  ;;  %v1290_v53 = vld [vmem:[#allocation2 + $0x4] sm:$0xff] }
  0x90   : > { %893 = vrot.lane.b32.xlu0 %v2418_v23, %s2203_s27 }
  0x91   : > { %v567_v55 = vpop.permute.xlu1 %566 }
  0x92   : > { %v517_v54 = vpop.permute.xlu0 %516 }
  0x93   : > { %529 = vst.msk [vmem:[#allocation3] sm:$0xff] %vm3145_vm3, %v517_v54  ;;  %820 = vrot.lane.b32.xlu1 %v2426_v25, %s2200_s21 }
  0x94   : > { %554 = vst.msk [vmem:[#allocation3] sm:$0xff] %vm3138_vm4, %v542_v52  ;;  %722 = vrot.lane.b32.xlu0 %v2420_v24, %s2196_s14  ;;  %s2209_s14 = smov 92   ;;  %v1258_v24 = vld [vmem:[#allocation2 + $0x6] sm:$0xff] }
  0x95   : > { %579 = vst.msk [vmem:[#allocation3] sm:$0xff] %vm3139_vm5, %v567_v55  ;;  %v592_v58 = vpop.permute.xlu1 %591  ;;  %v2614_v52 = vld [vmem:[#allocation2 + $0xc] sm:$0xff] }
  0x96   : > { %v494_v57 = vpop.permute.xlu0 %493  ;;  %604 = vst.msk [vmem:[#allocation3] sm:$0xff] %vm3146_vm6, %v592_v58  ;;  %v2627_v58 = vld [vmem:[#allocation2 + $0xb] sm:$0xff] }
  0x97   : > { %505 = vst.msk [vmem:[#allocation3 + $0x10] sm:$0xff] %vm3152_vm2, %v494_v57  ;;  %1016 = vrot.lane.b32.xlu1 %v2554_v56, %s3149_s13 }
  0x98   : > { %918 = vrot.lane.b32.xlu0 %v2428_v26, %s2204_s28  ;;  %1262 = vst.msk [vmem:[#allocation3 + $0x8] sm:$0xff] %vm3151_vm0, %v1258_v24 }
  0x99   : > { %v617_v60 = vpop.permute.xlu1 %616 }
  0x9a   : > { %v519_v59 = vpop.permute.xlu0 %518  ;;  %629 = vst.msk [vmem:[#allocation3] sm:$0xff] %vm3150_vm7, %v617_v60 }
  0x9b   : > { %530 = vst.msk [vmem:[#allocation3 + $0x10] sm:$0xff] %vm3145_vm3, %v519_v59  ;;  %845 = vrot.lane.b32.xlu1 %v2436_v29, %s2201_s22 }
  0x9c   : > { %747 = vrot.lane.b32.xlu0 %v2434_v28, %s2197_s15  ;;  %s3136_s15 = smov 96  }
  0x9d   : > { %v642_v63 = vpop.permute.xlu1 %641 }
  0x9e   : > { %v544_v62 = vpop.permute.xlu0 %543  ;;  %654 = vst.msk [vmem:[#allocation3] sm:$0xff] %vm653_vm8, %v642_v63 }
  0x9f   : > { %555 = vst.msk [vmem:[#allocation3 + $0x10] sm:$0xff] %vm3138_vm4, %v544_v62  ;;  %1041 = vrot.lane.b32.xlu1 %v2568_v61, %s2209_s14  ;;  %v1433_v62 = vld [vmem:[%s3115_s2 + $0x78] sm:$0xff] }
  0xa0   : > { %943 = vrot.lane.b32.xlu0 %v2443_v30, %s3133_s29  ;;  %1621 = vmatpush1.msra.mxu1 %v1433_v62 }
  0xa1   : > { %v667_v21 = vpop.permute.xlu1 %666  ;;  %1622 = vmatprep.subr.mxu1 %v2186_v0 }
  0xa2   : > { %v569_v5 = vpop.permute.xlu0 %568  ;;  %679 = vst.msk [vmem:[#allocation3] sm:$0xff] %vm678_vm9, %v667_v21  ;;  %v1431_v21 = vld [vmem:[%s3115_s2 + $0x68] sm:$0xff] }
  0xa3   : > { %580 = vst.msk [vmem:[#allocation3 + $0x10] sm:$0xff] %vm3139_vm5, %v569_v5  ;;  %870 = vrot.lane.b32.xlu1 %v2370_v12, %s2202_s23 }
  0xa4   : > { %772 = vrot.lane.b32.xlu0 %v2445_v31, %s2198_s16  ;;  %s3142_s16 = smov 100  }
  0xa5   : > { %v594_v28 = vpop.permute.xlu1 %593 }
  0xa6   : > { %v496_v27 = vpop.permute.xlu0 %495  ;;  %605 = vst.msk [vmem:[#allocation3 + $0x10] sm:$0xff] %vm3146_vm6, %v594_v28  ;;  %v1430_v28 = vld [vmem:[%s3115_s2 + $0x60] sm:$0xff] }
  0xa7   : > { %506 = vst.msk [vmem:[#allocation3 + $0x20] sm:$0xff] %vm3152_vm2, %v496_v27  ;;  %1066 = vrot.lane.b32.xlu1 %v2386_v16, %s3136_s15  ;;  %v1266_v16 = vld [vmem:[#allocation2 + $0x5] sm:$0xff] }
  0xa8   : > { %968 = vrot.lane.b32.xlu0 %v2451_v32, %s2206_s30 }
  0xa9   : > { %v521_v33 = vpop.permute.xlu1 %520 }
  0xaa   : > { %v692_v31 = vpop.permute.xlu0 %691  ;;  %531 = vst.msk [vmem:[#allocation3 + $0x20] sm:$0xff] %vm3145_vm3, %v521_v33  ;;  %v1338_v33 = vld [vmem:[#allocation2 + $0x2] sm:$0xff] }
  0xab   : > { %704 = vst.msk [vmem:[#allocation3] sm:$0xff] %vm703_vm10, %v692_v31  ;;  %895 = vrot.lane.b32.xlu1 %v2352_v7, %s2203_s27  ;;  %v2664_v31 = vld [vmem:[#allocation2 + $0xa] sm:$0xff] }
  0xac   : > { %797 = vrot.lane.b32.xlu0 %v2457_v34, %s2199_s19  ;;  %s3134_s19 = smov 104  }
  0xad   : > { %v717_v42 = vpop.permute.xlu1 %716 }
  0xae   : > { %v619_v39 = vpop.permute.xlu0 %618  ;;  %729 = vst.msk [vmem:[#allocation3] sm:$0xff] %vm728_vm11, %v717_v42 }
  0xaf   : > { %630 = vst.msk [vmem:[#allocation3 + $0x10] sm:$0xff] %vm3150_vm7, %v619_v39  ;;  %1091 = vrot.lane.b32.xlu1 %v2595_v36, %s3142_s16 }
  0xb0   : > { %993 = vrot.lane.b32.xlu0 %v2462_v35, %s3144_s12 }
  0xb1   : > { %v644_v44 = vpop.permute.xlu1 %643 }
  0xb2   : > { %v546_v34 = vpop.permute.xlu0 %545  ;;  %655 = vst.msk [vmem:[#allocation3 + $0x10] sm:$0xff] %vm653_vm8, %v644_v44  ;;  %v1427_v44 = vld [vmem:[%s3115_s2 + $0x48] sm:$0xff] }
  0xb3   : > { %556 = vst.msk [vmem:[#allocation3 + $0x20] sm:$0xff] %vm3138_vm4, %v546_v34  ;;  %822 = vrot.lane.b32.xlu1 %v2468_v37, %s2200_s21  ;;  %s3164_s21 = smov 88  }
  0xb4   : > { %1274 = vrot.lane.b32.xlu0 %v1266_v16, %s2188_s25 }
  0xb5   : > { %v571_v48 = vpop.permute.xlu1 %570 }
  0xb6   : > { %v742_v46 = vpop.permute.xlu0 %741  ;;  %581 = vst.msk [vmem:[#allocation3 + $0x20] sm:$0xff] %vm3139_vm5, %v571_v48  ;;  %v2689_v48 = vld [vmem:[#allocation2 + $0x9] sm:$0xff] }
  0xb7   : > { %754 = vst.msk [vmem:[#allocation3] sm:$0xff] %vm753_vm12, %v742_v46  ;;  %1018 = vrot.lane.b32.xlu1 %v2473_v38, %s3149_s13  ;;  %v1426_v46 = vld [vmem:[%s3115_s2 + $0x40] sm:$0xff] }
  0xb8   : > { %920 = vrot.lane.b32.xlu0 %v2358_v8, %s2204_s28 }
  0xb9   : > { %v767_v55 = vpop.permute.xlu1 %766 }
  0xba   : > { %v669_v54 = vpop.permute.xlu0 %668  ;;  %779 = vst.msk [vmem:[#allocation3] sm:$0xff] %vm778_vm13, %v767_v55 }
  0xbb   : > { %680 = vst.msk [vmem:[#allocation3 + $0x10] sm:$0xff] %vm678_vm9, %v669_v54  ;;  %1298 = vrot.lane.b32.xlu1 %v1290_v53, %s3131_s26  ;;  %s3140_s26 = smov 116  }
  0xbc   : > { %1116 = vrot.lane.b32.xlu0 %v2614_v52, %s3134_s19  ;;  %s2214_s19 = smov 112  }
  0xbd   : > { %v596_v57 = vpop.permute.xlu1 %595 }
  0xbe   : > { %v498_v37 = vpop.permute.xlu0 %497  ;;  %606 = vst.msk [vmem:[#allocation3 + $0x20] sm:$0xff] %vm3146_vm6, %v596_v57  ;;  %v1424_v57 = vld [vmem:[%s3115_s2 + $0x30] sm:$0xff] }
  0xbf   : > { %507 = vst.msk [vmem:[#allocation3 + $0x30] sm:$0xff] %vm3152_vm2, %v498_v37  ;;  %945 = vrot.lane.b32.xlu1 %v2350_v6, %s3133_s29  ;;  %v1432_v6 = vld [vmem:[%s3115_s2 + $0x70] sm:$0xff]  ;;  %s3159_s29 = smov 76  }
  0xc0   : > { %847 = vrot.lane.b32.xlu0 %v2479_v40, %s2201_s22  ;;  %s2213_s22 = smov 108   ;;  %v1314_v40 = vld [vmem:[#allocation2 + $0x3] sm:$0xff]  ;;  %1623 = vmatpush1.msra.mxu1 %v1432_v6 }
  0xc1   : > { %v792_v60 = vpop.permute.xlu1 %791  ;;  %1624 = vmatprep.subr.mxu1 %v2186_v0 }
  0xc2   : > { %v694_v59 = vpop.permute.xlu0 %693  ;;  %804 = vst.msk [vmem:[#allocation3] sm:$0xff] %vm803_vm14, %v792_v60  ;;  %1625 = vmatpush1.msra.mxu1 %v1431_v21  ;;  %v1423_v60 = vld [vmem:[%s3115_s2 + $0x28] sm:$0xff]  ;;  %v1421_v21 = vld [vmem:[%s3115_s2 + $0x18] sm:$0xff] }
  0xc3   : > { %705 = vst.msk [vmem:[#allocation3 + $0x10] sm:$0xff] %vm703_vm10, %v694_v59  ;;  %1141 = vrot.lane.b32.xlu1 %v2627_v58, %s2213_s22  ;;  %1626 = vmatprep.subr.mxu1 %v2186_v0  ;;  %v1438_v59 = vld [vmem:[%s3116_s3] sm:$0xf] }
  0xc4   : > { %1043 = vrot.lane.b32.xlu0 %v2484_v41, %s2209_s14  ;;  %1627 = vmatpush1.msra.mxu1 %v1430_v28  ;;  %v1419_v28 = vld [vmem:[%s3115_s2 + $0x8] sm:$0xff] }
  0xc5   : > { %v621_v5 = vpop.permute.xlu1 %620  ;;  %1628 = vmatprep.subr.mxu1 %v2186_v0 }
  0xc6   : > { %v523_v63 = vpop.permute.xlu0 %522  ;;  %631 = vst.msk [vmem:[#allocation3 + $0x20] sm:$0xff] %vm3150_vm7, %v621_v5 }
  0xc7   : > { %532 = vst.msk [vmem:[#allocation3 + $0x30] sm:$0xff] %vm3145_vm3, %v523_v63  ;;  %872 = vrot.lane.b32.xlu1 %v2378_v13, %s2202_s23  ;;  %v1429_v13 = vld [vmem:[%s3115_s2 + $0x58] sm:$0xff]  ;;  %s3154_s23 = smov 16   ;;  %vm903_vm3 = vcmask 589344  }
  0xc8   : > { %1322 = vrot.lane.b32.xlu0 %v1314_v40, %s2187_s24  ;;  %1629 = vmatpush1.msra.mxu1 %v1429_v13  ;;  %v2731_v40 = vld [vmem:[#allocation2 + $0x8] sm:$0xff] }
  0xc9   : > { %v817_v27 = vpop.permute.xlu1 %816  ;;  %1630 = vmatprep.subr.mxu1 %v2186_v0 }
  0xca   : > { %v719_v24 = vpop.permute.xlu0 %718  ;;  %829 = vst.msk [vmem:[#allocation3] sm:$0xff] %vm828_vm15, %v817_v27 }
  0xcb   : > { %730 = vst.msk [vmem:[#allocation3 + $0x10] sm:$0xff] %vm728_vm11, %v719_v24  ;;  %1068 = vrot.lane.b32.xlu1 %v2493_v43, %s3136_s15  ;;  %v1428_v43 = vld [vmem:[%s3115_s2 + $0x50] sm:$0xff]  ;;  %s3158_s15 = smov 24  }
  0xcc   : > { %970 = vrot.lane.b32.xlu0 %v2360_v9, %s2206_s30  ;;  %1631 = vmatpush1.msra.mxu1 %v1428_v43 }
  0xcd   : > { %v646_v42 = vpop.permute.xlu1 %645  ;;  %1632 = vmatprep.subr.mxu1 %v2186_v0 }
  0xce   : > { %v548_v39 = vpop.permute.xlu0 %547  ;;  %656 = vst.msk [vmem:[#allocation3 + $0x20] sm:$0xff] %vm653_vm8, %v646_v42  ;;  %1633 = vmatpush1.msra.mxu1 %v1427_v44  ;;  %v1260_v44 = vld [vmem:[#allocation2 + $0x16] sm:$0xff] }
  0xcf   : > { %557 = vst.msk [vmem:[#allocation3 + $0x30] sm:$0xff] %vm3138_vm4, %v548_v39  ;;  %1346 = vrot.lane.b32.xlu1 %v1338_v33, %s3154_s23  ;;  %1634 = vmatprep.subr.mxu1 %v2186_v0  ;;  %vm878_vm4 = vcmask 556544   ;;  %v1418_v33 = vld [vmem:[%s3115_s2] sm:$0xff] }
  0xd0   : > { %1166 = vrot.lane.b32.xlu0 %v2664_v31, %s2214_s19  ;;  %1635 = vmatpush1.msra.mxu1 %v1426_v46  ;;  %v1233_v39 = vld [vmem:[#allocation2 + $0x7] sm:$0xff]  ;;  %1264 = vst.msk [vmem:[#allocation3 + $0x28] sm:$0xff] %vm3151_vm0, %v1260_v44 }
  0xd1   : > { %v842_v34 = vpop.permute.xlu1 %841  ;;  %1636 = vmatprep.subr.mxu1 %v2186_v0  ;;  %v1434_v46 = vld [vmem:[%s3115_s2 + $0x80] sm:$0xff] }
  0xd2   : > { %v744_v16 = vpop.permute.xlu0 %743  ;;  %854 = vst.msk [vmem:[#allocation3] sm:$0xff] %vm853_vm1, %v842_v34  ;;  %v1435_v34 = vld [vmem:[%s3115_s2 + $0x88] sm:$0xff] }
  0xd3   : > { %755 = vst.msk [vmem:[#allocation3 + $0x10] sm:$0xff] %vm753_vm12, %v744_v16  ;;  %995 = vrot.lane.b32.xlu1 %v2368_v11, %s3144_s12  ;;  %v1362_v11 = vld [vmem:[#allocation2 + $0x1] sm:$0xff]  ;;  %s3162_s12 = smov 100  }
  0xd4   : > { %897 = vrot.lane.b32.xlu0 %v2366_v10, %s2203_s27  ;;  %v1425_v10 = vld [vmem:[%s3115_s2 + $0x38] sm:$0xff]  ;;  %s3147_s27 = smov 120  }
  0xd5   : > { %v671_v54 = vpop.permute.xlu1 %670  ;;  %1637 = vmatpush1.msra.mxu1 %v1425_v10 }
  0xd6   : > { %v573_v53 = vpop.permute.xlu0 %572  ;;  %681 = vst.msk [vmem:[#allocation3 + $0x20] sm:$0xff] %vm678_vm9, %v671_v54  ;;  %1638 = vmatprep.subr.mxu1 %v2186_v0 }
  0xd7   : > { %582 = vst.msk [vmem:[#allocation3 + $0x30] sm:$0xff] %vm3139_vm5, %v573_v53  ;;  %1191 = vrot.lane.b32.xlu1 %v2689_v48, %s3140_s26  ;;  %vm1451_vm5 = vcmask 1043456   ;;  %s3155_s26 = smov 20   ;;  %1639 = vmatpush1.msra.mxu1 %v1424_v57 }
  0xd8   : > { %1093 = vrot.lane.b32.xlu0 %v2502_v45, %s3142_s16  ;;  %2121 = vmatprep.subr.msk.mxu0 %vm1451_vm5, %v1438_v59  ;;  %s3157_s16 = smov 8  }
  0xd9   : > { %v867_v37 = vpop.permute.xlu1 %866  ;;  %1640 = vmatprep.subr.mxu1 %v2186_v0  ;;  %2122 = vmatpush3.msk.msra.mxu0 %vm1451_vm5, %v1438_v59 }
  0xda   : > { %v769_v55 = vpop.permute.xlu0 %768  ;;  %879 = vst.msk [vmem:[#allocation3] sm:$0xff] %vm878_vm4, %v867_v37  ;;  %1641 = vmatpush1.msra.mxu1 %v1423_v60  ;;  %2124 = vmatmul.mubr.msk.f32.vlgmr.msra.gmra.mxu0 %vm3151_vm0, %v2332_v3 }
  0xdb   : > { %780 = vst.msk [vmem:[#allocation3 + $0x10] sm:$0xff] %vm778_vm13, %v769_v55  ;;  %1370 = vrot.lane.b32.xlu1 %v1362_v11, %s3155_s26  ;;  %1642 = vmatprep.subr.mxu1 %v2186_v0 }
  0xdc   : > { %1276 = vrot.lane.b32.xlu0 %v2595_v36, %s2188_s25  ;;  %v1422_v36 = vld [vmem:[%s3115_s2 + $0x20] sm:$0xff]  ;;  %2126 = vmatprep.mubr.msk.f32.mxu0 %vm3151_vm0, %v2328_v1 }
  0xdd   : > { %v696_v6 = vpop.permute.xlu1 %695  ;;  %1643 = vmatpush1.msra.mxu1 %v1422_v36 }
  0xde   : > { %v598_v62 = vpop.permute.xlu0 %597  ;;  %706 = vst.msk [vmem:[#allocation3 + $0x20] sm:$0xff] %vm703_vm10, %v696_v6  ;;  %1644 = vmatprep.subr.mxu1 %v2186_v0  ;;  %2127 = vmatmul.mubr.msk.f32.gmra.mxu0 %vm3151_vm0, %v2330_v2 }
  0xdf   : > { %607 = vst.msk [vmem:[#allocation3 + $0x30] sm:$0xff] %vm3146_vm6, %v598_v62  ;;  %1020 = vrot.lane.b32.xlu1 %v2382_v15, %s3149_s13  ;;  %v1386_v15 = vld [vmem:[#allocation2] sm:$0xff]  ;;  %1645 = vmatpush1.msra.mxu1 %v1421_v21  ;;  %vm928_vm6 = vcmask 622144   ;;  %s2217_s13 = smov 124  }
  0xe0   : > { %922 = vrot.lane.b32.xlu0 %v2380_v14, %s2204_s28  ;;  %s3156_s28 = smov 104   ;;  %v1420_v14 = vld [vmem:[%s3115_s2 + $0x10] sm:$0xff]  ;;  %2131 = vmatprep.mubr.msk.f32.mxu0 %vm3151_vm0, %v2340_v4 }
  0xe1   : > { %v892_v5 = vpop.permute.xlu1 %891  ;;  %1646 = vmatprep.subr.mxu1 %v2186_v0 }
  0xe2   : > { %v794_v63 = vpop.permute.xlu0 %793  ;;  %904 = vst.msk [vmem:[#allocation3] sm:$0xff] %vm903_vm3, %v892_v5  ;;  %1647 = vmatpush1.msra.mxu1 %v1420_v14  ;;  %v2218_v14 = vmov 4294967295  }
  0xe3   : > { %805 = vst.msk [vmem:[#allocation3 + $0x10] sm:$0xff] %vm803_vm14, %v794_v63  ;;  %1216 = vrot.lane.b32.xlu1 %v2731_v40, %s3147_s27  ;;  %1648 = vmatprep.subr.mxu1 %v2186_v0  ;;  %s3163_s27 = smov 116  }
  0xe4   : > { %1118 = vrot.lane.b32.xlu0 %v2511_v47, %s3156_s28  ;;  %1649 = vmatpush1.msra.mxu1 %v1419_v28  ;;  %1546 = vst.msk [vmem:[#allocation5] sm:$0xff] %vm3151_vm0, %v2218_v14  ;;  %1547 = vst.msk [vmem:[#allocation5 + $0x8] sm:$0xff] %vm3151_vm0, %v2218_v14 }
  0xe5   : > { %v721_v27 = vpop.permute.xlu1 %720  ;;  %1650 = vmatprep.subr.mxu1 %v2186_v0  ;;  %1548 = vst.msk [vmem:[#allocation5 + $0x10] sm:$0xff] %vm3151_vm0, %v2218_v14  ;;  %1549 = vst.msk [vmem:[#allocation5 + $0x18] sm:$0xff] %vm3151_vm0, %v2218_v14 }
  0xe6   : > { %v623_v24 = vpop.permute.xlu0 %622  ;;  %731 = vst.msk [vmem:[#allocation3 + $0x20] sm:$0xff] %vm728_vm11, %v721_v27  ;;  %1651 = vmatpush1.msra.mxu1 %v1418_v33 }
  0xe7   : > { %632 = vst.msk [vmem:[#allocation3 + $0x30] sm:$0xff] %vm3150_vm7, %v623_v24  ;;  %1394 = vrot.lane.b32.xlu1 %v1386_v15, %s3158_s15  ;;  %1676 = vmatprep.subr.mxu1 %v2186_v0  ;;  %vm953_vm7 = vcmask 654944  }
  0xe8   : > { %1300 = vrot.lane.b32.xlu0 %v2614_v52, %s3157_s16  ;;  %v1437_v52 = vld [vmem:[%s3115_s2 + $0x98] sm:$0xf] }
  0xe9   : > { %v917_v13 = vpop.permute.xlu1 %916  ;;  %2094 = vmatpush2.msk.msra.mxu1 %vm1451_vm5, %v1437_v52 }
  0xea   : > { %v819_v4 = vpop.permute.xlu0 %818  ;;  %929 = vst.msk [vmem:[#allocation3] sm:$0xff] %vm928_vm6, %v917_v13  ;;  %1678 = vmatprep.subr.mxu1 %v2186_v0 }
  0xeb   : > { %830 = vst.msk [vmem:[#allocation3 + $0x10] sm:$0xff] %vm828_vm15, %v819_v4  ;;  %1045 = vrot.lane.b32.xlu1 %v2396_v18, %s2209_s14 }
  0xec   : > { %947 = vrot.lane.b32.xlu0 %v2394_v17, %s3159_s29  ;;  %v1436_v17 = vld [vmem:[%s3115_s2 + $0x90] sm:$0xff]  ;;  %s3160_s29 = smov 96  }
  0xed   : > { %v746_v43 = vpop.permute.xlu1 %745  ;;  %1679 = vmatpush2.msra.mxu1 %v1436_v17 }
  0xee   : > { %v648_v42 = vpop.permute.xlu0 %647  ;;  %756 = vst.msk [vmem:[#allocation3 + $0x20] sm:$0xff] %vm753_vm12, %v746_v43  ;;  %1680 = vmatprep.subr.mxu1 %v2186_v0 }
  0xef   : > { %657 = vst.msk [vmem:[#allocation3 + $0x30] sm:$0xff] %vm653_vm8, %v648_v42  ;;  %1241 = vrot.lane.b32.xlu1 %v1233_v39, %s2217_s13  ;;  %1681 = vmatpush2.msra.mxu1 %v1435_v34  ;;  %vm978_vm8 = vcmask 687744  }
  0xf0   : > { %1143 = vrot.lane.b32.xlu0 %v2520_v49, %s2213_s22  ;;  %1682 = vmatprep.subr.mxu1 %v2186_v0 }
  0xf1   : > { %v942_v16 = vpop.permute.xlu1 %941  ;;  %1683 = vmatpush2.msra.mxu1 %v1434_v46 }
  0xf2   : > { %v844_v18 = vpop.permute.xlu0 %843  ;;  %954 = vst.msk [vmem:[#allocation3] sm:$0xff] %vm953_vm7, %v942_v16 }
  0xf3   : > { %855 = vst.msk [vmem:[#allocation3 + $0x10] sm:$0xff] %vm853_vm1, %v844_v18  ;;  %972 = vrot.lane.b32.xlu1 %v2402_v19, %s2206_s30  ;;  %s3161_s30 = smov 84  }
  0xf4   : > { %1324 = vrot.lane.b32.xlu0 %v2627_v58, %s2187_s24 }
  0xf5   : > { %v771_v54 = vpop.permute.xlu1 %770 }
  0xf6   : > { %v673_v53 = vpop.permute.xlu0 %672  ;;  %781 = vst.msk [vmem:[#allocation3 + $0x20] sm:$0xff] %vm778_vm13, %v771_v54 }
  0xf7   : > { %682 = vst.msk [vmem:[#allocation3 + $0x30] sm:$0xff] %vm678_vm9, %v673_v53  ;;  %1168 = vrot.lane.b32.xlu1 %v2530_v50, %s2214_s19  ;;  %vm1003_vm9 = vcmask 720544  }
  0xf8   : > { %1070 = vrot.lane.b32.xlu0 %v2404_v20, %s3160_s29 }
  0xf9   : > { %v967_v58 = vpop.permute.xlu1 %966 }
  0xfa   : > { %v869_v19 = vpop.permute.xlu0 %868  ;;  %979 = vst.msk [vmem:[#allocation3] sm:$0xff] %vm978_vm8, %v967_v58 }
  0xfb   : > { %880 = vst.msk [vmem:[#allocation3 + $0x10] sm:$0xff] %vm878_vm4, %v869_v19  ;;  %997 = vrot.lane.b32.xlu1 %v2412_v22, %s3161_s30  ;;  %s3165_s30 = smov 120  }
  0xfc   : > { %1348 = vrot.lane.b32.xlu0 %v2664_v31, %s3154_s23 }
  0xfd   : > { %v796_v11 = vpop.permute.xlu1 %795 }
  0xfe   : > { %v698_v10 = vpop.permute.xlu0 %697  ;;  %806 = vst.msk [vmem:[#allocation3 + $0x20] sm:$0xff] %vm803_vm14, %v796_v11 }
  0xff   : > { %707 = vst.msk [vmem:[#allocation3 + $0x30] sm:$0xff] %vm703_vm10, %v698_v10  ;;  %1193 = vrot.lane.b32.xlu1 %v2540_v51, %s3163_s27  ;;  %vm1028_vm10 = vcmask 753344  }
 0x100   : > { %1095 = vrot.lane.b32.xlu0 %v2418_v23, %s3162_s12 }
 0x101   : > { %v992_v55 = vpop.permute.xlu1 %991 }
 0x102   : > { %v894_v20 = vpop.permute.xlu0 %893  ;;  %1004 = vst.msk [vmem:[#allocation3] sm:$0xff] %vm1003_vm9, %v992_v55 }
 0x103   : > { %905 = vst.msk [vmem:[#allocation3 + $0x10] sm:$0xff] %vm903_vm3, %v894_v20  ;;  %1372 = vrot.lane.b32.xlu1 %v2689_v48, %s3155_s26 }
 0x104   : > { %1278 = vrot.lane.b32.xlu0 %v2502_v45, %s2188_s25 }
 0x105   : > { %v821_v31 = vpop.permute.xlu1 %820 }
 0x106   : > { %v723_v22 = vpop.permute.xlu0 %722  ;;  %831 = vst.msk [vmem:[#allocation3 + $0x20] sm:$0xff] %vm828_vm15, %v821_v31 }
 0x107   : > { %732 = vst.msk [vmem:[#allocation3 + $0x30] sm:$0xff] %vm728_vm11, %v723_v22  ;;  %1120 = vrot.lane.b32.xlu1 %v2428_v26, %s3156_s28  ;;  %vm1053_vm11 = vcmask 786144  }
 0x108   : > { %1022 = vrot.lane.b32.xlu0 %v2426_v25, %s3164_s21 }
 0x109   : > { %v1017_v57 = vpop.permute.xlu1 %1016 }
 0x10a   : > { %v919_v37 = vpop.permute.xlu0 %918  ;;  %1029 = vst.msk [vmem:[#allocation3] sm:$0xff] %vm1028_vm10, %v1017_v57 }
 0x10b   : > { %930 = vst.msk [vmem:[#allocation3 + $0x10] sm:$0xff] %vm928_vm6, %v919_v37  ;;  %1302 = vrot.lane.b32.xlu1 %v2511_v47, %s3157_s16  ;;  %v1261_v47 = vld [vmem:[#allocation2 + $0x1e] sm:$0xff] }
 0x10c   : > { %1218 = vrot.lane.b32.xlu0 %v2554_v56, %s3165_s30  ;;  %1265 = vst.msk [vmem:[#allocation3 + $0x38] sm:$0xff] %vm3151_vm0, %v1261_v47 }
 0x10d   : > { %v846_v48 = vpop.permute.xlu1 %845 }
 0x10e   : > { %v748_v45 = vpop.permute.xlu0 %747  ;;  %856 = vst.msk [vmem:[#allocation3 + $0x20] sm:$0xff] %vm853_vm1, %v846_v48 }
 0x10f   : > { %757 = vst.msk [vmem:[#allocation3 + $0x30] sm:$0xff] %vm753_vm12, %v748_v45  ;;  %1047 = vrot.lane.b32.xlu1 %v2436_v29, %s2209_s14  ;;  %vm1078_vm12 = vcmask 818944  }
 0x110   : > { %1396 = vrot.lane.b32.xlu0 %v2731_v40, %s3158_s15 }
 0x111   : > { %v1042_v59 = vpop.permute.xlu1 %1041 }
 0x112   : > { %v944_v25 = vpop.permute.xlu0 %943  ;;  %1054 = vst.msk [vmem:[#allocation3] sm:$0xff] %vm1053_vm11, %v1042_v59 }
 0x113   : > { %955 = vst.msk [vmem:[#allocation3 + $0x10] sm:$0xff] %vm953_vm7, %v944_v25  ;;  %1243 = vrot.lane.b32.xlu1 %v2568_v61, %s2217_s13 }
 0x114   : > { %1145 = vrot.lane.b32.xlu0 %v2443_v30, %s2213_s22 }
 0x115   : > { %v871_v62 = vpop.permute.xlu1 %870 }
 0x116   : > { %v773_v60 = vpop.permute.xlu0 %772  ;;  %881 = vst.msk [vmem:[#allocation3 + $0x20] sm:$0xff] %vm878_vm4, %v871_v62 }
 0x117   : > { %782 = vst.msk [vmem:[#allocation3 + $0x30] sm:$0xff] %vm778_vm13, %v773_v60  ;;  %1072 = vrot.lane.b32.xlu1 %v2370_v12, %s3160_s29  ;;  %vm1103_vm13 = vcmask 851744  }
 0x118   : > { %1326 = vrot.lane.b32.xlu0 %v2520_v49, %s2187_s24 }
 0x119   : > { %v1067_v6 = vpop.permute.xlu1 %1066 }
 0x11a   : > { %v969_v29 = vpop.permute.xlu0 %968  ;;  %1079 = vst.msk [vmem:[#allocation3] sm:$0xff] %vm1078_vm12, %v1067_v6 }
 0x11b   : > { %980 = vst.msk [vmem:[#allocation3 + $0x10] sm:$0xff] %vm978_vm8, %v969_v29  ;;  %1350 = vrot.lane.b32.xlu1 %v2530_v50, %s3154_s23 }
 0x11c   : > { %1170 = vrot.lane.b32.xlu0 %v2451_v32, %s2214_s19 }
 0x11d   : > { %v896_v36 = vpop.permute.xlu1 %895 }
 0x11e   : > { %v798_v61 = vpop.permute.xlu0 %797  ;;  %906 = vst.msk [vmem:[#allocation3 + $0x20] sm:$0xff] %vm903_vm3, %v896_v36 }
 0x11f   : > { %807 = vst.msk [vmem:[#allocation3 + $0x30] sm:$0xff] %vm803_vm14, %v798_v61  ;;  %1195 = vrot.lane.b32.xlu1 %v2462_v35, %s3163_s27  ;;  %vm1128_vm14 = vcmask 884544  }
 0x120   : > { %1097 = vrot.lane.b32.xlu0 %v2352_v7, %s3162_s12  ;;  %v1742_v7 = vld [vmem:[%s3117_s4] sm:$0xf]  ;;  %s448_s12 = scalar_lea.vmem %s3123_s10, %s3206_s18 }
 0x121   : > { %v1092_v49 = vpop.permute.xlu1 %1091  ;;  %2129 = vmatprep.subr.msk.mxu0 %vm1451_vm5, %v1742_v7 }
 0x122   : > { %v994_v12 = vpop.permute.xlu0 %993  ;;  %1104 = vst.msk [vmem:[#allocation3] sm:$0xff] %vm1103_vm13, %v1092_v49  ;;  %2130 = vmatpush3.msk.msra.mxu0 %vm1451_vm5, %v1742_v7  ;;  %vm3166_vm5 = vcmask 97344  }
 0x123   : > { %1005 = vst.msk [vmem:[#allocation3 + $0x10] sm:$0xff] %vm1003_vm9, %v994_v12  ;;  %1374 = vrot.lane.b32.xlu1 %v2540_v51, %s3155_s26  ;;  %2132 = vmatmul.mubr.msk.f32.vlgmr.msra.gmra.mxu0 %vm3151_vm0, %v2332_v3 }
 0x124   : > { %1280 = vrot.lane.b32.xlu0 %v2418_v23, %s2188_s25  ;;  %2134 = vmatprep.mubr.msk.f32.mxu0 %vm3151_vm0, %v2328_v1  ;;  %v1186_v1 = vld [vmem:[#allocation2 + $0x21] sm:$0xff] }
 0x125   : > { %v823_v40 = vpop.permute.xlu1 %822 }
 0x126   : > { %v1275_v50 = vpop.permute.xlu0 %1274  ;;  %832 = vst.msk [vmem:[#allocation3 + $0x30] sm:$0xff] %vm828_vm15, %v823_v40  ;;  %vm1153_vm15 = vcmask 917344  }
 0x127   : > { %1286 = vst.msk [vmem:[#allocation3 + $0x8] sm:$0xff] %vm3152_vm2, %v1275_v50  ;;  %1220 = vrot.lane.b32.xlu1 %v2473_v38, %s3165_s30  ;;  %2135 = vmatmul.mubr.msk.f32.gmra.mxu0 %vm3151_vm0, %v2330_v2 }
 0x128   : > { %1122 = vrot.lane.b32.xlu0 %v2358_v8, %s3156_s28  ;;  %v1136_v8 = vld [vmem:[#allocation2 + $0x23] sm:$0xff] }
 0x129   : > { %v1019_v51 = vpop.permute.xlu1 %1018 }
 0x12a   : > { %v921_v23 = vpop.permute.xlu0 %920  ;;  %1030 = vst.msk [vmem:[#allocation3 + $0x10] sm:$0xff] %vm1028_vm10, %v1019_v51 }
 0x12b   : > { %931 = vst.msk [vmem:[#allocation3 + $0x20] sm:$0xff] %vm928_vm6, %v921_v23  ;;  %1398 = vrot.lane.b32.xlu1 %v2554_v56, %s3158_s15 }
 0x12c   : > { %1304 = vrot.lane.b32.xlu0 %v2428_v26, %s3157_s16  ;;  %s445_s16 = scalar_lea.vmem %s3122_s9, %s2322_s20 }
 0x12d   : > { %v1299_v5 = vpop.permute.xlu1 %1298 }
 0x12e   : > { %v1117_v63 = vpop.permute.xlu0 %1116  ;;  %1310 = vst.msk [vmem:[#allocation3 + $0x8] sm:$0xff] %vm3166_vm5, %v1299_v5  ;;  %vm3168_vm5 = vcmask 162944  }
 0x12f   : > { %1129 = vst.msk [vmem:[#allocation3] sm:$0xff] %vm1128_vm14, %v1117_v63  ;;  %1245 = vrot.lane.b32.xlu1 %v2484_v41, %s2217_s13  ;;  %v1211_v41 = vld [vmem:[#allocation2 + $0x20] sm:$0xff] }
 0x130   : > { %1147 = vrot.lane.b32.xlu0 %v1136_v8, %s2213_s22  ;;  %s2923_s22 = scalar_lea.vmem %s3114_s1, %s2322_s20 }
 0x131   : > { %v946_v26 = vpop.permute.xlu1 %945 }
 0x132   : > { %v848_v3 = vpop.permute.xlu0 %847  ;;  %956 = vst.msk [vmem:[#allocation3 + $0x20] sm:$0xff] %vm953_vm7, %v946_v26 }
 0x133   : > { %857 = vst.msk [vmem:[#allocation3 + $0x30] sm:$0xff] %vm853_vm1, %v848_v3  ;;  %1172 = vrot.lane.b32.xlu1 %v2360_v9, %s2214_s19  ;;  %vm3167_vm1 = vcmask 130144   ;;  %v1236_v9 = vld [vmem:[#allocation2 + $0x1f] sm:$0xff] }
 0x134   : > { %1328 = vrot.lane.b32.xlu0 %v2443_v30, %s2187_s24  ;;  %s3077_s24 = scalar_lea.vmem %s3119_s6, %s2322_s20 }
 0x135   : > { %v1142_v56 = vpop.permute.xlu1 %1141 }
 0x136   : > { %v1044_v2 = vpop.permute.xlu0 %1043  ;;  %1154 = vst.msk [vmem:[#allocation3] sm:$0xff] %vm1153_vm15, %v1142_v56  ;;  %v1559_v56 = vlaneseq }
 0x137   : > { %1055 = vst.msk [vmem:[#allocation3 + $0x10] sm:$0xff] %vm1053_vm11, %v1044_v2  ;;  %1197 = vrot.lane.b32.xlu1 %v1186_v1, %s3163_s27 }
 0x138   : > { %1352 = vrot.lane.b32.xlu0 %v2451_v32, %s3154_s23  ;;  %v2926_v32 = vld [vmem:[%s2923_s22] sm:$0xff] }
 0x139   : > { %v873_v30 = vpop.permute.xlu1 %872  ;;  %1555 = vst.msk [vmem:[#allocation5 + $0x1] sm:$0xff] %vm3151_vm0, %v2926_v32 }
 0x13a   : > { %v1323_v21 = vpop.permute.xlu0 %1322  ;;  %882 = vst.msk [vmem:[#allocation3 + $0x30] sm:$0xff] %vm878_vm4, %v873_v30  ;;  %vm1178_vm4 = vcmask 950144  }
 0x13b   : > { %1334 = vst.msk [vmem:[#allocation3 + $0x8] sm:$0xff] %vm3167_vm1, %v1323_v21  ;;  %1222 = vrot.lane.b32.xlu1 %v1211_v41, %s3165_s30  ;;  %vm1203_vm1 = vcmask 982944   ;;  %s451_s30 = scalar_lea.vmem %s3124_s11, %s3206_s18 }
 0x13c   : > { %1376 = vrot.lane.b32.xlu0 %v2462_v35, %s3155_s26  ;;  %v2937_v35 = vld [vmem:[%s2923_s22 + $0x8] sm:$0xff]  ;;  %s440_s26 = scalar_lea.vmem %s3121_s8, %s3206_s18 }
 0x13d   : > { %v1069_v24 = vpop.permute.xlu1 %1068  ;;  %1556 = vst.msk [vmem:[#allocation5 + $0x9] sm:$0xff] %vm3151_vm0, %v2937_v35  ;;  %vm3169_vm0 = vcmask 195744  }
 0x13e   : > { %v971_v15 = vpop.permute.xlu0 %970  ;;  %1080 = vst.msk [vmem:[#allocation3 + $0x10] sm:$0xff] %vm1078_vm12, %v1069_v24 }
 0x13f   : > { %981 = vst.msk [vmem:[#allocation3 + $0x20] sm:$0xff] %vm978_vm8, %v971_v15  ;;  %1247 = vrot.lane.b32.xlu1 %v1236_v9, %s2217_s13  ;;  %v3005_v9 = vshrl.u32 %v1559_v56, 7 }
 0x140   : > { %1400 = vrot.lane.b32.xlu0 %v2473_v38, %s3158_s15  ;;  %v1564_v15 = vld [vmem:[#allocation5] sm:$0xff] }
 0x141   : > { %v1347_v28 = vpop.permute.xlu1 %1346 }
 0x142   : > { %v1167_v27 = vpop.permute.xlu0 %1166  ;;  %1358 = vst.msk [vmem:[#allocation3 + $0x8] sm:$0xff] %vm3168_vm5, %v1347_v28  ;;  %vm3170_vm5 = vcmask 97344  }
 0x143   : > { %1179 = vst.msk [vmem:[#allocation3] sm:$0xff] %vm1178_vm4, %v1167_v27 }
 0x145   : > { %v996_v13 = vpop.permute.xlu1 %995 }
 0x146   : > { %v898_v4 = vpop.permute.xlu0 %897  ;;  %1006 = vst.msk [vmem:[#allocation3 + $0x20] sm:$0xff] %vm1003_vm9, %v996_v13 }
 0x147   : > { %907 = vst.msk [vmem:[#allocation3 + $0x30] sm:$0xff] %vm903_vm3, %v898_v4  ;;  %vm1228_vm3 = vcmask 1015744  }
 0x149   : > { %v1192_v52 = vpop.permute.xlu1 %1191 }
 0x14a   : > { %v1094_v33 = vpop.permute.xlu0 %1093  ;;  %1204 = vst.msk [vmem:[#allocation3] sm:$0xff] %vm1203_vm1, %v1192_v52 }
 0x14b   : > { %1105 = vst.msk [vmem:[#allocation3 + $0x10] sm:$0xff] %vm1103_vm13, %v1094_v33 }
 0x14d   : > { %v1371_v39 = vpop.permute.xlu1 %1370 }
 0x14e   : > { %v1277_v38 = vpop.permute.xlu0 %1276  ;;  %1382 = vst.msk [vmem:[#allocation3 + $0x8] sm:$0xff] %vm3169_vm0, %v1371_v39  ;;  %vm1253_vm0 = vcmask 1048544  }
 0x14f   : > { %1287 = vst.msk [vmem:[#allocation3 + $0x18] sm:$0xff] %vm3152_vm2, %v1277_v38  ;;  %vm3171_vm2 = vcmask 228544  }
 0x151   : > { %v1021_v43 = vpop.permute.xlu1 %1020 }
 0x152   : > { %v923_v42 = vpop.permute.xlu0 %922  ;;  %1031 = vst.msk [vmem:[#allocation3 + $0x20] sm:$0xff] %vm1028_vm10, %v1021_v43 }
 0x153   : > { %932 = vst.msk [vmem:[#allocation3 + $0x30] sm:$0xff] %vm928_vm6, %v923_v42  ;;  %vm1604_vm6 = vcmask 228352  }
 0x155   : > { %v1217_v18 = vpop.permute.xlu1 %1216 }
 0x156   : > { %v1119_v17 = vpop.permute.xlu0 %1118  ;;  %1229 = vst.msk [vmem:[#allocation3] sm:$0xff] %vm1228_vm3, %v1217_v18 }
 0x157   : > { %1130 = vst.msk [vmem:[#allocation3 + $0x10] sm:$0xff] %vm1128_vm14, %v1119_v17  ;;  %v458_v17 = vld [vmem:[%s2923_s22 + $0x10] sm:$0xff] }
 0x159   : > { %v1395_v34 = vpop.permute.xlu1 %1394 }
 0x15a   : > { %v1301_v16 = vpop.permute.xlu0 %1300  ;;  %1406 = vst.msk [vmem:[#allocation3 + $0x8] sm:$0xff] %vm3171_vm2, %v1395_v34  ;;  %vm3172_vm2 = vcmask 130144  }
 0x15b   : > { %1311 = vst.msk [vmem:[#allocation3 + $0x18] sm:$0xff] %vm3170_vm5, %v1301_v16  ;;  %vm3175_vm5 = vcmask 195744  }
 0x15d   : > { %v1046_v46 = vpop.permute.xlu1 %1045 }
 0x15e   : > { %v948_v44 = vpop.permute.xlu0 %947  ;;  %1056 = vst.msk [vmem:[#allocation3 + $0x20] sm:$0xff] %vm1053_vm11, %v1046_v46 }
 0x15f   : > { %957 = vst.msk [vmem:[#allocation3 + $0x30] sm:$0xff] %vm953_vm7, %v948_v44  ;;  %vm3173_vm7 = vcmask 162944   ;;  %v3028_v44 = vadd.s32 16, %v3005_v9 }
 0x161   : > { %v1242_v54 = vpop.permute.xlu1 %1241  ;;  %v1411_v19 = vld [vmem:[#allocation3 + $0x8] sm:$0xff] }
 0x162   : > { %v1144_v53 = vpop.permute.xlu0 %1143  ;;  %1254 = vst.msk [vmem:[#allocation3] sm:$0xff] %vm1253_vm0, %v1242_v54  ;;  %2095 = vmatprep.mubr.msk.f32.mxu1 %vm1604_vm6, %v1411_v19 }
 0x163   : > { %1155 = vst.msk [vmem:[#allocation3 + $0x10] sm:$0xff] %vm1153_vm15, %v1144_v53 }
 0x165   : > { %v973_v10 = vpop.permute.xlu1 %972 }
 0x166   : > { %v1325_v58 = vpop.permute.xlu0 %1324  ;;  %982 = vst.msk [vmem:[#allocation3 + $0x30] sm:$0xff] %vm978_vm8, %v973_v10  ;;  %vm3174_vm8 = vcmask 64544   ;;  %v2099_v10 = vld [vmem:[%s3118_s5] ss:$0 sm:$0xff] }
 0x167   : > { %1335 = vst.msk [vmem:[#allocation3 + $0x18] sm:$0xff] %vm3172_vm2, %v1325_v58  ;;  %vm3177_vm2 = vcmask 228544   ;;  %v459_v58 = vld [vmem:[%s2923_s22 + $0x18] sm:$0xff]  ;;  %s437_s22 = scalar_lea.vmem %s3120_s7, %s3206_s18 }
 0x169   : > { %v1169_v20 = vpop.permute.xlu1 %1168  ;;  %v1410_v55 = vld [vmem:[#allocation3] sm:$0xff] }
 0x16a   : > { %v1071_v11 = vpop.permute.xlu0 %1070  ;;  %1180 = vst.msk [vmem:[#allocation3 + $0x10] sm:$0xff] %vm1178_vm4, %v1169_v20  ;;  %1685 = vmatmul.mubr.f32.vlgmr.msra.gmra.mxu1 %v1410_v55 }
 0x16b   : > { %1081 = vst.msk [vmem:[#allocation3 + $0x20] sm:$0xff] %vm1078_vm12, %v1071_v11  ;;  %v3041_v11 = vadd.s32 24, %v3005_v9 }
 0x16d   : > { %v998_v31 = vpop.permute.xlu1 %997 }
 0x16e   : > { %v1349_v22 = vpop.permute.xlu0 %1348  ;;  %1007 = vst.msk [vmem:[#allocation3 + $0x30] sm:$0xff] %vm1003_vm9, %v998_v31  ;;  %vm3176_vm9 = vcmask 97344  }
 0x16f   : > { %1359 = vst.msk [vmem:[#allocation3 + $0x18] sm:$0xff] %vm3173_vm7, %v1349_v22 }
 0x171   : > { %v1194_v57 = vpop.permute.xlu1 %1193 }
 0x172   : > { %v1096_v37 = vpop.permute.xlu0 %1095  ;;  %1205 = vst.msk [vmem:[#allocation3 + $0x10] sm:$0xff] %vm1203_vm1, %v1194_v57 }
 0x173   : > { %1106 = vst.msk [vmem:[#allocation3 + $0x20] sm:$0xff] %vm1103_vm13, %v1096_v37 }
 0x175   : > { %v1373_v48 = vpop.permute.xlu1 %1372 }
 0x176   : > { %v1279_v45 = vpop.permute.xlu0 %1278  ;;  %1383 = vst.msk [vmem:[#allocation3 + $0x18] sm:$0xff] %vm3175_vm5, %v1373_v48 }
 0x177   : > { %1288 = vst.msk [vmem:[#allocation3 + $0x28] sm:$0xff] %vm3174_vm8, %v1279_v45 }
 0x179   : > { %v1121_v59 = vpop.permute.xlu1 %1120 }
 0x17a   : > { %v1023_v25 = vpop.permute.xlu0 %1022  ;;  %1131 = vst.msk [vmem:[#allocation3 + $0x20] sm:$0xff] %vm1128_vm14, %v1121_v59 }
 0x17b   : > { %1032 = vst.msk [vmem:[#allocation3 + $0x30] sm:$0xff] %vm1028_vm10, %v1023_v25  ;;  %vm3178_vm10 = vcmask 130144  }
 0x17d   : > { %v1303_v60 = vpop.permute.xlu1 %1302 }
 0x17e   : > { %v1219_v47 = vpop.permute.xlu0 %1218  ;;  %1312 = vst.msk [vmem:[#allocation3 + $0x28] sm:$0xff] %vm3176_vm9, %v1303_v60 }
 0x17f   : > { %1230 = vst.msk [vmem:[#allocation3 + $0x10] sm:$0xff] %vm1228_vm3, %v1219_v47 }
 0x181   : > { %v1048_v29 = vpop.permute.xlu1 %1047 }
 0x182   : > { %v1397_v62 = vpop.permute.xlu0 %1396  ;;  %1057 = vst.msk [vmem:[#allocation3 + $0x30] sm:$0xff] %vm1053_vm11, %v1048_v29  ;;  %vm3179_vm11 = vmmov %vm3173_vm7 }
 0x183   : > { %1407 = vst.msk [vmem:[#allocation3 + $0x18] sm:$0xff] %vm3177_vm2, %v1397_v62  ;;  %vm3180_vm7 = vmmov %vm3174_vm8 }
 0x184   : > { %vm3182_vm8 = vmmov %vm3176_vm9 }
 0x185   : > { %v1244_v61 = vpop.permute.xlu1 %1243 }
 0x186   : > { %v1146_v6 = vpop.permute.xlu0 %1145  ;;  %1255 = vst.msk [vmem:[#allocation3 + $0x10] sm:$0xff] %vm1253_vm0, %v1244_v61 }
 0x187   : > { %1156 = vst.msk [vmem:[#allocation3 + $0x20] sm:$0xff] %vm1153_vm15, %v1146_v6 }
 0x189   : > { %v1073_v12 = vpop.permute.xlu1 %1072 }
 0x18a   : > { %v1327_v36 = vpop.permute.xlu0 %1326  ;;  %v1413_v49 = vld [vmem:[#allocation3 + $0x18] sm:$0xff]  ;;  %1082 = vst.msk [vmem:[#allocation3 + $0x30] sm:$0xff] %vm1078_vm12, %v1073_v12  ;;  %vm3181_vm12 = vmmov %vm3175_vm5 }
 0x18b   : > { %1336 = vst.msk [vmem:[#allocation3 + $0x28] sm:$0xff] %vm3178_vm10, %v1327_v36  ;;  %2096 = vmatprep.mubr.msk.f32.mxu1 %vm1604_vm6, %v1413_v49  ;;  %vm3183_vm5 = vmmov %vm3177_vm2  ;;  %vm1568_vm2 = vcmp.eq.s32.totalorder %v1564_v15, %v3005_v9 }
 0x18d   : > { %v1351_v40 = vpop.permute.xlu1 %1350  ;;  %v1412_v7 = vld [vmem:[#allocation3 + $0x10] sm:$0xff] }
 0x18e   : > { %v1171_v50 = vpop.permute.xlu0 %1170  ;;  %1360 = vst.msk [vmem:[#allocation3 + $0x28] sm:$0xff] %vm3179_vm11, %v1351_v40  ;;  %1690 = vmatmul.mubr.f32.gmra.mxu1 %v1412_v7 }
 0x18f   : > { %1181 = vst.msk [vmem:[#allocation3 + $0x20] sm:$0xff] %vm1178_vm4, %v1171_v50 }
 0x191   : > { %v1196_v51 = vpop.permute.xlu1 %1195 }
 0x192   : > { %v1098_v23 = vpop.permute.xlu0 %1097  ;;  %1206 = vst.msk [vmem:[#allocation3 + $0x20] sm:$0xff] %vm1203_vm1, %v1196_v51 }
 0x193   : > { %1107 = vst.msk [vmem:[#allocation3 + $0x30] sm:$0xff] %vm1103_vm13, %v1098_v23  ;;  %vm3184_vm13 = vcmask 31744  }
 0x194   : > { %vm3185_vm9 = vmmov %vm3184_vm13 }
 0x195   : > { %v1375_v63 = vpop.permute.xlu1 %1374 }
 0x196   : > { %v1281_v8 = vpop.permute.xlu0 %1280  ;;  %1384 = vst.msk [vmem:[#allocation3 + $0x28] sm:$0xff] %vm3181_vm12, %v1375_v63 }
 0x197   : > { %1289 = vst.msk [vmem:[#allocation3 + $0x38] sm:$0xff] %vm3180_vm7, %v1281_v8  ;;  %vm3189_vm7 = vmmov %vm3185_vm9 }
 0x198   : > { %1557 = vst.msk [vmem:[#allocation5 + $0x11] sm:$0xff] %vm3189_vm7, %v458_v17 }
 0x199   : > { %v1221_v3 = vpop.permute.xlu1 %1220 }
 0x19a   : > { %v1123_v5 = vpop.permute.xlu0 %1122  ;;  %1231 = vst.msk [vmem:[#allocation3 + $0x20] sm:$0xff] %vm1228_vm3, %v1221_v3  ;;  %v2998_v2 = vpop.f32.mrf.mxu0 }
 0x19b   : > { %1132 = vst.msk [vmem:[#allocation3 + $0x30] sm:$0xff] %vm1128_vm14, %v1123_v5  ;;  %vm3186_vm14 = vmmov %vm3178_vm10  ;;  %vm1580_vm10 = vcmp.eq.s32.totalorder %v2926_v32, %v3005_v9 }
 0x19c   : > { %1552 = vst.msk [vmem:[#allocation4 + $0x9] sm:$0xff] %vm3184_vm13, %v2998_v2  ;;  %v1521_v41 = vpop.f32.mrf.mxu0 }
 0x19d   : > { %v1399_v1 = vpop.permute.xlu1 %1398  ;;  %1551 = vst.msk [vmem:[#allocation4 + $0x1] sm:$0xff] %vm3185_vm9, %v1521_v41  ;;  %vm1583_vm9 = vcmp.eq.s32.totalorder %v459_v58, %v3041_v11 }
 0x19e   : > { %v1305_v26 = vpop.permute.xlu0 %1304  ;;  %1408 = vst.msk [vmem:[#allocation3 + $0x28] sm:$0xff] %vm3183_vm5, %v1399_v1  ;;  %v2128_v32 = vpop.f32.mrf.mxu0 }
 0x19f   : > { %1313 = vst.msk [vmem:[#allocation3 + $0x38] sm:$0xff] %vm3182_vm8, %v1305_v26 }
 0x1a0   : > { %v1531_v34 = vpop.f32.mrf.mxu0 }
 0x1a1   : > { %v1246_v30 = vpop.permute.xlu1 %1245 }
 0x1a2   : > { %v1148_v21 = vpop.permute.xlu0 %1147  ;;  %1256 = vst.msk [vmem:[#allocation3 + $0x20] sm:$0xff] %vm1253_vm0, %v1246_v30 }
 0x1a3   : > { %1157 = vst.msk [vmem:[#allocation3 + $0x30] sm:$0xff] %vm1153_vm15, %v1148_v21  ;;  %vm3187_vm15 = vmmov %vm3179_vm11  ;;  %vm1544_vm11 = vcmask 25600  }
 0x1a4   : > { %v1572_v4 = vld [vmem:[#allocation4] sm:$0xff]  ;;  %1545 = vst.msk [vmem:[#allocation4 + $0x20] sm:$0x3] %vm1544_vm11, %v2186_v0  ;;  %1550 = vst.msk [vmem:[#allocation5 + $0x20] sm:$0x3] %vm1544_vm11, %v2218_v14  ;;  %v1566_v0 = vld [vmem:[#allocation5 + $0x10] sm:$0xff] }
 0x1a5   : > { %v1173_v27 = vpop.permute.xlu1 %1172  ;;  %v1415_v28 = vld [vmem:[#allocation3 + $0x28] sm:$0xff]  ;;  %v1576_v38 = vsel %vm1568_vm2, %v1572_v4, 0.0  ;;  %vm1570_vm8 = vcmp.eq.s32.totalorder %v1566_v0, %v3028_v44 }
 0x1a6   : > { %v1329_v24 = vpop.permute.xlu0 %1328  ;;  %1182 = vst.msk [vmem:[#allocation3 + $0x30] sm:$0xff] %vm1178_vm4, %v1173_v27  ;;  %2097 = vmatprep.mubr.msk.f32.mxu1 %vm1604_vm6, %v1415_v28  ;;  %v3015_v39 = vsel %vm1580_vm10, %v1521_v41, %v1576_v38  ;;  %vm3188_vm4 = vmmov %vm3181_vm12  ;;  %v1588_v38 = vld [vmem:[#allocation5 + $0x2] sm:$0xff] }
 0x1a7   : > { %1337 = vst.msk [vmem:[#allocation3 + $0x38] sm:$0xff] %vm3186_vm14, %v1329_v24  ;;  %vm3191_vm12 = vmmov %vm3183_vm5  ;;  %vm1582_vm5 = vcmp.eq.s32.totalorder %v458_v17, %v3028_v44  ;;  %vm1856_vm14 = vcmask 57344   ;;  %vm1592_vm2 = vcmp.eq.s32.totalorder %v1588_v38, %v3005_v9  ;;  %v1573_v0 = vld [vmem:[#allocation4 + $0x8] sm:$0xff] }
 0x1a9   : > { %v1414_v33 = vld [vmem:[#allocation3 + $0x20] sm:$0xff]  ;;  %v1198_v52 = vpop.permute.xlu1 %1197 }
 0x1aa   : > { %v1353_v13 = vpop.permute.xlu0 %1352  ;;  %1695 = vmatmul.mubr.f32.gmra.mxu1 %v1414_v33  ;;  %1207 = vst.msk [vmem:[#allocation3 + $0x30] sm:$0xff] %vm1203_vm1, %v1198_v52  ;;  %vm3190_vm1 = vmmov %vm3189_vm7 }
 0x1ab   : > { %1361 = vst.msk [vmem:[#allocation3 + $0x38] sm:$0xff] %vm3187_vm15, %v1353_v13 }
 0x1ac   : > { %1554 = vst.msk [vmem:[#allocation4 + $0x19] sm:$0xff] %vm3190_vm1, %v2128_v32 }
 0x1ad   : > { %v1223_v43 = vpop.permute.xlu1 %1222 }
 0x1ae   : > { %v1377_v42 = vpop.permute.xlu0 %1376  ;;  %1232 = vst.msk [vmem:[#allocation3 + $0x30] sm:$0xff] %vm1228_vm3, %v1223_v43  ;;  %vm3192_vm3 = vmmov %vm3190_vm1 }
 0x1af   : > { %1385 = vst.msk [vmem:[#allocation3 + $0x38] sm:$0xff] %vm3188_vm4, %v1377_v42  ;;  %v1596_v42 = vld [vmem:[#allocation4 + $0x2] sm:$0xff] }
 0x1b0   : > { %1553 = vst.msk [vmem:[#allocation4 + $0x11] sm:$0xff] %vm3192_vm3, %v1531_v34  ;;  %v1600_v43 = vsel %vm1592_vm2, %v1596_v42, %v3015_v39  ;;  %v1589_v39 = vld [vmem:[#allocation5 + $0xa] sm:$0xff] }
 0x1b1   : > { %v1248_v16 = vpop.permute.xlu1 %1247 }
 0x1b2   : > { %v1401_v18 = vpop.permute.xlu0 %1400  ;;  %1257 = vst.msk [vmem:[#allocation3 + $0x30] sm:$0xff] %vm1253_vm0, %v1248_v16  ;;  %vm3193_vm0 = vmmov %vm3190_vm1  ;;  %v1561_v16 = vadd.s32 8, %v3005_v9 }
 0x1b3   : > { %1409 = vst.msk [vmem:[#allocation3 + $0x38] sm:$0xff] %vm3191_vm12, %v1401_v18  ;;  %vm3194_vm10 = vmmov %vm3193_vm0 }
 0x1b4   : > { %1558 = vst.msk [vmem:[#allocation5 + $0x19] sm:$0xff] %vm3193_vm0, %v459_v58  ;;  %vm1581_vm4 = vcmp.eq.s32.totalorder %v2937_v35, %v1561_v16  ;;  %vm1593_vm11 = vcmp.eq.s32.totalorder %v1589_v39, %v1561_v16  ;;  %vm3195_vm7 = vmmov %vm3193_vm0 }
 0x1b5   : > { %vm3196_vm1 = vmmov %vm3193_vm0 }
 0x1b6   : > { %vm3197_vm12 = vmmov %vm3193_vm0 }
 0x1b7   : > { %v1574_v53 = vld [vmem:[#allocation4 + $0x10] sm:$0xff]  ;;  %v1575_v31 = vld [vmem:[#allocation4 + $0x18] sm:$0xff]  ;;  %vm3198_vm3 = vmmov %vm3193_vm0 }
 0x1b8   : > { %v1578_v54 = vsel %vm1570_vm8, %v1574_v53, 0.0  ;;  %v1597_v53 = vld [vmem:[#allocation4 + $0xa] sm:$0xff]  ;;  %vm3199_vm8 = vmmov %vm3193_vm0 }
 0x1b9   : > { %v1416_v46 = vld [vmem:[#allocation3 + $0x30] sm:$0xff]  ;;  %v3033_v19 = vsel %vm1582_vm5, %v1531_v34, %v1578_v54  ;;  %vm3203_vm2 = vmmov %vm3193_vm0 }
 0x1ba   : > { %v1417_v14 = vld [vmem:[#allocation3 + $0x38] sm:$0xff]  ;;  %v1565_v34 = vld [vmem:[#allocation5 + $0x8] sm:$0xff] }
 0x1bb   : > { %2098 = vmatprep.mubr.msk.f32.mxu1 %vm1604_vm6, %v1417_v14  ;;  %v1567_v55 = vld [vmem:[#allocation5 + $0x18] sm:$0xff]  ;;  %vm1838_vm6 = vcmask 64512   ;;  %vm1569_vm15 = vcmp.eq.s32.totalorder %v1565_v34, %v1561_v16 }
 0x1bc   : > { %1700 = vmatmul.mubr.f32.gmra.mxu1 %v1416_v46  ;;  %vm1571_vm13 = vcmp.eq.s32.totalorder %v1567_v55, %v3041_v11  ;;  %v1577_v14 = vsel %vm1569_vm15, %v1573_v0, 0.0  ;;  %vm1722_vm15 = vcmask 24576  }
 0x1bd   : > { %v1579_v57 = vsel %vm1571_vm13, %v1575_v31, 0.0  ;;  %v1585_v46 = vsel %vm1581_vm4, %v2998_v2, %v1577_v14  ;;  %vm3201_vm13 = vmmov %vm3193_vm0 }
 0x1be   : > { %v3050_v48 = vsel %vm1583_vm9, %v2128_v32, %v1579_v57  ;;  %v1601_v54 = vsel %vm1593_vm11, %v1597_v53, %v1585_v46 }
 0x1e3   : > { %v2133_v20 = vpop.f32.mrf.mxu0 }
 0x1e4   : > { %v1825_v22 = vadd.f32 %v2133_v20, %v2099_v10 }
 0x1e5   : > { %v1819_v37 = vpop.f32.mrf.mxu0 }
 0x1e6   : > { %1840 = vst.msk [vmem:[%s445_s16 + $0x8] sm:$0xff] %vm1838_vm6, %v1825_v22  ;;  %v1859_v45 = vmul.f32 %v1825_v22, %v1825_v22  ;;  %v1844_v25 = vsel %vm1838_vm6, %v1825_v22, 0.0  ;;  %v1820_v59 = vadd.f32 %v2099_v10, %v1819_v37 }
 0x1e7   : > { %v2136_v47 = vpop.f32.mrf.mxu0 }
 0x1e8   : > { %v1863_v60 = vsel %vm1838_vm6, %v1859_v45, 0.0  ;;  %1839 = vst.msk [vmem:[%s445_s16] sm:$0xff] %vm1838_vm6, %v1820_v59  ;;  %v1843_v62 = vsel %vm1838_vm6, %v1820_v59, 0.0  ;;  %v1858_v29 = vmul.f32 %v1820_v59, %v1820_v59  ;;  %v1835_v6 = vadd.f32 %v2136_v47, %v2099_v10  ;;  %v1590_v45 = vld [vmem:[#allocation5 + $0x12] sm:$0xff] }
 0x1e9   : > { %v1829_v61 = vpop.f32.mrf.mxu0  ;;  %v1845_v36 = vadd.f32 %v1844_v25, %v1843_v62  ;;  %vm1594_vm5 = vcmp.eq.s32.totalorder %v1590_v45, %v3028_v44  ;;  %v1598_v25 = vld [vmem:[#allocation4 + $0x12] sm:$0xff]  ;;  %v1599_v44 = vld [vmem:[#allocation4 + $0x1a] sm:$0xff] }
 0x1ea   : > { %v1830_v12 = vadd.f32 %v2099_v10, %v1829_v61  ;;  %v1862_v49 = vsel %vm1838_vm6, %v1858_v29, 0.0  ;;  %1842 = vst.msk [vmem:[%s445_s16 + $0x18] sm:$0xff] %vm1838_vm6, %v1835_v6  ;;  %v1861_v50 = vmul.f32 %v1835_v6, %v1835_v6  ;;  %v1848_v7 = vsel %vm1838_vm6, %v1835_v6, 0.0 }
 0x1eb   : > { %v1864_v40 = vadd.f32 %v1863_v60, %v1862_v49  ;;  %v1602_v59 = vsel %vm1594_vm5, %v1598_v25, %v3033_v19  ;;  %v1591_v49 = vld [vmem:[#allocation5 + $0x1a] sm:$0xff] }
 0x1ec   : > { %1841 = vst.msk [vmem:[%s445_s16 + $0x10] sm:$0xff] %vm1838_vm6, %v1830_v12  ;;  %v1846_v23 = vsel %vm1838_vm6, %v1830_v12, 0.0  ;;  %v1860_v51 = vmul.f32 %v1830_v12, %v1830_v12  ;;  %v1867_v63 = vsel %vm1838_vm6, %v1861_v50, 0.0  ;;  %vm1595_vm9 = vcmp.eq.s32.totalorder %v1591_v49, %v3041_v11 }
 0x1ed   : > { %v1847_v8 = vadd.f32 %v1846_v23, %v1845_v36  ;;  %v1603_v50 = vsel %vm1595_vm9, %v1599_v44, %v3050_v48 }
 0x1ee   : > { %v1865_v5 = vsel %vm1838_vm6, %v1860_v51, 0.0  ;;  %vm3200_vm6 = vmmov %vm3193_vm0 }
 0x1ef   : > { %v1849_v3 = vadd.f32 %v1848_v7, %v1847_v8  ;;  %v1866_v26 = vadd.f32 %v1865_v5, %v1864_v40 }
 0x1f1   : > { %v1850_v1 = vrot.slane %v1849_v3, 4  ;;  %v1868_v56 = vadd.f32 %v1867_v63, %v1866_v26 }
 0x1f3   : > { %v1851_v41 = vadd.f32 %v1850_v1, %v1849_v3  ;;  %v1869_v21 = vrot.slane %v1868_v56, 4 }
 0x1f5   : > { %v1852_v30 = vrot.slane %v1851_v41, 2  ;;  %v1870_v15 = vadd.f32 %v1869_v21, %v1868_v56 }
 0x1f7   : > { %v1853_v24 = vadd.f32 %v1852_v30, %v1851_v41  ;;  %v1871_v27 = vrot.slane %v1870_v15, 2 }
 0x1f9   : > { %v1854_v28 = vrot.slane %v1853_v24, 1  ;;  %v1872_v4 = vadd.f32 %v1871_v27, %v1870_v15 }
 0x1fb   : > { %v1855_v13 = vadd.f32 %v1854_v28, %v1853_v24  ;;  %v1873_v33 = vrot.slane %v1872_v4, 1 }
 0x1fd   : > { %1857 = vst.msk [vmem:[%s448_s12] sm:$0x1] %vm1856_vm14, %v1855_v13  ;;  %v1874_v52 = vadd.f32 %v1873_v33, %v1872_v4 }
 0x1ff   : > { %1875 = vst.msk [vmem:[%s451_s30] sm:$0x1] %vm1856_vm14, %v1874_v52  ;;  %vm3202_vm14 = vmmov %vm3193_vm0 }
 0x22a   : > { %v1686_v32 = vpop.f32.mrf.mxu1 }
 0x22b   : > { %v1687_v17 = vadd.f32 %v1686_v32, %v1600_v43 }
 0x22c   : > { %v1688_v18 = vpop.f32.mrf.mxu1 }
 0x22d   : > { %1705 = vst.msk [vmem:[%s3077_s24] sm:$0xff] %vm3194_vm10, %v1687_v17  ;;  %v1724_v10 = vmul.f32 %v1687_v17, %v1687_v17  ;;  %v1709_v9 = vsel %vm3195_vm7, %v1687_v17, 0.0  ;;  %vm3204_vm10 = vmmov %vm3193_vm0 }
 0x22f   : > { %v1728_v35 = vsel %vm3198_vm3, %v1724_v10, 0.0 }
 0x24e   : > { %v1691_v58 = vpop.f32.mrf.mxu1 }
 0x24f   : > { %v1692_v20 = vadd.f32 %v1691_v58, %v1601_v54 }
 0x250   : > { %v1693_v55 = vpop.f32.mrf.mxu1 }
 0x251   : > { %1706 = vst.msk [vmem:[%s3077_s24 + $0x8] sm:$0xff] %vm3196_vm1, %v1692_v20  ;;  %v1710_v22 = vsel %vm3197_vm12, %v1692_v20, 0.0  ;;  %v1725_v31 = vmul.f32 %v1692_v20, %v1692_v20 }
 0x252   : > { %v1711_v37 = vadd.f32 %v1710_v22, %v1709_v9 }
 0x253   : > { %v1729_v2 = vsel %vm3199_vm8, %v1725_v31, 0.0 }
 0x254   : > { %v1730_v57 = vadd.f32 %v1729_v2, %v1728_v35 }
 0x26a   : > { %v1696_v47 = vpop.f32.mrf.mxu1 }
 0x26b   : > { %v1697_v60 = vadd.f32 %v1696_v47, %v1602_v59 }
 0x26c   : > { %v1698_v62 = vpop.f32.mrf.mxu1 }
 0x26d   : > { %1707 = vst.msk [vmem:[%s3077_s24 + $0x10] sm:$0xff] %vm3193_vm0, %v1697_v60  ;;  %v1712_v29 = vsel %vm3200_vm6, %v1697_v60, 0.0  ;;  %v1726_v6 = vmul.f32 %v1697_v60, %v1697_v60 }
 0x26e   : > { %v1713_v61 = vadd.f32 %v1712_v29, %v1711_v37 }
 0x26f   : > { %v1731_v36 = vsel %vm3201_vm13, %v1726_v6, 0.0 }
 0x270   : > { %v1732_v12 = vadd.f32 %v1731_v36, %v1730_v57 }
 0x27c   : > { %v1701_v19 = vpop.f32.mrf.mxu1 }
 0x27d   : > { %v1702_v40 = vadd.f32 %v1701_v19, %v1603_v50 }
 0x27e   : > { %v1703_v7 = vpop.f32.mrf.mxu1 }
 0x27f   : > { %1708 = vst.msk [vmem:[%s3077_s24 + $0x18] sm:$0xff] %vm3202_vm14, %v1702_v40  ;;  %v1714_v23 = vsel %vm3203_vm2, %v1702_v40, 0.0  ;;  %v1727_v51 = vmul.f32 %v1702_v40, %v1702_v40 }
 0x280   : > { %v1715_v8 = vadd.f32 %v1714_v23, %v1713_v61 }
 0x281   : > { %v1733_v63 = vsel %vm3204_vm10, %v1727_v51, 0.0 }
 0x282   : > { %v1716_v5 = vrot.slane %v1715_v8, 4  ;;  %v1734_v3 = vadd.f32 %v1733_v63, %v1732_v12 }
 0x284   : > { %v1717_v26 = vadd.f32 %v1716_v5, %v1715_v8  ;;  %v1735_v11 = vrot.slane %v1734_v3, 4 }
 0x286   : > { %v1718_v1 = vrot.slane %v1717_v26, 2  ;;  %v1736_v56 = vadd.f32 %v1735_v11, %v1734_v3 }
 0x288   : > { %v1719_v48 = vadd.f32 %v1718_v1, %v1717_v26  ;;  %v1737_v41 = vrot.slane %v1736_v56, 2 }
 0x28a   : > { %v1720_v21 = vrot.slane %v1719_v48, 1  ;;  %v1738_v30 = vadd.f32 %v1737_v41, %v1736_v56 }
 0x28c   : > { %v1721_v15 = vadd.f32 %v1720_v21, %v1719_v48  ;;  %v1739_v24 = vrot.slane %v1738_v30, 1 }
 0x28e   : > { %1723 = vst.msk [vmem:[%s437_s22] sm:$0x1] %vm1722_vm15, %v1721_v15  ;;  %v1740_v27 = vadd.f32 %v1739_v24, %v1738_v30 }
 0x290   : > { %1741 = vst.msk [vmem:[%s440_s26] sm:$0x1] %vm1722_vm15, %v1740_v27 }
 0x291 PF: > { %s22_s17 = sadd.s32 1, %s2184_s17  }
 0x292   : > { %p19_p4 = scmp.ge.s32.totalorder %s22_s17, 4  }
 0x294   :  { %21 = sbr.rel (!%p19_p4) target bundleno = 1 (0x1), region = 137 }

// kernel: inception_transpose_block.5
= control target key start
LH: loop header
LB: loop body
LE: loop exit
PB: predicated region body
PF: predicated region fallthrough
CT: control target
= control target key end

     0   :  { %s1984_s27 = smov 0   ;;  %s2865_s0 = inlined_call_operand.vmem [shape: f32[2,32,4], index: 0, kind: input, shape index: {}]   ;;  %s2866_s1 = inlined_call_operand.vmem [shape: f32[1,1,4], index: 1, kind: input, shape index: {}]   ;;  %s2867_s2 = inlined_call_operand.vmem [shape: f32[1,1,4], index: 2, kind: input, shape index: {}]   ;;  %s2868_s3 = inlined_call_operand.vmem [shape: s32[2,32,4], index: 3, kind: input, shape index: {}]   ;;  %s2869_s4 = inlined_call_operand.vmem [shape: f32[156,4], index: 4, kind: input, shape index: {}]   ;;  %s2870_s5 = inlined_call_operand.vmem [shape: f32[4,4], index: 5, kind: input, shape index: {}]   ;;  %s2871_s6 = inlined_call_operand.vmem [shape: f32[2,32,4], index: 6, kind: output, shape index: {0}]   ;;  %s2872_s7 = inlined_call_operand.vmem [shape: f32[2,1,4], index: 7, kind: output, shape index: {1}]   ;;  %s2873_s8 = inlined_call_operand.vmem [shape: f32[2,1,4], index: 8, kind: output, shape index: {2}]  }
   0x1 LB: > { %s1776_s28 = sadd.s32 4294967295, %s1904_s27   ;;  %p1780_p0 = scmp.ge.s32.totalorder %s1904_s27, 1  ;;  %s1904_s27 = sphi %s1984_s27, %s19_s27  }
   0x2   : > { %p277_p1 = scmp.lt.s32.totalorder %s1904_s27, 3 }
   0x4   : > { %p278_p2 = pnand %p1780_p0, %p277_p1 }
   0x5   : > { %p322_p3 = scmp.lt.s32.totalorder (!%p278_p2), %s1776_s28, 1  ;;  %s1907_s15 = smov (!%p278_p2), 4  }
   0x6   : > { %281 = sbr.rel (%p278_p2) target bundleno = 654 (0x28e), region = 44  ;;  %s1908_s16 = smov (!%p278_p2), 8  }
   0x7   : > { %s1909_s17 = smov (!%p278_p2), 12   ;;  %s1910_s18 = smov (!%p278_p2), 16  }
   0x8   : > { %s1911_s19 = smov (!%p278_p2), 20   ;;  %s1912_s20 = smov (!%p278_p2), 24  }
   0x9   : > { %s1913_s21 = smov (!%p278_p2), 28   ;;  %s1914_s22 = smov (!%p278_p2), 32  }
   0xa   : > { %s1915_s23 = smov (!%p278_p2), 36   ;;  %s1916_s24 = smov (!%p278_p2), 40  }
   0xb   : > { %vm2875_vm0 = vcmask 31744   ;;  %v1906_v0 = vmov 0.0   ;;  %vm386_vm1 = vcmask 29696   ;;  %s2897_s28 = smov (!%p322_p3, %s1776_s28), 1  ;;  %v1787_v1 = vld [vmem:[%s2866_s1] ss:$0 sm:$0xff] }
   0xc   : > { %384 = vst.msk [vmem:[#allocation2 + $0x30] sm:$0xff] %vm2875_vm0, %v1906_v0  ;;  %385 = vst.msk [vmem:[#allocation2 + $0x38] sm:$0xff] %vm2875_vm0, %v1906_v0  ;;  %1817 = vmatprep.subr.mxu1 %v1906_v0  ;;  %s2021_s29 = sshll.u32 %s2897_s28, 5  ;;  %v1788_v2 = vld [vmem:[%s2867_s2] ss:$0 sm:$0xff]  ;;  %s1917_s25 = smov 44  }
   0xd   : > { %378 = vst.msk [vmem:[#allocation2] sm:$0xff] %vm2875_vm0, %v1906_v0  ;;  %379 = vst.msk [vmem:[#allocation2 + $0x8] sm:$0xff] %vm2875_vm0, %v1906_v0  ;;  %s326_s12 = scalar_lea.vmem %s2865_s0, %s2021_s29  ;;  %s1918_s26 = smov 48   ;;  %vm420_vm2 = vcmask 64544   ;;  %vm445_vm3 = vcmask 97344   ;;  %vm470_vm4 = vcmask 130144  }
   0xe   : > { %380 = vst.msk [vmem:[#allocation2 + $0x10] sm:$0xff] %vm2875_vm0, %v1906_v0  ;;  %381 = vst.msk [vmem:[#allocation2 + $0x18] sm:$0xff] %vm2875_vm0, %v1906_v0  ;;  %v346_v3 = vld [vmem:[%s326_s12 + $0x18] sm:$0xff]  ;;  %v345_v4 = vld [vmem:[%s326_s12 + $0x10] sm:$0xff]  ;;  %s1919_s30 = smov 52   ;;  %s1920_s9 = smov 56  }
   0xf   : > { %382 = vst.msk [vmem:[#allocation2 + $0x20] sm:$0xff] %vm2875_vm0, %v1906_v0  ;;  %383 = vst.msk [vmem:[#allocation2 + $0x28] sm:$0xff] %vm2875_vm0, %v1906_v0  ;;  %v344_v5 = vld [vmem:[%s326_s12 + $0x8] sm:$0xff]  ;;  %v357_v8 = vmul.f32 %v1787_v1, %v346_v3  ;;  %v356_v9 = vmul.f32 %v1787_v1, %v345_v4  ;;  %v343_v15 = vld [vmem:[%s326_s12] sm:$0xff]  ;;  %s1921_s10 = smov 60   ;;  %s1922_s11 = smov 64  }
  0x10   : > { %1457 = vst.msk [vmem:[#allocation4] sm:$0xff] %vm2875_vm0, %v1906_v0  ;;  %1458 = vst.msk [vmem:[#allocation4 + $0x8] sm:$0xff] %vm2875_vm0, %v1906_v0  ;;  %v355_v10 = vmul.f32 %v1787_v1, %v344_v5  ;;  %v354_v20 = vmul.f32 %v1787_v1, %v343_v15  ;;  %s1923_s12 = smov 68   ;;  %s1924_s13 = smov 72   ;;  %vm495_vm5 = vcmask 162944   ;;  %vm520_vm6 = vcmask 195744  }
  0x11   : > { %1459 = vst.msk [vmem:[#allocation4 + $0x10] sm:$0xff] %vm2875_vm0, %v1906_v0  ;;  %1460 = vst.msk [vmem:[#allocation4 + $0x18] sm:$0xff] %vm2875_vm0, %v1906_v0  ;;  %v2043_v12 = vadd.f32 %v1788_v2, %v357_v8  ;;  %v2045_v13 = vadd.f32 %v1788_v2, %v356_v9  ;;  %s1925_s14 = smov 76   ;;  %vm2874_vm7 = vcmask 228544   ;;  %vm570_vm8 = vcmask 261344  }
  0x12   : > { %387 = vst.msk [vmem:[#allocation2 + $0x40] sm:$0x3f] %vm386_vm1, %v1906_v0  ;;  %v2047_v14 = vadd.f32 %v1788_v2, %v355_v10  ;;  %v365_v21 = vadd.f32 %v1788_v2, %v354_v20  ;;  %vm595_vm9 = vcmask 294144   ;;  %vm620_vm10 = vcmask 326944  }
  0x13   : > { %v2033_v6 = vld [vmem:[#allocation2 + $0x35] sm:$0xff]  ;;  %v372_v17 = vmax.f32 %v2043_v12, 0.0  ;;  %v371_v18 = vmax.f32 %v2045_v13, 0.0  ;;  %vm645_vm11 = vcmask 359744   ;;  %vm670_vm12 = vcmask 392544  }
  0x14   : > { %v2035_v7 = vld [vmem:[#allocation2 + $0x34] sm:$0xff]  ;;  %412 = vrot.lane.b32.xlu1 %v2033_v6, %s1907_s15  ;;  %v370_v19 = vmax.f32 %v2047_v14, 0.0  ;;  %v369_v22 = vmax.f32 %v365_v21, 0.0  ;;  %vm695_vm13 = vcmask 425344   ;;  %vm720_vm14 = vcmask 458144  }
  0x15   : > { %437 = vrot.lane.b32.xlu0 %v2035_v7, %s1908_s16  ;;  %v2041_v11 = vld [vmem:[#allocation2 + $0x33] sm:$0xff]  ;;  %391 = vst.msk [vmem:[#allocation2 + $0x2b] sm:$0xff] %vm2875_vm0, %v372_v17  ;;  %390 = vst.msk [vmem:[#allocation2 + $0x23] sm:$0xff] %vm2875_vm0, %v371_v18  ;;  %vm745_vm15 = vcmask 490944   ;;  %vm770_vm1 = vcmask 523744  }
  0x16   : > { %v2049_v16 = vld [vmem:[#allocation2 + $0x36] sm:$0xff]  ;;  %389 = vst.msk [vmem:[#allocation2 + $0x1b] sm:$0xff] %vm2875_vm0, %v370_v19  ;;  %388 = vst.msk [vmem:[#allocation2 + $0x13] sm:$0xff] %vm2875_vm0, %v369_v22  ;;  %1811 = vmatprep.mubr.msk.f32.mxu0 %vm2875_vm0, %v369_v22 }
  0x17   : > { %398 = vst.msk [vmem:[#allocation3 + $0x20] sm:$0xff] %vm2875_vm0, %v2049_v16  ;;  %v528_v54 = vld [vmem:[#allocation2 + $0x38] sm:$0xff] }
  0x18   : > { %462 = vrot.lane.b32.xlu1 %v2041_v11, %s1909_s17  ;;  %v553_v56 = vld [vmem:[#allocation2 + $0x37] sm:$0xff] }
  0x19   : > { %v395_v34 = vld [vmem:[#allocation2 + $0x3e] sm:$0xff] }
  0x1a   : > { %399 = vst.msk [vmem:[#allocation3 + $0x30] sm:$0xff] %vm2875_vm0, %v395_v34  ;;  %v403_v40 = vld [vmem:[#allocation2 + $0x3d] sm:$0xff] }
  0x1b   : > { %v428_v43 = vld [vmem:[#allocation2 + $0x3c] sm:$0xff] }
  0x1c   : > { %v2069_v23 = vld [vmem:[#allocation2 + $0x2d] sm:$0xff]  ;;  %v2089_v28 = vld [vmem:[#allocation2 + $0x25] sm:$0xff]  ;;  %v453_v46 = vld [vmem:[#allocation2 + $0x3b] sm:$0xff] }
  0x1d   : > { %v2071_v24 = vld [vmem:[#allocation2 + $0x2b] sm:$0xff]  ;;  %410 = vrot.lane.b32.xlu0 %v2069_v23, %s1907_s15  ;;  %v2101_v31 = vld [vmem:[#allocation2 + $0x16] sm:$0xff]  ;;  %v2113_v35 = vld [vmem:[#allocation2 + $0x23] sm:$0xff] }
  0x1e   : > { %460 = vrot.lane.b32.xlu1 %v2071_v24, %s1909_s17  ;;  %v2077_v25 = vld [vmem:[#allocation2 + $0x2c] sm:$0xff]  ;;  %v2091_v29 = vld [vmem:[#allocation2 + $0x24] sm:$0xff]  ;;  %1181 = vst.msk [vmem:[#allocation3 + $0x28] sm:$0xff] %vm2875_vm0, %v2101_v31  ;;  %v478_v49 = vld [vmem:[#allocation2 + $0x3a] sm:$0xff] }
  0x1f   : > { %v2079_v26 = vld [vmem:[#allocation2 + $0x2a] sm:$0xff]  ;;  %v2115_v36 = vld [vmem:[#allocation2 + $0x22] sm:$0xff]  ;;  %v2128_v38 = vld [vmem:[#allocation2 + $0x32] sm:$0xff] }
  0x20   : > { %v2081_v27 = vld [vmem:[#allocation2 + $0x26] sm:$0xff]  ;;  %v2093_v30 = vld [vmem:[#allocation2 + $0x2e] sm:$0xff]  ;;  %v2163_v48 = vld [vmem:[#allocation2 + $0x1e] sm:$0xff] }
  0x21   : > { %396 = vst.msk [vmem:[#allocation3] sm:$0xff] %vm2875_vm0, %v2081_v27  ;;  %435 = vrot.lane.b32.xlu0 %v2077_v25, %s1908_s16  ;;  %397 = vst.msk [vmem:[#allocation3 + $0x10] sm:$0xff] %vm2875_vm0, %v2093_v30  ;;  %v2103_v32 = vld [vmem:[#allocation2 + $0x29] sm:$0xff]  ;;  %v2130_v39 = vld [vmem:[#allocation2 + $0x21] sm:$0xff] }
  0x22   : > { %485 = vrot.lane.b32.xlu1 %v2079_v26, %s1910_s18  ;;  %v2105_v33 = vld [vmem:[#allocation2 + $0x28] sm:$0xff]  ;;  %v2139_v41 = vld [vmem:[#allocation2 + $0x31] sm:$0xff]  ;;  %v2141_v42 = vld [vmem:[#allocation2 + $0x20] sm:$0xff] }
  0x23   : > { %v2122_v37 = vld [vmem:[#allocation2 + $0x27] sm:$0xff]  ;;  %v2150_v44 = vld [vmem:[#allocation2 + $0x30] sm:$0xff]  ;;  %v2152_v45 = vld [vmem:[#allocation2 + $0x1f] sm:$0xff] }
  0x24   : > { %v2161_v47 = vld [vmem:[#allocation2 + $0x2f] sm:$0xff]  ;;  %v2172_v50 = vld [vmem:[#allocation2 + $0x1d] sm:$0xff] }
  0x25   : > { %408 = vrot.lane.b32.xlu0 %v2089_v28, %s1907_s15  ;;  %v503_v51 = vld [vmem:[#allocation2 + $0x39] sm:$0xff]  ;;  %v2178_v52 = vld [vmem:[#allocation2 + $0xe] sm:$0xff] }
  0x26   : > { %433 = vrot.lane.b32.xlu1 %v2091_v29, %s1908_s16  ;;  %1180 = vst.msk [vmem:[#allocation3 + $0x18] sm:$0xff] %vm2875_vm0, %v2178_v52  ;;  %v2185_v53 = vld [vmem:[#allocation2 + $0x1c] sm:$0xff]  ;;  %v2270_v8 = vld [vmem:[#allocation2 + $0x14] sm:$0xff] }
  0x27   : > { %v2194_v55 = vld [vmem:[#allocation2 + $0x1b] sm:$0xff] }
  0x28   : > { %v2203_v57 = vld [vmem:[#allocation2 + $0x1a] sm:$0xff] }
  0x29   : > { %510 = vrot.lane.b32.xlu0 %v2103_v32, %s1911_s19  ;;  %v2213_v58 = vld [vmem:[#allocation2 + $0x19] sm:$0xff] }
  0x2a   : > { %535 = vrot.lane.b32.xlu1 %v2105_v33, %s1912_s20  ;;  %v2223_v59 = vld [vmem:[#allocation2 + $0x18] sm:$0xff] }
  0x2b   : > { %v2233_v60 = vld [vmem:[#allocation2 + $0x17] sm:$0xff] }
  0x2c   : > { %v2255_v3 = vld [vmem:[#allocation2 + $0x15] sm:$0xff] }
  0x2d   : > { %458 = vrot.lane.b32.xlu0 %v2113_v35, %s1909_s17  ;;  %v2519_v14 = vld [vmem:[%s2869_s4 + $0x18] sm:$0xff] }
  0x2e   : > { %483 = vrot.lane.b32.xlu1 %v2115_v36, %s1910_s18 }
  0x31   : > { %560 = vrot.lane.b32.xlu0 %v2122_v37, %s1913_s21 }
  0x32   : > { %585 = vrot.lane.b32.xlu1 %v2081_v27, %s1914_s22 }
  0x35   : > { %487 = vrot.lane.b32.xlu0 %v2128_v38, %s1910_s18 }
  0x36   : > { %508 = vrot.lane.b32.xlu1 %v2130_v39, %s1911_s19 }
  0x39   : > { %414 = vrot.lane.b32.xlu0 %v403_v40, %s1907_s15 }
  0x3a   : > { %610 = vrot.lane.b32.xlu1 %v2089_v28, %s1915_s23 }
  0x3d   : > { %512 = vrot.lane.b32.xlu0 %v2139_v41, %s1911_s19 }
  0x3e   : > { %533 = vrot.lane.b32.xlu1 %v2141_v42, %s1912_s20 }
  0x41   : > { %439 = vrot.lane.b32.xlu0 %v428_v43, %s1908_s16 }
  0x42   : > { %635 = vrot.lane.b32.xlu1 %v2091_v29, %s1916_s24 }
  0x45   : > { %537 = vrot.lane.b32.xlu0 %v2150_v44, %s1912_s20 }
  0x46   : > { %558 = vrot.lane.b32.xlu1 %v2152_v45, %s1913_s21 }
  0x49   : > { %464 = vrot.lane.b32.xlu0 %v453_v46, %s1909_s17  ;;  %v2312_v46 = vld [vmem:[#allocation2 + $0x11] sm:$0xff] }
  0x4a   : > { %660 = vrot.lane.b32.xlu1 %v2113_v35, %s1917_s25 }
  0x4d   : > { %562 = vrot.lane.b32.xlu0 %v2161_v47, %s1913_s21 }
  0x4e   : > { %583 = vrot.lane.b32.xlu1 %v2163_v48, %s1914_s22 }
  0x51   : > { %489 = vrot.lane.b32.xlu0 %v478_v49, %s1910_s18 }
  0x52   : > { %685 = vrot.lane.b32.xlu1 %v2115_v36, %s1918_s26 }
  0x55   : > { %587 = vrot.lane.b32.xlu0 %v2093_v30, %s1914_s22 }
  0x56   : > { %608 = vrot.lane.b32.xlu1 %v2172_v50, %s1915_s23 }
  0x59   : > { %514 = vrot.lane.b32.xlu0 %v503_v51, %s1911_s19 }
  0x5a   : > { %710 = vrot.lane.b32.xlu1 %v2130_v39, %s1919_s30 }
  0x5d   : > { %612 = vrot.lane.b32.xlu0 %v2069_v23, %s1915_s23 }
  0x5e   : > { %633 = vrot.lane.b32.xlu1 %v2185_v53, %s1916_s24 }
  0x61   : > { %539 = vrot.lane.b32.xlu0 %v528_v54, %s1912_s20 }
  0x62   : > { %735 = vrot.lane.b32.xlu1 %v2141_v42, %s1920_s9 }
  0x65   : > { %637 = vrot.lane.b32.xlu0 %v2077_v25, %s1916_s24 }
  0x66   : > { %658 = vrot.lane.b32.xlu1 %v2194_v55, %s1917_s25 }
  0x69   : > { %564 = vrot.lane.b32.xlu0 %v553_v56, %s1913_s21  ;;  %s1926_s21 = smov 80   ;;  %v2332_v56 = vld [vmem:[#allocation2 + $0xd] sm:$0xff] }
  0x6a   : > { %760 = vrot.lane.b32.xlu1 %v2152_v45, %s1921_s10 }
  0x6d   : > { %662 = vrot.lane.b32.xlu0 %v2071_v24, %s1917_s25 }
  0x6e   : > { %683 = vrot.lane.b32.xlu1 %v2203_v57, %s1918_s26 }
  0x71   : > { %589 = vrot.lane.b32.xlu0 %v2049_v16, %s1914_s22  ;;  %s1927_s22 = smov 84   ;;  %v2284_v16 = vld [vmem:[#allocation2 + $0x13] sm:$0xff] }
  0x72   : > { %785 = vrot.lane.b32.xlu1 %v2163_v48, %s1922_s11 }
  0x75   : > { %687 = vrot.lane.b32.xlu0 %v2079_v26, %s1918_s26 }
  0x76   : > { %708 = vrot.lane.b32.xlu1 %v2213_v58, %s1919_s30 }
  0x79   : > { %614 = vrot.lane.b32.xlu0 %v2033_v6, %s1915_s23  ;;  %s1928_s23 = smov 88  }
  0x7a   : > { %810 = vrot.lane.b32.xlu1 %v2172_v50, %s1923_s12 }
  0x7d   : > { %712 = vrot.lane.b32.xlu0 %v2103_v32, %s1919_s30 }
  0x7e   : > { %733 = vrot.lane.b32.xlu1 %v2223_v59, %s1920_s9 }
  0x81   : > { %639 = vrot.lane.b32.xlu0 %v2035_v7, %s1916_s24  ;;  %s1929_s24 = smov 92  }
  0x82   : > { %835 = vrot.lane.b32.xlu1 %v2185_v53, %s1924_s13 }
  0x85   : > { %737 = vrot.lane.b32.xlu0 %v2105_v33, %s1920_s9 }
  0x86   : > { %v413_v61 = vpop.permute.xlu1 %412  ;;  %758 = vrot.lane.b32.xlu1 %v2233_v60, %s1921_s10 }
  0x87   : > { %v438_v62 = vpop.permute.xlu0 %437  ;;  %423 = vst.msk [vmem:[#allocation3 + $0x20] sm:$0xff] %vm420_vm2, %v413_v61 }
  0x88   : > { %448 = vst.msk [vmem:[#allocation3 + $0x20] sm:$0xff] %vm445_vm3, %v438_v62  ;;  %v2340_v62 = vld [vmem:[#allocation2 + $0x10] sm:$0xff] }
  0x89   : > { %664 = vrot.lane.b32.xlu0 %v2041_v11, %s1917_s25  ;;  %s1930_s25 = smov 96  }
  0x8a   : > { %v463_v63 = vpop.permute.xlu1 %462  ;;  %860 = vrot.lane.b32.xlu1 %v2194_v55, %s1925_s14 }
  0x8b   : > { %473 = vst.msk [vmem:[#allocation3 + $0x20] sm:$0xff] %vm470_vm4, %v463_v63  ;;  %v2342_v63 = vld [vmem:[#allocation2 + $0xc] sm:$0xff] }
  0x8d   : > { %762 = vrot.lane.b32.xlu0 %v2122_v37, %s1921_s10 }
  0x8e   : > { %783 = vrot.lane.b32.xlu1 %v2101_v31, %s1922_s11 }
  0x8f   : > { %v411_v1 = vpop.permute.xlu0 %410 }
  0x90   : > { %v461_v2 = vpop.permute.xlu1 %460  ;;  %422 = vst.msk [vmem:[#allocation3 + $0x10] sm:$0xff] %vm420_vm2, %v411_v1 }
  0x91   : > { %689 = vrot.lane.b32.xlu0 %v2128_v38, %s1918_s26  ;;  %v2298_v38 = vld [vmem:[#allocation2 + $0x12] sm:$0xff]  ;;  %s1931_s26 = smov 100  }
  0x92   : > { %885 = vrot.lane.b32.xlu1 %v2203_v57, %s1926_s21 }
  0x93   : > { %v436_v4 = vpop.permute.xlu0 %435 }
  0x94   : > { %v486_v5 = vpop.permute.xlu1 %485  ;;  %447 = vst.msk [vmem:[#allocation3 + $0x10] sm:$0xff] %vm445_vm3, %v436_v4 }
  0x95   : > { %472 = vst.msk [vmem:[#allocation3 + $0x10] sm:$0xff] %vm470_vm4, %v461_v2  ;;  %787 = vrot.lane.b32.xlu0 %v2081_v27, %s1922_s11  ;;  %v2350_v2 = vld [vmem:[#allocation2 + $0xf] sm:$0xff] }
  0x96   : > { %808 = vrot.lane.b32.xlu1 %v2255_v3, %s1923_s12  ;;  %497 = vst.msk [vmem:[#allocation3 + $0x10] sm:$0xff] %vm495_vm5, %v486_v5 }
  0x97   : > { %v409_v6 = vpop.permute.xlu0 %408 }
  0x98   : > { %v434_v7 = vpop.permute.xlu1 %433  ;;  %421 = vst.msk [vmem:[#allocation3] sm:$0xff] %vm420_vm2, %v409_v6 }
  0x99   : > { %446 = vst.msk [vmem:[#allocation3] sm:$0xff] %vm445_vm3, %v434_v7  ;;  %714 = vrot.lane.b32.xlu0 %v2139_v41, %s1919_s30  ;;  %s1932_s30 = smov 104  }
  0x9a   : > { %910 = vrot.lane.b32.xlu1 %v2213_v58, %s1927_s22 }
  0x9b   : > { %v511_v9 = vpop.permute.xlu0 %510 }
  0x9c   : > { %v536_v10 = vpop.permute.xlu1 %535  ;;  %522 = vst.msk [vmem:[#allocation3 + $0x10] sm:$0xff] %vm520_vm6, %v511_v9 }
  0x9d   : > { %547 = vst.msk [vmem:[#allocation3 + $0x10] sm:$0xff] %vm2874_vm7, %v536_v10  ;;  %812 = vrot.lane.b32.xlu0 %v2089_v28, %s1923_s12 }
  0x9e   : > { %833 = vrot.lane.b32.xlu1 %v2270_v8, %s1924_s13 }
  0x9f   : > { %v459_v11 = vpop.permute.xlu0 %458 }
  0xa0   : > { %v484_v15 = vpop.permute.xlu1 %483  ;;  %471 = vst.msk [vmem:[#allocation3] sm:$0xff] %vm470_vm4, %v459_v11  ;;  %v2370_v11 = vld [vmem:[#allocation2 + $0xb] sm:$0xff] }
  0xa1   : > { %496 = vst.msk [vmem:[#allocation3] sm:$0xff] %vm495_vm5, %v484_v15  ;;  %739 = vrot.lane.b32.xlu0 %v2150_v44, %s1920_s9  ;;  %s1933_s9 = smov 108  }
  0xa2   : > { %935 = vrot.lane.b32.xlu1 %v2223_v59, %s1928_s23 }
  0xa3   : > { %v561_v20 = vpop.permute.xlu0 %560 }
  0xa4   : > { %v586_v21 = vpop.permute.xlu1 %585  ;;  %572 = vst.msk [vmem:[#allocation3 + $0x10] sm:$0xff] %vm570_vm8, %v561_v20  ;;  %v2375_v20 = vld [vmem:[%s2869_s4 + $0x78] sm:$0xff] }
  0xa5   : > { %597 = vst.msk [vmem:[#allocation3 + $0x10] sm:$0xff] %vm595_vm9, %v586_v21  ;;  %837 = vrot.lane.b32.xlu0 %v2091_v29, %s1924_s13  ;;  %1837 = vmatpush1.msra.mxu1 %v2375_v20  ;;  %v2389_v21 = vld [vmem:[#allocation2 + $0xa] sm:$0xff] }
  0xa6   : > { %858 = vrot.lane.b32.xlu1 %v2284_v16, %s1925_s14  ;;  %1818 = vmatprep.subr.mxu1 %v1906_v0 }
  0xa7   : > { %v488_v22 = vpop.permute.xlu0 %487 }
  0xa8   : > { %v509_v34 = vpop.permute.xlu1 %508  ;;  %498 = vst.msk [vmem:[#allocation3 + $0x20] sm:$0xff] %vm495_vm5, %v488_v22 }
  0xa9   : > { %521 = vst.msk [vmem:[#allocation3] sm:$0xff] %vm520_vm6, %v509_v34  ;;  %764 = vrot.lane.b32.xlu0 %v2161_v47, %s1921_s10 }
  0xaa   : > { %960 = vrot.lane.b32.xlu1 %v2233_v60, %s1929_s24 }
  0xab   : > { %v415_v40 = vpop.permute.xlu0 %414 }
  0xac   : > { %v611_v41 = vpop.permute.xlu1 %610  ;;  %424 = vst.msk [vmem:[#allocation3 + $0x30] sm:$0xff] %vm420_vm2, %v415_v40  ;;  %v2396_v40 = vld [vmem:[%s2869_s4 + $0x68] sm:$0xff] }
  0xad   : > { %622 = vst.msk [vmem:[#allocation3 + $0x10] sm:$0xff] %vm620_vm10, %v611_v41  ;;  %862 = vrot.lane.b32.xlu0 %v2113_v35, %s1925_s14  ;;  %v2408_v41 = vld [vmem:[%s2869_s4 + $0x60] sm:$0xff] }
  0xae   : > { %883 = vrot.lane.b32.xlu1 %v2298_v38, %s1926_s21 }
  0xaf   : > { %v513_v43 = vpop.permute.xlu0 %512 }
  0xb0   : > { %v534_v44 = vpop.permute.xlu1 %533  ;;  %523 = vst.msk [vmem:[#allocation3 + $0x20] sm:$0xff] %vm520_vm6, %v513_v43 }
  0xb1   : > { %546 = vst.msk [vmem:[#allocation3] sm:$0xff] %vm2874_vm7, %v534_v44  ;;  %789 = vrot.lane.b32.xlu0 %v2093_v30, %s1922_s11  ;;  %s1935_s11 = smov 116  }
  0xb2   : > { %985 = vrot.lane.b32.xlu1 %v2101_v31, %s1930_s25 }
  0xb3   : > { %v440_v47 = vpop.permute.xlu0 %439 }
  0xb4   : > { %v636_v49 = vpop.permute.xlu1 %635  ;;  %449 = vst.msk [vmem:[#allocation3 + $0x30] sm:$0xff] %vm445_vm3, %v440_v47 }
  0xb5   : > { %647 = vst.msk [vmem:[#allocation3 + $0x10] sm:$0xff] %vm645_vm11, %v636_v49  ;;  %887 = vrot.lane.b32.xlu0 %v2115_v36, %s1926_s21 }
  0xb6   : > { %908 = vrot.lane.b32.xlu1 %v2312_v46, %s1927_s22 }
  0xb7   : > { %v538_v30 = vpop.permute.xlu0 %537 }
  0xb8   : > { %v559_v51 = vpop.permute.xlu1 %558  ;;  %548 = vst.msk [vmem:[#allocation3 + $0x20] sm:$0xff] %vm2874_vm7, %v538_v30  ;;  %v2430_v30 = vld [vmem:[%s2869_s4 + $0x50] sm:$0xff] }
  0xb9   : > { %571 = vst.msk [vmem:[#allocation3] sm:$0xff] %vm570_vm8, %v559_v51  ;;  %814 = vrot.lane.b32.xlu0 %v2069_v23, %s1923_s12  ;;  %v2442_v51 = vld [vmem:[%s2869_s4 + $0x48] sm:$0xff] }
  0xba   : > { %1010 = vrot.lane.b32.xlu1 %v2255_v3, %s1931_s26 }
  0xbb   : > { %v465_v31 = vpop.permute.xlu0 %464 }
  0xbc   : > { %v661_v54 = vpop.permute.xlu1 %660  ;;  %474 = vst.msk [vmem:[#allocation3 + $0x30] sm:$0xff] %vm470_vm4, %v465_v31 }
  0xbd   : > { %672 = vst.msk [vmem:[#allocation3 + $0x10] sm:$0xff] %vm670_vm12, %v661_v54  ;;  %912 = vrot.lane.b32.xlu0 %v2130_v39, %s1927_s22 }
  0xbe   : > { %839 = vrot.lane.b32.xlu1 %v2077_v25, %s1924_s13  ;;  %s1936_s13 = smov 120  }
  0xbf   : > { %v563_v23 = vpop.permute.xlu0 %562 }
  0xc0   : > { %v584_v61 = vpop.permute.xlu1 %583  ;;  %573 = vst.msk [vmem:[#allocation3 + $0x20] sm:$0xff] %vm570_vm8, %v563_v23 }
  0xc1   : > { %596 = vst.msk [vmem:[#allocation3] sm:$0xff] %vm595_vm9, %v584_v61  ;;  %1193 = vrot.lane.b32.xlu0 %v2332_v56, %s1907_s15 }
  0xc2   : > { %937 = vrot.lane.b32.xlu1 %v2141_v42, %s1928_s23 }
  0xc3   : > { %v490_v25 = vpop.permute.xlu0 %489 }
  0xc4   : > { %v686_v1 = vpop.permute.xlu1 %685  ;;  %499 = vst.msk [vmem:[#allocation3 + $0x30] sm:$0xff] %vm495_vm5, %v490_v25  ;;  %v2463_v25 = vld [vmem:[%s2869_s4 + $0x38] sm:$0xff] }
  0xc5   : > { %697 = vst.msk [vmem:[#allocation3 + $0x10] sm:$0xff] %vm695_vm13, %v686_v1  ;;  %933 = vrot.lane.b32.xlu0 %v2340_v62, %s1928_s23  ;;  %v2476_v1 = vld [vmem:[#allocation2 + $0x9] sm:$0xff] }
  0xc6   : > { %1217 = vrot.lane.b32.xlu1 %v2342_v63, %s1908_s16 }
  0xc7   : > { %v588_v4 = vpop.permute.xlu0 %587 }
  0xc8   : > { %v609_v5 = vpop.permute.xlu1 %608  ;;  %598 = vst.msk [vmem:[#allocation3 + $0x20] sm:$0xff] %vm595_vm9, %v588_v4 }
  0xc9   : > { %621 = vst.msk [vmem:[#allocation3] sm:$0xff] %vm620_vm10, %v609_v5  ;;  %1035 = vrot.lane.b32.xlu0 %v2270_v8, %s1932_s30 }
  0xca   : > { %958 = vrot.lane.b32.xlu1 %v2350_v2, %s1929_s24 }
  0xcb   : > { %v515_v6 = vpop.permute.xlu0 %514 }
  0xcc   : > { %v711_v7 = vpop.permute.xlu1 %710  ;;  %524 = vst.msk [vmem:[#allocation3 + $0x30] sm:$0xff] %vm520_vm6, %v515_v6  ;;  %v1355_v6 = vld [vmem:[%s2870_s5] sm:$0xf] }
  0xcd   : > { %722 = vst.msk [vmem:[#allocation3 + $0x10] sm:$0xff] %vm720_vm14, %v711_v7  ;;  %864 = vrot.lane.b32.xlu0 %v2071_v24, %s1925_s14  ;;  %s1934_s14 = smov 112   ;;  %v1207_v7 = vld [vmem:[#allocation2 + $0x4] sm:$0xff] }
  0xce   : > { %1060 = vrot.lane.b32.xlu1 %v2284_v16, %s1933_s9 }
  0xcf   : > { %v613_v9 = vpop.permute.xlu0 %612 }
  0xd0   : > { %v634_v10 = vpop.permute.xlu1 %633  ;;  %623 = vst.msk [vmem:[#allocation3 + $0x20] sm:$0xff] %vm620_vm10, %v613_v9 }
  0xd1   : > { %646 = vst.msk [vmem:[#allocation3] sm:$0xff] %vm645_vm11, %v634_v10  ;;  %962 = vrot.lane.b32.xlu0 %v2152_v45, %s1929_s24 }
  0xd2   : > { %889 = vrot.lane.b32.xlu1 %v2079_v26, %s1926_s21  ;;  %v2383_v26 = vld [vmem:[%s2869_s4 + $0x70] sm:$0xff]  ;;  %s1937_s21 = smov 124  }
  0xd3   : > { %v540_v24 = vpop.permute.xlu0 %539  ;;  %1838 = vmatpush1.msra.mxu1 %v2383_v26 }
  0xd4   : > { %v736_v15 = vpop.permute.xlu1 %735  ;;  %549 = vst.msk [vmem:[#allocation3 + $0x30] sm:$0xff] %vm2874_vm7, %v540_v24  ;;  %1819 = vmatprep.subr.mxu1 %v1906_v0  ;;  %vm1368_vm7 = vcmask 1043456   ;;  %v2502_v24 = vld [vmem:[%s2869_s4 + $0x20] sm:$0xff] }
  0xd5   : > { %747 = vst.msk [vmem:[#allocation3 + $0x10] sm:$0xff] %vm745_vm15, %v736_v15  ;;  %1241 = vrot.lane.b32.xlu0 %v2370_v11, %s1909_s17  ;;  %1839 = vmatpush1.msra.mxu1 %v2396_v40 }
  0xd6   : > { %987 = vrot.lane.b32.xlu1 %v2163_v48, %s1930_s25  ;;  %v1175_v48 = vld [vmem:[#allocation2 + $0x6] sm:$0xff]  ;;  %1820 = vmatprep.subr.mxu1 %v1906_v0 }
  0xd7   : > { %v638_v22 = vpop.permute.xlu0 %637  ;;  %1179 = vst.msk [vmem:[#allocation3 + $0x8] sm:$0xff] %vm2875_vm0, %v1175_v48  ;;  %1840 = vmatpush1.msra.mxu1 %v2408_v41  ;;  %1809 = vmatprep.subr.msk.mxu0 %vm1368_vm7, %v1355_v6 }
  0xd8   : > { %v659_v34 = vpop.permute.xlu1 %658  ;;  %648 = vst.msk [vmem:[#allocation3 + $0x20] sm:$0xff] %vm645_vm11, %v638_v22  ;;  %1821 = vmatprep.subr.mxu1 %v1906_v0  ;;  %1810 = vmatpush3.msk.msra.mxu0 %vm1368_vm7, %v1355_v6 }
  0xd9   : > { %671 = vst.msk [vmem:[#allocation3] sm:$0xff] %vm670_vm12, %v659_v34  ;;  %983 = vrot.lane.b32.xlu0 %v2178_v52, %s1930_s25  ;;  %v2419_v52 = vld [vmem:[%s2869_s4 + $0x58] sm:$0xff]  ;;  %1812 = vmatmul.mubr.msk.f32.vlgmr.msra.gmra.mxu0 %vm2875_vm0, %v370_v19  ;;  %v2521_v19 = vld [vmem:[#allocation2 + $0x8] sm:$0xff] }
  0xda   : > { %1265 = vrot.lane.b32.xlu1 %v2389_v21, %s1910_s18  ;;  %1841 = vmatpush1.msra.mxu1 %v2419_v52 }
  0xdb   : > { %v565_v43 = vpop.permute.xlu0 %564  ;;  %1822 = vmatprep.subr.mxu1 %v1906_v0  ;;  %1814 = vmatprep.mubr.msk.f32.mxu0 %vm2875_vm0, %v371_v18  ;;  %v2535_v18 = vld [vmem:[%s2869_s4 + $0x10] sm:$0xff] }
  0xdc   : > { %v761_v44 = vpop.permute.xlu1 %760  ;;  %574 = vst.msk [vmem:[#allocation3 + $0x30] sm:$0xff] %vm570_vm8, %v565_v43  ;;  %vm795_vm8 = vcmask 556544   ;;  %1842 = vmatpush1.msra.mxu1 %v2430_v30  ;;  %1537 = vmatprep.subr.mxu0 %v1906_v0  ;;  %v1255_v43 = vld [vmem:[#allocation2 + $0x2] sm:$0xff] }
  0xdd   : > { %772 = vst.msk [vmem:[#allocation3 + $0x10] sm:$0xff] %vm770_vm1, %v761_v44  ;;  %1085 = vrot.lane.b32.xlu0 %v2298_v38, %s1934_s14  ;;  %1823 = vmatprep.subr.mxu1 %v1906_v0 }
  0xde   : > { %1008 = vrot.lane.b32.xlu1 %v2332_v56, %s1931_s26  ;;  %1843 = vmatpush1.msra.mxu1 %v2442_v51  ;;  %v1183_v56 = vld [vmem:[#allocation2 + $0x5] sm:$0xff] }
  0xdf   : > { %v663_v47 = vpop.permute.xlu0 %662  ;;  %1824 = vmatprep.subr.mxu1 %v1906_v0  ;;  %1815 = vmatmul.mubr.msk.f32.gmra.mxu0 %vm2875_vm0, %v372_v17 }
  0xe0   : > { %v684_v49 = vpop.permute.xlu1 %683  ;;  %673 = vst.msk [vmem:[#allocation3 + $0x20] sm:$0xff] %vm670_vm12, %v663_v47  ;;  %1538 = vmatpush1.msra.mxu0 %v2375_v20  ;;  %v2562_v20 = vld [vmem:[%s2869_s4] sm:$0xff] }
  0xe1   : > { %696 = vst.msk [vmem:[#allocation3] sm:$0xff] %vm695_vm13, %v684_v49  ;;  %914 = vrot.lane.b32.xlu0 %v2103_v32, %s1927_s22  ;;  %v2452_v32 = vld [vmem:[%s2869_s4 + $0x40] sm:$0xff]  ;;  %1539 = vmatprep.subr.mxu0 %v1906_v0 }
  0xe2   : > { %1110 = vrot.lane.b32.xlu1 %v2312_v46, %s1935_s11  ;;  %1844 = vmatpush1.msra.mxu1 %v2452_v32  ;;  %v1178_v47 = vld [vmem:[#allocation2 + $0x1e] sm:$0xff] }
  0xe3   : > { %v590_v31 = vpop.permute.xlu0 %589  ;;  %1825 = vmatprep.subr.mxu1 %v1906_v0  ;;  %1540 = vmatpush1.msra.mxu0 %v2383_v26  ;;  %1182 = vst.msk [vmem:[#allocation3 + $0x38] sm:$0xff] %vm2875_vm0, %v1178_v47 }
  0xe4   : > { %v786_v54 = vpop.permute.xlu1 %785  ;;  %599 = vst.msk [vmem:[#allocation3 + $0x30] sm:$0xff] %vm595_vm9, %v590_v31  ;;  %vm820_vm9 = vcmask 589344   ;;  %1845 = vmatpush1.msra.mxu1 %v2463_v25  ;;  %1541 = vmatprep.subr.mxu0 %v1906_v0 }
  0xe5   : > { %797 = vst.msk [vmem:[#allocation3 + $0x10] sm:$0xff] %vm795_vm8, %v786_v54  ;;  %1012 = vrot.lane.b32.xlu0 %v2172_v50, %s1931_s26  ;;  %1826 = vmatprep.subr.mxu1 %v1906_v0 }
  0xe6   : > { %1195 = vrot.lane.b32.xlu1 %v2255_v3, %s1907_s15  ;;  %v2474_v3 = vld [vmem:[%s2869_s4 + $0x30] sm:$0xff]  ;;  %1542 = vmatpush1.msra.mxu0 %v2396_v40 }
  0xe7   : > { %v688_v23 = vpop.permute.xlu0 %687  ;;  %1846 = vmatpush1.msra.mxu1 %v2474_v3  ;;  %1543 = vmatprep.subr.mxu0 %v1906_v0  ;;  %v2588_v40 = vld [vmem:[%s2869_s4 + $0x90] sm:$0xff] }
  0xe8   : > { %v709_v61 = vpop.permute.xlu1 %708  ;;  %698 = vst.msk [vmem:[#allocation3 + $0x20] sm:$0xff] %vm695_vm13, %v688_v23  ;;  %1827 = vmatprep.subr.mxu1 %v1906_v0  ;;  %1544 = vmatpush1.msra.mxu0 %v2408_v41 }
  0xe9   : > { %721 = vst.msk [vmem:[#allocation3] sm:$0xff] %vm720_vm14, %v709_v61  ;;  %1191 = vrot.lane.b32.xlu0 %v1183_v56, %s1907_s15  ;;  %1545 = vmatprep.subr.mxu0 %v1906_v0 }
  0xea   : > { %939 = vrot.lane.b32.xlu1 %v2105_v33, %s1928_s23  ;;  %v2489_v33 = vld [vmem:[%s2869_s4 + $0x28] sm:$0xff]  ;;  %1546 = vmatpush1.msra.mxu0 %v2419_v52 }
  0xeb   : > { %v615_v4 = vpop.permute.xlu0 %614  ;;  %1847 = vmatpush1.msra.mxu1 %v2489_v33  ;;  %1547 = vmatprep.subr.mxu0 %v1906_v0 }
  0xec   : > { %v811_v5 = vpop.permute.xlu1 %810  ;;  %624 = vst.msk [vmem:[#allocation3 + $0x30] sm:$0xff] %vm620_vm10, %v615_v4  ;;  %1828 = vmatprep.subr.mxu1 %v1906_v0  ;;  %vm845_vm10 = vcmask 622144   ;;  %1548 = vmatpush1.msra.mxu0 %v2430_v30 }
  0xed   : > { %822 = vst.msk [vmem:[#allocation3 + $0x10] sm:$0xff] %vm820_vm9, %v811_v5  ;;  %1289 = vrot.lane.b32.xlu0 %v2476_v1, %s1911_s19  ;;  %1848 = vmatpush1.msra.mxu1 %v2502_v24 }
  0xee   : > { %1037 = vrot.lane.b32.xlu1 %v2185_v53, %s1932_s30  ;;  %1829 = vmatprep.subr.mxu1 %v1906_v0 }
  0xef   : > { %v713_v9 = vpop.permute.xlu0 %712  ;;  %1849 = vmatpush1.msra.mxu1 %v2519_v14  ;;  %1549 = vmatprep.subr.mxu0 %v1906_v0 }
  0xf0   : > { %v734_v10 = vpop.permute.xlu1 %733  ;;  %723 = vst.msk [vmem:[#allocation3 + $0x20] sm:$0xff] %vm720_vm14, %v713_v9  ;;  %1830 = vmatprep.subr.mxu1 %v1906_v0  ;;  %1550 = vmatpush1.msra.mxu0 %v2442_v51 }
  0xf1   : > { %746 = vst.msk [vmem:[#allocation3] sm:$0xff] %vm745_vm15, %v734_v10  ;;  %1033 = vrot.lane.b32.xlu0 %v2342_v63, %s1932_s30  ;;  %1850 = vmatpush1.msra.mxu1 %v2535_v18  ;;  %v2548_v63 = vld [vmem:[%s2869_s4 + $0x8] sm:$0xff] }
  0xf2   : > { %1215 = vrot.lane.b32.xlu1 %v1207_v7, %s1908_s16  ;;  %1831 = vmatprep.subr.mxu1 %v1906_v0 }
  0xf3   : > { %v640_v13 = vpop.permute.xlu0 %639  ;;  %1851 = vmatpush1.msra.mxu1 %v2548_v63  ;;  %1551 = vmatprep.subr.mxu0 %v1906_v0 }
  0xf4   : > { %v836_v15 = vpop.permute.xlu1 %835  ;;  %649 = vst.msk [vmem:[#allocation3 + $0x30] sm:$0xff] %vm645_vm11, %v640_v13  ;;  %vm870_vm11 = vcmask 654944   ;;  %1832 = vmatprep.subr.mxu1 %v1906_v0  ;;  %1552 = vmatpush1.msra.mxu0 %v2452_v32 }
  0xf5   : > { %847 = vst.msk [vmem:[#allocation3 + $0x10] sm:$0xff] %vm845_vm10, %v836_v15  ;;  %1135 = vrot.lane.b32.xlu0 %v2340_v62, %s1936_s13  ;;  %1852 = vmatpush1.msra.mxu1 %v2562_v20 }
  0xf6   : > { %1313 = vrot.lane.b32.xlu1 %v2521_v19, %s1912_s20  ;;  %1833 = vmatprep.subr.mxu1 %v1906_v0 }
  0xf7   : > { %v738_v12 = vpop.permute.xlu0 %737  ;;  %1553 = vmatprep.subr.mxu0 %v1906_v0 }
  0xf8   : > { %v759_v17 = vpop.permute.xlu1 %758  ;;  %748 = vst.msk [vmem:[#allocation3 + $0x20] sm:$0xff] %vm745_vm15, %v738_v12  ;;  %1554 = vmatpush1.msra.mxu0 %v2463_v25 }
  0xf9   : > { %771 = vst.msk [vmem:[#allocation3] sm:$0xff] %vm770_vm1, %v759_v17  ;;  %1219 = vrot.lane.b32.xlu0 %v2270_v8, %s1908_s16  ;;  %v2574_v8 = vld [vmem:[%s2869_s4 + $0x98] sm:$0xf]  ;;  %1555 = vmatprep.subr.mxu0 %v1906_v0 }
  0xfa   : > { %1058 = vrot.lane.b32.xlu1 %v2370_v11, %s1933_s9  ;;  %1853 = vmatpush2.msk.msra.mxu1 %vm1368_vm7, %v2574_v8 }
  0xfb   : > { %v665_v26 = vpop.permute.xlu0 %664  ;;  %1834 = vmatprep.subr.mxu1 %v1906_v0  ;;  %1556 = vmatpush1.msra.mxu0 %v2474_v3 }
  0xfc   : > { %v861_v22 = vpop.permute.xlu1 %860  ;;  %674 = vst.msk [vmem:[#allocation3 + $0x30] sm:$0xff] %vm670_vm12, %v665_v26  ;;  %vm895_vm12 = vcmask 687744   ;;  %1854 = vmatpush2.msra.mxu1 %v2588_v40  ;;  %1557 = vmatprep.subr.mxu0 %v1906_v0 }
  0xfd   : > { %872 = vst.msk [vmem:[#allocation3 + $0x10] sm:$0xff] %vm870_vm11, %v861_v22  ;;  %964 = vrot.lane.b32.xlu0 %v2122_v37, %s1929_s24  ;;  %v2602_v37 = vld [vmem:[%s2869_s4 + $0x88] sm:$0xff]  ;;  %1835 = vmatprep.subr.mxu1 %v1906_v0 }
  0xfe   : > { %1160 = vrot.lane.b32.xlu1 %v2350_v2, %s1937_s21  ;;  %v1231_v2 = vld [vmem:[#allocation2 + $0x3] sm:$0xff]  ;;  %1855 = vmatpush2.msra.mxu1 %v2602_v37 }
  0xff   : > { %v763_v11 = vpop.permute.xlu0 %762  ;;  %1836 = vmatprep.subr.mxu1 %v1906_v0  ;;  %1558 = vmatpush1.msra.mxu0 %v2489_v33 }
 0x100   : > { %v784_v34 = vpop.permute.xlu1 %783  ;;  %773 = vst.msk [vmem:[#allocation3 + $0x20] sm:$0xff] %vm770_vm1, %v763_v11  ;;  %1559 = vmatprep.subr.mxu0 %v1906_v0 }
 0x101   : > { %796 = vst.msk [vmem:[#allocation3] sm:$0xff] %vm795_vm8, %v784_v34  ;;  %1062 = vrot.lane.b32.xlu0 %v2194_v55, %s1933_s9  ;;  %1560 = vmatpush1.msra.mxu0 %v2502_v24 }
 0x102   : > { %1243 = vrot.lane.b32.xlu1 %v2284_v16, %s1909_s17  ;;  %v2614_v16 = vld [vmem:[%s2869_s4 + $0x80] sm:$0xff]  ;;  %1561 = vmatprep.subr.mxu0 %v1906_v0 }
 0x103   : > { %v690_v48 = vpop.permute.xlu0 %689  ;;  %1856 = vmatpush2.msra.mxu1 %v2614_v16  ;;  %1562 = vmatpush1.msra.mxu0 %v2519_v14 }
 0x104   : > { %v886_v41 = vpop.permute.xlu1 %885  ;;  %699 = vst.msk [vmem:[#allocation3 + $0x30] sm:$0xff] %vm695_vm13, %v690_v48  ;;  %vm920_vm13 = vcmask 720544   ;;  %1563 = vmatprep.subr.mxu0 %v1906_v0 }
 0x105   : > { %897 = vst.msk [vmem:[#allocation3 + $0x10] sm:$0xff] %vm895_vm12, %v886_v41  ;;  %1239 = vrot.lane.b32.xlu0 %v1231_v2, %s1909_s17  ;;  %1564 = vmatpush1.msra.mxu0 %v2535_v18 }
 0x106   : > { %1083 = vrot.lane.b32.xlu1 %v2389_v21, %s1934_s14  ;;  %1565 = vmatprep.subr.mxu0 %v1906_v0 }
 0x107   : > { %v788_v44 = vpop.permute.xlu0 %787  ;;  %1566 = vmatpush1.msra.mxu0 %v2548_v63 }
 0x108   : > { %v809_v52 = vpop.permute.xlu1 %808  ;;  %798 = vst.msk [vmem:[#allocation3 + $0x20] sm:$0xff] %vm795_vm8, %v788_v44  ;;  %1567 = vmatprep.subr.mxu0 %v1906_v0 }
 0x109   : > { %821 = vst.msk [vmem:[#allocation3] sm:$0xff] %vm820_vm9, %v809_v52  ;;  %989 = vrot.lane.b32.xlu0 %v2081_v27, %s1930_s25  ;;  %1568 = vmatpush1.msra.mxu0 %v2562_v20 }
 0x10a   : > { %1263 = vrot.lane.b32.xlu1 %v1255_v43, %s1910_s18  ;;  %1593 = vmatprep.subr.mxu0 %v1906_v0 }
 0x10b   : > { %v715_v21 = vpop.permute.xlu0 %714  ;;  %1794 = vmatpush2.msk.msra.mxu0 %vm1368_vm7, %v2574_v8  ;;  %vm1020_vm7 = vcmask 851744  }
 0x10c   : > { %v911_v49 = vpop.permute.xlu1 %910  ;;  %724 = vst.msk [vmem:[#allocation3 + $0x30] sm:$0xff] %vm720_vm14, %v715_v21  ;;  %vm945_vm14 = vcmask 753344   ;;  %1595 = vmatprep.subr.mxu0 %v1906_v0 }
 0x10d   : > { %922 = vst.msk [vmem:[#allocation3 + $0x10] sm:$0xff] %vm920_vm13, %v911_v49  ;;  %1087 = vrot.lane.b32.xlu0 %v2203_v57, %s1934_s14  ;;  %1596 = vmatpush2.msra.mxu0 %v2588_v40 }
 0x10e   : > { %1014 = vrot.lane.b32.xlu1 %v2089_v28, %s1931_s26  ;;  %v1279_v28 = vld [vmem:[#allocation2 + $0x1] sm:$0xff]  ;;  %1597 = vmatprep.subr.mxu0 %v1906_v0  ;;  %s339_s26 = scalar_lea.vmem %s2872_s7, %s2897_s28 }
 0x10f   : > { %v813_v27 = vpop.permute.xlu0 %812  ;;  %1598 = vmatpush2.msra.mxu0 %v2602_v37 }
 0x110   : > { %v834_v30 = vpop.permute.xlu1 %833  ;;  %823 = vst.msk [vmem:[#allocation3 + $0x20] sm:$0xff] %vm820_vm9, %v813_v27  ;;  %1599 = vmatprep.subr.mxu0 %v1906_v0 }
 0x111   : > { %846 = vst.msk [vmem:[#allocation3] sm:$0xff] %vm845_vm10, %v834_v30  ;;  %1267 = vrot.lane.b32.xlu0 %v2298_v38, %s1910_s18  ;;  %1600 = vmatpush2.msra.mxu0 %v2614_v16 }
 0x112   : > { %1112 = vrot.lane.b32.xlu1 %v2213_v58, %s1935_s11 }
 0x113   : > { %v740_v51 = vpop.permute.xlu0 %739 }
 0x114   : > { %v936_v31 = vpop.permute.xlu1 %935  ;;  %749 = vst.msk [vmem:[#allocation3 + $0x30] sm:$0xff] %vm745_vm15, %v740_v51  ;;  %vm970_vm15 = vcmask 786144  }
 0x115   : > { %947 = vst.msk [vmem:[#allocation3 + $0x10] sm:$0xff] %vm945_vm14, %v936_v31  ;;  %1108 = vrot.lane.b32.xlu0 %v2476_v1, %s1935_s11 }
 0x116   : > { %1287 = vrot.lane.b32.xlu1 %v1279_v28, %s1911_s19 }
 0x117   : > { %v838_v38 = vpop.permute.xlu0 %837 }
 0x118   : > { %v859_v54 = vpop.permute.xlu1 %858  ;;  %848 = vst.msk [vmem:[#allocation3 + $0x20] sm:$0xff] %vm845_vm10, %v838_v38 }
 0x119   : > { %871 = vst.msk [vmem:[#allocation3] sm:$0xff] %vm870_vm11, %v859_v54  ;;  %1197 = vrot.lane.b32.xlu0 %v2172_v50, %s1907_s15 }
 0x11a   : > { %1039 = vrot.lane.b32.xlu1 %v2091_v29, %s1932_s30  ;;  %v1303_v29 = vld [vmem:[#allocation2] sm:$0xff] }
 0x11b   : > { %v765_v32 = vpop.permute.xlu0 %764 }
 0x11c   : > { %v961_v56 = vpop.permute.xlu1 %960  ;;  %774 = vst.msk [vmem:[#allocation3 + $0x30] sm:$0xff] %vm770_vm1, %v765_v32  ;;  %vm995_vm1 = vcmask 818944  }
 0x11d   : > { %972 = vst.msk [vmem:[#allocation3 + $0x10] sm:$0xff] %vm970_vm15, %v961_v56  ;;  %1291 = vrot.lane.b32.xlu0 %v2312_v46, %s1911_s19 }
 0x11e   : > { %1137 = vrot.lane.b32.xlu1 %v2223_v59, %s1936_s13 }
 0x11f   : > { %v863_v50 = vpop.permute.xlu0 %862 }
 0x120   : > { %v884_v23 = vpop.permute.xlu1 %883  ;;  %873 = vst.msk [vmem:[#allocation3 + $0x20] sm:$0xff] %vm870_vm11, %v863_v50 }
 0x121   : > { %896 = vst.msk [vmem:[#allocation3] sm:$0xff] %vm895_vm12, %v884_v23  ;;  %1133 = vrot.lane.b32.xlu0 %v2521_v19, %s1936_s13 }
 0x122   : > { %1311 = vrot.lane.b32.xlu1 %v1303_v29, %s1912_s20 }
 0x123   : > { %v790_v46 = vpop.permute.xlu0 %789 }
 0x124   : > { %v986_v61 = vpop.permute.xlu1 %985  ;;  %799 = vst.msk [vmem:[#allocation3 + $0x30] sm:$0xff] %vm795_vm8, %v790_v46  ;;  %vm1045_vm8 = vcmask 884544  }
 0x125   : > { %997 = vst.msk [vmem:[#allocation3 + $0x10] sm:$0xff] %vm995_vm1, %v986_v61  ;;  %1221 = vrot.lane.b32.xlu0 %v2185_v53, %s1908_s16  ;;  %v1150_v53 = vld [vmem:[#allocation2 + $0x7] sm:$0xff] }
 0x126   : > { %1064 = vrot.lane.b32.xlu1 %v2113_v35, %s1933_s9 }
 0x127   : > { %v888_v25 = vpop.permute.xlu0 %887 }
 0x128   : > { %v909_v3 = vpop.permute.xlu1 %908  ;;  %898 = vst.msk [vmem:[#allocation3 + $0x20] sm:$0xff] %vm895_vm12, %v888_v25 }
 0x129   : > { %921 = vst.msk [vmem:[#allocation3] sm:$0xff] %vm920_vm13, %v909_v3  ;;  %1315 = vrot.lane.b32.xlu0 %v2340_v62, %s1912_s20 }
 0x12a   : > { %1162 = vrot.lane.b32.xlu1 %v2233_v60, %s1937_s21 }
 0x12b   : > { %v815_v1 = vpop.permute.xlu0 %814 }
 0x12c   : > { %v1011_v35 = vpop.permute.xlu1 %1010  ;;  %824 = vst.msk [vmem:[#allocation3 + $0x30] sm:$0xff] %vm820_vm9, %v815_v1  ;;  %vm1461_vm9 = vcmask 25600  }
 0x12d   : > { %1022 = vst.msk [vmem:[#allocation3 + $0x10] sm:$0xff] %vm1020_vm7, %v1011_v35  ;;  %1158 = vrot.lane.b32.xlu0 %v1150_v53, %s1937_s21 }
 0x12e   : > { %1089 = vrot.lane.b32.xlu1 %v2115_v36, %s1934_s14  ;;  %1462 = vst.msk [vmem:[#allocation4 + $0x20] sm:$0x3] %vm1461_vm9, %v1906_v0  ;;  %s342_s14 = scalar_lea.vmem %s2873_s8, %s2897_s28 }
 0x12f   : > { %v913_v4 = vpop.permute.xlu0 %912 }
 0x130   : > { %v840_v5 = vpop.permute.xlu1 %839  ;;  %923 = vst.msk [vmem:[#allocation3 + $0x20] sm:$0xff] %vm920_vm13, %v913_v4 }
 0x131   : > { %849 = vst.msk [vmem:[#allocation3 + $0x30] sm:$0xff] %vm845_vm10, %v840_v5  ;;  %1245 = vrot.lane.b32.xlu0 %v2194_v55, %s1909_s17  ;;  %s2728_s17 = scalar_lea.vmem %s2868_s3, %s2021_s29  ;;  %vm1070_vm10 = vcmask 917344  }
 0x132   : > { %1114 = vrot.lane.b32.xlu1 %v2130_v39, %s1935_s11  ;;  %v2731_v39 = vld [vmem:[%s2728_s17] sm:$0xff] }
 0x133   : > { %v1194_v60 = vpop.permute.xlu0 %1193 }
 0x134   : > { %v938_v62 = vpop.permute.xlu1 %937  ;;  %1204 = vst.msk [vmem:[#allocation3 + $0x18] sm:$0xff] %vm420_vm2, %v1194_v60 }
 0x135   : > { %948 = vst.msk [vmem:[#allocation3 + $0x20] sm:$0xff] %vm945_vm14, %v938_v62  ;;  %1269 = vrot.lane.b32.xlu0 %v2203_v57, %s1910_s18  ;;  %v2740_v57 = vld [vmem:[%s2728_s17 + $0x8] sm:$0xff] }
 0x136   : > { %1139 = vrot.lane.b32.xlu1 %v2141_v42, %s1936_s13  ;;  %v1938_v42 = vmov 4294967295  }
 0x137   : > { %v934_v36 = vpop.permute.xlu0 %933  ;;  %1463 = vst.msk [vmem:[#allocation5] sm:$0xff] %vm2875_vm0, %v1938_v42  ;;  %1464 = vst.msk [vmem:[#allocation5 + $0x8] sm:$0xff] %vm2875_vm0, %v1938_v42 }
 0x138   : > { %v1218_v6 = vpop.permute.xlu1 %1217  ;;  %946 = vst.msk [vmem:[#allocation3] sm:$0xff] %vm945_vm14, %v934_v36 }
 0x139   : > { %1228 = vst.msk [vmem:[#allocation3 + $0x18] sm:$0xff] %vm445_vm3, %v1218_v6  ;;  %1293 = vrot.lane.b32.xlu0 %v2213_v58, %s1911_s19  ;;  %v2743_v58 = vld [vmem:[%s2728_s17 + $0x10] sm:$0xff] }
 0x13a   : > { %1164 = vrot.lane.b32.xlu1 %v2152_v45, %s1937_s21  ;;  %1465 = vst.msk [vmem:[#allocation5 + $0x10] sm:$0xff] %vm2875_vm0, %v1938_v42  ;;  %1466 = vst.msk [vmem:[#allocation5 + $0x18] sm:$0xff] %vm2875_vm0, %v1938_v42 }
 0x13b   : > { %v1036_v45 = vpop.permute.xlu0 %1035  ;;  %1472 = vst.msk [vmem:[#allocation5 + $0x1] sm:$0xff] %vm2875_vm0, %v2731_v39  ;;  %1473 = vst.msk [vmem:[#allocation5 + $0x9] sm:$0xff] %vm2875_vm0, %v2740_v57 }
 0x13c   : > { %v959_v55 = vpop.permute.xlu1 %958  ;;  %1047 = vst.msk [vmem:[#allocation3 + $0x10] sm:$0xff] %vm1045_vm8, %v1036_v45 }
 0x13d   : > { %971 = vst.msk [vmem:[#allocation3] sm:$0xff] %vm970_vm15, %v959_v55  ;;  %1317 = vrot.lane.b32.xlu0 %v2223_v59, %s1912_s20  ;;  %s2833_s20 = scalar_lea.vmem %s2871_s6, %s2021_s29 }
 0x13e   : > { %1467 = vst.msk [vmem:[#allocation5 + $0x20] sm:$0x3] %vm1461_vm9, %v1938_v42  ;;  %vm2876_vm9 = vcmask 228544  }
 0x13f   : > { %1474 = vst.msk [vmem:[#allocation5 + $0x11] sm:$0xff] %vm2875_vm0, %v2743_v58  ;;  %v865_v33 = vpop.permute.xlu0 %864  ;;  %vm1521_vm0 = vcmask 228352  }
 0x140   : > { %v1061_v7 = vpop.permute.xlu1 %1060  ;;  %874 = vst.msk [vmem:[#allocation3 + $0x30] sm:$0xff] %vm870_vm11, %v865_v33  ;;  %vm1095_vm11 = vcmask 950144  }
 0x141   : > { %1072 = vst.msk [vmem:[#allocation3 + $0x10] sm:$0xff] %vm1070_vm10, %v1061_v7  ;;  %v1476_v7 = vlaneseq }
 0x143   : > { %v963_v9 = vpop.permute.xlu0 %962 }
 0x144   : > { %v890_v10 = vpop.permute.xlu1 %889  ;;  %973 = vst.msk [vmem:[#allocation3 + $0x20] sm:$0xff] %vm970_vm15, %v963_v9 }
 0x145   : > { %899 = vst.msk [vmem:[#allocation3 + $0x30] sm:$0xff] %vm895_vm12, %v890_v10  ;;  %vm1120_vm12 = vcmask 982944  }
 0x147   : > { %v1242_v0 = vpop.permute.xlu0 %1241 }
 0x148   : > { %v988_v24 = vpop.permute.xlu1 %987  ;;  %1252 = vst.msk [vmem:[#allocation3 + $0x18] sm:$0xff] %vm470_vm4, %v1242_v0  ;;  %v2813_v0 = vshrl.u32 %v1476_v7, 7 }
 0x149   : > { %998 = vst.msk [vmem:[#allocation3 + $0x20] sm:$0xff] %vm995_vm1, %v988_v24 }
 0x14b   : > { %v984_v59 = vpop.permute.xlu0 %983 }
 0x14c   : > { %v1266_v14 = vpop.permute.xlu1 %1265  ;;  %996 = vst.msk [vmem:[#allocation3] sm:$0xff] %vm995_vm1, %v984_v59 }
 0x14d   : > { %1276 = vst.msk [vmem:[#allocation3 + $0x18] sm:$0xff] %vm495_vm5, %v1266_v14  ;;  %v1478_v14 = vadd.s32 8, %v2813_v0 }
 0x14f   : > { %v1086_v19 = vpop.permute.xlu0 %1085 }
 0x150   : > { %v1009_v13 = vpop.permute.xlu1 %1008  ;;  %1097 = vst.msk [vmem:[#allocation3 + $0x10] sm:$0xff] %vm1095_vm11, %v1086_v19  ;;  %v1481_v19 = vld [vmem:[#allocation5] sm:$0xff] }
 0x151   : > { %1021 = vst.msk [vmem:[#allocation3] sm:$0xff] %vm1020_vm7, %v1009_v13  ;;  %v1482_v13 = vld [vmem:[#allocation5 + $0x8] sm:$0xff] }
 0x153   : > { %v915_v15 = vpop.permute.xlu0 %914 }
 0x154   : > { %v1111_v18 = vpop.permute.xlu1 %1110  ;;  %924 = vst.msk [vmem:[#allocation3 + $0x30] sm:$0xff] %vm920_vm13, %v915_v15  ;;  %vm1145_vm13 = vcmask 1015744  }
 0x155   : > { %1122 = vst.msk [vmem:[#allocation3 + $0x10] sm:$0xff] %vm1120_vm12, %v1111_v18 }
 0x157   : > { %v1013_v12 = vpop.permute.xlu0 %1012 }
 0x158   : > { %v1196_v17 = vpop.permute.xlu1 %1195  ;;  %1023 = vst.msk [vmem:[#allocation3 + $0x20] sm:$0xff] %vm1020_vm7, %v1013_v12 }
 0x159   : > { %1205 = vst.msk [vmem:[#allocation3 + $0x28] sm:$0xff] %vm420_vm2, %v1196_v17 }
 0x15b   : > { %v1192_v63 = vpop.permute.xlu0 %1191 }
 0x15c   : > { %v940_v20 = vpop.permute.xlu1 %939  ;;  %1203 = vst.msk [vmem:[#allocation3 + $0x8] sm:$0xff] %vm420_vm2, %v1192_v63 }
 0x15d   : > { %949 = vst.msk [vmem:[#allocation3 + $0x30] sm:$0xff] %vm945_vm14, %v940_v20  ;;  %vm1170_vm14 = vcmask 1048544  }
 0x15f   : > { %v1290_v26 = vpop.permute.xlu0 %1289 }
 0x160   : > { %v1038_v22 = vpop.permute.xlu1 %1037  ;;  %1300 = vst.msk [vmem:[#allocation3 + $0x18] sm:$0xff] %vm520_vm6, %v1290_v26 }
 0x161   : > { %1048 = vst.msk [vmem:[#allocation3 + $0x20] sm:$0xff] %vm1045_vm8, %v1038_v22 }
 0x163   : > { %v1034_v8 = vpop.permute.xlu0 %1033 }
 0x164   : > { %v1216_v11 = vpop.permute.xlu1 %1215  ;;  %1046 = vst.msk [vmem:[#allocation3] sm:$0xff] %vm1045_vm8, %v1034_v8 }
 0x165   : > { %1227 = vst.msk [vmem:[#allocation3 + $0x8] sm:$0xff] %vm445_vm3, %v1216_v11  ;;  %v376_v11 = vld [vmem:[%s2728_s17 + $0x18] sm:$0xff] }
 0x167   : > { %v1136_v34 = vpop.permute.xlu0 %1135 }
 0x168   : > { %v1314_v40 = vpop.permute.xlu1 %1313  ;;  %1147 = vst.msk [vmem:[#allocation3 + $0x10] sm:$0xff] %vm1145_vm13, %v1136_v34  ;;  %v1480_v34 = vadd.s32 24, %v2813_v0 }
 0x169   : > { %1324 = vst.msk [vmem:[#allocation3 + $0x18] sm:$0xff] %vm2876_vm9, %v1314_v40 }
 0x16b   : > { %v1220_v37 = vpop.permute.xlu0 %1219 }
 0x16c   : > { %v1059_v2 = vpop.permute.xlu1 %1058  ;;  %1229 = vst.msk [vmem:[#allocation3 + $0x28] sm:$0xff] %vm445_vm3, %v1220_v37 }
 0x16d   : > { %1071 = vst.msk [vmem:[#allocation3] sm:$0xff] %vm1070_vm10, %v1059_v2 }
 0x16f   : > { %v965_v48 = vpop.permute.xlu0 %964 }
 0x170   : > { %v1161_v41 = vpop.permute.xlu1 %1160  ;;  %v1330_v16 = vld [vmem:[#allocation3 + $0x18] sm:$0xff]  ;;  %974 = vst.msk [vmem:[#allocation3 + $0x30] sm:$0xff] %vm970_vm15, %v965_v48  ;;  %vm2877_vm15 = vmmov %vm2876_vm9 }
 0x171   : > { %1172 = vst.msk [vmem:[#allocation3 + $0x10] sm:$0xff] %vm1170_vm14, %v1161_v41  ;;  %1796 = vmatprep.mubr.msk.f32.mxu1 %vm1521_vm0, %v1330_v16 }
 0x173   : > { %v1063_v43 = vpop.permute.xlu0 %1062 }
 0x174   : > { %v1244_v44 = vpop.permute.xlu1 %1243  ;;  %1073 = vst.msk [vmem:[#allocation3 + $0x20] sm:$0xff] %vm1070_vm10, %v1063_v43 }
 0x175   : > { %1253 = vst.msk [vmem:[#allocation3 + $0x28] sm:$0xff] %vm470_vm4, %v1244_v44 }
 0x177   : > { %v1240_v52 = vpop.permute.xlu0 %1239 }
 0x178   : > { %v1084_v47 = vpop.permute.xlu1 %1083  ;;  %v1329_v21 = vld [vmem:[#allocation3 + $0x10] sm:$0xff]  ;;  %1251 = vst.msk [vmem:[#allocation3 + $0x8] sm:$0xff] %vm470_vm4, %v1240_v52  ;;  %v1479_v52 = vadd.s32 16, %v2813_v0 }
 0x179   : > { %1096 = vst.msk [vmem:[#allocation3] sm:$0xff] %vm1095_vm11, %v1084_v47  ;;  %1607 = vmatmul.mubr.f32.vlgmr.msra.gmra.mxu1 %v1329_v21  ;;  %v1483_v47 = vld [vmem:[#allocation5 + $0x10] sm:$0xff] }
 0x17b   : > { %v990_v49 = vpop.permute.xlu0 %989 }
 0x17c   : > { %v1264_v27 = vpop.permute.xlu1 %1263  ;;  %999 = vst.msk [vmem:[#allocation3 + $0x30] sm:$0xff] %vm995_vm1, %v990_v49 }
 0x17d   : > { %1275 = vst.msk [vmem:[#allocation3 + $0x8] sm:$0xff] %vm495_vm5, %v1264_v27 }
 0x17f   : > { %v1088_v30 = vpop.permute.xlu0 %1087 }
 0x180   : > { %v1015_v28 = vpop.permute.xlu1 %1014  ;;  %1098 = vst.msk [vmem:[#allocation3 + $0x20] sm:$0xff] %vm1095_vm11, %v1088_v30 }
 0x181   : > { %1024 = vst.msk [vmem:[#allocation3 + $0x30] sm:$0xff] %vm1020_vm7, %v1015_v28  ;;  %vm1485_vm7 = vcmp.eq.s32.totalorder %v1481_v19, %v2813_v0 }
 0x183   : > { %v1268_v51 = vpop.permute.xlu0 %1267 }
 0x184   : > { %v1113_v31 = vpop.permute.xlu1 %1112  ;;  %1277 = vst.msk [vmem:[#allocation3 + $0x28] sm:$0xff] %vm495_vm5, %v1268_v51  ;;  %v1505_v51 = vld [vmem:[#allocation5 + $0x2] sm:$0xff] }
 0x185   : > { %1123 = vst.msk [vmem:[#allocation3 + $0x20] sm:$0xff] %vm1120_vm12, %v1113_v31 }
 0x187   : > { %v1109_v38 = vpop.permute.xlu0 %1108 }
 0x188   : > { %v1288_v54 = vpop.permute.xlu1 %1287  ;;  %1121 = vst.msk [vmem:[#allocation3] sm:$0xff] %vm1120_vm12, %v1109_v38 }
 0x189   : > { %1299 = vst.msk [vmem:[#allocation3 + $0x8] sm:$0xff] %vm520_vm6, %v1288_v54 }
 0x18b   : > { %v1198_v32 = vpop.permute.xlu0 %1197 }
 0x18c   : > { %v1040_v56 = vpop.permute.xlu1 %1039  ;;  %1206 = vst.msk [vmem:[#allocation3 + $0x38] sm:$0xff] %vm420_vm2, %v1198_v32  ;;  %vm2878_vm2 = vmmov %vm2876_vm9 }
 0x18d   : > { %1049 = vst.msk [vmem:[#allocation3 + $0x30] sm:$0xff] %vm1045_vm8, %v1040_v56  ;;  %vm1486_vm8 = vcmp.eq.s32.totalorder %v1482_v13, %v1478_v14 }
 0x18f   : > { %v1292_v29 = vpop.permute.xlu0 %1291 }
 0x190   : > { %v1138_v50 = vpop.permute.xlu1 %1137  ;;  %1301 = vst.msk [vmem:[#allocation3 + $0x28] sm:$0xff] %vm520_vm6, %v1292_v29 }
 0x191   : > { %1148 = vst.msk [vmem:[#allocation3 + $0x20] sm:$0xff] %vm1145_vm13, %v1138_v50 }
 0x193   : > { %v1134_v23 = vpop.permute.xlu0 %1133 }
 0x194   : > { %v1312_v46 = vpop.permute.xlu1 %1311  ;;  %1146 = vst.msk [vmem:[#allocation3] sm:$0xff] %vm1145_vm13, %v1134_v23 }
 0x195   : > { %1323 = vst.msk [vmem:[#allocation3 + $0x8] sm:$0xff] %vm2877_vm15, %v1312_v46  ;;  %vm1487_vm15 = vcmp.eq.s32.totalorder %v1483_v47, %v1479_v52 }
 0x197   : > { %v1222_v61 = vpop.permute.xlu0 %1221 }
 0x198   : > { %v1065_v25 = vpop.permute.xlu1 %1064  ;;  %1230 = vst.msk [vmem:[#allocation3 + $0x38] sm:$0xff] %vm445_vm3, %v1222_v61  ;;  %vm2879_vm3 = vmmov %vm2878_vm2 }
 0x199   : > { %1074 = vst.msk [vmem:[#allocation3 + $0x30] sm:$0xff] %vm1070_vm10, %v1065_v25  ;;  %v1813_v10 = vpop.f32.mrf.mxu0  ;;  %vm1497_vm10 = vcmp.eq.s32.totalorder %v2731_v39, %v2813_v0 }
 0x19b   : > { %v1316_v3 = vpop.permute.xlu0 %1315  ;;  %v1438_v24 = vpop.f32.mrf.mxu0 }
 0x19c   : > { %v1163_v53 = vpop.permute.xlu1 %1162  ;;  %v1328_v1 = vld [vmem:[#allocation3 + $0x8] sm:$0xff]  ;;  %1325 = vst.msk [vmem:[#allocation3 + $0x28] sm:$0xff] %vm2878_vm2, %v1316_v3  ;;  %vm1499_vm2 = vcmp.eq.s32.totalorder %v2743_v58, %v1479_v52 }
 0x19d   : > { %1173 = vst.msk [vmem:[#allocation3 + $0x20] sm:$0xff] %vm1170_vm14, %v1163_v53  ;;  %1795 = vmatprep.mubr.msk.f32.mxu0 %vm1521_vm0, %v1328_v1 }
 0x19f   : > { %v1159_v35 = vpop.permute.xlu0 %1158  ;;  %v1816_v59 = vpop.f32.mrf.mxu0 }
 0x1a0   : > { %v1090_v4 = vpop.permute.xlu1 %1089  ;;  %1171 = vst.msk [vmem:[#allocation3] sm:$0xff] %vm1170_vm14, %v1159_v35 }
 0x1a1   : > { %1099 = vst.msk [vmem:[#allocation3 + $0x30] sm:$0xff] %vm1095_vm11, %v1090_v4  ;;  %v1448_v15 = vpop.f32.mrf.mxu0  ;;  %vm1498_vm11 = vcmp.eq.s32.totalorder %v2740_v57, %v1478_v14  ;;  %v1506_v57 = vld [vmem:[#allocation5 + $0xa] sm:$0xff] }
 0x1a2   : > { %vm1510_vm9 = vcmp.eq.s32.totalorder %v1506_v57, %v1478_v14 }
 0x1a3   : > { %v1246_v5 = vpop.permute.xlu0 %1245  ;;  %v1332_v60 = vld [vmem:[#allocation3 + $0x28] sm:$0xff] }
 0x1a4   : > { %v1331_v62 = vld [vmem:[#allocation3 + $0x20] sm:$0xff]  ;;  %v1115_v36 = vpop.permute.xlu1 %1114  ;;  %1254 = vst.msk [vmem:[#allocation3 + $0x38] sm:$0xff] %vm470_vm4, %v1246_v5  ;;  %1797 = vmatprep.mubr.msk.f32.mxu1 %vm1521_vm0, %v1332_v60  ;;  %vm2880_vm4 = vcmask 31744  }
 0x1a5   : > { %1124 = vst.msk [vmem:[#allocation3 + $0x30] sm:$0xff] %vm1120_vm12, %v1115_v36  ;;  %1612 = vmatmul.mubr.f32.gmra.mxu1 %v1331_v62  ;;  %vm2882_vm1 = vmmov %vm2880_vm4 }
 0x1a6   : > { %1469 = vst.msk [vmem:[#allocation4 + $0x9] sm:$0xff] %vm2880_vm4, %v1813_v10  ;;  %vm2884_vm12 = vmmov %vm2882_vm1 }
 0x1a7   : > { %v1270_v6 = vpop.permute.xlu0 %1269  ;;  %v1327_v42 = vld [vmem:[#allocation3] sm:$0xff]  ;;  %1471 = vst.msk [vmem:[#allocation4 + $0x19] sm:$0xff] %vm2882_vm1, %v1816_v59 }
 0x1a8   : > { %v1140_v45 = vpop.permute.xlu1 %1139  ;;  %1278 = vst.msk [vmem:[#allocation3 + $0x38] sm:$0xff] %vm495_vm5, %v1270_v6  ;;  %1602 = vmatmul.mubr.f32.vlgmr.msra.gmra.mxu0 %v1327_v42  ;;  %vm2881_vm5 = vmmov %vm2880_vm4  ;;  %vm1509_vm4 = vcmp.eq.s32.totalorder %v1505_v51, %v2813_v0 }
 0x1a9   : > { %1149 = vst.msk [vmem:[#allocation3 + $0x30] sm:$0xff] %vm1145_vm13, %v1140_v45  ;;  %vm1500_vm13 = vcmp.eq.s32.totalorder %v376_v11, %v1480_v34 }
 0x1aa   : > { %1468 = vst.msk [vmem:[#allocation4 + $0x1] sm:$0xff] %vm2881_vm5, %v1438_v24  ;;  %vm2886_vm5 = vmmov %vm2882_vm1 }
 0x1ab   : > { %v1294_v55 = vpop.permute.xlu0 %1293  ;;  %1475 = vst.msk [vmem:[#allocation5 + $0x19] sm:$0xff] %vm2884_vm12, %v376_v11  ;;  %vm2892_vm12 = vmmov %vm2882_vm1 }
 0x1ac   : > { %v1165_v33 = vpop.permute.xlu1 %1164  ;;  %1302 = vst.msk [vmem:[#allocation3 + $0x38] sm:$0xff] %vm520_vm6, %v1294_v55  ;;  %vm2883_vm6 = vmmov %vm2882_vm1 }
 0x1ad   : > { %1174 = vst.msk [vmem:[#allocation3 + $0x30] sm:$0xff] %vm1170_vm14, %v1165_v33  ;;  %vm2885_vm14 = vmmov %vm2882_vm1 }
 0x1ae   : > { %1470 = vst.msk [vmem:[#allocation4 + $0x11] sm:$0xff] %vm2883_vm6, %v1448_v15  ;;  %vm2887_vm6 = vmmov %vm2882_vm1  ;;  %v1516_v45 = vld [vmem:[#allocation4 + $0x1a] sm:$0xff] }
 0x1af   : > { %v1318_v9 = vpop.permute.xlu0 %1317 }
 0x1b0   : > { %1326 = vst.msk [vmem:[#allocation3 + $0x38] sm:$0xff] %vm2879_vm3, %v1318_v9 }
 0x1b1   : > { %v1489_v17 = vld [vmem:[#allocation4] sm:$0xff]  ;;  %v1490_v63 = vld [vmem:[#allocation4 + $0x8] sm:$0xff] }
 0x1b2   : > { %v1493_v20 = vsel %vm1485_vm7, %v1489_v17, 0.0  ;;  %v1494_v26 = vsel %vm1486_vm8, %v1490_v63, 0.0  ;;  %v1484_v40 = vld [vmem:[#allocation5 + $0x18] sm:$0xff]  ;;  %vm2888_vm7 = vmmov %vm2882_vm1 }
 0x1b3   : > { %v1501_v22 = vsel %vm1497_vm10, %v1438_v24, %v1493_v20  ;;  %v1502_v8 = vsel %vm1498_vm11, %v1813_v10, %v1494_v26  ;;  %v1507_v27 = vld [vmem:[#allocation5 + $0x12] sm:$0xff]  ;;  %v1513_v54 = vld [vmem:[#allocation4 + $0x2] sm:$0xff]  ;;  %vm2889_vm8 = vmmov %vm2882_vm1 }
 0x1b4   : > { %v1333_v18 = vld [vmem:[#allocation3 + $0x30] sm:$0xff]  ;;  %vm1511_vm3 = vcmp.eq.s32.totalorder %v1507_v27, %v1479_v52  ;;  %v1517_v29 = vsel %vm1509_vm4, %v1513_v54, %v1501_v22  ;;  %vm2890_vm10 = vmmov %vm2882_vm1  ;;  %v1508_v42 = vld [vmem:[#allocation5 + $0x1a] sm:$0xff] }
 0x1b5   : > { %v1492_v37 = vld [vmem:[#allocation4 + $0x18] sm:$0xff]  ;;  %v1514_v48 = vld [vmem:[#allocation4 + $0xa] sm:$0xff]  ;;  %vm2891_vm11 = vmmov %vm2882_vm1 }
 0x1b6   : > { %v1518_v41 = vsel %vm1510_vm9, %v1514_v48, %v1502_v8  ;;  %v1491_v21 = vld [vmem:[#allocation4 + $0x10] sm:$0xff]  ;;  %vm2894_vm9 = vmmov %vm2882_vm1 }
 0x1b7   : > { %v1334_v12 = vld [vmem:[#allocation3 + $0x38] sm:$0xff]  ;;  %v1495_v49 = vsel %vm1487_vm15, %v1491_v21, 0.0  ;;  %vm1639_vm15 = vcmask 24576  }
 0x1b8   : > { %1798 = vmatprep.mubr.msk.f32.mxu1 %vm1521_vm0, %v1334_v12  ;;  %vm1488_vm0 = vcmp.eq.s32.totalorder %v1484_v40, %v1480_v34  ;;  %v1503_v30 = vsel %vm1499_vm2, %v1448_v15, %v1495_v49  ;;  %v1515_v28 = vld [vmem:[#allocation4 + $0x12] sm:$0xff] }
 0x1b9   : > { %1617 = vmatmul.mubr.f32.gmra.mxu1 %v1333_v18  ;;  %v1496_v2 = vsel %vm1488_vm0, %v1492_v37, 0.0  ;;  %v1519_v31 = vsel %vm1511_vm3, %v1515_v28, %v1503_v30  ;;  %vm1512_vm0 = vcmp.eq.s32.totalorder %v1508_v42, %v1480_v34 }
 0x1ba   : > { %v1504_v39 = vsel %vm1500_vm13, %v1816_v59, %v1496_v2  ;;  %vm2893_vm13 = vmmov %vm2882_vm1 }
 0x1bb   : > { %v1520_v55 = vsel %vm1512_vm0, %v1516_v45, %v1504_v39 }
 0x239   : > { %v1608_v16 = vpop.f32.mrf.mxu1 }
 0x23a   : > { %v1609_v43 = vadd.f32 %v1608_v16, %v1518_v41 }
 0x23b   : > { %v1610_v44 = vpop.f32.mrf.mxu1 }
 0x23c   : > { %1623 = vst.msk [vmem:[%s2833_s20 + $0x8] sm:$0xff] %vm2885_vm14, %v1609_v43  ;;  %v1642_v23 = vmul.f32 %v1609_v43, %v1609_v43  ;;  %v1627_v61 = vsel %vm2882_vm1, %v1609_v43, 0.0  ;;  %vm2895_vm14 = vmmov %vm2882_vm1 }
 0x23e   : > { %v1646_v35 = vsel %vm2889_vm8, %v1642_v23, 0.0 }
 0x265   : > { %v1613_v38 = vpop.f32.mrf.mxu1 }
 0x266   : > { %v1614_v32 = vadd.f32 %v1613_v38, %v1519_v31 }
 0x267   : > { %v1615_v56 = vpop.f32.mrf.mxu1 }
 0x268   : > { %1624 = vst.msk [vmem:[%s2833_s20 + $0x10] sm:$0xff] %vm2886_vm5, %v1614_v32  ;;  %v1603_v50 = vpop.f32.mrf.mxu0  ;;  %v1643_v25 = vmul.f32 %v1614_v32, %v1614_v32  ;;  %v1629_v4 = vsel %vm2890_vm10, %v1614_v32, 0.0 }
 0x269   : > { %v1604_v46 = vadd.f32 %v1603_v50, %v1517_v29 }
 0x26a   : > { %v1605_v58 = vpop.f32.mrf.mxu0  ;;  %v1648_v36 = vsel %vm2892_vm12, %v1643_v25, 0.0 }
 0x26b   : > { %1622 = vst.msk [vmem:[%s2833_s20] sm:$0xff] %vm2887_vm6, %v1604_v46  ;;  %v1626_v3 = vsel %vm2888_vm7, %v1604_v46, 0.0  ;;  %v1641_v53 = vmul.f32 %v1604_v46, %v1604_v46 }
 0x26c   : > { %v1628_v1 = vadd.f32 %v1627_v61, %v1626_v3 }
 0x26d   : > { %v1645_v5 = vsel %vm2891_vm11, %v1641_v53, 0.0 }
 0x26e   : > { %v1647_v60 = vadd.f32 %v1646_v35, %v1645_v5  ;;  %v1630_v62 = vadd.f32 %v1629_v4, %v1628_v1 }
 0x270   : > { %v1649_v6 = vadd.f32 %v1648_v36, %v1647_v60 }
 0x279   : > { %v1618_v33 = vpop.f32.mrf.mxu1 }
 0x27a   : > { %v1619_v7 = vadd.f32 %v1618_v33, %v1520_v55 }
 0x27b   : > { %v1620_v9 = vpop.f32.mrf.mxu1 }
 0x27c   : > { %1625 = vst.msk [vmem:[%s2833_s20 + $0x18] sm:$0xff] %vm2893_vm13, %v1619_v7  ;;  %v1631_v10 = vsel %vm2894_vm9, %v1619_v7, 0.0  ;;  %v1644_v0 = vmul.f32 %v1619_v7, %v1619_v7 }
 0x27d   : > { %v1632_v24 = vadd.f32 %v1631_v10, %v1630_v62 }
 0x27e   : > { %v1650_v59 = vsel %vm2895_vm14, %v1644_v0, 0.0 }
 0x27f   : > { %v1633_v14 = vrot.slane %v1632_v24, 4  ;;  %v1651_v19 = vadd.f32 %v1650_v59, %v1649_v6 }
 0x281   : > { %v1634_v13 = vadd.f32 %v1633_v14, %v1632_v24  ;;  %v1652_v15 = vrot.slane %v1651_v19, 4 }
 0x283   : > { %v1635_v18 = vrot.slane %v1634_v13, 2  ;;  %v1653_v12 = vadd.f32 %v1652_v15, %v1651_v19 }
 0x285   : > { %v1636_v17 = vadd.f32 %v1635_v18, %v1634_v13  ;;  %v1654_v63 = vrot.slane %v1653_v12, 2 }
 0x287   : > { %v1637_v20 = vrot.slane %v1636_v17, 1  ;;  %v1655_v26 = vadd.f32 %v1654_v63, %v1653_v12 }
 0x289   : > { %v1638_v22 = vadd.f32 %v1637_v20, %v1636_v17  ;;  %v1656_v8 = vrot.slane %v1655_v26, 1 }
 0x28b   : > { %1640 = vst.msk [vmem:[%s339_s26] sm:$0x1] %vm1639_vm15, %v1638_v22  ;;  %v1657_v11 = vadd.f32 %v1656_v8, %v1655_v26 }
 0x28d   : > { %1658 = vst.msk [vmem:[%s342_s14] sm:$0x1] %vm1639_vm15, %v1657_v11 }
 0x28e PF: > { %s19_s27 = sadd.s32 1, %s1904_s27  }
 0x28f   : > { %p16_p4 = scmp.ge.s32.totalorder %s19_s27, 4  }
 0x291   :  { %18 = sbr.rel (!%p16_p4) target bundleno = 1 (0x1), region = 101 }

// kernel: inception_transpose_block.6
= control target key start
LH: loop header
LB: loop body
LE: loop exit
PB: predicated region body
PF: predicated region fallthrough
CT: control target
= control target key end

     0   :  { %s1985_s27 = smov 0   ;;  %s2866_s0 = inlined_call_operand.vmem [shape: f32[2,32,4], index: 0, kind: input, shape index: {}]   ;;  %s2867_s1 = inlined_call_operand.vmem [shape: f32[1,1,4], index: 1, kind: input, shape index: {}]   ;;  %s2868_s2 = inlined_call_operand.vmem [shape: f32[1,1,4], index: 2, kind: input, shape index: {}]   ;;  %s2869_s3 = inlined_call_operand.vmem [shape: s32[2,32,8], index: 3, kind: input, shape index: {}]   ;;  %s2870_s4 = inlined_call_operand.vmem [shape: f32[156,8], index: 4, kind: input, shape index: {}]   ;;  %s2871_s5 = inlined_call_operand.vmem [shape: f32[4,8], index: 5, kind: input, shape index: {}]   ;;  %s2872_s6 = inlined_call_operand.vmem [shape: f32[2,32,8], index: 6, kind: output, shape index: {0}]   ;;  %s2873_s7 = inlined_call_operand.vmem [shape: f32[2,1,8], index: 7, kind: output, shape index: {1}]   ;;  %s2874_s8 = inlined_call_operand.vmem [shape: f32[2,1,8], index: 8, kind: output, shape index: {2}]  }
   0x1 LB: > { %s1777_s28 = sadd.s32 4294967295, %s1905_s27   ;;  %p1781_p0 = scmp.ge.s32.totalorder %s1905_s27, 1  ;;  %s1905_s27 = sphi %s1985_s27, %s19_s27  }
   0x2   : > { %p277_p1 = scmp.lt.s32.totalorder %s1905_s27, 3 }
   0x4   : > { %p278_p2 = pnand %p1781_p0, %p277_p1 }
   0x5   : > { %p322_p3 = scmp.lt.s32.totalorder (!%p278_p2), %s1777_s28, 1  ;;  %s1908_s15 = smov (!%p278_p2), 4  }
   0x6   : > { %281 = sbr.rel (%p278_p2) target bundleno = 654 (0x28e), region = 44  ;;  %s1909_s16 = smov (!%p278_p2), 8  }
   0x7   : > { %s1910_s17 = smov (!%p278_p2), 12   ;;  %s1911_s18 = smov (!%p278_p2), 16  }
   0x8   : > { %s1912_s19 = smov (!%p278_p2), 20   ;;  %s1913_s20 = smov (!%p278_p2), 24  }
   0x9   : > { %s1914_s21 = smov (!%p278_p2), 28   ;;  %s1915_s22 = smov (!%p278_p2), 32  }
   0xa   : > { %s1916_s23 = smov (!%p278_p2), 36   ;;  %s1917_s24 = smov (!%p278_p2), 40  }
   0xb   : > { %vm377_vm0 = vcmask 31744   ;;  %v1907_v0 = vmov 0.0   ;;  %vm386_vm1 = vcmask 29696   ;;  %s2898_s28 = smov (!%p322_p3, %s1777_s28), 1  ;;  %v1788_v1 = vld [vmem:[%s2867_s1] ss:$0 sm:$0xff] }
   0xc   : > { %384 = vst.msk [vmem:[#allocation2 + $0x30] sm:$0xff] %vm377_vm0, %v1907_v0  ;;  %385 = vst.msk [vmem:[#allocation2 + $0x38] sm:$0xff] %vm377_vm0, %v1907_v0  ;;  %1818 = vmatprep.subr.mxu1 %v1907_v0  ;;  %s2014_s29 = sshll.u32 %s2898_s28, 5  ;;  %v1789_v2 = vld [vmem:[%s2868_s2] ss:$0 sm:$0xff]  ;;  %s1918_s25 = smov 44  }
   0xd   : > { %378 = vst.msk [vmem:[#allocation2] sm:$0xff] %vm377_vm0, %v1907_v0  ;;  %379 = vst.msk [vmem:[#allocation2 + $0x8] sm:$0xff] %vm377_vm0, %v1907_v0  ;;  %s326_s12 = scalar_lea.vmem %s2866_s0, %s2014_s29  ;;  %s1919_s26 = smov 48   ;;  %vm420_vm2 = vcmask 64544   ;;  %vm445_vm3 = vcmask 97344   ;;  %vm470_vm4 = vcmask 130144  }
   0xe   : > { %380 = vst.msk [vmem:[#allocation2 + $0x10] sm:$0xff] %vm377_vm0, %v1907_v0  ;;  %381 = vst.msk [vmem:[#allocation2 + $0x18] sm:$0xff] %vm377_vm0, %v1907_v0  ;;  %v346_v3 = vld [vmem:[%s326_s12 + $0x18] sm:$0xff]  ;;  %v345_v4 = vld [vmem:[%s326_s12 + $0x10] sm:$0xff]  ;;  %s1920_s30 = smov 52   ;;  %s1921_s9 = smov 56  }
   0xf   : > { %382 = vst.msk [vmem:[#allocation2 + $0x20] sm:$0xff] %vm377_vm0, %v1907_v0  ;;  %383 = vst.msk [vmem:[#allocation2 + $0x28] sm:$0xff] %vm377_vm0, %v1907_v0  ;;  %v344_v5 = vld [vmem:[%s326_s12 + $0x8] sm:$0xff]  ;;  %v357_v8 = vmul.f32 %v1788_v1, %v346_v3  ;;  %v356_v9 = vmul.f32 %v1788_v1, %v345_v4  ;;  %v343_v15 = vld [vmem:[%s326_s12] sm:$0xff]  ;;  %s1922_s10 = smov 60   ;;  %s1923_s11 = smov 64  }
  0x10   : > { %387 = vst.msk [vmem:[#allocation2 + $0x40] sm:$0x3f] %vm386_vm1, %v1907_v0  ;;  %v355_v10 = vmul.f32 %v1788_v1, %v344_v5  ;;  %v354_v20 = vmul.f32 %v1788_v1, %v343_v15  ;;  %s1924_s12 = smov 68   ;;  %s1925_s13 = smov 72   ;;  %vm495_vm5 = vcmask 162944   ;;  %vm520_vm6 = vcmask 195744  }
  0x11   : > { %v2036_v12 = vadd.f32 %v1789_v2, %v357_v8  ;;  %v2038_v13 = vadd.f32 %v1789_v2, %v356_v9  ;;  %s1926_s14 = smov 76   ;;  %vm2875_vm7 = vcmask 228544   ;;  %vm570_vm8 = vcmask 261344  }
  0x12   : > { %v2040_v14 = vadd.f32 %v1789_v2, %v355_v10  ;;  %v365_v21 = vadd.f32 %v1789_v2, %v354_v20  ;;  %vm595_vm9 = vcmask 294144   ;;  %vm620_vm10 = vcmask 326944  }
  0x13   : > { %v2026_v6 = vld [vmem:[#allocation2 + $0x35] sm:$0xff]  ;;  %v372_v17 = vmax.f32 %v2036_v12, 0.0  ;;  %v371_v18 = vmax.f32 %v2038_v13, 0.0  ;;  %vm645_vm11 = vcmask 359744   ;;  %vm670_vm12 = vcmask 392544  }
  0x14   : > { %v2028_v7 = vld [vmem:[#allocation2 + $0x34] sm:$0xff]  ;;  %412 = vrot.lane.b32.xlu1 %v2026_v6, %s1908_s15  ;;  %v370_v19 = vmax.f32 %v2040_v14, 0.0  ;;  %v369_v22 = vmax.f32 %v365_v21, 0.0  ;;  %vm695_vm13 = vcmask 425344   ;;  %vm720_vm14 = vcmask 458144  }
  0x15   : > { %437 = vrot.lane.b32.xlu0 %v2028_v7, %s1909_s16  ;;  %v2034_v11 = vld [vmem:[#allocation2 + $0x33] sm:$0xff]  ;;  %391 = vst.msk [vmem:[#allocation2 + $0x2b] sm:$0xff] %vm377_vm0, %v372_v17  ;;  %390 = vst.msk [vmem:[#allocation2 + $0x23] sm:$0xff] %vm377_vm0, %v371_v18  ;;  %vm745_vm15 = vcmask 490944   ;;  %vm770_vm1 = vcmask 523744  }
  0x16   : > { %v2042_v16 = vld [vmem:[#allocation2 + $0x36] sm:$0xff]  ;;  %389 = vst.msk [vmem:[#allocation2 + $0x1b] sm:$0xff] %vm377_vm0, %v370_v19  ;;  %388 = vst.msk [vmem:[#allocation2 + $0x13] sm:$0xff] %vm377_vm0, %v369_v22  ;;  %1812 = vmatprep.mubr.msk.f32.mxu0 %vm377_vm0, %v369_v22 }
  0x17   : > { %398 = vst.msk [vmem:[#allocation3 + $0x20] sm:$0xff] %vm377_vm0, %v2042_v16  ;;  %v395_v34 = vld [vmem:[#allocation2 + $0x3e] sm:$0xff] }
  0x18   : > { %462 = vrot.lane.b32.xlu1 %v2034_v11, %s1910_s17  ;;  %399 = vst.msk [vmem:[#allocation3 + $0x30] sm:$0xff] %vm377_vm0, %v395_v34  ;;  %v403_v40 = vld [vmem:[#allocation2 + $0x3d] sm:$0xff] }
  0x19   : > { %v428_v43 = vld [vmem:[#allocation2 + $0x3c] sm:$0xff] }
  0x1a   : > { %v453_v46 = vld [vmem:[#allocation2 + $0x3b] sm:$0xff] }
  0x1b   : > { %v478_v49 = vld [vmem:[#allocation2 + $0x3a] sm:$0xff] }
  0x1c   : > { %v2062_v23 = vld [vmem:[#allocation2 + $0x2d] sm:$0xff]  ;;  %v2082_v28 = vld [vmem:[#allocation2 + $0x25] sm:$0xff]  ;;  %v503_v51 = vld [vmem:[#allocation2 + $0x39] sm:$0xff] }
  0x1d   : > { %v2064_v24 = vld [vmem:[#allocation2 + $0x2b] sm:$0xff]  ;;  %410 = vrot.lane.b32.xlu0 %v2062_v23, %s1908_s15  ;;  %v2094_v31 = vld [vmem:[#allocation2 + $0x16] sm:$0xff]  ;;  %v2106_v35 = vld [vmem:[#allocation2 + $0x23] sm:$0xff] }
  0x1e   : > { %460 = vrot.lane.b32.xlu1 %v2064_v24, %s1910_s17  ;;  %v2070_v25 = vld [vmem:[#allocation2 + $0x2c] sm:$0xff]  ;;  %v2084_v29 = vld [vmem:[#allocation2 + $0x24] sm:$0xff]  ;;  %1181 = vst.msk [vmem:[#allocation3 + $0x28] sm:$0xff] %vm377_vm0, %v2094_v31  ;;  %v2178_v53 = vld [vmem:[#allocation2 + $0x1c] sm:$0xff] }
  0x1f   : > { %v2072_v26 = vld [vmem:[#allocation2 + $0x2a] sm:$0xff]  ;;  %v2108_v36 = vld [vmem:[#allocation2 + $0x22] sm:$0xff]  ;;  %v2121_v38 = vld [vmem:[#allocation2 + $0x32] sm:$0xff] }
  0x20   : > { %v2074_v27 = vld [vmem:[#allocation2 + $0x26] sm:$0xff]  ;;  %v2086_v30 = vld [vmem:[#allocation2 + $0x2e] sm:$0xff]  ;;  %v2156_v48 = vld [vmem:[#allocation2 + $0x1e] sm:$0xff] }
  0x21   : > { %396 = vst.msk [vmem:[#allocation3] sm:$0xff] %vm377_vm0, %v2074_v27  ;;  %435 = vrot.lane.b32.xlu0 %v2070_v25, %s1909_s16  ;;  %397 = vst.msk [vmem:[#allocation3 + $0x10] sm:$0xff] %vm377_vm0, %v2086_v30  ;;  %v2096_v32 = vld [vmem:[#allocation2 + $0x29] sm:$0xff]  ;;  %v2123_v39 = vld [vmem:[#allocation2 + $0x21] sm:$0xff] }
  0x22   : > { %485 = vrot.lane.b32.xlu1 %v2072_v26, %s1911_s18  ;;  %v2098_v33 = vld [vmem:[#allocation2 + $0x28] sm:$0xff]  ;;  %v2132_v41 = vld [vmem:[#allocation2 + $0x31] sm:$0xff]  ;;  %v2134_v42 = vld [vmem:[#allocation2 + $0x20] sm:$0xff] }
  0x23   : > { %v2115_v37 = vld [vmem:[#allocation2 + $0x27] sm:$0xff]  ;;  %v2143_v44 = vld [vmem:[#allocation2 + $0x30] sm:$0xff]  ;;  %v2145_v45 = vld [vmem:[#allocation2 + $0x1f] sm:$0xff] }
  0x24   : > { %v2154_v47 = vld [vmem:[#allocation2 + $0x2f] sm:$0xff]  ;;  %v2165_v50 = vld [vmem:[#allocation2 + $0x1d] sm:$0xff] }
  0x25   : > { %408 = vrot.lane.b32.xlu0 %v2082_v28, %s1908_s15  ;;  %v2171_v52 = vld [vmem:[#allocation2 + $0xe] sm:$0xff]  ;;  %v528_v54 = vld [vmem:[#allocation2 + $0x38] sm:$0xff] }
  0x26   : > { %433 = vrot.lane.b32.xlu1 %v2084_v29, %s1909_s16  ;;  %1180 = vst.msk [vmem:[#allocation3 + $0x18] sm:$0xff] %vm377_vm0, %v2171_v52  ;;  %v2187_v55 = vld [vmem:[#allocation2 + $0x1b] sm:$0xff] }
  0x27   : > { %v553_v56 = vld [vmem:[#allocation2 + $0x37] sm:$0xff] }
  0x28   : > { %v2196_v57 = vld [vmem:[#allocation2 + $0x1a] sm:$0xff] }
  0x29   : > { %510 = vrot.lane.b32.xlu0 %v2096_v32, %s1912_s19  ;;  %v2206_v58 = vld [vmem:[#allocation2 + $0x19] sm:$0xff] }
  0x2a   : > { %535 = vrot.lane.b32.xlu1 %v2098_v33, %s1913_s20  ;;  %v2216_v59 = vld [vmem:[#allocation2 + $0x18] sm:$0xff] }
  0x2b   : > { %v2226_v60 = vld [vmem:[#allocation2 + $0x17] sm:$0xff] }
  0x2c   : > { %v2248_v3 = vld [vmem:[#allocation2 + $0x15] sm:$0xff] }
  0x2d   : > { %458 = vrot.lane.b32.xlu0 %v2106_v35, %s1910_s17  ;;  %v2263_v8 = vld [vmem:[#allocation2 + $0x14] sm:$0xff] }
  0x2e   : > { %483 = vrot.lane.b32.xlu1 %v2108_v36, %s1911_s18  ;;  %v2512_v14 = vld [vmem:[%s2870_s4 + $0x18] sm:$0xff] }
  0x31   : > { %560 = vrot.lane.b32.xlu0 %v2115_v37, %s1914_s21 }
  0x32   : > { %585 = vrot.lane.b32.xlu1 %v2074_v27, %s1915_s22 }
  0x35   : > { %487 = vrot.lane.b32.xlu0 %v2121_v38, %s1911_s18 }
  0x36   : > { %508 = vrot.lane.b32.xlu1 %v2123_v39, %s1912_s19 }
  0x39   : > { %414 = vrot.lane.b32.xlu0 %v403_v40, %s1908_s15 }
  0x3a   : > { %610 = vrot.lane.b32.xlu1 %v2082_v28, %s1916_s23 }
  0x3d   : > { %512 = vrot.lane.b32.xlu0 %v2132_v41, %s1912_s19 }
  0x3e   : > { %533 = vrot.lane.b32.xlu1 %v2134_v42, %s1913_s20 }
  0x41   : > { %439 = vrot.lane.b32.xlu0 %v428_v43, %s1909_s16 }
  0x42   : > { %635 = vrot.lane.b32.xlu1 %v2084_v29, %s1917_s24 }
  0x45   : > { %537 = vrot.lane.b32.xlu0 %v2143_v44, %s1913_s20 }
  0x46   : > { %558 = vrot.lane.b32.xlu1 %v2145_v45, %s1914_s21 }
  0x49   : > { %464 = vrot.lane.b32.xlu0 %v453_v46, %s1910_s17  ;;  %v2305_v46 = vld [vmem:[#allocation2 + $0x11] sm:$0xff] }
  0x4a   : > { %660 = vrot.lane.b32.xlu1 %v2106_v35, %s1918_s25 }
  0x4d   : > { %562 = vrot.lane.b32.xlu0 %v2154_v47, %s1914_s21 }
  0x4e   : > { %583 = vrot.lane.b32.xlu1 %v2156_v48, %s1915_s22 }
  0x51   : > { %489 = vrot.lane.b32.xlu0 %v478_v49, %s1911_s18 }
  0x52   : > { %685 = vrot.lane.b32.xlu1 %v2108_v36, %s1919_s26 }
  0x55   : > { %587 = vrot.lane.b32.xlu0 %v2086_v30, %s1915_s22 }
  0x56   : > { %608 = vrot.lane.b32.xlu1 %v2165_v50, %s1916_s23 }
  0x59   : > { %514 = vrot.lane.b32.xlu0 %v503_v51, %s1912_s19 }
  0x5a   : > { %710 = vrot.lane.b32.xlu1 %v2123_v39, %s1920_s30 }
  0x5d   : > { %612 = vrot.lane.b32.xlu0 %v2062_v23, %s1916_s23 }
  0x5e   : > { %633 = vrot.lane.b32.xlu1 %v2178_v53, %s1917_s24 }
  0x61   : > { %539 = vrot.lane.b32.xlu0 %v528_v54, %s1913_s20 }
  0x62   : > { %735 = vrot.lane.b32.xlu1 %v2134_v42, %s1921_s9 }
  0x65   : > { %637 = vrot.lane.b32.xlu0 %v2070_v25, %s1917_s24 }
  0x66   : > { %658 = vrot.lane.b32.xlu1 %v2187_v55, %s1918_s25 }
  0x69   : > { %564 = vrot.lane.b32.xlu0 %v553_v56, %s1914_s21  ;;  %s1927_s21 = smov 80   ;;  %v2325_v56 = vld [vmem:[#allocation2 + $0xd] sm:$0xff] }
  0x6a   : > { %760 = vrot.lane.b32.xlu1 %v2145_v45, %s1922_s10 }
  0x6d   : > { %662 = vrot.lane.b32.xlu0 %v2064_v24, %s1918_s25 }
  0x6e   : > { %683 = vrot.lane.b32.xlu1 %v2196_v57, %s1919_s26 }
  0x71   : > { %589 = vrot.lane.b32.xlu0 %v2042_v16, %s1915_s22  ;;  %s1928_s22 = smov 84   ;;  %v2277_v16 = vld [vmem:[#allocation2 + $0x13] sm:$0xff] }
  0x72   : > { %785 = vrot.lane.b32.xlu1 %v2156_v48, %s1923_s11 }
  0x75   : > { %687 = vrot.lane.b32.xlu0 %v2072_v26, %s1919_s26 }
  0x76   : > { %708 = vrot.lane.b32.xlu1 %v2206_v58, %s1920_s30 }
  0x79   : > { %614 = vrot.lane.b32.xlu0 %v2026_v6, %s1916_s23  ;;  %s1929_s23 = smov 88  }
  0x7a   : > { %810 = vrot.lane.b32.xlu1 %v2165_v50, %s1924_s12 }
  0x7d   : > { %712 = vrot.lane.b32.xlu0 %v2096_v32, %s1920_s30 }
  0x7e   : > { %733 = vrot.lane.b32.xlu1 %v2216_v59, %s1921_s9 }
  0x81   : > { %639 = vrot.lane.b32.xlu0 %v2028_v7, %s1917_s24  ;;  %s1930_s24 = smov 92  }
  0x82   : > { %835 = vrot.lane.b32.xlu1 %v2178_v53, %s1925_s13 }
  0x85   : > { %737 = vrot.lane.b32.xlu0 %v2098_v33, %s1921_s9 }
  0x86   : > { %v413_v61 = vpop.permute.xlu1 %412  ;;  %758 = vrot.lane.b32.xlu1 %v2226_v60, %s1922_s10 }
  0x87   : > { %v438_v62 = vpop.permute.xlu0 %437  ;;  %423 = vst.msk [vmem:[#allocation3 + $0x20] sm:$0xff] %vm420_vm2, %v413_v61 }
  0x88   : > { %448 = vst.msk [vmem:[#allocation3 + $0x20] sm:$0xff] %vm445_vm3, %v438_v62  ;;  %v2333_v62 = vld [vmem:[#allocation2 + $0x10] sm:$0xff] }
  0x89   : > { %664 = vrot.lane.b32.xlu0 %v2034_v11, %s1918_s25  ;;  %s1931_s25 = smov 96  }
  0x8a   : > { %v463_v63 = vpop.permute.xlu1 %462  ;;  %860 = vrot.lane.b32.xlu1 %v2187_v55, %s1926_s14 }
  0x8b   : > { %473 = vst.msk [vmem:[#allocation3 + $0x20] sm:$0xff] %vm470_vm4, %v463_v63  ;;  %v2335_v63 = vld [vmem:[#allocation2 + $0xc] sm:$0xff] }
  0x8d   : > { %762 = vrot.lane.b32.xlu0 %v2115_v37, %s1922_s10 }
  0x8e   : > { %783 = vrot.lane.b32.xlu1 %v2094_v31, %s1923_s11 }
  0x8f   : > { %v411_v1 = vpop.permute.xlu0 %410 }
  0x90   : > { %v461_v2 = vpop.permute.xlu1 %460  ;;  %422 = vst.msk [vmem:[#allocation3 + $0x10] sm:$0xff] %vm420_vm2, %v411_v1 }
  0x91   : > { %689 = vrot.lane.b32.xlu0 %v2121_v38, %s1919_s26  ;;  %v2291_v38 = vld [vmem:[#allocation2 + $0x12] sm:$0xff]  ;;  %s1932_s26 = smov 100  }
  0x92   : > { %885 = vrot.lane.b32.xlu1 %v2196_v57, %s1927_s21 }
  0x93   : > { %v436_v4 = vpop.permute.xlu0 %435 }
  0x94   : > { %v486_v5 = vpop.permute.xlu1 %485  ;;  %447 = vst.msk [vmem:[#allocation3 + $0x10] sm:$0xff] %vm445_vm3, %v436_v4 }
  0x95   : > { %472 = vst.msk [vmem:[#allocation3 + $0x10] sm:$0xff] %vm470_vm4, %v461_v2  ;;  %787 = vrot.lane.b32.xlu0 %v2074_v27, %s1923_s11  ;;  %v2343_v2 = vld [vmem:[#allocation2 + $0xf] sm:$0xff] }
  0x96   : > { %808 = vrot.lane.b32.xlu1 %v2248_v3, %s1924_s12  ;;  %497 = vst.msk [vmem:[#allocation3 + $0x10] sm:$0xff] %vm495_vm5, %v486_v5 }
  0x97   : > { %v409_v6 = vpop.permute.xlu0 %408 }
  0x98   : > { %v434_v7 = vpop.permute.xlu1 %433  ;;  %421 = vst.msk [vmem:[#allocation3] sm:$0xff] %vm420_vm2, %v409_v6 }
  0x99   : > { %446 = vst.msk [vmem:[#allocation3] sm:$0xff] %vm445_vm3, %v434_v7  ;;  %714 = vrot.lane.b32.xlu0 %v2132_v41, %s1920_s30  ;;  %s1933_s30 = smov 104  }
  0x9a   : > { %910 = vrot.lane.b32.xlu1 %v2206_v58, %s1928_s22 }
  0x9b   : > { %v511_v9 = vpop.permute.xlu0 %510 }
  0x9c   : > { %v536_v10 = vpop.permute.xlu1 %535  ;;  %522 = vst.msk [vmem:[#allocation3 + $0x10] sm:$0xff] %vm520_vm6, %v511_v9 }
  0x9d   : > { %547 = vst.msk [vmem:[#allocation3 + $0x10] sm:$0xff] %vm2875_vm7, %v536_v10  ;;  %812 = vrot.lane.b32.xlu0 %v2082_v28, %s1924_s12 }
  0x9e   : > { %833 = vrot.lane.b32.xlu1 %v2263_v8, %s1925_s13 }
  0x9f   : > { %v459_v11 = vpop.permute.xlu0 %458 }
  0xa0   : > { %v484_v15 = vpop.permute.xlu1 %483  ;;  %471 = vst.msk [vmem:[#allocation3] sm:$0xff] %vm470_vm4, %v459_v11  ;;  %v2363_v11 = vld [vmem:[#allocation2 + $0xb] sm:$0xff] }
  0xa1   : > { %496 = vst.msk [vmem:[#allocation3] sm:$0xff] %vm495_vm5, %v484_v15  ;;  %739 = vrot.lane.b32.xlu0 %v2143_v44, %s1921_s9  ;;  %s1934_s9 = smov 108  }
  0xa2   : > { %935 = vrot.lane.b32.xlu1 %v2216_v59, %s1929_s23 }
  0xa3   : > { %v561_v20 = vpop.permute.xlu0 %560 }
  0xa4   : > { %v586_v21 = vpop.permute.xlu1 %585  ;;  %572 = vst.msk [vmem:[#allocation3 + $0x10] sm:$0xff] %vm570_vm8, %v561_v20  ;;  %v2368_v20 = vld [vmem:[%s2870_s4 + $0x78] sm:$0xff] }
  0xa5   : > { %597 = vst.msk [vmem:[#allocation3 + $0x10] sm:$0xff] %vm595_vm9, %v586_v21  ;;  %837 = vrot.lane.b32.xlu0 %v2084_v29, %s1925_s13  ;;  %1838 = vmatpush1.msra.mxu1 %v2368_v20  ;;  %v2382_v21 = vld [vmem:[#allocation2 + $0xa] sm:$0xff] }
  0xa6   : > { %858 = vrot.lane.b32.xlu1 %v2277_v16, %s1926_s14  ;;  %1819 = vmatprep.subr.mxu1 %v1907_v0 }
  0xa7   : > { %v488_v22 = vpop.permute.xlu0 %487 }
  0xa8   : > { %v509_v34 = vpop.permute.xlu1 %508  ;;  %498 = vst.msk [vmem:[#allocation3 + $0x20] sm:$0xff] %vm495_vm5, %v488_v22 }
  0xa9   : > { %521 = vst.msk [vmem:[#allocation3] sm:$0xff] %vm520_vm6, %v509_v34  ;;  %764 = vrot.lane.b32.xlu0 %v2154_v47, %s1922_s10 }
  0xaa   : > { %960 = vrot.lane.b32.xlu1 %v2226_v60, %s1930_s24 }
  0xab   : > { %v415_v40 = vpop.permute.xlu0 %414 }
  0xac   : > { %v611_v41 = vpop.permute.xlu1 %610  ;;  %424 = vst.msk [vmem:[#allocation3 + $0x30] sm:$0xff] %vm420_vm2, %v415_v40  ;;  %v2389_v40 = vld [vmem:[%s2870_s4 + $0x68] sm:$0xff] }
  0xad   : > { %622 = vst.msk [vmem:[#allocation3 + $0x10] sm:$0xff] %vm620_vm10, %v611_v41  ;;  %862 = vrot.lane.b32.xlu0 %v2106_v35, %s1926_s14  ;;  %v2401_v41 = vld [vmem:[%s2870_s4 + $0x60] sm:$0xff] }
  0xae   : > { %883 = vrot.lane.b32.xlu1 %v2291_v38, %s1927_s21 }
  0xaf   : > { %v513_v43 = vpop.permute.xlu0 %512 }
  0xb0   : > { %v534_v44 = vpop.permute.xlu1 %533  ;;  %523 = vst.msk [vmem:[#allocation3 + $0x20] sm:$0xff] %vm520_vm6, %v513_v43 }
  0xb1   : > { %546 = vst.msk [vmem:[#allocation3] sm:$0xff] %vm2875_vm7, %v534_v44  ;;  %789 = vrot.lane.b32.xlu0 %v2086_v30, %s1923_s11  ;;  %s1936_s11 = smov 116  }
  0xb2   : > { %985 = vrot.lane.b32.xlu1 %v2094_v31, %s1931_s25 }
  0xb3   : > { %v440_v47 = vpop.permute.xlu0 %439 }
  0xb4   : > { %v636_v49 = vpop.permute.xlu1 %635  ;;  %449 = vst.msk [vmem:[#allocation3 + $0x30] sm:$0xff] %vm445_vm3, %v440_v47 }
  0xb5   : > { %647 = vst.msk [vmem:[#allocation3 + $0x10] sm:$0xff] %vm645_vm11, %v636_v49  ;;  %887 = vrot.lane.b32.xlu0 %v2108_v36, %s1927_s21 }
  0xb6   : > { %908 = vrot.lane.b32.xlu1 %v2305_v46, %s1928_s22 }
  0xb7   : > { %v538_v30 = vpop.permute.xlu0 %537 }
  0xb8   : > { %v559_v51 = vpop.permute.xlu1 %558  ;;  %548 = vst.msk [vmem:[#allocation3 + $0x20] sm:$0xff] %vm2875_vm7, %v538_v30  ;;  %v2423_v30 = vld [vmem:[%s2870_s4 + $0x50] sm:$0xff] }
  0xb9   : > { %571 = vst.msk [vmem:[#allocation3] sm:$0xff] %vm570_vm8, %v559_v51  ;;  %814 = vrot.lane.b32.xlu0 %v2062_v23, %s1924_s12  ;;  %v2435_v51 = vld [vmem:[%s2870_s4 + $0x48] sm:$0xff] }
  0xba   : > { %1010 = vrot.lane.b32.xlu1 %v2248_v3, %s1932_s26 }
  0xbb   : > { %v465_v31 = vpop.permute.xlu0 %464 }
  0xbc   : > { %v661_v54 = vpop.permute.xlu1 %660  ;;  %474 = vst.msk [vmem:[#allocation3 + $0x30] sm:$0xff] %vm470_vm4, %v465_v31 }
  0xbd   : > { %672 = vst.msk [vmem:[#allocation3 + $0x10] sm:$0xff] %vm670_vm12, %v661_v54  ;;  %912 = vrot.lane.b32.xlu0 %v2123_v39, %s1928_s22 }
  0xbe   : > { %839 = vrot.lane.b32.xlu1 %v2070_v25, %s1925_s13  ;;  %s1937_s13 = smov 120  }
  0xbf   : > { %v563_v23 = vpop.permute.xlu0 %562 }
  0xc0   : > { %v584_v61 = vpop.permute.xlu1 %583  ;;  %573 = vst.msk [vmem:[#allocation3 + $0x20] sm:$0xff] %vm570_vm8, %v563_v23 }
  0xc1   : > { %596 = vst.msk [vmem:[#allocation3] sm:$0xff] %vm595_vm9, %v584_v61  ;;  %1193 = vrot.lane.b32.xlu0 %v2325_v56, %s1908_s15 }
  0xc2   : > { %937 = vrot.lane.b32.xlu1 %v2134_v42, %s1929_s23 }
  0xc3   : > { %v490_v25 = vpop.permute.xlu0 %489 }
  0xc4   : > { %v686_v1 = vpop.permute.xlu1 %685  ;;  %499 = vst.msk [vmem:[#allocation3 + $0x30] sm:$0xff] %vm495_vm5, %v490_v25  ;;  %v2456_v25 = vld [vmem:[%s2870_s4 + $0x38] sm:$0xff] }
  0xc5   : > { %697 = vst.msk [vmem:[#allocation3 + $0x10] sm:$0xff] %vm695_vm13, %v686_v1  ;;  %933 = vrot.lane.b32.xlu0 %v2333_v62, %s1929_s23  ;;  %v2469_v1 = vld [vmem:[#allocation2 + $0x9] sm:$0xff] }
  0xc6   : > { %1217 = vrot.lane.b32.xlu1 %v2335_v63, %s1909_s16 }
  0xc7   : > { %v588_v4 = vpop.permute.xlu0 %587 }
  0xc8   : > { %v609_v5 = vpop.permute.xlu1 %608  ;;  %598 = vst.msk [vmem:[#allocation3 + $0x20] sm:$0xff] %vm595_vm9, %v588_v4 }
  0xc9   : > { %621 = vst.msk [vmem:[#allocation3] sm:$0xff] %vm620_vm10, %v609_v5  ;;  %1035 = vrot.lane.b32.xlu0 %v2263_v8, %s1933_s30 }
  0xca   : > { %958 = vrot.lane.b32.xlu1 %v2343_v2, %s1930_s24 }
  0xcb   : > { %v515_v6 = vpop.permute.xlu0 %514 }
  0xcc   : > { %v711_v7 = vpop.permute.xlu1 %710  ;;  %524 = vst.msk [vmem:[#allocation3 + $0x30] sm:$0xff] %vm520_vm6, %v515_v6  ;;  %v1355_v6 = vld [vmem:[%s2871_s5] sm:$0xf] }
  0xcd   : > { %722 = vst.msk [vmem:[#allocation3 + $0x10] sm:$0xff] %vm720_vm14, %v711_v7  ;;  %864 = vrot.lane.b32.xlu0 %v2064_v24, %s1926_s14  ;;  %s1935_s14 = smov 112   ;;  %v1207_v7 = vld [vmem:[#allocation2 + $0x4] sm:$0xff] }
  0xce   : > { %1060 = vrot.lane.b32.xlu1 %v2277_v16, %s1934_s9 }
  0xcf   : > { %v613_v9 = vpop.permute.xlu0 %612 }
  0xd0   : > { %v634_v10 = vpop.permute.xlu1 %633  ;;  %623 = vst.msk [vmem:[#allocation3 + $0x20] sm:$0xff] %vm620_vm10, %v613_v9 }
  0xd1   : > { %646 = vst.msk [vmem:[#allocation3] sm:$0xff] %vm645_vm11, %v634_v10  ;;  %962 = vrot.lane.b32.xlu0 %v2145_v45, %s1930_s24 }
  0xd2   : > { %889 = vrot.lane.b32.xlu1 %v2072_v26, %s1927_s21  ;;  %v2376_v26 = vld [vmem:[%s2870_s4 + $0x70] sm:$0xff]  ;;  %s1938_s21 = smov 124  }
  0xd3   : > { %v540_v24 = vpop.permute.xlu0 %539  ;;  %1839 = vmatpush1.msra.mxu1 %v2376_v26 }
  0xd4   : > { %v736_v15 = vpop.permute.xlu1 %735  ;;  %549 = vst.msk [vmem:[#allocation3 + $0x30] sm:$0xff] %vm2875_vm7, %v540_v24  ;;  %1820 = vmatprep.subr.mxu1 %v1907_v0  ;;  %vm1368_vm7 = vcmask 1043456   ;;  %v2495_v24 = vld [vmem:[%s2870_s4 + $0x20] sm:$0xff] }
  0xd5   : > { %747 = vst.msk [vmem:[#allocation3 + $0x10] sm:$0xff] %vm745_vm15, %v736_v15  ;;  %1241 = vrot.lane.b32.xlu0 %v2363_v11, %s1910_s17  ;;  %1840 = vmatpush1.msra.mxu1 %v2389_v40 }
  0xd6   : > { %987 = vrot.lane.b32.xlu1 %v2156_v48, %s1931_s25  ;;  %v1175_v48 = vld [vmem:[#allocation2 + $0x6] sm:$0xff]  ;;  %1821 = vmatprep.subr.mxu1 %v1907_v0 }
  0xd7   : > { %v638_v22 = vpop.permute.xlu0 %637  ;;  %1179 = vst.msk [vmem:[#allocation3 + $0x8] sm:$0xff] %vm377_vm0, %v1175_v48  ;;  %1841 = vmatpush1.msra.mxu1 %v2401_v41  ;;  %1810 = vmatprep.subr.msk.mxu0 %vm1368_vm7, %v1355_v6 }
  0xd8   : > { %v659_v34 = vpop.permute.xlu1 %658  ;;  %648 = vst.msk [vmem:[#allocation3 + $0x20] sm:$0xff] %vm645_vm11, %v638_v22  ;;  %1822 = vmatprep.subr.mxu1 %v1907_v0  ;;  %1811 = vmatpush3.msk.msra.mxu0 %vm1368_vm7, %v1355_v6 }
  0xd9   : > { %671 = vst.msk [vmem:[#allocation3] sm:$0xff] %vm670_vm12, %v659_v34  ;;  %983 = vrot.lane.b32.xlu0 %v2171_v52, %s1931_s25  ;;  %v2412_v52 = vld [vmem:[%s2870_s4 + $0x58] sm:$0xff]  ;;  %1813 = vmatmul.mubr.msk.f32.vlgmr.msra.gmra.mxu0 %vm377_vm0, %v370_v19  ;;  %v2514_v19 = vld [vmem:[#allocation2 + $0x8] sm:$0xff] }
  0xda   : > { %1265 = vrot.lane.b32.xlu1 %v2382_v21, %s1911_s18  ;;  %1842 = vmatpush1.msra.mxu1 %v2412_v52 }
  0xdb   : > { %v565_v43 = vpop.permute.xlu0 %564  ;;  %1823 = vmatprep.subr.mxu1 %v1907_v0  ;;  %1815 = vmatprep.mubr.msk.f32.mxu0 %vm377_vm0, %v371_v18  ;;  %v2528_v18 = vld [vmem:[%s2870_s4 + $0x10] sm:$0xff] }
  0xdc   : > { %v761_v44 = vpop.permute.xlu1 %760  ;;  %574 = vst.msk [vmem:[#allocation3 + $0x30] sm:$0xff] %vm570_vm8, %v565_v43  ;;  %vm795_vm8 = vcmask 556544   ;;  %1843 = vmatpush1.msra.mxu1 %v2423_v30  ;;  %1538 = vmatprep.subr.mxu0 %v1907_v0  ;;  %v1255_v43 = vld [vmem:[#allocation2 + $0x2] sm:$0xff] }
  0xdd   : > { %772 = vst.msk [vmem:[#allocation3 + $0x10] sm:$0xff] %vm770_vm1, %v761_v44  ;;  %1085 = vrot.lane.b32.xlu0 %v2291_v38, %s1935_s14  ;;  %1824 = vmatprep.subr.mxu1 %v1907_v0 }
  0xde   : > { %1008 = vrot.lane.b32.xlu1 %v2325_v56, %s1932_s26  ;;  %1844 = vmatpush1.msra.mxu1 %v2435_v51  ;;  %v1183_v56 = vld [vmem:[#allocation2 + $0x5] sm:$0xff] }
  0xdf   : > { %v663_v47 = vpop.permute.xlu0 %662  ;;  %1825 = vmatprep.subr.mxu1 %v1907_v0  ;;  %1816 = vmatmul.mubr.msk.f32.gmra.mxu0 %vm377_vm0, %v372_v17 }
  0xe0   : > { %v684_v49 = vpop.permute.xlu1 %683  ;;  %673 = vst.msk [vmem:[#allocation3 + $0x20] sm:$0xff] %vm670_vm12, %v663_v47  ;;  %1539 = vmatpush1.msra.mxu0 %v2368_v20  ;;  %v2555_v20 = vld [vmem:[%s2870_s4] sm:$0xff] }
  0xe1   : > { %696 = vst.msk [vmem:[#allocation3] sm:$0xff] %vm695_vm13, %v684_v49  ;;  %914 = vrot.lane.b32.xlu0 %v2096_v32, %s1928_s22  ;;  %v2445_v32 = vld [vmem:[%s2870_s4 + $0x40] sm:$0xff]  ;;  %1540 = vmatprep.subr.mxu0 %v1907_v0 }
  0xe2   : > { %1110 = vrot.lane.b32.xlu1 %v2305_v46, %s1936_s11  ;;  %1845 = vmatpush1.msra.mxu1 %v2445_v32  ;;  %v1178_v47 = vld [vmem:[#allocation2 + $0x1e] sm:$0xff] }
  0xe3   : > { %v590_v31 = vpop.permute.xlu0 %589  ;;  %1826 = vmatprep.subr.mxu1 %v1907_v0  ;;  %1541 = vmatpush1.msra.mxu0 %v2376_v26  ;;  %1182 = vst.msk [vmem:[#allocation3 + $0x38] sm:$0xff] %vm377_vm0, %v1178_v47  ;;  %vm945_vm0 = vcmask 753344  }
  0xe4   : > { %v786_v54 = vpop.permute.xlu1 %785  ;;  %599 = vst.msk [vmem:[#allocation3 + $0x30] sm:$0xff] %vm595_vm9, %v590_v31  ;;  %vm820_vm9 = vcmask 589344   ;;  %1846 = vmatpush1.msra.mxu1 %v2456_v25  ;;  %1542 = vmatprep.subr.mxu0 %v1907_v0 }
  0xe5   : > { %797 = vst.msk [vmem:[#allocation3 + $0x10] sm:$0xff] %vm795_vm8, %v786_v54  ;;  %1012 = vrot.lane.b32.xlu0 %v2165_v50, %s1932_s26  ;;  %1827 = vmatprep.subr.mxu1 %v1907_v0 }
  0xe6   : > { %1195 = vrot.lane.b32.xlu1 %v2248_v3, %s1908_s15  ;;  %v2467_v3 = vld [vmem:[%s2870_s4 + $0x30] sm:$0xff]  ;;  %1543 = vmatpush1.msra.mxu0 %v2389_v40 }
  0xe7   : > { %v688_v23 = vpop.permute.xlu0 %687  ;;  %1847 = vmatpush1.msra.mxu1 %v2467_v3  ;;  %1544 = vmatprep.subr.mxu0 %v1907_v0  ;;  %v2581_v40 = vld [vmem:[%s2870_s4 + $0x90] sm:$0xff] }
  0xe8   : > { %v709_v61 = vpop.permute.xlu1 %708  ;;  %698 = vst.msk [vmem:[#allocation3 + $0x20] sm:$0xff] %vm695_vm13, %v688_v23  ;;  %1828 = vmatprep.subr.mxu1 %v1907_v0  ;;  %1545 = vmatpush1.msra.mxu0 %v2401_v41 }
  0xe9   : > { %721 = vst.msk [vmem:[#allocation3] sm:$0xff] %vm720_vm14, %v709_v61  ;;  %1191 = vrot.lane.b32.xlu0 %v1183_v56, %s1908_s15  ;;  %1546 = vmatprep.subr.mxu0 %v1907_v0 }
  0xea   : > { %939 = vrot.lane.b32.xlu1 %v2098_v33, %s1929_s23  ;;  %v2482_v33 = vld [vmem:[%s2870_s4 + $0x28] sm:$0xff]  ;;  %1547 = vmatpush1.msra.mxu0 %v2412_v52 }
  0xeb   : > { %v615_v4 = vpop.permute.xlu0 %614  ;;  %1848 = vmatpush1.msra.mxu1 %v2482_v33  ;;  %1548 = vmatprep.subr.mxu0 %v1907_v0 }
  0xec   : > { %v811_v5 = vpop.permute.xlu1 %810  ;;  %624 = vst.msk [vmem:[#allocation3 + $0x30] sm:$0xff] %vm620_vm10, %v615_v4  ;;  %1829 = vmatprep.subr.mxu1 %v1907_v0  ;;  %vm845_vm10 = vcmask 622144   ;;  %1549 = vmatpush1.msra.mxu0 %v2423_v30 }
  0xed   : > { %822 = vst.msk [vmem:[#allocation3 + $0x10] sm:$0xff] %vm820_vm9, %v811_v5  ;;  %1289 = vrot.lane.b32.xlu0 %v2469_v1, %s1912_s19  ;;  %1849 = vmatpush1.msra.mxu1 %v2495_v24 }
  0xee   : > { %1037 = vrot.lane.b32.xlu1 %v2178_v53, %s1933_s30  ;;  %1830 = vmatprep.subr.mxu1 %v1907_v0 }
  0xef   : > { %v713_v9 = vpop.permute.xlu0 %712  ;;  %1850 = vmatpush1.msra.mxu1 %v2512_v14  ;;  %1550 = vmatprep.subr.mxu0 %v1907_v0 }
  0xf0   : > { %v734_v10 = vpop.permute.xlu1 %733  ;;  %723 = vst.msk [vmem:[#allocation3 + $0x20] sm:$0xff] %vm720_vm14, %v713_v9  ;;  %1831 = vmatprep.subr.mxu1 %v1907_v0  ;;  %1551 = vmatpush1.msra.mxu0 %v2435_v51 }
  0xf1   : > { %746 = vst.msk [vmem:[#allocation3] sm:$0xff] %vm745_vm15, %v734_v10  ;;  %1033 = vrot.lane.b32.xlu0 %v2335_v63, %s1933_s30  ;;  %1851 = vmatpush1.msra.mxu1 %v2528_v18  ;;  %v2541_v63 = vld [vmem:[%s2870_s4 + $0x8] sm:$0xff] }
  0xf2   : > { %1215 = vrot.lane.b32.xlu1 %v1207_v7, %s1909_s16  ;;  %1832 = vmatprep.subr.mxu1 %v1907_v0 }
  0xf3   : > { %v640_v13 = vpop.permute.xlu0 %639  ;;  %1852 = vmatpush1.msra.mxu1 %v2541_v63  ;;  %1552 = vmatprep.subr.mxu0 %v1907_v0 }
  0xf4   : > { %v836_v15 = vpop.permute.xlu1 %835  ;;  %649 = vst.msk [vmem:[#allocation3 + $0x30] sm:$0xff] %vm645_vm11, %v640_v13  ;;  %vm870_vm11 = vcmask 654944   ;;  %1833 = vmatprep.subr.mxu1 %v1907_v0  ;;  %1553 = vmatpush1.msra.mxu0 %v2445_v32 }
  0xf5   : > { %847 = vst.msk [vmem:[#allocation3 + $0x10] sm:$0xff] %vm845_vm10, %v836_v15  ;;  %1135 = vrot.lane.b32.xlu0 %v2333_v62, %s1937_s13  ;;  %1853 = vmatpush1.msra.mxu1 %v2555_v20 }
  0xf6   : > { %1313 = vrot.lane.b32.xlu1 %v2514_v19, %s1913_s20  ;;  %1834 = vmatprep.subr.mxu1 %v1907_v0 }
  0xf7   : > { %v738_v12 = vpop.permute.xlu0 %737  ;;  %1554 = vmatprep.subr.mxu0 %v1907_v0 }
  0xf8   : > { %v759_v17 = vpop.permute.xlu1 %758  ;;  %748 = vst.msk [vmem:[#allocation3 + $0x20] sm:$0xff] %vm745_vm15, %v738_v12  ;;  %1555 = vmatpush1.msra.mxu0 %v2456_v25 }
  0xf9   : > { %771 = vst.msk [vmem:[#allocation3] sm:$0xff] %vm770_vm1, %v759_v17  ;;  %1219 = vrot.lane.b32.xlu0 %v2263_v8, %s1909_s16  ;;  %v2567_v8 = vld [vmem:[%s2870_s4 + $0x98] sm:$0xf]  ;;  %1556 = vmatprep.subr.mxu0 %v1907_v0 }
  0xfa   : > { %1058 = vrot.lane.b32.xlu1 %v2363_v11, %s1934_s9  ;;  %1854 = vmatpush2.msk.msra.mxu1 %vm1368_vm7, %v2567_v8 }
  0xfb   : > { %v665_v26 = vpop.permute.xlu0 %664  ;;  %1835 = vmatprep.subr.mxu1 %v1907_v0  ;;  %1557 = vmatpush1.msra.mxu0 %v2467_v3 }
  0xfc   : > { %v861_v22 = vpop.permute.xlu1 %860  ;;  %674 = vst.msk [vmem:[#allocation3 + $0x30] sm:$0xff] %vm670_vm12, %v665_v26  ;;  %vm895_vm12 = vcmask 687744   ;;  %1855 = vmatpush2.msra.mxu1 %v2581_v40  ;;  %1558 = vmatprep.subr.mxu0 %v1907_v0 }
  0xfd   : > { %872 = vst.msk [vmem:[#allocation3 + $0x10] sm:$0xff] %vm870_vm11, %v861_v22  ;;  %964 = vrot.lane.b32.xlu0 %v2115_v37, %s1930_s24  ;;  %v2595_v37 = vld [vmem:[%s2870_s4 + $0x88] sm:$0xff]  ;;  %1836 = vmatprep.subr.mxu1 %v1907_v0 }
  0xfe   : > { %1160 = vrot.lane.b32.xlu1 %v2343_v2, %s1938_s21  ;;  %v1231_v2 = vld [vmem:[#allocation2 + $0x3] sm:$0xff]  ;;  %1856 = vmatpush2.msra.mxu1 %v2595_v37 }
  0xff   : > { %v763_v11 = vpop.permute.xlu0 %762  ;;  %1837 = vmatprep.subr.mxu1 %v1907_v0  ;;  %1559 = vmatpush1.msra.mxu0 %v2482_v33 }
 0x100   : > { %v784_v34 = vpop.permute.xlu1 %783  ;;  %773 = vst.msk [vmem:[#allocation3 + $0x20] sm:$0xff] %vm770_vm1, %v763_v11  ;;  %1560 = vmatprep.subr.mxu0 %v1907_v0 }
 0x101   : > { %796 = vst.msk [vmem:[#allocation3] sm:$0xff] %vm795_vm8, %v784_v34  ;;  %1062 = vrot.lane.b32.xlu0 %v2187_v55, %s1934_s9  ;;  %1561 = vmatpush1.msra.mxu0 %v2495_v24 }
 0x102   : > { %1243 = vrot.lane.b32.xlu1 %v2277_v16, %s1910_s17  ;;  %v2607_v16 = vld [vmem:[%s2870_s4 + $0x80] sm:$0xff]  ;;  %1562 = vmatprep.subr.mxu0 %v1907_v0 }
 0x103   : > { %v690_v48 = vpop.permute.xlu0 %689  ;;  %1857 = vmatpush2.msra.mxu1 %v2607_v16  ;;  %1563 = vmatpush1.msra.mxu0 %v2512_v14 }
 0x104   : > { %v886_v41 = vpop.permute.xlu1 %885  ;;  %699 = vst.msk [vmem:[#allocation3 + $0x30] sm:$0xff] %vm695_vm13, %v690_v48  ;;  %vm920_vm13 = vcmask 720544   ;;  %1564 = vmatprep.subr.mxu0 %v1907_v0 }
 0x105   : > { %897 = vst.msk [vmem:[#allocation3 + $0x10] sm:$0xff] %vm895_vm12, %v886_v41  ;;  %1239 = vrot.lane.b32.xlu0 %v1231_v2, %s1910_s17  ;;  %1565 = vmatpush1.msra.mxu0 %v2528_v18 }
 0x106   : > { %1083 = vrot.lane.b32.xlu1 %v2382_v21, %s1935_s14  ;;  %1566 = vmatprep.subr.mxu0 %v1907_v0 }
 0x107   : > { %v788_v44 = vpop.permute.xlu0 %787  ;;  %1567 = vmatpush1.msra.mxu0 %v2541_v63 }
 0x108   : > { %v809_v52 = vpop.permute.xlu1 %808  ;;  %798 = vst.msk [vmem:[#allocation3 + $0x20] sm:$0xff] %vm795_vm8, %v788_v44  ;;  %1568 = vmatprep.subr.mxu0 %v1907_v0 }
 0x109   : > { %821 = vst.msk [vmem:[#allocation3] sm:$0xff] %vm820_vm9, %v809_v52  ;;  %989 = vrot.lane.b32.xlu0 %v2074_v27, %s1931_s25  ;;  %1569 = vmatpush1.msra.mxu0 %v2555_v20 }
 0x10a   : > { %1263 = vrot.lane.b32.xlu1 %v1255_v43, %s1911_s18  ;;  %1594 = vmatprep.subr.mxu0 %v1907_v0 }
 0x10b   : > { %v715_v21 = vpop.permute.xlu0 %714  ;;  %1795 = vmatpush2.msk.msra.mxu0 %vm1368_vm7, %v2567_v8  ;;  %vm1020_vm7 = vcmask 851744  }
 0x10c   : > { %v911_v49 = vpop.permute.xlu1 %910  ;;  %724 = vst.msk [vmem:[#allocation3 + $0x30] sm:$0xff] %vm720_vm14, %v715_v21  ;;  %vm970_vm14 = vcmask 786144   ;;  %1596 = vmatprep.subr.mxu0 %v1907_v0 }
 0x10d   : > { %922 = vst.msk [vmem:[#allocation3 + $0x10] sm:$0xff] %vm920_vm13, %v911_v49  ;;  %1087 = vrot.lane.b32.xlu0 %v2196_v57, %s1935_s14  ;;  %1597 = vmatpush2.msra.mxu0 %v2581_v40 }
 0x10e   : > { %1014 = vrot.lane.b32.xlu1 %v2082_v28, %s1932_s26  ;;  %v1279_v28 = vld [vmem:[#allocation2 + $0x1] sm:$0xff]  ;;  %1598 = vmatprep.subr.mxu0 %v1907_v0  ;;  %s339_s26 = scalar_lea.vmem %s2873_s7, %s2898_s28 }
 0x10f   : > { %v813_v27 = vpop.permute.xlu0 %812  ;;  %1599 = vmatpush2.msra.mxu0 %v2595_v37 }
 0x110   : > { %v834_v30 = vpop.permute.xlu1 %833  ;;  %823 = vst.msk [vmem:[#allocation3 + $0x20] sm:$0xff] %vm820_vm9, %v813_v27  ;;  %1600 = vmatprep.subr.mxu0 %v1907_v0 }
 0x111   : > { %846 = vst.msk [vmem:[#allocation3] sm:$0xff] %vm845_vm10, %v834_v30  ;;  %1267 = vrot.lane.b32.xlu0 %v2291_v38, %s1911_s18  ;;  %1601 = vmatpush2.msra.mxu0 %v2607_v16 }
 0x112   : > { %1112 = vrot.lane.b32.xlu1 %v2206_v58, %s1936_s11 }
 0x113   : > { %v740_v51 = vpop.permute.xlu0 %739 }
 0x114   : > { %v936_v31 = vpop.permute.xlu1 %935  ;;  %749 = vst.msk [vmem:[#allocation3 + $0x30] sm:$0xff] %vm745_vm15, %v740_v51  ;;  %vm995_vm15 = vcmask 818944  }
 0x115   : > { %947 = vst.msk [vmem:[#allocation3 + $0x10] sm:$0xff] %vm945_vm0, %v936_v31  ;;  %1108 = vrot.lane.b32.xlu0 %v2469_v1, %s1936_s11 }
 0x116   : > { %1287 = vrot.lane.b32.xlu1 %v1279_v28, %s1912_s19 }
 0x117   : > { %v838_v38 = vpop.permute.xlu0 %837 }
 0x118   : > { %v859_v54 = vpop.permute.xlu1 %858  ;;  %848 = vst.msk [vmem:[#allocation3 + $0x20] sm:$0xff] %vm845_vm10, %v838_v38 }
 0x119   : > { %871 = vst.msk [vmem:[#allocation3] sm:$0xff] %vm870_vm11, %v859_v54  ;;  %1197 = vrot.lane.b32.xlu0 %v2165_v50, %s1908_s15 }
 0x11a   : > { %1039 = vrot.lane.b32.xlu1 %v2084_v29, %s1933_s30  ;;  %v1303_v29 = vld [vmem:[#allocation2] sm:$0xff] }
 0x11b   : > { %v765_v32 = vpop.permute.xlu0 %764 }
 0x11c   : > { %v961_v56 = vpop.permute.xlu1 %960  ;;  %774 = vst.msk [vmem:[#allocation3 + $0x30] sm:$0xff] %vm770_vm1, %v765_v32  ;;  %vm1045_vm1 = vcmask 884544  }
 0x11d   : > { %972 = vst.msk [vmem:[#allocation3 + $0x10] sm:$0xff] %vm970_vm14, %v961_v56  ;;  %1291 = vrot.lane.b32.xlu0 %v2305_v46, %s1912_s19 }
 0x11e   : > { %1137 = vrot.lane.b32.xlu1 %v2216_v59, %s1937_s13 }
 0x11f   : > { %v863_v50 = vpop.permute.xlu0 %862 }
 0x120   : > { %v884_v23 = vpop.permute.xlu1 %883  ;;  %873 = vst.msk [vmem:[#allocation3 + $0x20] sm:$0xff] %vm870_vm11, %v863_v50 }
 0x121   : > { %896 = vst.msk [vmem:[#allocation3] sm:$0xff] %vm895_vm12, %v884_v23  ;;  %1133 = vrot.lane.b32.xlu0 %v2514_v19, %s1937_s13 }
 0x122   : > { %1311 = vrot.lane.b32.xlu1 %v1303_v29, %s1913_s20 }
 0x123   : > { %v790_v46 = vpop.permute.xlu0 %789 }
 0x124   : > { %v986_v61 = vpop.permute.xlu1 %985  ;;  %799 = vst.msk [vmem:[#allocation3 + $0x30] sm:$0xff] %vm795_vm8, %v790_v46  ;;  %vm2876_vm8 = vcmask 64512  }
 0x125   : > { %997 = vst.msk [vmem:[#allocation3 + $0x10] sm:$0xff] %vm995_vm15, %v986_v61  ;;  %1221 = vrot.lane.b32.xlu0 %v2178_v53, %s1909_s16  ;;  %v1150_v53 = vld [vmem:[#allocation2 + $0x7] sm:$0xff] }
 0x126   : > { %1064 = vrot.lane.b32.xlu1 %v2106_v35, %s1934_s9  ;;  %1459 = vst.msk [vmem:[#allocation4 + $0x8] sm:$0xff] %vm2876_vm8, %v1907_v0  ;;  %1460 = vst.msk [vmem:[#allocation4 + $0x10] sm:$0xff] %vm2876_vm8, %v1907_v0 }
 0x127   : > { %v888_v25 = vpop.permute.xlu0 %887  ;;  %1458 = vst.msk [vmem:[#allocation4] sm:$0xff] %vm2876_vm8, %v1907_v0  ;;  %1461 = vst.msk [vmem:[#allocation4 + $0x18] sm:$0xff] %vm2876_vm8, %v1907_v0 }
 0x128   : > { %v909_v3 = vpop.permute.xlu1 %908  ;;  %898 = vst.msk [vmem:[#allocation3 + $0x20] sm:$0xff] %vm895_vm12, %v888_v25 }
 0x129   : > { %921 = vst.msk [vmem:[#allocation3] sm:$0xff] %vm920_vm13, %v909_v3  ;;  %1315 = vrot.lane.b32.xlu0 %v2333_v62, %s1913_s20 }
 0x12a   : > { %1162 = vrot.lane.b32.xlu1 %v2226_v60, %s1938_s21 }
 0x12b   : > { %v815_v1 = vpop.permute.xlu0 %814 }
 0x12c   : > { %v1011_v35 = vpop.permute.xlu1 %1010  ;;  %824 = vst.msk [vmem:[#allocation3 + $0x30] sm:$0xff] %vm820_vm9, %v815_v1  ;;  %vm1462_vm9 = vcmask 58368  }
 0x12d   : > { %1022 = vst.msk [vmem:[#allocation3 + $0x10] sm:$0xff] %vm1020_vm7, %v1011_v35  ;;  %1158 = vrot.lane.b32.xlu0 %v1150_v53, %s1938_s21 }
 0x12e   : > { %1089 = vrot.lane.b32.xlu1 %v2108_v36, %s1935_s14  ;;  %1463 = vst.msk [vmem:[#allocation4 + $0x20] sm:$0x3] %vm1462_vm9, %v1907_v0  ;;  %s342_s14 = scalar_lea.vmem %s2874_s8, %s2898_s28 }
 0x12f   : > { %v913_v4 = vpop.permute.xlu0 %912 }
 0x130   : > { %v840_v5 = vpop.permute.xlu1 %839  ;;  %923 = vst.msk [vmem:[#allocation3 + $0x20] sm:$0xff] %vm920_vm13, %v913_v4 }
 0x131   : > { %849 = vst.msk [vmem:[#allocation3 + $0x30] sm:$0xff] %vm845_vm10, %v840_v5  ;;  %1245 = vrot.lane.b32.xlu0 %v2187_v55, %s1910_s17  ;;  %s2721_s17 = scalar_lea.vmem %s2869_s3, %s2014_s29  ;;  %vm1070_vm10 = vcmask 917344  }
 0x132   : > { %1114 = vrot.lane.b32.xlu1 %v2123_v39, %s1936_s11  ;;  %v2732_v39 = vld [vmem:[%s2721_s17] sm:$0xff] }
 0x133   : > { %v1194_v60 = vpop.permute.xlu0 %1193 }
 0x134   : > { %v938_v62 = vpop.permute.xlu1 %937  ;;  %1204 = vst.msk [vmem:[#allocation3 + $0x18] sm:$0xff] %vm420_vm2, %v1194_v60 }
 0x135   : > { %948 = vst.msk [vmem:[#allocation3 + $0x20] sm:$0xff] %vm945_vm0, %v938_v62  ;;  %1269 = vrot.lane.b32.xlu0 %v2196_v57, %s1911_s18  ;;  %v2741_v57 = vld [vmem:[%s2721_s17 + $0x8] sm:$0xff] }
 0x136   : > { %1139 = vrot.lane.b32.xlu1 %v2134_v42, %s1937_s13  ;;  %v1939_v42 = vmov 4294967295  }
 0x137   : > { %v934_v36 = vpop.permute.xlu0 %933  ;;  %1464 = vst.msk [vmem:[#allocation5] sm:$0xff] %vm2876_vm8, %v1939_v42  ;;  %1465 = vst.msk [vmem:[#allocation5 + $0x8] sm:$0xff] %vm2876_vm8, %v1939_v42 }
 0x138   : > { %v1218_v6 = vpop.permute.xlu1 %1217  ;;  %946 = vst.msk [vmem:[#allocation3] sm:$0xff] %vm945_vm0, %v934_v36 }
 0x139   : > { %1228 = vst.msk [vmem:[#allocation3 + $0x18] sm:$0xff] %vm445_vm3, %v1218_v6  ;;  %1293 = vrot.lane.b32.xlu0 %v2206_v58, %s1912_s19  ;;  %v2744_v58 = vld [vmem:[%s2721_s17 + $0x10] sm:$0xff] }
 0x13a   : > { %1164 = vrot.lane.b32.xlu1 %v2145_v45, %s1938_s21  ;;  %1466 = vst.msk [vmem:[#allocation5 + $0x10] sm:$0xff] %vm2876_vm8, %v1939_v42  ;;  %1467 = vst.msk [vmem:[#allocation5 + $0x18] sm:$0xff] %vm2876_vm8, %v1939_v42 }
 0x13b   : > { %v1036_v45 = vpop.permute.xlu0 %1035  ;;  %1473 = vst.msk [vmem:[#allocation5 + $0x1] sm:$0xff] %vm2876_vm8, %v2732_v39  ;;  %1474 = vst.msk [vmem:[#allocation5 + $0x9] sm:$0xff] %vm2876_vm8, %v2741_v57 }
 0x13c   : > { %v959_v55 = vpop.permute.xlu1 %958  ;;  %1047 = vst.msk [vmem:[#allocation3 + $0x10] sm:$0xff] %vm1045_vm1, %v1036_v45 }
 0x13d   : > { %971 = vst.msk [vmem:[#allocation3] sm:$0xff] %vm970_vm14, %v959_v55  ;;  %1317 = vrot.lane.b32.xlu0 %v2216_v59, %s1913_s20  ;;  %s2834_s20 = scalar_lea.vmem %s2872_s6, %s2014_s29 }
 0x13e   : > { %1468 = vst.msk [vmem:[#allocation5 + $0x20] sm:$0x3] %vm1462_vm9, %v1939_v42  ;;  %vm2877_vm9 = vcmask 228544  }
 0x13f   : > { %1475 = vst.msk [vmem:[#allocation5 + $0x11] sm:$0xff] %vm2876_vm8, %v2744_v58  ;;  %v865_v33 = vpop.permute.xlu0 %864  ;;  %vm1522_vm8 = vcmask 228352  }
 0x140   : > { %v1061_v7 = vpop.permute.xlu1 %1060  ;;  %874 = vst.msk [vmem:[#allocation3 + $0x30] sm:$0xff] %vm870_vm11, %v865_v33  ;;  %vm1095_vm11 = vcmask 950144  }
 0x141   : > { %1072 = vst.msk [vmem:[#allocation3 + $0x10] sm:$0xff] %vm1070_vm10, %v1061_v7  ;;  %v1477_v7 = vlaneseq }
 0x143   : > { %v963_v9 = vpop.permute.xlu0 %962 }
 0x144   : > { %v890_v10 = vpop.permute.xlu1 %889  ;;  %973 = vst.msk [vmem:[#allocation3 + $0x20] sm:$0xff] %vm970_vm14, %v963_v9 }
 0x145   : > { %899 = vst.msk [vmem:[#allocation3 + $0x30] sm:$0xff] %vm895_vm12, %v890_v10  ;;  %vm1120_vm12 = vcmask 982944  }
 0x147   : > { %v1242_v0 = vpop.permute.xlu0 %1241 }
 0x148   : > { %v988_v24 = vpop.permute.xlu1 %987  ;;  %1252 = vst.msk [vmem:[#allocation3 + $0x18] sm:$0xff] %vm470_vm4, %v1242_v0  ;;  %v2814_v0 = vshrl.u32 %v1477_v7, 7 }
 0x149   : > { %998 = vst.msk [vmem:[#allocation3 + $0x20] sm:$0xff] %vm995_vm15, %v988_v24 }
 0x14b   : > { %v984_v59 = vpop.permute.xlu0 %983 }
 0x14c   : > { %v1266_v14 = vpop.permute.xlu1 %1265  ;;  %996 = vst.msk [vmem:[#allocation3] sm:$0xff] %vm995_vm15, %v984_v59 }
 0x14d   : > { %1276 = vst.msk [vmem:[#allocation3 + $0x18] sm:$0xff] %vm495_vm5, %v1266_v14  ;;  %v1479_v14 = vadd.s32 8, %v2814_v0 }
 0x14f   : > { %v1086_v19 = vpop.permute.xlu0 %1085 }
 0x150   : > { %v1009_v13 = vpop.permute.xlu1 %1008  ;;  %1097 = vst.msk [vmem:[#allocation3 + $0x10] sm:$0xff] %vm1095_vm11, %v1086_v19  ;;  %v1482_v19 = vld [vmem:[#allocation5] sm:$0xff] }
 0x151   : > { %1021 = vst.msk [vmem:[#allocation3] sm:$0xff] %vm1020_vm7, %v1009_v13  ;;  %v1483_v13 = vld [vmem:[#allocation5 + $0x8] sm:$0xff] }
 0x153   : > { %v915_v15 = vpop.permute.xlu0 %914 }
 0x154   : > { %v1111_v18 = vpop.permute.xlu1 %1110  ;;  %924 = vst.msk [vmem:[#allocation3 + $0x30] sm:$0xff] %vm920_vm13, %v915_v15  ;;  %vm1145_vm13 = vcmask 1015744  }
 0x155   : > { %1122 = vst.msk [vmem:[#allocation3 + $0x10] sm:$0xff] %vm1120_vm12, %v1111_v18 }
 0x157   : > { %v1013_v12 = vpop.permute.xlu0 %1012 }
 0x158   : > { %v1196_v17 = vpop.permute.xlu1 %1195  ;;  %1023 = vst.msk [vmem:[#allocation3 + $0x20] sm:$0xff] %vm1020_vm7, %v1013_v12 }
 0x159   : > { %1205 = vst.msk [vmem:[#allocation3 + $0x28] sm:$0xff] %vm420_vm2, %v1196_v17 }
 0x15b   : > { %v1192_v63 = vpop.permute.xlu0 %1191 }
 0x15c   : > { %v940_v20 = vpop.permute.xlu1 %939  ;;  %1203 = vst.msk [vmem:[#allocation3 + $0x8] sm:$0xff] %vm420_vm2, %v1192_v63 }
 0x15d   : > { %949 = vst.msk [vmem:[#allocation3 + $0x30] sm:$0xff] %vm945_vm0, %v940_v20  ;;  %vm1170_vm0 = vcmask 1048544  }
 0x15f   : > { %v1290_v26 = vpop.permute.xlu0 %1289 }
 0x160   : > { %v1038_v22 = vpop.permute.xlu1 %1037  ;;  %1300 = vst.msk [vmem:[#allocation3 + $0x18] sm:$0xff] %vm520_vm6, %v1290_v26 }
 0x161   : > { %1048 = vst.msk [vmem:[#allocation3 + $0x20] sm:$0xff] %vm1045_vm1, %v1038_v22 }
 0x163   : > { %v1034_v8 = vpop.permute.xlu0 %1033 }
 0x164   : > { %v1216_v11 = vpop.permute.xlu1 %1215  ;;  %1046 = vst.msk [vmem:[#allocation3] sm:$0xff] %vm1045_vm1, %v1034_v8 }
 0x165   : > { %1227 = vst.msk [vmem:[#allocation3 + $0x8] sm:$0xff] %vm445_vm3, %v1216_v11  ;;  %v376_v11 = vld [vmem:[%s2721_s17 + $0x18] sm:$0xff] }
 0x167   : > { %v1136_v34 = vpop.permute.xlu0 %1135 }
 0x168   : > { %v1314_v40 = vpop.permute.xlu1 %1313  ;;  %1147 = vst.msk [vmem:[#allocation3 + $0x10] sm:$0xff] %vm1145_vm13, %v1136_v34  ;;  %v1481_v34 = vadd.s32 24, %v2814_v0 }
 0x169   : > { %1324 = vst.msk [vmem:[#allocation3 + $0x18] sm:$0xff] %vm2877_vm9, %v1314_v40 }
 0x16b   : > { %v1220_v37 = vpop.permute.xlu0 %1219 }
 0x16c   : > { %v1059_v2 = vpop.permute.xlu1 %1058  ;;  %1229 = vst.msk [vmem:[#allocation3 + $0x28] sm:$0xff] %vm445_vm3, %v1220_v37 }
 0x16d   : > { %1071 = vst.msk [vmem:[#allocation3] sm:$0xff] %vm1070_vm10, %v1059_v2 }
 0x16f   : > { %v965_v48 = vpop.permute.xlu0 %964 }
 0x170   : > { %v1161_v41 = vpop.permute.xlu1 %1160  ;;  %v1330_v16 = vld [vmem:[#allocation3 + $0x18] sm:$0xff]  ;;  %974 = vst.msk [vmem:[#allocation3 + $0x30] sm:$0xff] %vm970_vm14, %v965_v48  ;;  %vm2878_vm14 = vmmov %vm2877_vm9 }
 0x171   : > { %1172 = vst.msk [vmem:[#allocation3 + $0x10] sm:$0xff] %vm1170_vm0, %v1161_v41  ;;  %1797 = vmatprep.mubr.msk.f32.mxu1 %vm1522_vm8, %v1330_v16 }
 0x173   : > { %v1063_v43 = vpop.permute.xlu0 %1062 }
 0x174   : > { %v1244_v44 = vpop.permute.xlu1 %1243  ;;  %1073 = vst.msk [vmem:[#allocation3 + $0x20] sm:$0xff] %vm1070_vm10, %v1063_v43 }
 0x175   : > { %1253 = vst.msk [vmem:[#allocation3 + $0x28] sm:$0xff] %vm470_vm4, %v1244_v44 }
 0x177   : > { %v1240_v52 = vpop.permute.xlu0 %1239 }
 0x178   : > { %v1084_v47 = vpop.permute.xlu1 %1083  ;;  %v1329_v21 = vld [vmem:[#allocation3 + $0x10] sm:$0xff]  ;;  %1251 = vst.msk [vmem:[#allocation3 + $0x8] sm:$0xff] %vm470_vm4, %v1240_v52  ;;  %v1480_v52 = vadd.s32 16, %v2814_v0 }
 0x179   : > { %1096 = vst.msk [vmem:[#allocation3] sm:$0xff] %vm1095_vm11, %v1084_v47  ;;  %1608 = vmatmul.mubr.f32.vlgmr.msra.gmra.mxu1 %v1329_v21  ;;  %v1484_v47 = vld [vmem:[#allocation5 + $0x10] sm:$0xff] }
 0x17b   : > { %v990_v49 = vpop.permute.xlu0 %989 }
 0x17c   : > { %v1264_v27 = vpop.permute.xlu1 %1263  ;;  %999 = vst.msk [vmem:[#allocation3 + $0x30] sm:$0xff] %vm995_vm15, %v990_v49 }
 0x17d   : > { %1275 = vst.msk [vmem:[#allocation3 + $0x8] sm:$0xff] %vm495_vm5, %v1264_v27 }
 0x17f   : > { %v1088_v30 = vpop.permute.xlu0 %1087 }
 0x180   : > { %v1015_v28 = vpop.permute.xlu1 %1014  ;;  %1098 = vst.msk [vmem:[#allocation3 + $0x20] sm:$0xff] %vm1095_vm11, %v1088_v30 }
 0x181   : > { %1024 = vst.msk [vmem:[#allocation3 + $0x30] sm:$0xff] %vm1020_vm7, %v1015_v28  ;;  %vm1486_vm7 = vcmp.eq.s32.totalorder %v1482_v19, %v2814_v0 }
 0x183   : > { %v1268_v51 = vpop.permute.xlu0 %1267 }
 0x184   : > { %v1113_v31 = vpop.permute.xlu1 %1112  ;;  %1277 = vst.msk [vmem:[#allocation3 + $0x28] sm:$0xff] %vm495_vm5, %v1268_v51  ;;  %v1506_v51 = vld [vmem:[#allocation5 + $0x2] sm:$0xff] }
 0x185   : > { %1123 = vst.msk [vmem:[#allocation3 + $0x20] sm:$0xff] %vm1120_vm12, %v1113_v31 }
 0x187   : > { %v1109_v38 = vpop.permute.xlu0 %1108 }
 0x188   : > { %v1288_v54 = vpop.permute.xlu1 %1287  ;;  %1121 = vst.msk [vmem:[#allocation3] sm:$0xff] %vm1120_vm12, %v1109_v38 }
 0x189   : > { %1299 = vst.msk [vmem:[#allocation3 + $0x8] sm:$0xff] %vm520_vm6, %v1288_v54 }
 0x18b   : > { %v1198_v32 = vpop.permute.xlu0 %1197 }
 0x18c   : > { %v1040_v56 = vpop.permute.xlu1 %1039  ;;  %1206 = vst.msk [vmem:[#allocation3 + $0x38] sm:$0xff] %vm420_vm2, %v1198_v32  ;;  %vm2879_vm2 = vmmov %vm2877_vm9 }
 0x18d   : > { %1049 = vst.msk [vmem:[#allocation3 + $0x30] sm:$0xff] %vm1045_vm1, %v1040_v56  ;;  %vm1487_vm1 = vcmp.eq.s32.totalorder %v1483_v13, %v1479_v14 }
 0x18f   : > { %v1292_v29 = vpop.permute.xlu0 %1291 }
 0x190   : > { %v1138_v50 = vpop.permute.xlu1 %1137  ;;  %1301 = vst.msk [vmem:[#allocation3 + $0x28] sm:$0xff] %vm520_vm6, %v1292_v29 }
 0x191   : > { %1148 = vst.msk [vmem:[#allocation3 + $0x20] sm:$0xff] %vm1145_vm13, %v1138_v50 }
 0x193   : > { %v1134_v23 = vpop.permute.xlu0 %1133 }
 0x194   : > { %v1312_v46 = vpop.permute.xlu1 %1311  ;;  %1146 = vst.msk [vmem:[#allocation3] sm:$0xff] %vm1145_vm13, %v1134_v23 }
 0x195   : > { %1323 = vst.msk [vmem:[#allocation3 + $0x8] sm:$0xff] %vm2878_vm14, %v1312_v46  ;;  %vm1488_vm14 = vcmp.eq.s32.totalorder %v1484_v47, %v1480_v52 }
 0x197   : > { %v1222_v61 = vpop.permute.xlu0 %1221 }
 0x198   : > { %v1065_v25 = vpop.permute.xlu1 %1064  ;;  %1230 = vst.msk [vmem:[#allocation3 + $0x38] sm:$0xff] %vm445_vm3, %v1222_v61  ;;  %vm2880_vm3 = vmmov %vm2879_vm2 }
 0x199   : > { %1074 = vst.msk [vmem:[#allocation3 + $0x30] sm:$0xff] %vm1070_vm10, %v1065_v25  ;;  %v1814_v10 = vpop.f32.mrf.mxu0  ;;  %vm1498_vm10 = vcmp.eq.s32.totalorder %v2732_v39, %v2814_v0 }
 0x19b   : > { %v1316_v3 = vpop.permute.xlu0 %1315  ;;  %v1438_v24 = vpop.f32.mrf.mxu0 }
 0x19c   : > { %v1163_v53 = vpop.permute.xlu1 %1162  ;;  %v1328_v1 = vld [vmem:[#allocation3 + $0x8] sm:$0xff]  ;;  %1325 = vst.msk [vmem:[#allocation3 + $0x28] sm:$0xff] %vm2879_vm2, %v1316_v3  ;;  %vm1500_vm2 = vcmp.eq.s32.totalorder %v2744_v58, %v1480_v52 }
 0x19d   : > { %1173 = vst.msk [vmem:[#allocation3 + $0x20] sm:$0xff] %vm1170_vm0, %v1163_v53  ;;  %1796 = vmatprep.mubr.msk.f32.mxu0 %vm1522_vm8, %v1328_v1 }
 0x19f   : > { %v1159_v35 = vpop.permute.xlu0 %1158  ;;  %v1817_v59 = vpop.f32.mrf.mxu0 }
 0x1a0   : > { %v1090_v4 = vpop.permute.xlu1 %1089  ;;  %1171 = vst.msk [vmem:[#allocation3] sm:$0xff] %vm1170_vm0, %v1159_v35 }
 0x1a1   : > { %1099 = vst.msk [vmem:[#allocation3 + $0x30] sm:$0xff] %vm1095_vm11, %v1090_v4  ;;  %v1448_v15 = vpop.f32.mrf.mxu0  ;;  %vm1499_vm11 = vcmp.eq.s32.totalorder %v2741_v57, %v1479_v14  ;;  %v1507_v57 = vld [vmem:[#allocation5 + $0xa] sm:$0xff] }
 0x1a2   : > { %vm1511_vm9 = vcmp.eq.s32.totalorder %v1507_v57, %v1479_v14 }
 0x1a3   : > { %v1246_v5 = vpop.permute.xlu0 %1245  ;;  %v1332_v60 = vld [vmem:[#allocation3 + $0x28] sm:$0xff] }
 0x1a4   : > { %v1331_v62 = vld [vmem:[#allocation3 + $0x20] sm:$0xff]  ;;  %v1115_v36 = vpop.permute.xlu1 %1114  ;;  %1254 = vst.msk [vmem:[#allocation3 + $0x38] sm:$0xff] %vm470_vm4, %v1246_v5  ;;  %1798 = vmatprep.mubr.msk.f32.mxu1 %vm1522_vm8, %v1332_v60  ;;  %vm2881_vm4 = vcmask 64512  }
 0x1a5   : > { %1124 = vst.msk [vmem:[#allocation3 + $0x30] sm:$0xff] %vm1120_vm12, %v1115_v36  ;;  %1613 = vmatmul.mubr.f32.gmra.mxu1 %v1331_v62  ;;  %vm2883_vm15 = vmmov %vm2881_vm4 }
 0x1a6   : > { %1470 = vst.msk [vmem:[#allocation4 + $0x9] sm:$0xff] %vm2881_vm4, %v1814_v10  ;;  %vm2885_vm12 = vmmov %vm2881_vm4 }
 0x1a7   : > { %v1270_v6 = vpop.permute.xlu0 %1269  ;;  %v1327_v42 = vld [vmem:[#allocation3] sm:$0xff]  ;;  %1472 = vst.msk [vmem:[#allocation4 + $0x19] sm:$0xff] %vm2883_vm15, %v1817_v59 }
 0x1a8   : > { %v1140_v45 = vpop.permute.xlu1 %1139  ;;  %1278 = vst.msk [vmem:[#allocation3 + $0x38] sm:$0xff] %vm495_vm5, %v1270_v6  ;;  %1603 = vmatmul.mubr.f32.vlgmr.msra.gmra.mxu0 %v1327_v42  ;;  %vm2882_vm5 = vmmov %vm2881_vm4 }
 0x1a9   : > { %1149 = vst.msk [vmem:[#allocation3 + $0x30] sm:$0xff] %vm1145_vm13, %v1140_v45  ;;  %vm1501_vm13 = vcmp.eq.s32.totalorder %v376_v11, %v1481_v34 }
 0x1aa   : > { %1469 = vst.msk [vmem:[#allocation4 + $0x1] sm:$0xff] %vm2882_vm5, %v1438_v24 }
 0x1ab   : > { %v1294_v55 = vpop.permute.xlu0 %1293  ;;  %1476 = vst.msk [vmem:[#allocation5 + $0x19] sm:$0xff] %vm2885_vm12, %v376_v11 }
 0x1ac   : > { %v1165_v33 = vpop.permute.xlu1 %1164  ;;  %1302 = vst.msk [vmem:[#allocation3 + $0x38] sm:$0xff] %vm520_vm6, %v1294_v55  ;;  %vm2884_vm6 = vmmov %vm2881_vm4 }
 0x1ad   : > { %1174 = vst.msk [vmem:[#allocation3 + $0x30] sm:$0xff] %vm1170_vm0, %v1165_v33  ;;  %vm2886_vm0 = vmmov %vm2881_vm4  ;;  %vm1510_vm4 = vcmp.eq.s32.totalorder %v1506_v51, %v2814_v0 }
 0x1ae   : > { %1471 = vst.msk [vmem:[#allocation4 + $0x11] sm:$0xff] %vm2884_vm6, %v1448_v15  ;;  %vm2887_vm5 = vmmov %vm2886_vm0  ;;  %v1517_v45 = vld [vmem:[#allocation4 + $0x1a] sm:$0xff] }
 0x1af   : > { %v1318_v9 = vpop.permute.xlu0 %1317  ;;  %vm2888_vm15 = vmmov %vm2886_vm0 }
 0x1b0   : > { %1326 = vst.msk [vmem:[#allocation3 + $0x38] sm:$0xff] %vm2880_vm3, %v1318_v9  ;;  %vm2889_vm6 = vmmov %vm2886_vm0 }
 0x1b1   : > { %v1490_v17 = vld [vmem:[#allocation4] sm:$0xff]  ;;  %v1491_v63 = vld [vmem:[#allocation4 + $0x8] sm:$0xff]  ;;  %vm2894_vm12 = vmmov %vm2886_vm0 }
 0x1b2   : > { %v1494_v20 = vsel %vm1486_vm7, %v1490_v17, 0.0  ;;  %v1495_v26 = vsel %vm1487_vm1, %v1491_v63, 0.0  ;;  %v1485_v40 = vld [vmem:[#allocation5 + $0x18] sm:$0xff]  ;;  %vm2890_vm7 = vmmov %vm2886_vm0 }
 0x1b3   : > { %v1502_v22 = vsel %vm1498_vm10, %v1438_v24, %v1494_v20  ;;  %v1503_v8 = vsel %vm1499_vm11, %v1814_v10, %v1495_v26  ;;  %v1508_v27 = vld [vmem:[#allocation5 + $0x12] sm:$0xff]  ;;  %v1514_v54 = vld [vmem:[#allocation4 + $0x2] sm:$0xff]  ;;  %vm2891_vm1 = vmmov %vm2886_vm0 }
 0x1b4   : > { %v1333_v18 = vld [vmem:[#allocation3 + $0x30] sm:$0xff]  ;;  %vm1512_vm3 = vcmp.eq.s32.totalorder %v1508_v27, %v1480_v52  ;;  %v1518_v29 = vsel %vm1510_vm4, %v1514_v54, %v1502_v22  ;;  %vm2892_vm10 = vmmov %vm2886_vm0  ;;  %v1509_v42 = vld [vmem:[#allocation5 + $0x1a] sm:$0xff] }
 0x1b5   : > { %v1493_v37 = vld [vmem:[#allocation4 + $0x18] sm:$0xff]  ;;  %v1515_v48 = vld [vmem:[#allocation4 + $0xa] sm:$0xff]  ;;  %vm2893_vm11 = vmmov %vm2886_vm0 }
 0x1b6   : > { %v1519_v41 = vsel %vm1511_vm9, %v1515_v48, %v1503_v8  ;;  %v1492_v21 = vld [vmem:[#allocation4 + $0x10] sm:$0xff]  ;;  %vm2896_vm9 = vmmov %vm2886_vm0 }
 0x1b7   : > { %v1334_v12 = vld [vmem:[#allocation3 + $0x38] sm:$0xff]  ;;  %v1496_v49 = vsel %vm1488_vm14, %v1492_v21, 0.0  ;;  %vm1640_vm14 = vcmask 57344  }
 0x1b8   : > { %1799 = vmatprep.mubr.msk.f32.mxu1 %vm1522_vm8, %v1334_v12  ;;  %vm1489_vm8 = vcmp.eq.s32.totalorder %v1485_v40, %v1481_v34  ;;  %v1504_v30 = vsel %vm1500_vm2, %v1448_v15, %v1496_v49  ;;  %v1516_v28 = vld [vmem:[#allocation4 + $0x12] sm:$0xff] }
 0x1b9   : > { %1618 = vmatmul.mubr.f32.gmra.mxu1 %v1333_v18  ;;  %v1497_v2 = vsel %vm1489_vm8, %v1493_v37, 0.0  ;;  %v1520_v31 = vsel %vm1512_vm3, %v1516_v28, %v1504_v30  ;;  %vm1513_vm8 = vcmp.eq.s32.totalorder %v1509_v42, %v1481_v34 }
 0x1ba   : > { %v1505_v39 = vsel %vm1501_vm13, %v1817_v59, %v1497_v2  ;;  %vm2895_vm13 = vmmov %vm2886_vm0 }
 0x1bb   : > { %v1521_v55 = vsel %vm1513_vm8, %v1517_v45, %v1505_v39 }
 0x239   : > { %v1609_v16 = vpop.f32.mrf.mxu1 }
 0x23a   : > { %v1610_v43 = vadd.f32 %v1609_v16, %v1519_v41 }
 0x23b   : > { %v1611_v44 = vpop.f32.mrf.mxu1 }
 0x23c   : > { %1624 = vst.msk [vmem:[%s2834_s20 + $0x8] sm:$0xff] %vm2886_vm0, %v1610_v43  ;;  %v1643_v23 = vmul.f32 %v1610_v43, %v1610_v43  ;;  %v1628_v61 = vsel %vm2888_vm15, %v1610_v43, 0.0 }
 0x23e   : > { %v1647_v35 = vsel %vm2891_vm1, %v1643_v23, 0.0 }
 0x265   : > { %v1614_v38 = vpop.f32.mrf.mxu1 }
 0x266   : > { %v1615_v32 = vadd.f32 %v1614_v38, %v1520_v31 }
 0x267   : > { %v1616_v56 = vpop.f32.mrf.mxu1 }
 0x268   : > { %1625 = vst.msk [vmem:[%s2834_s20 + $0x10] sm:$0xff] %vm2887_vm5, %v1615_v32  ;;  %v1604_v50 = vpop.f32.mrf.mxu0  ;;  %v1644_v25 = vmul.f32 %v1615_v32, %v1615_v32  ;;  %v1630_v4 = vsel %vm2892_vm10, %v1615_v32, 0.0 }
 0x269   : > { %v1605_v46 = vadd.f32 %v1604_v50, %v1518_v29 }
 0x26a   : > { %v1606_v58 = vpop.f32.mrf.mxu0  ;;  %v1649_v36 = vsel %vm2894_vm12, %v1644_v25, 0.0 }
 0x26b   : > { %1623 = vst.msk [vmem:[%s2834_s20] sm:$0xff] %vm2889_vm6, %v1605_v46  ;;  %v1627_v3 = vsel %vm2890_vm7, %v1605_v46, 0.0  ;;  %v1642_v53 = vmul.f32 %v1605_v46, %v1605_v46 }
 0x26c   : > { %v1629_v1 = vadd.f32 %v1628_v61, %v1627_v3 }
 0x26d   : > { %v1646_v5 = vsel %vm2893_vm11, %v1642_v53, 0.0 }
 0x26e   : > { %v1648_v60 = vadd.f32 %v1647_v35, %v1646_v5  ;;  %v1631_v62 = vadd.f32 %v1630_v4, %v1629_v1 }
 0x270   : > { %v1650_v6 = vadd.f32 %v1649_v36, %v1648_v60 }
 0x279   : > { %v1619_v33 = vpop.f32.mrf.mxu1 }
 0x27a   : > { %v1620_v7 = vadd.f32 %v1619_v33, %v1521_v55 }
 0x27b   : > { %v1621_v9 = vpop.f32.mrf.mxu1 }
 0x27c   : > { %1626 = vst.msk [vmem:[%s2834_s20 + $0x18] sm:$0xff] %vm2895_vm13, %v1620_v7  ;;  %v1632_v10 = vsel %vm2896_vm9, %v1620_v7, 0.0  ;;  %v1645_v0 = vmul.f32 %v1620_v7, %v1620_v7 }
 0x27d   : > { %v1633_v24 = vadd.f32 %v1632_v10, %v1631_v62 }
 0x27e   : > { %v1651_v59 = vsel %vm2886_vm0, %v1645_v0, 0.0 }
 0x27f   : > { %v1634_v14 = vrot.slane %v1633_v24, 4  ;;  %v1652_v19 = vadd.f32 %v1651_v59, %v1650_v6 }
 0x281   : > { %v1635_v13 = vadd.f32 %v1634_v14, %v1633_v24  ;;  %v1653_v15 = vrot.slane %v1652_v19, 4 }
 0x283   : > { %v1636_v18 = vrot.slane %v1635_v13, 2  ;;  %v1654_v12 = vadd.f32 %v1653_v15, %v1652_v19 }
 0x285   : > { %v1637_v17 = vadd.f32 %v1636_v18, %v1635_v13  ;;  %v1655_v63 = vrot.slane %v1654_v12, 2 }
 0x287   : > { %v1638_v20 = vrot.slane %v1637_v17, 1  ;;  %v1656_v26 = vadd.f32 %v1655_v63, %v1654_v12 }
 0x289   : > { %v1639_v22 = vadd.f32 %v1638_v20, %v1637_v17  ;;  %v1657_v8 = vrot.slane %v1656_v26, 1 }
 0x28b   : > { %1641 = vst.msk [vmem:[%s339_s26] sm:$0x1] %vm1640_vm14, %v1639_v22  ;;  %v1658_v11 = vadd.f32 %v1657_v8, %v1656_v26 }
 0x28d   : > { %1659 = vst.msk [vmem:[%s342_s14] sm:$0x1] %vm1640_vm14, %v1658_v11 }
 0x28e PF: > { %s19_s27 = sadd.s32 1, %s1905_s27  }
 0x28f   : > { %p16_p4 = scmp.ge.s32.totalorder %s19_s27, 4  }
 0x291   :  { %18 = sbr.rel (!%p16_p4) target bundleno = 1 (0x1), region = 101 }

</bundles_post_ra>
